<compile_context>
chip_gen: v7x
topology: tpu7x:2x2x1
jax: 0.10.0
libtpu: 0.0.40
codegen_flags: <defaults>
</compile_context>

<pallas_src>
import functools

import jax
import jax.numpy as jnp
import numpy as np
from jax.experimental import pallas as pl
from jax.experimental.pallas import tpu as pltpu

NEURONS = 512        # hidden width baked into MLP_Time
LANE = 128           # TPU lane width


def _pad_axis_to(x, multiple, axis):
    pad = (-x.shape[axis]) % multiple
    if pad == 0:
        return x
    widths = [(0, 0)] * x.ndim
    widths[axis] = (0, pad)
    return jnp.pad(x, widths)


def _choose_tile_b(batch):
    # Largest of {512, 256, 128} that still leaves >= 2 grid steps, so the
    # "parallel" batch axis can be sharded across v7x's two TensorCores.
    for t in (512, 256, 128):
        if batch >= 2 * t:
            return t
    return 128


# --------------------------------------------------------------------------
# Kernel: one batch tile through the whole MLP (weights resident in VMEM).
# bf16 operands into the MXU, f32 accumulation, f32 bias add, bf16 re-cast.
# --------------------------------------------------------------------------
def mlp_time_kernel(x_ref, w1_ref, b1_ref, w2_ref, b2_ref, w3_ref, b3_ref,
                    w4_ref, b4_ref, o_ref):
    h = jnp.dot(x_ref[...], w1_ref[...], preferred_element_type=jnp.float32)
    h = jnp.maximum(h + b1_ref[...], 0.0).astype(jnp.bfloat16)

    h = jnp.dot(h, w2_ref[...], preferred_element_type=jnp.float32)
    h = jnp.maximum(h + b2_ref[...], 0.0).astype(jnp.bfloat16)

    h = jnp.dot(h, w3_ref[...], preferred_element_type=jnp.float32)
    h = jnp.maximum(h + b3_ref[...], 0.0).astype(jnp.bfloat16)

    out = jnp.dot(h, w4_ref[...], preferred_element_type=jnp.float32) + b4_ref[...]
    o_ref[...] = out.astype(o_ref.dtype)


# --------------------------------------------------------------------------
# One-time weight preprocessing (outside the per-call path).
#   Weights stored (in_dim, out_dim) bf16 so the kernel computes x @ W + b
#   (== torch's x @ W.T + b with W of shape (out, in)).  W1's contraction
#   dim is zero-padded to a lane multiple; W4/b4 are lane-padded on the
#   output dim; biases stay f32 (added post-accumulation).
# --------------------------------------------------------------------------
def prepare_params(w1, b1, w2, b2, w3, b3, w4, b4):
    return dict(
        w1=_pad_axis_to(w1.astype(jnp.bfloat16), LANE, axis=0),
        b1=b1.reshape(1, -1).astype(jnp.float32),
        w2=w2.astype(jnp.bfloat16),
        b2=b2.reshape(1, -1).astype(jnp.float32),
        w3=w3.astype(jnp.bfloat16),
        b3=b3.reshape(1, -1).astype(jnp.float32),
        w4=_pad_axis_to(w4.astype(jnp.bfloat16), LANE, axis=1),
        b4=_pad_axis_to(b4.reshape(1, -1).astype(jnp.float32), LANE, axis=1),
        out_dim=w4.shape[1],
    )


# --------------------------------------------------------------------------
# Fused forward.  Returns the lane-padded (Bp, out_pad) f32 slab; slice
# [:B, :out_dim] lazily at the consumer (keeps the hot path free of an extra
# HBM round trip on the padded buffer).
# --------------------------------------------------------------------------
@functools.partial(jax.jit, static_argnames=("single_buffer_weights",))
def mlp_time_pallas_padded(x, w1, b1, w2, b2, w3, b3, w4, b4,
                           *, single_buffer_weights=True):
    B, _ = x.shape
    k_pad = w1.shape[0]          # in_dim padded to a multiple of 128
    out_pad = w4.shape[1]        # out_dim padded to a multiple of 128

    tile_b = _choose_tile_b(B)
    xp = _pad_axis_to(x.astype(jnp.bfloat16), LANE, axis=1)   # K: in_dim -> k_pad
    xp = _pad_axis_to(xp, tile_b, axis=0)                     # batch -> Bp
    Bp = xp.shape[0]
    grid = (Bp // tile_b,)

    const = lambda i: (0, 0)     # weight/bias blocks never change -> no re-DMA

    def wspec(shape):
        if single_buffer_weights:
            return pl.BlockSpec(shape, const, pipeline_mode=pl.Buffered(1))
        return pl.BlockSpec(shape, const)

    out = pl.pallas_call(
        mlp_time_kernel,
        out_shape=jax.ShapeDtypeStruct((Bp, out_pad), jnp.float32),
        grid_spec=pltpu.PrefetchScalarGridSpec(
            num_scalar_prefetch=0,
            grid=grid,
            in_specs=[
                pl.BlockSpec((tile_b, k_pad), lambda i: (i, 0)),  # x tile (bf16)
                wspec((k_pad, NEURONS)),                          # W1
                wspec((1, NEURONS)),                              # b1
                wspec((NEURONS, NEURONS)),                        # W2
                wspec((1, NEURONS)),                              # b2
                wspec((NEURONS, NEURONS)),                        # W3
                wspec((1, NEURONS)),                              # b3
                wspec((NEURONS, out_pad)),                        # W4 (lane-padded)
                wspec((1, out_pad)),                              # b4 (lane-padded)
            ],
            out_specs=pl.BlockSpec((tile_b, out_pad), lambda i: (i, 0)),
        ),
        compiler_params=pltpu.CompilerParams(
            dimension_semantics=("parallel",),     # shard batch tiles across TCs (v7x)
            vmem_limit_bytes=32 * 1024 * 1024,     # covers v5e's 16 MiB default limit
        ),
    )(xp, w1, b1, w2, b2, w3, b3, w4, b4)
    return out


def mlp_time_pallas(x, params, **kw):
    """Module-equivalent convenience API: returns the (B, out_dim) result."""
    out = mlp_time_pallas_padded(
        x, params["w1"], params["b1"], params["w2"], params["b2"],
        params["w3"], params["b3"], params["w4"], params["b4"], **kw)
    return out[: x.shape[0], : params["out_dim"]]


# --------------------------------------------------------------------------
# Pure-JAX reference (validation only, f32 weights).
# --------------------------------------------------------------------------
def mlp_time_ref(x, w1, b1, w2, b2, w3, b3, w4, b4):
    h = jnp.maximum(x @ w1 + b1, 0.0)
    h = jnp.maximum(h @ w2 + b2, 0.0)
    h = jnp.maximum(h @ w3 + b3, 0.0)
    return h @ w4 + b4


if __name__ == "__main__":
    # batch=512 -> TILE_B=256, 2 "parallel" grid steps (both v7x TCs busy).
    input_dim, output_dim, batch = 16, 8, 512

    key = jax.random.PRNGKey(0)
    ks = jax.random.split(key, 9)

    def linear_init(kw, kb, fan_in, fan_out):
        # matches nn.Linear default U(-1/sqrt(fan_in), 1/sqrt(fan_in))
        bound = 1.0 / np.sqrt(fan_in)
        w = jax.random.uniform(kw, (fan_in, fan_out), jnp.float32, -bound, bound)
        b = jax.random.uniform(kb, (fan_out,), jnp.float32, -bound, bound)
        return w, b

    w1, b1 = linear_init(ks[0], ks[1], input_dim, NEURONS)
    w2, b2 = linear_init(ks[2], ks[3], NEURONS, NEURONS)
    w3, b3 = linear_init(ks[4], ks[5], NEURONS, NEURONS)
    w4, b4 = linear_init(ks[6], ks[7], NEURONS, output_dim)
    x = jax.random.normal(ks[8], (batch, input_dim), jnp.float32)

    params = prepare_params(w1, b1, w2, b2, w3, b3, w4, b4)
    args = (x, params["w1"], params["b1"], params["w2"], params["b2"],
            params["w3"], params["b3"], params["w4"], params["b4"])

    try:
        out_padded = jax.block_until_ready(
            mlp_time_pallas_padded(*args, single_buffer_weights=True))
    except Exception:
        # Some JAX builds reject buffer_count=1; default double-buffering is
        # functionally identical (constant index_map already avoids re-DMA).
        out_padded = jax.block_until_ready(
            mlp_time_pallas_padded(*args, single_buffer_weights=False))

    # Lazy consumer-side slice of the lane-padded slab.
    out = np.asarray(out_padded)[:batch, :output_dim]

    ref = np.asarray(mlp_time_ref(x, w1, b1[None, :], w2, b2[None, :],
                                  w3, b3[None, :], w4, b4[None, :]))
    # bf16 MXU operands with f32 accumulation: ~1e-2 relative drift expected.
    np.testing.assert_allclose(out, ref, rtol=2e-2, atol=2e-2)

    print("KERNEL_OK")
</pallas_src>

<mosaic_0001>
module attributes {stable_mosaic.version = 11 : i64} {
  func.func @mlp_time_kernel(%arg0: i32, %arg1: memref<256x128xbf16, #tpu.memory_space<vmem>>, %arg2: memref<128x512xbf16, #tpu.memory_space<vmem>>, %arg3: memref<1x512xf32, #tpu.memory_space<vmem>>, %arg4: memref<512x512xbf16, #tpu.memory_space<vmem>>, %arg5: memref<1x512xf32, #tpu.memory_space<vmem>>, %arg6: memref<512x512xbf16, #tpu.memory_space<vmem>>, %arg7: memref<1x512xf32, #tpu.memory_space<vmem>>, %arg8: memref<512x128xbf16, #tpu.memory_space<vmem>>, %arg9: memref<1x128xf32, #tpu.memory_space<vmem>>, %arg10: memref<256x128xf32, #tpu.memory_space<vmem>>) attributes {dimension_semantics = [#tpu.dimension_semantics<parallel>], iteration_bounds = array<i64: 2>, scalar_prefetch = 0 : i64, scratch_operands = 0 : i64, tpu.core_type = #tpu.core_type<tc>, window_params = [{transform_indices = @transform_0, window_bounds = array<i64: 256, 128>}, {pipeline_mode = #tpu.pipeline_mode<synchronous>, transform_indices = @transform_1, window_bounds = array<i64: 128, 512>}, {pipeline_mode = #tpu.pipeline_mode<synchronous>, transform_indices = @transform_2, window_bounds = array<i64: 1, 512>}, {pipeline_mode = #tpu.pipeline_mode<synchronous>, transform_indices = @transform_3, window_bounds = array<i64: 512, 512>}, {pipeline_mode = #tpu.pipeline_mode<synchronous>, transform_indices = @transform_4, window_bounds = array<i64: 1, 512>}, {pipeline_mode = #tpu.pipeline_mode<synchronous>, transform_indices = @transform_5, window_bounds = array<i64: 512, 512>}, {pipeline_mode = #tpu.pipeline_mode<synchronous>, transform_indices = @transform_6, window_bounds = array<i64: 1, 512>}, {pipeline_mode = #tpu.pipeline_mode<synchronous>, transform_indices = @transform_7, window_bounds = array<i64: 512, 128>}, {pipeline_mode = #tpu.pipeline_mode<synchronous>, transform_indices = @transform_8, window_bounds = array<i64: 1, 128>}, {transform_indices = @transform_9, window_bounds = array<i64: 256, 128>}]} {
    %c0 = arith.constant 0 : index
    %c0_0 = arith.constant 0 : index
    %0 = vector.load %arg1[%c0, %c0_0] : memref<256x128xbf16, #tpu.memory_space<vmem>>, vector<256x128xbf16>
    %c0_1 = arith.constant 0 : index
    %c0_2 = arith.constant 0 : index
    %1 = vector.load %arg2[%c0_1, %c0_2] : memref<128x512xbf16, #tpu.memory_space<vmem>>, vector<128x512xbf16>
    %cst = arith.constant dense<0.000000e+00> : vector<256x512xf32>
    %2 = tpu.matmul %0, %1, %cst {dimension_numbers = #tpu.dot_dimension_numbers<[1], [0], [0], [1], [0, 0, 1, 1], [], []>} : vector<256x128xbf16>, vector<128x512xbf16>, vector<256x512xf32> -> vector<256x512xf32>
    %c0_3 = arith.constant 0 : index
    %c0_4 = arith.constant 0 : index
    %3 = vector.load %arg3[%c0_3, %c0_4] : memref<1x512xf32, #tpu.memory_space<vmem>>, vector<1x512xf32>
    %4 = vector.broadcast %3 : vector<1x512xf32> to vector<256x512xf32>
    %5 = arith.addf %2, %4 : vector<256x512xf32>
    %cst_5 = arith.constant 0.000000e+00 : f32
    %6 = vector.broadcast %cst_5 : f32 to vector<256x512xf32>
    %7 = arith.maximumf %5, %6 : vector<256x512xf32>
    %8 = arith.truncf %7 : vector<256x512xf32> to vector<256x512xbf16>
    %c0_6 = arith.constant 0 : index
    %c0_7 = arith.constant 0 : index
    %9 = vector.load %arg4[%c0_6, %c0_7] : memref<512x512xbf16, #tpu.memory_space<vmem>>, vector<512x512xbf16>
    %cst_8 = arith.constant dense<0.000000e+00> : vector<256x512xf32>
    %10 = tpu.matmul %8, %9, %cst_8 {dimension_numbers = #tpu.dot_dimension_numbers<[1], [0], [0], [1], [0, 0, 1, 1], [], []>} : vector<256x512xbf16>, vector<512x512xbf16>, vector<256x512xf32> -> vector<256x512xf32>
    %c0_9 = arith.constant 0 : index
    %c0_10 = arith.constant 0 : index
    %11 = vector.load %arg5[%c0_9, %c0_10] : memref<1x512xf32, #tpu.memory_space<vmem>>, vector<1x512xf32>
    %12 = vector.broadcast %11 : vector<1x512xf32> to vector<256x512xf32>
    %13 = arith.addf %10, %12 : vector<256x512xf32>
    %cst_11 = arith.constant 0.000000e+00 : f32
    %14 = vector.broadcast %cst_11 : f32 to vector<256x512xf32>
    %15 = arith.maximumf %13, %14 : vector<256x512xf32>
    %16 = arith.truncf %15 : vector<256x512xf32> to vector<256x512xbf16>
    %c0_12 = arith.constant 0 : index
    %c0_13 = arith.constant 0 : index
    %17 = vector.load %arg6[%c0_12, %c0_13] : memref<512x512xbf16, #tpu.memory_space<vmem>>, vector<512x512xbf16>
    %cst_14 = arith.constant dense<0.000000e+00> : vector<256x512xf32>
    %18 = tpu.matmul %16, %17, %cst_14 {dimension_numbers = #tpu.dot_dimension_numbers<[1], [0], [0], [1], [0, 0, 1, 1], [], []>} : vector<256x512xbf16>, vector<512x512xbf16>, vector<256x512xf32> -> vector<256x512xf32>
    %c0_15 = arith.constant 0 : index
    %c0_16 = arith.constant 0 : index
    %19 = vector.load %arg7[%c0_15, %c0_16] : memref<1x512xf32, #tpu.memory_space<vmem>>, vector<1x512xf32>
    %20 = vector.broadcast %19 : vector<1x512xf32> to vector<256x512xf32>
    %21 = arith.addf %18, %20 : vector<256x512xf32>
    %cst_17 = arith.constant 0.000000e+00 : f32
    %22 = vector.broadcast %cst_17 : f32 to vector<256x512xf32>
    %23 = arith.maximumf %21, %22 : vector<256x512xf32>
    %24 = arith.truncf %23 : vector<256x512xf32> to vector<256x512xbf16>
    %c0_18 = arith.constant 0 : index
    %c0_19 = arith.constant 0 : index
    %25 = vector.load %arg8[%c0_18, %c0_19] : memref<512x128xbf16, #tpu.memory_space<vmem>>, vector<512x128xbf16>
    %cst_20 = arith.constant dense<0.000000e+00> : vector<256x128xf32>
    %26 = tpu.matmul %24, %25, %cst_20 {dimension_numbers = #tpu.dot_dimension_numbers<[1], [0], [0], [1], [0, 0, 1, 1], [], []>} : vector<256x512xbf16>, vector<512x128xbf16>, vector<256x128xf32> -> vector<256x128xf32>
    %c0_21 = arith.constant 0 : index
    %c0_22 = arith.constant 0 : index
    %27 = vector.load %arg9[%c0_21, %c0_22] : memref<1x128xf32, #tpu.memory_space<vmem>>, vector<1x128xf32>
    %28 = vector.broadcast %27 : vector<1x128xf32> to vector<256x128xf32>
    %29 = arith.addf %26, %28 : vector<256x128xf32>
    %c0_23 = arith.constant 0 : index
    %c0_24 = arith.constant 0 : index
    %30 = vector.load %arg10[%c0_23, %c0_24] : memref<256x128xf32, #tpu.memory_space<vmem>>, vector<256x128xf32>
    tpu.vector_store %arg10[%c0_23, %c0_24], %29 {strides = array<i32>} : memref<256x128xf32, #tpu.memory_space<vmem>>, vector<256x128xf32>,
    return
  }
  func.func @transform_0(%arg0: i32) -> (i32, i32) {
    %c0_i32 = arith.constant 0 : i32
    %c0_i32_0 = arith.constant 0 : i32
    return %arg0, %c0_i32 : i32, i32
  }
  func.func @transform_1(%arg0: i32) -> (i32, i32) {
    %c0_i32 = arith.constant 0 : i32
    %c0_i32_0 = arith.constant 0 : i32
    %c0_i32_1 = arith.constant 0 : i32
    return %c0_i32, %c0_i32_0 : i32, i32
  }
  func.func @transform_2(%arg0: i32) -> (i32, i32) {
    %c0_i32 = arith.constant 0 : i32
    %c0_i32_0 = arith.constant 0 : i32
    %c0_i32_1 = arith.constant 0 : i32
    return %c0_i32, %c0_i32_0 : i32, i32
  }
  func.func @transform_3(%arg0: i32) -> (i32, i32) {
    %c0_i32 = arith.constant 0 : i32
    %c0_i32_0 = arith.constant 0 : i32
    %c0_i32_1 = arith.constant 0 : i32
    return %c0_i32, %c0_i32_0 : i32, i32
  }
  func.func @transform_4(%arg0: i32) -> (i32, i32) {
    %c0_i32 = arith.constant 0 : i32
    %c0_i32_0 = arith.constant 0 : i32
    %c0_i32_1 = arith.constant 0 : i32
    return %c0_i32, %c0_i32_0 : i32, i32
  }
  func.func @transform_5(%arg0: i32) -> (i32, i32) {
    %c0_i32 = arith.constant 0 : i32
    %c0_i32_0 = arith.constant 0 : i32
    %c0_i32_1 = arith.constant 0 : i32
    return %c0_i32, %c0_i32_0 : i32, i32
  }
  func.func @transform_6(%arg0: i32) -> (i32, i32) {
    %c0_i32 = arith.constant 0 : i32
    %c0_i32_0 = arith.constant 0 : i32
    %c0_i32_1 = arith.constant 0 : i32
    return %c0_i32, %c0_i32_0 : i32, i32
  }
  func.func @transform_7(%arg0: i32) -> (i32, i32) {
    %c0_i32 = arith.constant 0 : i32
    %c0_i32_0 = arith.constant 0 : i32
    %c0_i32_1 = arith.constant 0 : i32
    return %c0_i32, %c0_i32_0 : i32, i32
  }
  func.func @transform_8(%arg0: i32) -> (i32, i32) {
    %c0_i32 = arith.constant 0 : i32
    %c0_i32_0 = arith.constant 0 : i32
    %c0_i32_1 = arith.constant 0 : i32
    return %c0_i32, %c0_i32_0 : i32, i32
  }
  func.func @transform_9(%arg0: i32) -> (i32, i32) {
    %c0_i32 = arith.constant 0 : i32
    %c0_i32_0 = arith.constant 0 : i32
    return %arg0, %c0_i32 : i32, i32
  }
}

module attributes {stable_mosaic.version = 11 : i64} {
  func.func @mlp_time_kernel(%arg0: i32, %arg1: memref<256x128xbf16, #tpu.memory_space<vmem>>, %arg2: memref<128x512xbf16, #tpu.memory_space<vmem>>, %arg3: memref<1x512xf32, #tpu.memory_space<vmem>>, %arg4: memref<512x512xbf16, #tpu.memory_space<vmem>>, %arg5: memref<1x512xf32, #tpu.memory_space<vmem>>, %arg6: memref<512x512xbf16, #tpu.memory_space<vmem>>, %arg7: memref<1x512xf32, #tpu.memory_space<vmem>>, %arg8: memref<512x128xbf16, #tpu.memory_space<vmem>>, %arg9: memref<1x128xf32, #tpu.memory_space<vmem>>, %arg10: memref<256x128xf32, #tpu.memory_space<vmem>>) attributes {dimension_semantics = [#tpu.dimension_semantics<parallel>], iteration_bounds = array<i64: 2>, scalar_prefetch = 0 : i64, scratch_operands = 0 : i64, tpu.core_type = #tpu.core_type<tc>, window_params = [{transform_indices = @transform_0, window_bounds = array<i64: 256, 128>}, {pipeline_mode = #tpu.pipeline_mode<synchronous>, transform_indices = @transform_1, window_bounds = array<i64: 128, 512>}, {pipeline_mode = #tpu.pipeline_mode<synchronous>, transform_indices = @transform_2, window_bounds = array<i64: 1, 512>}, {pipeline_mode = #tpu.pipeline_mode<synchronous>, transform_indices = @transform_3, window_bounds = array<i64: 512, 512>}, {pipeline_mode = #tpu.pipeline_mode<synchronous>, transform_indices = @transform_4, window_bounds = array<i64: 1, 512>}, {pipeline_mode = #tpu.pipeline_mode<synchronous>, transform_indices = @transform_5, window_bounds = array<i64: 512, 512>}, {pipeline_mode = #tpu.pipeline_mode<synchronous>, transform_indices = @transform_6, window_bounds = array<i64: 1, 512>}, {pipeline_mode = #tpu.pipeline_mode<synchronous>, transform_indices = @transform_7, window_bounds = array<i64: 512, 128>}, {pipeline_mode = #tpu.pipeline_mode<synchronous>, transform_indices = @transform_8, window_bounds = array<i64: 1, 128>}, {transform_indices = @transform_9, window_bounds = array<i64: 256, 128>}]} {
    %c0 = arith.constant 0 : index
    %c0_0 = arith.constant 0 : index
    %0 = vector.load %arg1[%c0, %c0_0] : memref<256x128xbf16, #tpu.memory_space<vmem>>, vector<256x128xbf16>
    %c0_1 = arith.constant 0 : index
    %c0_2 = arith.constant 0 : index
    %1 = vector.load %arg2[%c0_1, %c0_2] : memref<128x512xbf16, #tpu.memory_space<vmem>>, vector<128x512xbf16>
    %cst = arith.constant dense<0.000000e+00> : vector<256x512xf32>
    %2 = tpu.matmul %0, %1, %cst {dimension_numbers = #tpu.dot_dimension_numbers<[1], [0], [0], [1], [0, 0, 1, 1], [], []>} : vector<256x128xbf16>, vector<128x512xbf16>, vector<256x512xf32> -> vector<256x512xf32>
    %c0_3 = arith.constant 0 : index
    %c0_4 = arith.constant 0 : index
    %3 = vector.load %arg3[%c0_3, %c0_4] : memref<1x512xf32, #tpu.memory_space<vmem>>, vector<1x512xf32>
    %4 = vector.broadcast %3 : vector<1x512xf32> to vector<256x512xf32>
    %5 = arith.addf %2, %4 : vector<256x512xf32>
    %cst_5 = arith.constant 0.000000e+00 : f32
    %6 = vector.broadcast %cst_5 : f32 to vector<256x512xf32>
    %7 = arith.maximumf %5, %6 : vector<256x512xf32>
    %8 = arith.truncf %7 : vector<256x512xf32> to vector<256x512xbf16>
    %c0_6 = arith.constant 0 : index
    %c0_7 = arith.constant 0 : index
    %9 = vector.load %arg4[%c0_6, %c0_7] : memref<512x512xbf16, #tpu.memory_space<vmem>>, vector<512x512xbf16>
    %cst_8 = arith.constant dense<0.000000e+00> : vector<256x512xf32>
    %10 = tpu.matmul %8, %9, %cst_8 {dimension_numbers = #tpu.dot_dimension_numbers<[1], [0], [0], [1], [0, 0, 1, 1], [], []>} : vector<256x512xbf16>, vector<512x512xbf16>, vector<256x512xf32> -> vector<256x512xf32>
    %c0_9 = arith.constant 0 : index
    %c0_10 = arith.constant 0 : index
    %11 = vector.load %arg5[%c0_9, %c0_10] : memref<1x512xf32, #tpu.memory_space<vmem>>, vector<1x512xf32>
    %12 = vector.broadcast %11 : vector<1x512xf32> to vector<256x512xf32>
    %13 = arith.addf %10, %12 : vector<256x512xf32>
    %cst_11 = arith.constant 0.000000e+00 : f32
    %14 = vector.broadcast %cst_11 : f32 to vector<256x512xf32>
    %15 = arith.maximumf %13, %14 : vector<256x512xf32>
    %16 = arith.truncf %15 : vector<256x512xf32> to vector<256x512xbf16>
    %c0_12 = arith.constant 0 : index
    %c0_13 = arith.constant 0 : index
    %17 = vector.load %arg6[%c0_12, %c0_13] : memref<512x512xbf16, #tpu.memory_space<vmem>>, vector<512x512xbf16>
    %cst_14 = arith.constant dense<0.000000e+00> : vector<256x512xf32>
    %18 = tpu.matmul %16, %17, %cst_14 {dimension_numbers = #tpu.dot_dimension_numbers<[1], [0], [0], [1], [0, 0, 1, 1], [], []>} : vector<256x512xbf16>, vector<512x512xbf16>, vector<256x512xf32> -> vector<256x512xf32>
    %c0_15 = arith.constant 0 : index
    %c0_16 = arith.constant 0 : index
    %19 = vector.load %arg7[%c0_15, %c0_16] : memref<1x512xf32, #tpu.memory_space<vmem>>, vector<1x512xf32>
    %20 = vector.broadcast %19 : vector<1x512xf32> to vector<256x512xf32>
    %21 = arith.addf %18, %20 : vector<256x512xf32>
    %cst_17 = arith.constant 0.000000e+00 : f32
    %22 = vector.broadcast %cst_17 : f32 to vector<256x512xf32>
    %23 = arith.maximumf %21, %22 : vector<256x512xf32>
    %24 = arith.truncf %23 : vector<256x512xf32> to vector<256x512xbf16>
    %c0_18 = arith.constant 0 : index
    %c0_19 = arith.constant 0 : index
    %25 = vector.load %arg8[%c0_18, %c0_19] : memref<512x128xbf16, #tpu.memory_space<vmem>>, vector<512x128xbf16>
    %cst_20 = arith.constant dense<0.000000e+00> : vector<256x128xf32>
    %26 = tpu.matmul %24, %25, %cst_20 {dimension_numbers = #tpu.dot_dimension_numbers<[1], [0], [0], [1], [0, 0, 1, 1], [], []>} : vector<256x512xbf16>, vector<512x128xbf16>, vector<256x128xf32> -> vector<256x128xf32>
    %c0_21 = arith.constant 0 : index
    %c0_22 = arith.constant 0 : index
    %27 = vector.load %arg9[%c0_21, %c0_22] : memref<1x128xf32, #tpu.memory_space<vmem>>, vector<1x128xf32>
    %28 = vector.broadcast %27 : vector<1x128xf32> to vector<256x128xf32>
    %29 = arith.addf %26, %28 : vector<256x128xf32>
    %c0_23 = arith.constant 0 : index
    %c0_24 = arith.constant 0 : index
    %30 = vector.load %arg10[%c0_23, %c0_24] : memref<256x128xf32, #tpu.memory_space<vmem>>, vector<256x128xf32>
    tpu.vector_store %arg10[%c0_23, %c0_24], %29 {strides = array<i32>} : memref<256x128xf32, #tpu.memory_space<vmem>>, vector<256x128xf32>,
    return
  }
  func.func @transform_0(%arg0: i32) -> (i32, i32) {
    %c0_i32 = arith.constant 0 : i32
    %c0_i32_0 = arith.constant 0 : i32
    return %arg0, %c0_i32 : i32, i32
  }
  func.func @transform_1(%arg0: i32) -> (i32, i32) {
    %c0_i32 = arith.constant 0 : i32
    %c0_i32_0 = arith.constant 0 : i32
    %c0_i32_1 = arith.constant 0 : i32
    return %c0_i32, %c0_i32_0 : i32, i32
  }
  func.func @transform_2(%arg0: i32) -> (i32, i32) {
    %c0_i32 = arith.constant 0 : i32
    %c0_i32_0 = arith.constant 0 : i32
    %c0_i32_1 = arith.constant 0 : i32
    return %c0_i32, %c0_i32_0 : i32, i32
  }
  func.func @transform_3(%arg0: i32) -> (i32, i32) {
    %c0_i32 = arith.constant 0 : i32
    %c0_i32_0 = arith.constant 0 : i32
    %c0_i32_1 = arith.constant 0 : i32
    return %c0_i32, %c0_i32_0 : i32, i32
  }
  func.func @transform_4(%arg0: i32) -> (i32, i32) {
    %c0_i32 = arith.constant 0 : i32
    %c0_i32_0 = arith.constant 0 : i32
    %c0_i32_1 = arith.constant 0 : i32
    return %c0_i32, %c0_i32_0 : i32, i32
  }
  func.func @transform_5(%arg0: i32) -> (i32, i32) {
    %c0_i32 = arith.constant 0 : i32
    %c0_i32_0 = arith.constant 0 : i32
    %c0_i32_1 = arith.constant 0 : i32
    return %c0_i32, %c0_i32_0 : i32, i32
  }
  func.func @transform_6(%arg0: i32) -> (i32, i32) {
    %c0_i32 = arith.constant 0 : i32
    %c0_i32_0 = arith.constant 0 : i32
    %c0_i32_1 = arith.constant 0 : i32
    return %c0_i32, %c0_i32_0 : i32, i32
  }
  func.func @transform_7(%arg0: i32) -> (i32, i32) {
    %c0_i32 = arith.constant 0 : i32
    %c0_i32_0 = arith.constant 0 : i32
    %c0_i32_1 = arith.constant 0 : i32
    return %c0_i32, %c0_i32_0 : i32, i32
  }
  func.func @transform_8(%arg0: i32) -> (i32, i32) {
    %c0_i32 = arith.constant 0 : i32
    %c0_i32_0 = arith.constant 0 : i32
    %c0_i32_1 = arith.constant 0 : i32
    return %c0_i32, %c0_i32_0 : i32, i32
  }
  func.func @transform_9(%arg0: i32) -> (i32, i32) {
    %c0_i32 = arith.constant 0 : i32
    %c0_i32_0 = arith.constant 0 : i32
    return %arg0, %c0_i32 : i32, i32
  }
}

</mosaic_0001>

<bundles_post_ra>
// kernel: mlp_time_pallas_padded.1
= control target key start
LH: loop header
LB: loop body
LE: loop exit
PB: predicated region body
PF: predicated region fallthrough
CT: control target
= control target key end

     0   :  { %14 = vsyncpa [#allocation3], 0  ;;  %s8514_s0 = inlined_call_operand.vmem [shape: bf16[512,128], index: 0, kind: input, shape index: {}]   ;;  %s8515_s1 = inlined_call_operand.vmem [shape: bf16[128,512], index: 1, kind: input, shape index: {}]   ;;  %s8516_s2 = inlined_call_operand.vmem [shape: f32[1,512], index: 2, kind: input, shape index: {}]   ;;  %s8517_s3 = inlined_call_operand.hbm [shape: bf16[512,512], index: 3, kind: input, shape index: {}]   ;;  %s8518_s4 = inlined_call_operand.vmem [shape: f32[1,512], index: 4, kind: input, shape index: {}]   ;;  %s8519_s5 = inlined_call_operand.hbm [shape: bf16[512,512], index: 5, kind: input, shape index: {}]   ;;  %s8520_s6 = inlined_call_operand.vmem [shape: f32[1,512], index: 6, kind: input, shape index: {}]   ;;  %s8521_s7 = inlined_call_operand.vmem [shape: bf16[512,128], index: 7, kind: input, shape index: {}]   ;;  %s8522_s8 = inlined_call_operand.vmem [shape: f32[1,128], index: 8, kind: input, shape index: {}]   ;;  %s8523_s9 = inlined_call_operand.hbm [shape: f32[512,128], index: 9, kind: output, shape index: {}]  }
   0x1   :  { %15 = vsyncpa [#allocation6], 0 }
   0x2   :  { %16 = vsyncpa [#allocation4], 0 }
   0x3   :  { %18 = vsyncpa [#allocation4 + $0x1], 0  ;;  %s7329_s30 = smov 0   ;;  %s7331_s10 = smov 0  }
   0x4   :  { %s7333_s11 = smov 0   ;;  %s7335_s12 = smov 0  }
   0x5 LB: > { %8530 = sst [smem:[#allocation11_spill]] %s7265_s11  ;;  %s7350_s13 = sadd.s32 4294967295, %s7269_s12   ;;  %s7269_s12 = sphi %s7335_s12, %s8544_s12   ;;  %s7265_s11 = sphi %s7333_s11, %s8546_s11   ;;  %s7261_s10 = sphi %s7331_s10, %s8548_s10   ;;  %s7257_s30 = sphi %s7329_s30, %s8547_s30  }
   0x6   : > { %s5508_s14 = sadd.s32 4294967294, %s7269_s12   ;;  %s7354_s15 = sadd.s32 1, %s7269_s12  }
   0x7   : > { %8531 = sst [smem:[#allocation12_spill]] %s7354_s15  ;;  %s225_s16 = sadd.s32 1, %s7265_s11 }
   0x8   : > { %s222_s17 = ssub.s32 %s7269_s12, %s7354_s15  ;;  %p235_p0 = scmp.ne.s32.totalorder %s7265_s11, %s7261_s10 }
   0x9   : > { %p223_p1 = scmp.eq.s32.totalorder %s222_s17, 0  ;;  %p236_p2 = scmp.eq.s32.totalorder %s7350_s13, 1 }
   0xa   : > { %p241_p3 = scmp.ne.s32.totalorder %s7261_s10, %s7257_s30  ;;  %p242_p4 = scmp.eq.s32.totalorder %s5508_s14, 1 }
   0xb   : > { %s7365_s18 = scalar_select %p223_p1, %s7265_s11, %s225_s16  }
   0xc   : > { %p7367_p5 = por %p236_p2, %p235_p0  ;;  %p7371_p6 = por %p242_p4, %p241_p3 }
   0xd   : > { %8532 = sst [smem:[#allocation13_spill]] %s7365_s18  ;;  %p5509_p7 = scmp.ge.s32.totalorder %s7269_s12, 1 }
   0xe   : > { %s8533_s19 = scalar_select %p7367_p5, 1, 0 }
   0xf   : > { %s8534_s20 = scalar_select %p7371_p6, 1, 0 }
  0x10   : > { %p249_p8 = scmp.lt.s32.totalorder %s7269_s12, 3  ;;  %p8524_p9 = scmp.eq.s32.totalorder %s7350_s13, 0 }
  0x11   : > { %s7271_s22 = smov [#allocation2]   ;;  %s7272_s25 = smov [#allocation5]  }
  0x12   : > { %p7378_p10 = pnand %p5509_p7, %p249_p8  ;;  %s267_s23 = sshll.u32 %s7271_s22, 4  ;;  %s268_s23 = int_to_ptr.vmem [resolvable:$true] %s267_s23 }
  0x13   : > { %s283_s26 = sshll.u32 %s7272_s25, 4  ;;  %s7143_s29 = scalar_lea.hbm %s8517_s3, 16384  ;;  %s7390_s26 = int_to_ptr.vmem [resolvable:$true] %s283_s26 }
  0x14   : > { %s8535_s21 = scalar_select %p7378_p10, 1, 0 }
  0x15   : > { %p6608_p11 = pneg %p7378_p10  ;;  %p7144_p13 = scmp.ne.s32.totalorder %s8517_s3, %s7143_s29 }
  0x16   : > { %p7150_p3 = scmp.lt.u32.totalorder %s7143_s29, %s8517_s3 }
  0x17   : > { %p7386_p12 = pnand %p8524_p9, %p6608_p11 }
  0x19   : > { %p7145_p0 = pneg %p7386_p12 }
  0x1b   : > { %p7146_p1 = pnand %p7145_p0, %p7144_p13 }
  0x1d   : > { %p7147_p2 = pneg %p7146_p1 }
  0x1f   : > { %p7152_p4 = pnand %p7150_p3, %p7147_p2 }
  0x21   : > { %7155 = shalt.err (!%p7152_p4)
}
  0x22   : > { %s7156_s25 = scalar_lea.vmem %s268_s23, 16384  ;;  %p7164_p9 = scmp.lt.s32.totalorder %s268_s23, %s268_s23 }
  0x23   : > { %p7157_p7 = scmp.ne.s32.totalorder %s268_s23, %s7156_s25  ;;  %p7165_p6 = scmp.lt.s32.totalorder %s7156_s25, %s7156_s25 }
  0x25   : > { %p7159_p8 = pnand %p7157_p7, %p7145_p0  ;;  %p7166_p5 = por %p7165_p6, %p7164_p9 }
  0x27   : > { %p7160_p11 = pneg %p7159_p8 }
  0x29   : > { %p7167_p10 = pnand %p7166_p5, %p7160_p11 }
  0x2b   : > { %7170 = shalt.err (!%p7167_p10)
}
  0x2c   : > { %s7273_s27 = smov 256   ;;  %s7274_s28 = smov 16  }
  0x2d   : > { %6611 = dma.hbm_to_vmem [thread:$0]  (!%p7386_p12), %s8517_s3, 16384, %s268_s23, [#allocation3], %s7273_s27, %s7273_s27, %s7274_s28  }
  0x2e   : > { %s7171_s22 = scalar_lea.hbm %s8519_s5, 16384 }
  0x2f   : > { %p7172_p13 = scmp.ne.s32.totalorder %s8519_s5, %s7171_s22  ;;  %p7178_p9 = scmp.lt.u32.totalorder %s7171_s22, %s8519_s5 }
  0x31   : > { %p7174_p5 = pnand %p7172_p13, %p7145_p0 }
  0x33   : > { %p7175_p6 = pneg %p7174_p5 }
  0x35   : > { %p7180_p10 = pnand %p7178_p9, %p7175_p6 }
  0x37   : > { %7183 = shalt.err (!%p7180_p10)
}
  0x38   : > { %s7184_s23 = scalar_lea.vmem %s7390_s26, 16384  ;;  %p7192_p4 = scmp.lt.s32.totalorder %s7390_s26, %s7390_s26 }
  0x39   : > { %p7185_p1 = scmp.ne.s32.totalorder %s7390_s26, %s7184_s23  ;;  %p7193_p7 = scmp.lt.s32.totalorder %s7184_s23, %s7184_s23 }
  0x3b   : > { %p7187_p2 = pnand %p7185_p1, %p7145_p0  ;;  %p7194_p8 = por %p7193_p7, %p7192_p4 }
  0x3d   : > { %p7188_p3 = pneg %p7187_p2 }
  0x3f   : > { %p7195_p11 = pnand %p7194_p8, %p7188_p3 }
  0x41   : > { %7198 = shalt.err (!%p7195_p11)
}
  0x42   : > { %6614 = dma.hbm_to_vmem [thread:$0]  (!%p7386_p12), %s8519_s5, 16384, %s7390_s26, [#allocation6], %s7273_s27, %s7273_s27, %s7274_s28  }
  0x43   : > { %p8537_p13 = scmp.ne.s32.totalorder %s8535_s21, 0 }
  0x44   : > { %p8538_p5 = scmp.eq.s32.totalorder (!%p8537_p13), %s7350_s13, 0 }
  0x45   : > { %317 = sbr.rel (%p8537_p13) target bundleno = 1393 (0x571), region = 56 }
  0x4c   : > { %7244 = dma.done.wait (%p8538_p5), [#allocation3], 16384   ;;  %p8539_p0 = pmov %p8538_p5 }
  0x4e   : > { %7246 = vsyncadd (%p8539_p0), [#allocation3], 4294950912  ;;  %p8540_p6 = pmov %p8539_p0 }
  0x4f   : > { %p8541_p9 = pmov %p8539_p0 }
  0x50   : > { %7248 = dma.done.wait (%p8540_p6), [#allocation6], 16384  }
  0x51   : > { %7250 = vsyncadd (%p8541_p9), [#allocation6], 4294950912  ;;  %v7275_v0 = vmov 0   ;;  %s5517_s18 = sshll.u32 %s7350_s13, 5  ;;  %v6663_v1 = vld [vmem:[%s8515_s1 + $0x4] ss:$16 sps:$4 sm:$0xff]  }
  0x52   : > { %739 = vmatprep.mubr.bf16.mxu0 %v7275_v0  ;;  %932 = vmatprep.mubr.bf16.mxu1 %v7275_v0  ;;  %p358_p12 = scmp.lt.s32.totalorder %s5517_s18, 63  ;;  %v6665_v2 = vld [vmem:[%s8515_s1] ss:$16 sps:$4 sm:$0xff]   ;;  %v6666_v3 = vld [vmem:[%s8515_s1 + $0x24] ss:$16 sps:$4 sm:$0xff]   ;;  %s354_s14 = sand.u32 1, %s7261_s10  }
  0x53   : > { %707 = vmatprep.subr.bf16.mxu0 %v6663_v1  ;;  %v6668_v4 = vld [vmem:[%s8515_s1 + $0x20] ss:$16 sps:$4 sm:$0xff]   ;;  %v6669_v5 = vld [vmem:[%s8515_s1 + $0x44] ss:$16 sps:$4 sm:$0xff]   ;;  %v6695_v13 = vld [vmem:[%s8515_s1 + $0xc] ss:$16 sps:$4 sm:$0xff]  }
  0x54   : > { %s8550_s18 = smov (!%p358_p12, %s5517_s18), 63  ;;  %708 = vmatpush1.bf16.msra.mxu0 %v6665_v2  ;;  %v6671_v6 = vld [vmem:[%s8515_s1 + $0x40] ss:$16 sps:$4 sm:$0xff]   ;;  %v6672_v7 = vld [vmem:[%s8515_s1 + $0x64] ss:$16 sps:$4 sm:$0xff]   ;;  %900 = vmatprep.subr.bf16.mxu1 %v6695_v13  ;;  %s5516_s22 = sshll.u32 %s354_s14, 8 }
  0x55   : > { %709 = vmatprep.subr.bf16.mxu0 %v6666_v3  ;;  %s5518_s25 = sshll.u32 %s8550_s18, 2  ;;  %v6674_v8 = vld [vmem:[%s8515_s1 + $0x60] ss:$16 sps:$4 sm:$0xff]   ;;  %v6675_v9 = vld [vmem:[%s8515_s1 + $0x84] ss:$16 sps:$4 sm:$0xff]   ;;  %s8398_s23 = scalar_lea.vmem [#allocation7], %s5516_s22 }
  0x56   : > { %s7476_s27 = scalar_lea.vmem %s8514_s0, %s5518_s25  ;;  %v6677_v10 = vld [vmem:[%s8515_s1 + $0x80] ss:$16 sps:$4 sm:$0xff]   ;;  %v6678_v11 = vld [vmem:[%s8515_s1 + $0xa4] ss:$16 sps:$4 sm:$0xff]   ;;  %v6697_v14 = vld [vmem:[%s8515_s1 + $0x8] ss:$16 sps:$4 sm:$0xff]  }
  0x57   : > { %v6680_v12 = vld [vmem:[%s8515_s1 + $0xa0] ss:$16 sps:$4 sm:$0xff]   ;;  %v6681_v15 = vld [vmem:[%s8515_s1 + $0xc4] ss:$16 sps:$4 sm:$0xff]   ;;  %v6699_v16 = vld [vmem:[%s8515_s1 + $0x2c] ss:$16 sps:$4 sm:$0xff]   ;;  %901 = vmatpush1.bf16.msra.mxu1 %v6697_v14 }
  0x58   : > { %710 = vmatpush1.bf16.msra.mxu0 %v6668_v4  ;;  %v6701_v17 = vld [vmem:[%s8515_s1 + $0x28] ss:$16 sps:$4 sm:$0xff]   ;;  %v6683_v18 = vld [vmem:[%s8515_s1 + $0xc0] ss:$16 sps:$4 sm:$0xff]   ;;  %902 = vmatprep.subr.bf16.mxu1 %v6699_v16  ;;  %v6702_v19 = vld [vmem:[%s8515_s1 + $0x4c] ss:$16 sps:$4 sm:$0xff]  }
  0x59   : > { %711 = vmatprep.subr.bf16.mxu0 %v6669_v5  ;;  %v6684_v20 = vld [vmem:[%s8515_s1 + $0xe4] ss:$16 sps:$4 sm:$0xff]   ;;  %v6686_v21 = vld [vmem:[%s8515_s1 + $0xe0] ss:$16 sps:$4 sm:$0xff]   ;;  %v6704_v22 = vld [vmem:[%s8515_s1 + $0x48] ss:$16 sps:$4 sm:$0xff]  }
  0x5a   : > { %v6706_v23 = vld [vmem:[%s8515_s1 + $0x6c] ss:$16 sps:$4 sm:$0xff]   ;;  %v6687_v24 = vld [vmem:[%s7476_s27] sm:$0xff]   ;;  %v6708_v25 = vld [vmem:[%s8515_s1 + $0x68] ss:$16 sps:$4 sm:$0xff]   ;;  %s5861_s25 = sshll.u32 %s7350_s13, 12 }
  0x5b   : > { %903 = vmatpush1.bf16.msra.mxu1 %v6701_v17  ;;  %v6709_v26 = vld [vmem:[%s8515_s1 + $0x8c] ss:$16 sps:$4 sm:$0xff]   ;;  %v6711_v27 = vld [vmem:[%s8515_s1 + $0x88] ss:$16 sps:$4 sm:$0xff]   ;;  %v6723_v28 = vld [vmem:[#allocation2] ss:$16 sps:$4 sm:$0xff]   ;;  %s8465_s21 = scalar_lea.hbm %s8523_s9, %s5861_s25 }
  0x5c   : > { %712 = vmatpush1.bf16.msra.mxu0 %v6671_v6  ;;  %904 = vmatprep.subr.bf16.mxu1 %v6702_v19  ;;  %v6725_v29 = vld [vmem:[#allocation2 + $0x4] ss:$16 sps:$4 sm:$0xff]   ;;  %v6713_v30 = vld [vmem:[%s8515_s1 + $0xac] ss:$16 sps:$4 sm:$0xff]   ;;  %v6727_v33 = vld [vmem:[#allocation2 + $0x20] ss:$16 sps:$4 sm:$0xff]  }
  0x5d   : > { %713 = vmatprep.subr.bf16.mxu0 %v6672_v7  ;;  %v6688_v31 = vld [vmem:[%s7476_s27 + $0x8] sm:$0xff]   ;;  %v6729_v32 = vld [vmem:[#allocation2 + $0x24] ss:$16 sps:$4 sm:$0xff]   ;;  %v6731_v38 = vld [vmem:[#allocation2 + $0x40] ss:$16 sps:$4 sm:$0xff]   ;;  %s5424_s11 = sshll.u32 %s8398_s23, 4  ;;  %s8467_s11 = int_to_ptr.vmem [resolvable:$true] %s5424_s11 }
  0x5e   : > { %v6715_v34 = vld [vmem:[%s8515_s1 + $0xa8] ss:$16 sps:$4 sm:$0xff]   ;;  %v6716_v35 = vld [vmem:[%s8515_s1 + $0xcc] ss:$16 sps:$4 sm:$0xff]   ;;  %v6733_v36 = vld [vmem:[#allocation2 + $0x44] ss:$16 sps:$4 sm:$0xff]  }
  0x5f   : > { %905 = vmatpush1.bf16.msra.mxu1 %v6704_v22  ;;  %v6718_v37 = vld [vmem:[%s8515_s1 + $0xc8] ss:$16 sps:$4 sm:$0xff]   ;;  %v6737_v39 = vld [vmem:[#allocation2 + $0x64] ss:$16 sps:$4 sm:$0xff]   ;;  %v6720_v40 = vld [vmem:[%s8515_s1 + $0xec] ss:$16 sps:$4 sm:$0xff]  }
  0x60   : > { %714 = vmatpush1.bf16.msra.mxu0 %v6674_v8  ;;  %906 = vmatprep.subr.bf16.mxu1 %v6706_v23  ;;  %v6735_v41 = vld [vmem:[#allocation2 + $0x60] ss:$16 sps:$4 sm:$0xff]   ;;  %v6722_v43 = vld [vmem:[%s8515_s1 + $0xe8] ss:$16 sps:$4 sm:$0xff]   ;;  %v6741_v44 = vld [vmem:[#allocation2 + $0x84] ss:$16 sps:$4 sm:$0xff]  }
  0x61   : > { %715 = vmatprep.subr.bf16.mxu0 %v6675_v9  ;;  %v6689_v42 = vld [vmem:[%s7476_s27 + $0x10] sm:$0xff]   ;;  %v6756_v47 = vld [vmem:[#allocation2 + $0xc] ss:$16 sps:$4 sm:$0xff]   ;;  %v6754_v48 = vld [vmem:[#allocation2 + $0x8] ss:$16 sps:$4 sm:$0xff]   ;;  %s8473_s24 = scalar_lea.sflag [#allocation4], %s354_s14 }
  0x62   : > { %v6739_v45 = vld [vmem:[#allocation2 + $0x80] ss:$16 sps:$4 sm:$0xff]   ;;  %v6744_v46 = vld [vmem:[#allocation2 + $0xa4] ss:$16 sps:$4 sm:$0xff]   ;;  %v6759_v49 = vld [vmem:[#allocation2 + $0x2c] ss:$16 sps:$4 sm:$0xff]  }
  0x63   : > { %907 = vmatpush1.bf16.msra.mxu1 %v6708_v25  ;;  %v6742_v50 = vld [vmem:[#allocation2 + $0xa0] ss:$16 sps:$4 sm:$0xff]   ;;  %v6690_v51 = vld [vmem:[%s7476_s27 + $0x18] sm:$0xff]   ;;  %v6747_v52 = vld [vmem:[#allocation2 + $0xc4] ss:$16 sps:$4 sm:$0xff]   ;;  %s7199_s13 = scalar_lea.vmem %s8467_s11, 4096 }
  0x64   : > { %716 = vmatpush1.bf16.msra.mxu0 %v6677_v10  ;;  %908 = vmatprep.subr.bf16.mxu1 %v6709_v26  ;;  %v6757_v53 = vld [vmem:[#allocation2 + $0x28] ss:$16 sps:$4 sm:$0xff]   ;;  %v6765_v54 = vld [vmem:[#allocation2 + $0x4c] ss:$16 sps:$4 sm:$0xff]   ;;  %v6745_v55 = vld [vmem:[#allocation2 + $0xc0] ss:$16 sps:$4 sm:$0xff]   ;;  %p7200_p10 = scmp.ne.s32.totalorder %s8467_s11, %s7199_s13 }
  0x65   : > { %717 = vmatprep.subr.bf16.mxu0 %v6678_v11  ;;  %v6750_v56 = vld [vmem:[#allocation2 + $0xe4] ss:$16 sps:$4 sm:$0xff]   ;;  %v6763_v57 = vld [vmem:[#allocation2 + $0x48] ss:$16 sps:$4 sm:$0xff]   ;;  %v6768_v58 = vld [vmem:[#allocation2 + $0x6c] ss:$16 sps:$4 sm:$0xff]  }
  0x66   : > { %v6748_v59 = vld [vmem:[#allocation2 + $0xe0] ss:$16 sps:$4 sm:$0xff]   ;;  %v6753_v61 = vld [vmem:[#allocation2 + $0x104] ss:$16 sps:$4 sm:$0xff]   ;;  %v6766_v62 = vld [vmem:[#allocation2 + $0x68] ss:$16 sps:$4 sm:$0xff]  }
  0x67   : > { %909 = vmatpush1.bf16.msra.mxu1 %v6711_v27  ;;  %v6691_v60 = vld [vmem:[%s7476_s27 + $0x20] sm:$0xff]   ;;  %v6774_v63 = vld [vmem:[#allocation2 + $0x8c] ss:$16 sps:$4 sm:$0xff]   ;;  %v6772_v3 = vld [vmem:[#allocation2 + $0x88] ss:$16 sps:$4 sm:$0xff]   ;;  %p8542_p1 = scmp.ne.s32.totalorder %s8533_s19, 0 }
  0x68   : > { %718 = vmatpush1.bf16.msra.mxu0 %v6680_v12  ;;  %910 = vmatprep.subr.bf16.mxu1 %v6713_v30  ;;  %v6751_v1 = vld [vmem:[#allocation2 + $0x100] ss:$16 sps:$4 sm:$0xff]   ;;  %v6762_v2 = vld [vmem:[#allocation2 + $0x124] ss:$16 sps:$4 sm:$0xff]   ;;  %v6777_v4 = vld [vmem:[#allocation2 + $0xac] ss:$16 sps:$4 sm:$0xff]  }
  0x69   : > { %719 = vmatprep.subr.bf16.mxu0 %v6681_v15  ;;  %v6760_v5 = vld [vmem:[#allocation2 + $0x120] ss:$16 sps:$4 sm:$0xff]   ;;  %v6692_v6 = vld [vmem:[%s7476_s27 + $0x28] sm:$0xff]   ;;  %v6771_v7 = vld [vmem:[#allocation2 + $0x144] ss:$16 sps:$4 sm:$0xff]   ;;  %p7201_p2 = pnand %p7200_p10, %p8542_p1  ;;  %s7276_s26 = smov [#allocation7]  }
  0x6a   : > { %v6775_v8 = vld [vmem:[#allocation2 + $0xa8] ss:$16 sps:$4 sm:$0xff]   ;;  %v6783_v9 = vld [vmem:[#allocation2 + $0xcc] ss:$16 sps:$4 sm:$0xff]   ;;  %v6769_v10 = vld [vmem:[#allocation2 + $0x140] ss:$16 sps:$4 sm:$0xff]  }
  0x6b   : > { %911 = vmatpush1.bf16.msra.mxu1 %v6715_v34  ;;  %v6780_v11 = vld [vmem:[#allocation2 + $0x164] ss:$16 sps:$4 sm:$0xff]   ;;  %v6778_v12 = vld [vmem:[#allocation2 + $0x160] ss:$16 sps:$4 sm:$0xff]   ;;  %v6781_v13 = vld [vmem:[#allocation2 + $0xc8] ss:$16 sps:$4 sm:$0xff]   ;;  %p7202_p3 = pneg %p7201_p2 }
  0x6c   : > { %720 = vmatpush1.bf16.msra.mxu0 %v6683_v18  ;;  %912 = vmatprep.subr.bf16.mxu1 %v6716_v35  ;;  %v6786_v14 = vld [vmem:[#allocation2 + $0xec] ss:$16 sps:$4 sm:$0xff]   ;;  %v6693_v15 = vld [vmem:[%s7476_s27 + $0x30] sm:$0xff]   ;;  %v6784_v17 = vld [vmem:[#allocation2 + $0xe8] ss:$16 sps:$4 sm:$0xff]   ;;  %s7203_s28 = sshll.u32 %s7276_s26, 4  ;;  %s7204_s28 = int_to_ptr.vmem [resolvable:$false] %s7203_s28 }
  0x6d   : > { %721 = vmatprep.subr.bf16.mxu0 %v6684_v20  ;;  %v6789_v16 = vld [vmem:[#allocation2 + $0x184] ss:$16 sps:$4 sm:$0xff]   ;;  %v6792_v18 = vld [vmem:[#allocation2 + $0x10c] ss:$16 sps:$4 sm:$0xff]   ;;  %v6787_v19 = vld [vmem:[#allocation2 + $0x180] ss:$16 sps:$4 sm:$0xff]   ;;  %p7206_p4 = scmp.lt.s32.totalorder %s8467_s11, %s7204_s28 }
  0x6e   : > { %v6798_v20 = vld [vmem:[#allocation2 + $0x1a4] ss:$16 sps:$4 sm:$0xff]   ;;  %v6795_v22 = vld [vmem:[#allocation2 + $0x12c] ss:$16 sps:$4 sm:$0xff]   ;;  %v6796_v23 = vld [vmem:[#allocation2 + $0x1a0] ss:$16 sps:$4 sm:$0xff]  }
  0x6f   : > { %913 = vmatpush1.bf16.msra.mxu1 %v6718_v37  ;;  %v6807_v25 = vld [vmem:[#allocation2 + $0x1c4] ss:$16 sps:$4 sm:$0xff]   ;;  %v6793_v26 = vld [vmem:[#allocation2 + $0x128] ss:$16 sps:$4 sm:$0xff]   ;;  %v6801_v27 = vld [vmem:[#allocation2 + $0x14c] ss:$16 sps:$4 sm:$0xff]  }
  0x70   : > { %722 = vmatpush1.bf16.msra.mxu0 %v6686_v21  ;;  %914 = vmatprep.subr.bf16.mxu1 %v6720_v40  ;;  %v6790_v21 = vld [vmem:[#allocation2 + $0x108] ss:$16 sps:$4 sm:$0xff]   ;;  %v6804_v30 = vld [vmem:[#allocation2 + $0x16c] ss:$16 sps:$4 sm:$0xff]   ;;  %s7205_s29 = scalar_lea.vmem %s7204_s28, 8192 }
  0x71   : > { %2075 = vmatprep.subr.bf16.mxu0 %v6725_v29  ;;  %v6799_v29 = vld [vmem:[#allocation2 + $0x148] ss:$16 sps:$4 sm:$0xff]   ;;  %v6813_v35 = vld [vmem:[#allocation2 + $0x1ac] ss:$16 sps:$4 sm:$0xff]   ;;  %p7207_p7 = scmp.lt.s32.totalorder %s7205_s29, %s7199_s13 }
  0x72   : > { %v6808_v34 = vld [vmem:[#allocation2 + $0x188] ss:$16 sps:$4 sm:$0xff]   ;;  %v6819_v40 = vld [vmem:[#allocation2 + $0x1cc] ss:$16 sps:$4 sm:$0xff]  }
  0x73   : > { %740 = vmatmul.mubr.bf16.vlgmr.msra.gmra.mrb[0].mxu0 %v6687_v24  ;;  %915 = vmatpush1.bf16.msra.mxu1 %v6722_v43  ;;  %v6811_v37 = vld [vmem:[#allocation2 + $0x1a8] ss:$16 sps:$4 sm:$0xff]   ;;  %v6822_v43 = vld [vmem:[#allocation2 + $0x1ec] ss:$16 sps:$4 sm:$0xff]   ;;  %p7208_p8 = por %p7207_p7, %p7206_p4 }
  0x74   : > { %749 = vmatprep.mubr.bf16.mxu0 %v7275_v0  ;;  %2076 = vmatpush1.bf16.msra.mxu0 %v6723_v28  ;;  %v6805_v28 = vld [vmem:[#allocation2 + $0x1c0] ss:$16 sps:$4 sm:$0xff]  }
  0x75   : > { %2077 = vmatprep.subr.bf16.mxu0 %v6729_v32  ;;  %2461 = vmatprep.subr.bf16.mxu1 %v6756_v47  ;;  %v6802_v32 = vld [vmem:[#allocation2 + $0x168] ss:$16 sps:$4 sm:$0xff]   ;;  %p7209_p11 = pnand %p7208_p8, %p7202_p3 }
  0x76   : > { %933 = vmatmul.mubr.bf16.vlgmr.msra.gmra.mrb[0].mxu1 %v6687_v24  ;;  %v6694_v24 = vld [vmem:[%s7476_s27 + $0x38] sm:$0xff]   ;;  %v6730_v47 = vld [vmem:[%s7476_s27 + $0x68] sm:$0xff]  }
  0x77   : > { %942 = vmatprep.mubr.bf16.mxu1 %v7275_v0  ;;  %2462 = vmatpush1.bf16.msra.mxu1 %v6754_v48  ;;  %v6825_v48 = vld [vmem:[#allocation2 + $0x204] ss:$16 sps:$4 sm:$0xff]  }
  0x78   : > { %2078 = vmatpush1.bf16.msra.mxu0 %v6727_v33  ;;  %2463 = vmatprep.subr.bf16.mxu1 %v6759_v49  ;;  %v6810_v33 = vld [vmem:[#allocation2 + $0x18c] ss:$16 sps:$4 sm:$0xff]   ;;  %v6734_v49 = vld [vmem:[%s7476_s27 + $0x70] sm:$0xff]  }
  0x79   : > { %2079 = vmatprep.subr.bf16.mxu0 %v6733_v36  ;;  %v6705_v36 = vld [vmem:[%s7476_s27 + $0x48] sm:$0xff]  }
  0x7b   : > { %750 = vmatmul.mubr.bf16.gmra.mrb[4].mxu0 %v6688_v31  ;;  %2464 = vmatpush1.bf16.msra.mxu1 %v6757_v53 }
  0x7c   : > { %759 = vmatprep.mubr.bf16.mxu0 %v7275_v0  ;;  %2080 = vmatpush1.bf16.msra.mxu0 %v6731_v38  ;;  %v6712_v38 = vld [vmem:[%s7476_s27 + $0x50] sm:$0xff]  }
  0x7d   : > { %2081 = vmatprep.subr.bf16.mxu0 %v6737_v39  ;;  %2465 = vmatprep.subr.bf16.mxu1 %v6765_v54  ;;  %v6719_v39 = vld [vmem:[%s7476_s27 + $0x58] sm:$0xff]  }
  0x7e   : > { %943 = vmatmul.mubr.bf16.gmra.mrb[4].mxu1 %v6688_v31  ;;  %v6698_v31 = vld [vmem:[%s7476_s27 + $0x40] sm:$0xff]  }
  0x7f   : > { %952 = vmatprep.mubr.bf16.mxu1 %v7275_v0  ;;  %2466 = vmatpush1.bf16.msra.mxu1 %v6763_v57 }
  0x80   : > { %2082 = vmatpush1.bf16.msra.mxu0 %v6735_v41  ;;  %2467 = vmatprep.subr.bf16.mxu1 %v6768_v58  ;;  %v6817_v41 = vld [vmem:[#allocation2 + $0x1c8] ss:$16 sps:$4 sm:$0xff]  }
  0x81   : > { %2083 = vmatprep.subr.bf16.mxu0 %v6741_v44  ;;  %v6814_v44 = vld [vmem:[#allocation2 + $0x1e0] ss:$16 sps:$4 sm:$0xff]  }
  0x83   : > { %760 = vmatmul.mubr.bf16.gmra.mrb[8].mxu0 %v6689_v42  ;;  %2468 = vmatpush1.bf16.msra.mxu1 %v6766_v62 }
  0x84   : > { %769 = vmatprep.mubr.bf16.mxu0 %v7275_v0  ;;  %2084 = vmatpush1.bf16.msra.mxu0 %v6739_v45  ;;  %v6820_v45 = vld [vmem:[#allocation2 + $0x1e8] ss:$16 sps:$4 sm:$0xff]  }
  0x85   : > { %2085 = vmatprep.subr.bf16.mxu0 %v6744_v46  ;;  %2469 = vmatprep.subr.bf16.mxu1 %v6774_v63  ;;  %v6726_v46 = vld [vmem:[%s7476_s27 + $0x60] sm:$0xff]  }
  0x86   : > { %953 = vmatmul.mubr.bf16.gmra.mrb[8].mxu1 %v6689_v42  ;;  %v6816_v42 = vld [vmem:[#allocation2 + $0x1e4] ss:$16 sps:$4 sm:$0xff]  }
  0x87   : > { %962 = vmatprep.mubr.bf16.mxu1 %v7275_v0  ;;  %2470 = vmatpush1.bf16.msra.mxu1 %v6772_v3 }
  0x88   : > { %2086 = vmatpush1.bf16.msra.mxu0 %v6742_v50  ;;  %2471 = vmatprep.subr.bf16.mxu1 %v6777_v4  ;;  %v6738_v50 = vld [vmem:[%s7476_s27 + $0x78] sm:$0xff]  }
  0x89   : > { %2087 = vmatprep.subr.bf16.mxu0 %v6747_v52  ;;  %v431_v52 = vlaneseq }
  0x8b   : > { %770 = vmatmul.mubr.bf16.gmra.mrb[12].mxu0 %v6690_v51  ;;  %2472 = vmatpush1.bf16.msra.mxu1 %v6775_v8  ;;  %v432_v53 = vshrl.u32 %v431_v52, 7 }
  0x8c   : > { %779 = vmatprep.mubr.bf16.mxu0 %v7275_v0  ;;  %2088 = vmatpush1.bf16.msra.mxu0 %v6745_v55  ;;  %v429_v55 = vld [vmem:[%s8516_s2] sm:$0xf] }
  0x8d   : > { %2089 = vmatprep.subr.bf16.mxu0 %v6750_v56  ;;  %2473 = vmatprep.subr.bf16.mxu1 %v6783_v9  ;;  %v7599_v54 = vsub.s32 0, %v432_v53  ;;  %v7604_v56 = vsub.s32 1, %v432_v53 }
  0x8e   : > { %963 = vmatmul.mubr.bf16.gmra.mrb[12].mxu1 %v6690_v51  ;;  %v6852_v51 = vld [vmem:[#allocation2 + $0x20c] ss:$16 sps:$4 sm:$0xff]  }
  0x8f   : > { %972 = vmatprep.mubr.bf16.mxu1 %v7275_v0  ;;  %2474 = vmatpush1.bf16.msra.mxu1 %v6781_v13  ;;  %v7607_v57 = vrot.slane %v429_v55, %v7599_v54  ;;  %v7610_v58 = vrot.slane %v429_v55, %v7604_v56 }
  0x90   : > { %2090 = vmatpush1.bf16.msra.mxu0 %v6748_v59  ;;  %2475 = vmatprep.subr.bf16.mxu1 %v6786_v14  ;;  %v6828_v14 = vld [vmem:[#allocation2 + $0x224] ss:$16 sps:$4 sm:$0xff]  }
  0x91   : > { %2091 = vmatprep.subr.bf16.mxu0 %v6753_v61 }
  0x93   : > { %780 = vmatmul.mubr.bf16.gmra.mrb[16].mxu0 %v6691_v60  ;;  %2476 = vmatpush1.bf16.msra.mxu1 %v6784_v17 }
  0x94   : > { %789 = vmatprep.mubr.bf16.mxu0 %v7275_v0  ;;  %2092 = vmatpush1.bf16.msra.mxu0 %v6751_v1 }
  0x95   : > { %2093 = vmatprep.subr.bf16.mxu0 %v6762_v2  ;;  %2477 = vmatprep.subr.bf16.mxu1 %v6792_v18 }
  0x96   : > { %973 = vmatmul.mubr.bf16.gmra.mrb[16].mxu1 %v6691_v60 }
  0x97   : > { %982 = vmatprep.mubr.bf16.mxu1 %v7275_v0  ;;  %2478 = vmatpush1.bf16.msra.mxu1 %v6790_v21 }
  0x98   : > { %2094 = vmatpush1.bf16.msra.mxu0 %v6760_v5  ;;  %2479 = vmatprep.subr.bf16.mxu1 %v6795_v22  ;;  %v6831_v22 = vld [vmem:[#allocation2 + $0x244] ss:$16 sps:$4 sm:$0xff]  }
  0x99   : > { %2095 = vmatprep.subr.bf16.mxu0 %v6771_v7 }
  0x9b   : > { %790 = vmatmul.mubr.bf16.gmra.mrb[20].mxu0 %v6692_v6  ;;  %2480 = vmatpush1.bf16.msra.mxu1 %v6793_v26 }
  0x9c   : > { %799 = vmatprep.mubr.bf16.mxu0 %v7275_v0  ;;  %2096 = vmatpush1.bf16.msra.mxu0 %v6769_v10  ;;  %v6823_v10 = vld [vmem:[#allocation2 + $0x200] ss:$16 sps:$4 sm:$0xff]  }
  0x9d   : > { %2097 = vmatprep.subr.bf16.mxu0 %v6780_v11  ;;  %2481 = vmatprep.subr.bf16.mxu1 %v6801_v27  ;;  %v6850_v11 = vld [vmem:[#allocation2 + $0x208] ss:$16 sps:$4 sm:$0xff]   ;;  %v6861_v27 = vld [vmem:[#allocation2 + $0x24c] ss:$16 sps:$4 sm:$0xff]  }
  0x9e   : > { %983 = vmatmul.mubr.bf16.gmra.mrb[20].mxu1 %v6692_v6 }
  0x9f   : > { %992 = vmatprep.mubr.bf16.mxu1 %v7275_v0  ;;  %2482 = vmatpush1.bf16.msra.mxu1 %v6799_v29 }
  0xa0   : > { %2098 = vmatpush1.bf16.msra.mxu0 %v6778_v12  ;;  %2483 = vmatprep.subr.bf16.mxu1 %v6804_v30 }
  0xa1   : > { %2099 = vmatprep.subr.bf16.mxu0 %v6789_v16 }
  0xa3   : > { %800 = vmatmul.mubr.bf16.gmra.mrb[24].mxu0 %v6693_v15  ;;  %2484 = vmatpush1.bf16.msra.mxu1 %v6802_v32 }
  0xa4   : > { %809 = vmatprep.mubr.bf16.mxu0 %v7275_v0  ;;  %2100 = vmatpush1.bf16.msra.mxu0 %v6787_v19 }
  0xa5   : > { %2101 = vmatprep.subr.bf16.mxu0 %v6798_v20  ;;  %2485 = vmatprep.subr.bf16.mxu1 %v6810_v33  ;;  %v6826_v20 = vld [vmem:[#allocation2 + $0x220] ss:$16 sps:$4 sm:$0xff]  }
  0xa6   : > { %993 = vmatmul.mubr.bf16.gmra.mrb[24].mxu1 %v6693_v15  ;;  %v6855_v15 = vld [vmem:[#allocation2 + $0x22c] ss:$16 sps:$4 sm:$0xff]  }
  0xa7   : > { %1002 = vmatprep.mubr.bf16.mxu1 %v7275_v0  ;;  %2486 = vmatpush1.bf16.msra.mxu1 %v6808_v34  ;;  %v6829_v34 = vld [vmem:[#allocation2 + $0x240] ss:$16 sps:$4 sm:$0xff]  }
  0xa8   : > { %2102 = vmatpush1.bf16.msra.mxu0 %v6796_v23  ;;  %2487 = vmatprep.subr.bf16.mxu1 %v6813_v35  ;;  %v6853_v23 = vld [vmem:[#allocation2 + $0x228] ss:$16 sps:$4 sm:$0xff]  }
  0xa9   : > { %2103 = vmatprep.subr.bf16.mxu0 %v6807_v25  ;;  %v6859_v35 = vld [vmem:[#allocation2 + $0x248] ss:$16 sps:$4 sm:$0xff]  }
  0xab   : > { %810 = vmatmul.mubr.bf16.gmra.mrb[28].mxu0 %v6694_v24  ;;  %2488 = vmatpush1.bf16.msra.mxu1 %v6811_v37 }
  0xac   : > { %819 = vmatprep.mubr.bf16.mxu0 %v7275_v0  ;;  %2104 = vmatpush1.bf16.msra.mxu0 %v6805_v28  ;;  %v7622_v28 = vsub.s32 3, %v432_v53 }
  0xad   : > { %2489 = vmatprep.subr.bf16.mxu1 %v6819_v40  ;;  %2105 = vmatprep.subr.bf16.mxu0 %v6816_v42  ;;  %v6864_v40 = vld [vmem:[#allocation2 + $0x26c] ss:$16 sps:$4 sm:$0xff]  }
  0xae   : > { %1003 = vmatmul.mubr.bf16.gmra.mrb[28].mxu1 %v6694_v24  ;;  %v7620_v24 = vsub.s32 2, %v432_v53 }
  0xaf   : > { %1012 = vmatprep.mubr.bf16.mxu1 %v7275_v0  ;;  %2490 = vmatpush1.bf16.msra.mxu1 %v6817_v41  ;;  %v7629_v41 = vrot.slane %v429_v55, %v7622_v28 }
  0xb0   : > { %2491 = vmatprep.subr.bf16.mxu1 %v6822_v43  ;;  %2106 = vmatpush1.bf16.msra.mxu0 %v6814_v44 }
  0xb1   : > { %2268 = vmatprep.subr.bf16.mxu0 %v6825_v48 }
  0xb3   : > { %820 = vmatmul.mubr.bf16.gmra.mrb[32].mxu0 %v6698_v31  ;;  %2492 = vmatpush1.bf16.msra.mxu1 %v6820_v45 }
  0xb4   : > { %829 = vmatprep.mubr.bf16.mxu0 %v7275_v0  ;;  %2654 = vmatprep.subr.bf16.mxu1 %v6852_v51 }
  0xb6   : > { %1013 = vmatmul.mubr.bf16.gmra.mrb[32].mxu1 %v6698_v31 }
  0xb7   : > { %1022 = vmatprep.mubr.bf16.mxu1 %v7275_v0 }
  0xbb   : > { %830 = vmatmul.mubr.bf16.gmra.mrb[36].mxu0 %v6705_v36 }
  0xbc   : > { %839 = vmatprep.mubr.bf16.mxu0 %v7275_v0 }
  0xbe   : > { %1023 = vmatmul.mubr.bf16.gmra.mrb[36].mxu1 %v6705_v36  ;;  %v7625_v36 = vrot.slane %v429_v55, %v7620_v24 }
  0xbf   : > { %1032 = vmatprep.mubr.bf16.mxu1 %v7275_v0 }
  0xc3   : > { %840 = vmatmul.mubr.bf16.gmra.mrb[40].mxu0 %v6712_v38 }
  0xc4   : > { %849 = vmatprep.mubr.bf16.mxu0 %v7275_v0 }
  0xc6   : > { %1033 = vmatmul.mubr.bf16.gmra.mrb[40].mxu1 %v6712_v38 }
  0xc7   : > { %1042 = vmatprep.mubr.bf16.mxu1 %v7275_v0 }
  0xcb   : > { %850 = vmatmul.mubr.bf16.gmra.mrb[44].mxu0 %v6719_v39 }
  0xcc   : > { %859 = vmatprep.mubr.bf16.mxu0 %v7275_v0 }
  0xce   : > { %1043 = vmatmul.mubr.bf16.gmra.mrb[44].mxu1 %v6719_v39  ;;  %v6834_v39 = vld [vmem:[#allocation2 + $0x264] ss:$16 sps:$4 sm:$0xff]  }
  0xcf   : > { %1052 = vmatprep.mubr.bf16.mxu1 %v7275_v0 }
  0xd3   : > { %860 = vmatmul.mubr.bf16.gmra.mrb[48].mxu0 %v6726_v46 }
  0xd4   : > { %869 = vmatprep.mubr.bf16.mxu0 %v7275_v0 }
  0xd6   : > { %1053 = vmatmul.mubr.bf16.gmra.mrb[48].mxu1 %v6726_v46  ;;  %v6832_v46 = vld [vmem:[#allocation2 + $0x260] ss:$16 sps:$4 sm:$0xff]  }
  0xd7   : > { %1062 = vmatprep.mubr.bf16.mxu1 %v7275_v0 }
  0xdb   : > { %870 = vmatmul.mubr.bf16.gmra.mrb[52].mxu0 %v6730_v47 }
  0xdc   : > { %879 = vmatprep.mubr.bf16.mxu0 %v7275_v0 }
  0xde   : > { %1063 = vmatmul.mubr.bf16.gmra.mrb[52].mxu1 %v6730_v47 }
  0xdf   : > { %1072 = vmatprep.mubr.bf16.mxu1 %v7275_v0 }
  0xe3   : > { %880 = vmatmul.mubr.bf16.gmra.mrb[56].mxu0 %v6734_v49 }
  0xe4   : > { %889 = vmatprep.mubr.bf16.mxu0 %v7275_v0 }
  0xe6   : > { %1073 = vmatmul.mubr.bf16.gmra.mrb[56].mxu1 %v6734_v49  ;;  %v6837_v49 = vld [vmem:[#allocation2 + $0x284] ss:$16 sps:$4 sm:$0xff]  }
  0xe7   : > { %1082 = vmatprep.mubr.bf16.mxu1 %v7275_v0 }
  0xeb   : > { %890 = vmatmul.mubr.bf16.gmra.mrb[60].mxu0 %v6738_v50 }
  0xee   : > { %1083 = vmatmul.mubr.bf16.gmra.mrb[60].mxu1 %v6738_v50  ;;  %v6862_v50 = vld [vmem:[#allocation2 + $0x268] ss:$16 sps:$4 sm:$0xff]  }
 0x146   : > { %v741_v0 = vpop.f32.mrb[0].mxu0 }
 0x147   : > { %v742_v59 = vadd.f32 %v741_v0, %v7607_v57  ;;  %v743_v60 = vpop.f32.mrb[1].mxu0  ;;  %v6870_v0 = vld [vmem:[#allocation2 + $0x28c] ss:$16 sps:$4 sm:$0xff]  }
 0x148   : > { %v744_v61 = vadd.f32 %v743_v60, %v7610_v58  ;;  %v745_v62 = vpop.f32.mrb[2].mxu0 }
 0x149   : > { %v746_v63 = vadd.f32 %v745_v62, %v7607_v57  ;;  %v747_v1 = vpop.f32.mrb[3].mxu0  ;;  %v1093_v3 = vmax.f32 %v742_v59, 0.0  ;;  %v934_v47 = vpop.f32.mrb[0].mxu1 }
 0x14a   : > { %v748_v2 = vadd.f32 %v747_v1, %v7610_v58  ;;  %v1094_v5 = vmax.f32 %v744_v61, 0.0  ;;  %v935_v51 = vadd.f32 %v934_v47, %v7625_v36  ;;  %v936_v52 = vpop.f32.mrb[1].mxu1 }
 0x14b   : > { %v1097_v4 = vmax.f32 %v746_v63, 0.0  ;;  %v937_v59 = vadd.f32 %v936_v52, %v7629_v41  ;;  %v938_v60 = vpop.f32.mrb[2].mxu1 }
 0x14c   : > { %v1098_v6 = vmax.f32 %v748_v2, 0.0  ;;  %v1095_v63 = vmax.f32 %v935_v51, 0.0  ;;  %v939_v1 = vadd.f32 %v938_v60, %v7625_v36  ;;  %v940_v2 = vpop.f32.mrb[3].mxu1 }
 0x14d   : > { %v1221_v7 = vpack.c.bf16 %v1097_v4, %v1093_v3  ;;  %v1096_v4 = vmax.f32 %v937_v59, 0.0 }
 0x14e   : > { %v1222_v8 = vpack.c.bf16 %v1098_v6, %v1094_v5  ;;  %v751_v9 = vpop.f32.mrb[4].mxu0  ;;  %v941_v5 = vadd.f32 %v940_v2, %v7629_v41 }
 0x14f   : > { %v752_v12 = vadd.f32 %v751_v9, %v7607_v57  ;;  %v753_v13 = vpop.f32.mrb[5].mxu0  ;;  %v6868_v9 = vld [vmem:[#allocation2 + $0x288] ss:$16 sps:$4 sm:$0xff]  }
 0x150   : > { %v754_v16 = vadd.f32 %v753_v13, %v7610_v58  ;;  %v755_v17 = vpop.f32.mrb[6].mxu0  ;;  %2107 = vmatprep.mubr.bf16.mxu0 %v1222_v8  ;;  %2493 = vmatprep.mubr.bf16.mxu1 %v1222_v8  ;;  %v6835_v8 = vld [vmem:[#allocation2 + $0x280] ss:$16 sps:$4 sm:$0xff]   ;;  %v6840_v13 = vld [vmem:[#allocation2 + $0x2a4] ss:$16 sps:$4 sm:$0xff]  }
 0x151   : > { %v756_v18 = vadd.f32 %v755_v17, %v7607_v57  ;;  %v757_v19 = vpop.f32.mrb[7].mxu0  ;;  %2108 = vmatmul.mubr.bf16.vlgmr.msra.gmra.mrb[64].mxu0 %v1221_v7  ;;  %2494 = vmatmul.mubr.bf16.vlgmr.msra.gmra.mrb[64].mxu1 %v1221_v7  ;;  %v1101_v25 = vmax.f32 %v752_v12, 0.0 }
 0x152   : > { %v758_v21 = vadd.f32 %v757_v19, %v7610_v58  ;;  %2269 = vmatpush1.bf16.msra.mxu0 %v6823_v10  ;;  %2655 = vmatpush1.bf16.msra.mxu1 %v6850_v11  ;;  %v1102_v29 = vmax.f32 %v754_v16, 0.0  ;;  %v1099_v10 = vmax.f32 %v939_v1, 0.0  ;;  %v6844_v1 = vld [vmem:[#allocation2 + $0x2e0] ss:$16 sps:$4 sm:$0xff]  }
 0x153   : > { %v1105_v26 = vmax.f32 %v756_v18, 0.0  ;;  %2270 = vmatprep.subr.bf16.mxu0 %v6828_v14  ;;  %2656 = vmatprep.subr.bf16.mxu1 %v6855_v15  ;;  %v6873_v14 = vld [vmem:[#allocation2 + $0x2ac] ss:$16 sps:$4 sm:$0xff]   ;;  %v1100_v15 = vmax.f32 %v941_v5, 0.0  ;;  %v6849_v5 = vld [vmem:[#allocation2 + $0x304] ss:$16 sps:$4 sm:$0xff]  }
 0x154   : > { %v1106_v30 = vmax.f32 %v758_v21, 0.0  ;;  %v7640_v18 = vpack.c.bf16 %v1099_v10, %v1095_v63  ;;  %v6838_v21 = vld [vmem:[#allocation2 + $0x2a0] ss:$16 sps:$4 sm:$0xff]  }
 0x155   : > { %v1225_v31 = vpack.c.bf16 %v1105_v26, %v1101_v25  ;;  %v6843_v26 = vld [vmem:[#allocation2 + $0x2c4] ss:$16 sps:$4 sm:$0xff]  }
 0x156   : > { %v1226_v32 = vpack.c.bf16 %v1106_v30, %v1102_v29  ;;  %v761_v33 = vpop.f32.mrb[8].mxu0  ;;  %2271 = vmatpush1.bf16.msra.mxu0 %v6826_v20  ;;  %2657 = vmatpush1.bf16.msra.mxu1 %v6853_v23  ;;  %v944_v23 = vpop.f32.mrb[4].mxu1 }
 0x157   : > { %v762_v37 = vadd.f32 %v761_v33, %v7607_v57  ;;  %v763_v38 = vpop.f32.mrb[9].mxu0  ;;  %2272 = vmatprep.subr.bf16.mxu0 %v6831_v22  ;;  %2658 = vmatprep.subr.bf16.mxu1 %v6861_v27  ;;  %v7643_v22 = vpack.c.bf16 %v1100_v15, %v1096_v4  ;;  %v6871_v27 = vld [vmem:[#allocation2 + $0x2a8] ss:$16 sps:$4 sm:$0xff]   ;;  %v945_v29 = vadd.f32 %v944_v23, %v7625_v36  ;;  %v946_v30 = vpop.f32.mrb[5].mxu1  ;;  %v6879_v33 = vld [vmem:[#allocation2 + $0x2cc] ss:$16 sps:$4 sm:$0xff]  }
 0x158   : > { %v764_v42 = vadd.f32 %v763_v38, %v7610_v58  ;;  %v765_v43 = vpop.f32.mrb[10].mxu0  ;;  %2117 = vmatprep.mubr.bf16.mxu0 %v1226_v32  ;;  %2503 = vmatprep.mubr.bf16.mxu1 %v1226_v32 }
 0x159   : > { %v766_v44 = vadd.f32 %v765_v43, %v7607_v57  ;;  %v767_v45 = vpop.f32.mrb[11].mxu0  ;;  %2118 = vmatmul.mubr.bf16.gmra.mrb[68].mxu0 %v1225_v31  ;;  %2504 = vmatmul.mubr.bf16.gmra.mrb[68].mxu1 %v1225_v31  ;;  %v1109_v53 = vmax.f32 %v762_v37, 0.0 }
 0x15a   : > { %v768_v48 = vadd.f32 %v767_v45, %v7610_v58  ;;  %2273 = vmatpush1.bf16.msra.mxu0 %v6829_v34  ;;  %2659 = vmatpush1.bf16.msra.mxu1 %v6859_v35  ;;  %v1110_v61 = vmax.f32 %v764_v42, 0.0  ;;  %v947_v34 = vadd.f32 %v946_v30, %v7629_v41  ;;  %v948_v35 = vpop.f32.mrb[6].mxu1 }
 0x15b   : > { %v1113_v55 = vmax.f32 %v766_v44, 0.0  ;;  %2274 = vmatprep.subr.bf16.mxu0 %v6834_v39  ;;  %2660 = vmatprep.subr.bf16.mxu1 %v6864_v40  ;;  %v1103_v39 = vmax.f32 %v945_v29, 0.0  ;;  %v949_v40 = vadd.f32 %v948_v35, %v7625_v36  ;;  %v950_v42 = vpop.f32.mrb[7].mxu1  ;;  %v6886_v29 = vld [vmem:[#allocation2 + $0x308] ss:$16 sps:$4 sm:$0xff]  }
 0x15c   : > { %v1114_v62 = vmax.f32 %v768_v48, 0.0  ;;  %v1104_v44 = vmax.f32 %v947_v34, 0.0  ;;  %v951_v45 = vadd.f32 %v950_v42, %v7629_v41  ;;  %v6841_v48 = vld [vmem:[#allocation2 + $0x2c0] ss:$16 sps:$4 sm:$0xff]   ;;  %v6891_v34 = vld [vmem:[#allocation2 + $0x32c] ss:$16 sps:$4 sm:$0xff]  }
 0x15d   : > { %v1229_v3 = vpack.c.bf16 %v1113_v55, %v1109_v53  ;;  %v6846_v53 = vld [vmem:[#allocation2 + $0x2e4] ss:$16 sps:$4 sm:$0xff]   ;;  %v6882_v55 = vld [vmem:[#allocation2 + $0x2ec] ss:$16 sps:$4 sm:$0xff]  }
 0x15e   : > { %v1230_v6 = vpack.c.bf16 %v1114_v62, %v1110_v61  ;;  %v771_v7 = vpop.f32.mrb[12].mxu0  ;;  %2275 = vmatpush1.bf16.msra.mxu0 %v6832_v46  ;;  %2661 = vmatpush1.bf16.msra.mxu1 %v6862_v50  ;;  %v1107_v50 = vmax.f32 %v949_v40, 0.0 }
 0x15f   : > { %v772_v11 = vadd.f32 %v771_v7, %v7607_v57  ;;  %v773_v12 = vpop.f32.mrb[13].mxu0  ;;  %2276 = vmatprep.subr.bf16.mxu0 %v6837_v49  ;;  %2662 = vmatprep.subr.bf16.mxu1 %v6870_v0  ;;  %v6877_v49 = vld [vmem:[#allocation2 + $0x2c8] ss:$16 sps:$4 sm:$0xff]   ;;  %v1108_v0 = vmax.f32 %v951_v45, 0.0 }
 0x160   : > { %v774_v16 = vadd.f32 %v773_v12, %v7610_v58  ;;  %v775_v17 = vpop.f32.mrb[14].mxu0  ;;  %2127 = vmatprep.mubr.bf16.mxu0 %v1230_v6  ;;  %2513 = vmatprep.mubr.bf16.mxu1 %v1230_v6  ;;  %v7652_v61 = vpack.c.bf16 %v1107_v50, %v1103_v39  ;;  %v6880_v6 = vld [vmem:[#allocation2 + $0x2e8] ss:$16 sps:$4 sm:$0xff]  }
 0x161   : > { %v776_v19 = vadd.f32 %v775_v17, %v7607_v57  ;;  %v777_v20 = vpop.f32.mrb[15].mxu0  ;;  %2128 = vmatmul.mubr.bf16.gmra.mrb[72].mxu0 %v1229_v3  ;;  %2514 = vmatmul.mubr.bf16.gmra.mrb[72].mxu1 %v1229_v3  ;;  %v1117_v31 = vmax.f32 %v772_v11, 0.0  ;;  %v7655_v2 = vpack.c.bf16 %v1108_v0, %v1104_v44  ;;  %v954_v3 = vpop.f32.mrb[8].mxu1  ;;  %v6888_v11 = vld [vmem:[#allocation2 + $0x30c] ss:$16 sps:$4 sm:$0xff]  }
 0x162   : > { %v778_v25 = vadd.f32 %v777_v20, %v7610_v58  ;;  %2277 = vmatpush1.bf16.msra.mxu0 %v6835_v8  ;;  %2663 = vmatpush1.bf16.msra.mxu1 %v6868_v9  ;;  %v1118_v37 = vmax.f32 %v774_v16, 0.0  ;;  %v955_v7 = vadd.f32 %v954_v3, %v7625_v36  ;;  %v956_v8 = vpop.f32.mrb[9].mxu1 }
 0x163   : > { %v1121_v32 = vmax.f32 %v776_v19, 0.0  ;;  %2278 = vmatprep.subr.bf16.mxu0 %v6840_v13  ;;  %2664 = vmatprep.subr.bf16.mxu1 %v6873_v14  ;;  %v957_v12 = vadd.f32 %v956_v8, %v7629_v41  ;;  %v958_v13 = vpop.f32.mrb[10].mxu1  ;;  %v6865_v8 = vld [vmem:[#allocation2 + $0x340] ss:$16 sps:$4 sm:$0xff]  }
 0x164   : > { %v1122_v38 = vmax.f32 %v778_v25, 0.0  ;;  %v1111_v16 = vmax.f32 %v955_v7, 0.0  ;;  %v959_v17 = vadd.f32 %v958_v13, %v7625_v36  ;;  %v960_v19 = vpop.f32.mrb[11].mxu1  ;;  %v6876_v13 = vld [vmem:[#allocation2 + $0x364] ss:$16 sps:$4 sm:$0xff]  }
 0x165   : > { %v1233_v43 = vpack.c.bf16 %v1121_v32, %v1117_v31  ;;  %v961_v23 = vadd.f32 %v960_v19, %v7629_v41  ;;  %v964_v45 = vpop.f32.mrb[12].mxu1 }
 0x166   : > { %v1234_v46 = vpack.c.bf16 %v1122_v38, %v1118_v37  ;;  %v781_v47 = vpop.f32.mrb[16].mxu0  ;;  %2279 = vmatpush1.bf16.msra.mxu0 %v6838_v21  ;;  %2665 = vmatpush1.bf16.msra.mxu1 %v6871_v27  ;;  %v1112_v21 = vmax.f32 %v957_v12, 0.0  ;;  %v6847_v27 = vld [vmem:[#allocation2 + $0x300] ss:$16 sps:$4 sm:$0xff]   ;;  %v1115_v30 = vmax.f32 %v959_v17, 0.0  ;;  %v966_v50 = vpop.f32.mrb[13].mxu1 }
 0x167   : > { %v782_v51 = vadd.f32 %v781_v47, %v7607_v57  ;;  %v783_v52 = vpop.f32.mrb[17].mxu0  ;;  %2280 = vmatprep.subr.bf16.mxu0 %v6843_v26  ;;  %2666 = vmatprep.subr.bf16.mxu1 %v6879_v33  ;;  %v6858_v33 = vld [vmem:[#allocation2 + $0x324] ss:$16 sps:$4 sm:$0xff]   ;;  %v1116_v35 = vmax.f32 %v961_v23, 0.0  ;;  %v968_v0 = vpop.f32.mrb[14].mxu1 }
 0x168   : > { %v784_v59 = vadd.f32 %v783_v52, %v7610_v58  ;;  %v785_v60 = vpop.f32.mrb[18].mxu0  ;;  %2137 = vmatprep.mubr.bf16.mxu0 %v1234_v46  ;;  %2523 = vmatprep.mubr.bf16.mxu1 %v1234_v46  ;;  %v7664_v39 = vpack.c.bf16 %v1115_v30, %v1111_v16  ;;  %v6867_v47 = vld [vmem:[#allocation2 + $0x344] ss:$16 sps:$4 sm:$0xff]   ;;  %v6874_v23 = vld [vmem:[#allocation2 + $0x360] ss:$16 sps:$4 sm:$0xff]  }
 0x169   : > { %v786_v62 = vadd.f32 %v785_v60, %v7607_v57  ;;  %v787_v63 = vpop.f32.mrb[19].mxu0  ;;  %2138 = vmatmul.mubr.bf16.gmra.mrb[76].mxu0 %v1233_v43  ;;  %2524 = vmatmul.mubr.bf16.gmra.mrb[76].mxu1 %v1233_v43  ;;  %v1125_v9 = vmax.f32 %v782_v51, 0.0  ;;  %v6856_v43 = vld [vmem:[#allocation2 + $0x320] ss:$16 sps:$4 sm:$0xff]   ;;  %v7667_v44 = vpack.c.bf16 %v1116_v35, %v1112_v21  ;;  %v6898_v30 = vld [vmem:[#allocation2 + $0x368] ss:$16 sps:$4 sm:$0xff]  }
 0x16a   : > { %v788_v4 = vadd.f32 %v787_v63, %v7610_v58  ;;  %2281 = vmatpush1.bf16.msra.mxu0 %v6841_v48  ;;  %2667 = vmatpush1.bf16.msra.mxu1 %v6877_v49  ;;  %v1126_v14 = vmax.f32 %v784_v59, 0.0  ;;  %v6889_v48 = vld [vmem:[#allocation2 + $0x328] ss:$16 sps:$4 sm:$0xff]   ;;  %v965_v49 = vadd.f32 %v964_v45, %v7625_v36  ;;  %v969_v63 = vadd.f32 %v968_v0, %v7625_v36  ;;  %v6906_v35 = vld [vmem:[#allocation2 + $0x38c] ss:$16 sps:$4 sm:$0xff]  }
 0x16b   : > { %v1129_v10 = vmax.f32 %v786_v62, 0.0  ;;  %2282 = vmatprep.subr.bf16.mxu0 %v6846_v53  ;;  %2668 = vmatprep.subr.bf16.mxu1 %v6882_v55  ;;  %v6897_v53 = vld [vmem:[#allocation2 + $0x34c] ss:$16 sps:$4 sm:$0xff]   ;;  %v967_v55 = vadd.f32 %v966_v50, %v7629_v41 }
 0x16c   : > { %v1130_v15 = vmax.f32 %v788_v4, 0.0  ;;  %v1119_v62 = vmax.f32 %v965_v49, 0.0 }
 0x16d   : > { %v1237_v20 = vpack.c.bf16 %v1129_v10, %v1125_v9  ;;  %v1120_v4 = vmax.f32 %v967_v55, 0.0  ;;  %v6895_v9 = vld [vmem:[#allocation2 + $0x348] ss:$16 sps:$4 sm:$0xff]   ;;  %v1123_v10 = vmax.f32 %v969_v63, 0.0 }
 0x16e   : > { %v1238_v25 = vpack.c.bf16 %v1130_v15, %v1126_v14  ;;  %v791_v26 = vpop.f32.mrb[20].mxu0  ;;  %2283 = vmatpush1.bf16.msra.mxu0 %v6844_v1  ;;  %2669 = vmatpush1.bf16.msra.mxu1 %v6880_v6  ;;  %v970_v1 = vpop.f32.mrb[15].mxu1  ;;  %v6900_v14 = vld [vmem:[#allocation2 + $0x36c] ss:$16 sps:$4 sm:$0xff]  }
 0x16f   : > { %v792_v31 = vadd.f32 %v791_v26, %v7607_v57  ;;  %v793_v32 = vpop.f32.mrb[21].mxu0  ;;  %2284 = vmatprep.subr.bf16.mxu0 %v6849_v5  ;;  %2670 = vmatprep.subr.bf16.mxu1 %v6888_v11  ;;  %v971_v5 = vadd.f32 %v970_v1, %v7629_v41  ;;  %v7676_v19 = vpack.c.bf16 %v1123_v10, %v1119_v62  ;;  %v974_v26 = vpop.f32.mrb[16].mxu1  ;;  %v6909_v62 = vld [vmem:[#allocation2 + $0x3ac] ss:$16 sps:$4 sm:$0xff]  }
 0x170   : > { %v794_v37 = vadd.f32 %v793_v32, %v7610_v58  ;;  %v795_v38 = vpop.f32.mrb[22].mxu0  ;;  %2147 = vmatprep.mubr.bf16.mxu0 %v1238_v25  ;;  %2533 = vmatprep.mubr.bf16.mxu1 %v1238_v25  ;;  %v976_v32 = vpop.f32.mrb[17].mxu1 }
 0x171   : > { %v796_v40 = vadd.f32 %v795_v38, %v7607_v57  ;;  %v797_v42 = vpop.f32.mrb[23].mxu0  ;;  %2148 = vmatmul.mubr.bf16.gmra.mrb[80].mxu0 %v1237_v20  ;;  %2534 = vmatmul.mubr.bf16.gmra.mrb[80].mxu1 %v1237_v20  ;;  %v1133_v51 = vmax.f32 %v792_v31, 0.0  ;;  %v1124_v15 = vmax.f32 %v971_v5, 0.0  ;;  %v975_v31 = vadd.f32 %v974_v26, %v7625_v36  ;;  %v978_v38 = vpop.f32.mrb[18].mxu1 }
 0x172   : > { %v798_v46 = vadd.f32 %v797_v42, %v7610_v58  ;;  %2285 = vmatpush1.bf16.msra.mxu0 %v6847_v27  ;;  %2671 = vmatpush1.bf16.msra.mxu1 %v6886_v29  ;;  %v1134_v59 = vmax.f32 %v794_v37, 0.0  ;;  %v6885_v29 = vld [vmem:[#allocation2 + $0x384] ss:$16 sps:$4 sm:$0xff]   ;;  %v977_v37 = vadd.f32 %v976_v32, %v7629_v41  ;;  %v979_v45 = vadd.f32 %v978_v38, %v7625_v36  ;;  %v6913_v38 = vld [vmem:[#allocation2 + $0x3c8] ss:$16 sps:$4 sm:$0xff]  }
 0x173   : > { %v1137_v52 = vmax.f32 %v796_v40, 0.0  ;;  %2286 = vmatprep.subr.bf16.mxu0 %v6858_v33  ;;  %2672 = vmatprep.subr.bf16.mxu1 %v6891_v34  ;;  %v7679_v25 = vpack.c.bf16 %v1124_v15, %v1120_v4 }
 0x174   : > { %v1138_v60 = vmax.f32 %v798_v46, 0.0  ;;  %v980_v46 = vpop.f32.mrb[19].mxu1  ;;  %v1131_v55 = vmax.f32 %v979_v45, 0.0  ;;  %v6912_v45 = vld [vmem:[#allocation2 + $0x3e4] ss:$16 sps:$4 sm:$0xff]  }
 0x175   : > { %v1241_v3 = vpack.c.bf16 %v1137_v52, %v1133_v51  ;;  %v981_v49 = vadd.f32 %v980_v46, %v7629_v41  ;;  %v6883_v52 = vld [vmem:[#allocation2 + $0x380] ss:$16 sps:$4 sm:$0xff]   ;;  %v6918_v46 = vld [vmem:[#allocation2 + $0x3ec] ss:$16 sps:$4 sm:$0xff]  }
 0x176   : > { %v1242_v6 = vpack.c.bf16 %v1138_v60, %v1134_v59  ;;  %v801_v7 = vpop.f32.mrb[24].mxu0  ;;  %2287 = vmatpush1.bf16.msra.mxu0 %v6856_v43  ;;  %2673 = vmatpush1.bf16.msra.mxu1 %v6889_v48  ;;  %v1127_v43 = vmax.f32 %v975_v31, 0.0  ;;  %v1128_v48 = vmax.f32 %v977_v37, 0.0  ;;  %v6894_v60 = vld [vmem:[#allocation2 + $0x3a4] ss:$16 sps:$4 sm:$0xff]  }
 0x177   : > { %v802_v11 = vadd.f32 %v801_v7, %v7607_v57  ;;  %v803_v12 = vpop.f32.mrb[25].mxu0  ;;  %2288 = vmatprep.subr.bf16.mxu0 %v6867_v47  ;;  %2674 = vmatprep.subr.bf16.mxu1 %v6897_v53  ;;  %v6904_v53 = vld [vmem:[#allocation2 + $0x388] ss:$16 sps:$4 sm:$0xff]   ;;  %v1132_v63 = vmax.f32 %v981_v49, 0.0  ;;  %v6892_v7 = vld [vmem:[#allocation2 + $0x3a0] ss:$16 sps:$4 sm:$0xff]  }
 0x178   : > { %v804_v16 = vadd.f32 %v803_v12, %v7610_v58  ;;  %v805_v17 = vpop.f32.mrb[26].mxu0  ;;  %2157 = vmatprep.mubr.bf16.mxu0 %v1242_v6  ;;  %2543 = vmatprep.mubr.bf16.mxu1 %v1242_v6  ;;  %v7688_v4 = vpack.c.bf16 %v1131_v55, %v1127_v43  ;;  %v6907_v12 = vld [vmem:[#allocation2 + $0x3a8] ss:$16 sps:$4 sm:$0xff]   ;;  %v6901_v37 = vld [vmem:[#allocation2 + $0x3c0] ss:$16 sps:$4 sm:$0xff]  }
 0x179   : > { %v806_v20 = vadd.f32 %v805_v17, %v7607_v57  ;;  %v807_v21 = vpop.f32.mrb[27].mxu0  ;;  %2158 = vmatmul.mubr.bf16.gmra.mrb[84].mxu0 %v1241_v3  ;;  %2544 = vmatmul.mubr.bf16.gmra.mrb[84].mxu1 %v1241_v3  ;;  %v1141_v33 = vmax.f32 %v802_v11, 0.0  ;;  %v6903_v11 = vld [vmem:[#allocation2 + $0x3c4] ss:$16 sps:$4 sm:$0xff]   ;;  %v6915_v17 = vld [vmem:[#allocation2 + $0x3cc] ss:$16 sps:$4 sm:$0xff]  }
 0x17a   : > { %v808_v27 = vadd.f32 %v807_v21, %v7610_v58  ;;  %2289 = vmatpush1.bf16.msra.mxu0 %v6865_v8  ;;  %2675 = vmatpush1.bf16.msra.mxu1 %v6895_v9  ;;  %v1142_v40 = vmax.f32 %v804_v16, 0.0  ;;  %v7691_v8 = vpack.c.bf16 %v1132_v63, %v1128_v48  ;;  %v984_v9 = vpop.f32.mrb[20].mxu1 }
 0x17b   : > { %v1145_v34 = vmax.f32 %v806_v20, 0.0  ;;  %2290 = vmatprep.subr.bf16.mxu0 %v6876_v13  ;;  %2676 = vmatprep.subr.bf16.mxu1 %v6900_v14  ;;  %v985_v13 = vadd.f32 %v984_v9, %v7625_v36  ;;  %v986_v14 = vpop.f32.mrb[21].mxu1 }
 0x17c   : > { %v1146_v42 = vmax.f32 %v808_v27, 0.0  ;;  %v987_v20 = vadd.f32 %v986_v14, %v7629_v41  ;;  %v988_v21 = vpop.f32.mrb[22].mxu1 }
 0x17d   : > { %v1245_v47 = vpack.c.bf16 %v1145_v34, %v1141_v33  ;;  %v1135_v27 = vmax.f32 %v985_v13, 0.0 }
 0x17e   : > { %v1246_v50 = vpack.c.bf16 %v1146_v42, %v1142_v40  ;;  %v811_v51 = vpop.f32.mrb[28].mxu0  ;;  %2291 = vmatpush1.bf16.msra.mxu0 %v6874_v23  ;;  %2677 = vmatpush1.bf16.msra.mxu1 %v6898_v30  ;;  %v990_v30 = vpop.f32.mrb[23].mxu1  ;;  %v1136_v32 = vmax.f32 %v987_v20, 0.0 }
 0x17f   : > { %v812_v0 = vadd.f32 %v811_v51, %v7607_v57  ;;  %v813_v59 = vpop.f32.mrb[29].mxu0  ;;  %2292 = vmatprep.subr.bf16.mxu0 %v6885_v29  ;;  %2678 = vmatprep.subr.bf16.mxu1 %v6906_v35  ;;  %v989_v29 = vadd.f32 %v988_v21, %v7625_v36  ;;  %v991_v33 = vadd.f32 %v990_v30, %v7629_v41  ;;  %v994_v55 = vpop.f32.mrb[24].mxu1 }
 0x180   : > { %v814_v1 = vadd.f32 %v813_v59, %v7610_v58  ;;  %v815_v3 = vpop.f32.mrb[30].mxu0  ;;  %2167 = vmatprep.mubr.bf16.mxu0 %v1246_v50  ;;  %2553 = vmatprep.mubr.bf16.mxu1 %v1246_v50  ;;  %v6910_v59 = vld [vmem:[#allocation2 + $0x3e0] ss:$16 sps:$4 sm:$0xff]   ;;  %v996_v63 = vpop.f32.mrb[25].mxu1 }
 0x181   : > { %v816_v5 = vadd.f32 %v815_v3, %v7607_v57  ;;  %v817_v6 = vpop.f32.mrb[31].mxu0  ;;  %2168 = vmatmul.mubr.bf16.gmra.mrb[88].mxu0 %v1245_v47  ;;  %2554 = vmatmul.mubr.bf16.gmra.mrb[88].mxu1 %v1245_v47  ;;  %v1149_v15 = vmax.f32 %v812_v0, 0.0  ;;  %v1139_v40 = vmax.f32 %v989_v29, 0.0  ;;  %v1140_v47 = vmax.f32 %v991_v33, 0.0 }
 0x182   : > { %v818_v10 = vadd.f32 %v817_v6, %v7610_v58  ;;  %2293 = vmatpush1.bf16.msra.mxu0 %v6883_v52  ;;  %2679 = vmatpush1.bf16.msra.mxu1 %v6904_v53  ;;  %v1150_v23 = vmax.f32 %v814_v1, 0.0  ;;  %v998_v6 = vpop.f32.mrb[26].mxu1 }
 0x183   : > { %v1153_v16 = vmax.f32 %v816_v5, 0.0  ;;  %2294 = vmatprep.subr.bf16.mxu0 %v6894_v60  ;;  %2680 = vmatprep.subr.bf16.mxu1 %v6909_v62  ;;  %v7700_v50 = vpack.c.bf16 %v1139_v40, %v1135_v27  ;;  %v7703_v53 = vpack.c.bf16 %v1140_v47, %v1136_v32  ;;  %v6916_v60 = vld [vmem:[#allocation2 + $0x3e8] ss:$16 sps:$4 sm:$0xff]   ;;  %v995_v62 = vadd.f32 %v994_v55, %v7625_v36 }
 0x184   : > { %v1154_v26 = vmax.f32 %v818_v10, 0.0  ;;  %v997_v5 = vadd.f32 %v996_v63, %v7629_v41 }
 0x185   : > { %v1249_v31 = vpack.c.bf16 %v1153_v16, %v1149_v15  ;;  %v1143_v10 = vmax.f32 %v995_v62, 0.0 }
 0x186   : > { %v1250_v34 = vpack.c.bf16 %v1154_v26, %v1150_v23  ;;  %v821_v35 = vpop.f32.mrb[32].mxu0  ;;  %2295 = vmatpush1.bf16.msra.mxu0 %v6892_v7  ;;  %2681 = vmatpush1.bf16.msra.mxu1 %v6907_v12  ;;  %v1000_v12 = vpop.f32.mrb[27].mxu1  ;;  %v1144_v14 = vmax.f32 %v997_v5, 0.0 }
 0x187   : > { %v822_v42 = vadd.f32 %v821_v35, %v7607_v57  ;;  %v823_v43 = vpop.f32.mrb[33].mxu0  ;;  %2296 = vmatprep.subr.bf16.mxu0 %v6903_v11  ;;  %2682 = vmatprep.subr.bf16.mxu1 %v6915_v17  ;;  %v999_v11 = vadd.f32 %v998_v6, %v7625_v36  ;;  %v1001_v15 = vadd.f32 %v1000_v12, %v7629_v41 }
 0x188   : > { %v824_v48 = vadd.f32 %v823_v43, %v7610_v58  ;;  %v825_v49 = vpop.f32.mrb[34].mxu0  ;;  %2177 = vmatprep.mubr.bf16.mxu0 %v1250_v34  ;;  %2563 = vmatprep.mubr.bf16.mxu1 %v1250_v34  ;;  %v1004_v34 = vpop.f32.mrb[28].mxu1 }
 0x189   : > { %v826_v51 = vadd.f32 %v825_v49, %v7607_v57  ;;  %v827_v52 = vpop.f32.mrb[35].mxu0  ;;  %2178 = vmatmul.mubr.bf16.gmra.mrb[92].mxu0 %v1249_v31  ;;  %2564 = vmatmul.mubr.bf16.gmra.mrb[92].mxu1 %v1249_v31  ;;  %v1157_v1 = vmax.f32 %v822_v42, 0.0  ;;  %v1147_v20 = vmax.f32 %v999_v11, 0.0  ;;  %v1148_v26 = vmax.f32 %v1001_v15, 0.0 }
 0x18a   : > { %v828_v0 = vadd.f32 %v827_v52, %v7610_v58  ;;  %2297 = vmatpush1.bf16.msra.mxu0 %v6901_v37  ;;  %2683 = vmatpush1.bf16.msra.mxu1 %v6913_v38  ;;  %v1158_v7 = vmax.f32 %v824_v48, 0.0  ;;  %v1005_v37 = vadd.f32 %v1004_v34, %v7625_v36  ;;  %v1006_v38 = vpop.f32.mrb[29].mxu1 }
 0x18b   : > { %v1161_v3 = vmax.f32 %v826_v51, 0.0  ;;  %2298 = vmatprep.subr.bf16.mxu0 %v6912_v45  ;;  %2684 = vmatprep.subr.bf16.mxu1 %v6918_v46  ;;  %v7712_v30 = vpack.c.bf16 %v1147_v20, %v1143_v10  ;;  %v7715_v33 = vpack.c.bf16 %v1148_v26, %v1144_v14  ;;  %v1007_v43 = vadd.f32 %v1006_v38, %v7629_v41  ;;  %v1008_v45 = vpop.f32.mrb[30].mxu1 }
 0x18c   : > { %v1162_v9 = vmax.f32 %v828_v0, 0.0  ;;  %v1151_v48 = vmax.f32 %v1005_v37, 0.0  ;;  %v1009_v49 = vadd.f32 %v1008_v45, %v7625_v36  ;;  %v1010_v51 = vpop.f32.mrb[31].mxu1 }
 0x18d   : > { %v1253_v13 = vpack.c.bf16 %v1161_v3, %v1157_v1  ;;  %v1152_v55 = vmax.f32 %v1007_v43, 0.0  ;;  %v1011_v0 = vadd.f32 %v1010_v51, %v7629_v41  ;;  %v1014_v12 = vpop.f32.mrb[32].mxu1 }
 0x18e   : > { %v1254_v16 = vpack.c.bf16 %v1162_v9, %v1158_v7  ;;  %v831_v17 = vpop.f32.mrb[36].mxu0  ;;  %2299 = vmatpush1.bf16.msra.mxu0 %v6910_v59  ;;  %2685 = vmatpush1.bf16.msra.mxu1 %v6916_v60  ;;  %v1155_v62 = vmax.f32 %v1009_v49, 0.0  ;;  %v1015_v14 = vadd.f32 %v1014_v12, %v7625_v36  ;;  %v1016_v15 = vpop.f32.mrb[33].mxu1 }
 0x18f   : > { %v832_v21 = vadd.f32 %v831_v17, %v7607_v57  ;;  %v833_v23 = vpop.f32.mrb[37].mxu0  ;;  %v1156_v3 = vmax.f32 %v1011_v0, 0.0  ;;  %v1017_v20 = vadd.f32 %v1016_v15, %v7629_v41 }
 0x190   : > { %v834_v27 = vadd.f32 %v833_v23, %v7610_v58  ;;  %v835_v29 = vpop.f32.mrb[38].mxu0  ;;  %2187 = vmatprep.mubr.bf16.mxu0 %v1254_v16  ;;  %2573 = vmatprep.mubr.bf16.mxu1 %v1254_v16  ;;  %v7724_v7 = vpack.c.bf16 %v1155_v62, %v1151_v48 }
 0x191   : > { %v836_v31 = vadd.f32 %v835_v29, %v7607_v57  ;;  %v837_v32 = vpop.f32.mrb[39].mxu0  ;;  %2188 = vmatmul.mubr.bf16.gmra.mrb[96].mxu0 %v1253_v13  ;;  %2574 = vmatmul.mubr.bf16.gmra.mrb[96].mxu1 %v1253_v13  ;;  %v1165_v40 = vmax.f32 %v832_v21, 0.0  ;;  %v7727_v11 = vpack.c.bf16 %v1156_v3, %v1152_v55  ;;  %v1018_v21 = vpop.f32.mrb[34].mxu1  ;;  %v1160_v34 = vmax.f32 %v1017_v20, 0.0 }
 0x192   : > { %v838_v35 = vadd.f32 %v837_v32, %v7610_v58  ;;  %v1166_v46 = vmax.f32 %v834_v27, 0.0  ;;  %v1159_v27 = vmax.f32 %v1015_v14, 0.0  ;;  %v1019_v29 = vadd.f32 %v1018_v21, %v7625_v36 }
 0x193   : > { %v1169_v42 = vmax.f32 %v836_v31, 0.0  ;;  %v1020_v31 = vpop.f32.mrb[35].mxu1 }
 0x194   : > { %v1170_v47 = vmax.f32 %v838_v35, 0.0  ;;  %v1021_v35 = vadd.f32 %v1020_v31, %v7629_v41  ;;  %v1024_v55 = vpop.f32.mrb[36].mxu1 }
 0x195   : > { %v1257_v52 = vpack.c.bf16 %v1169_v42, %v1165_v40  ;;  %v1163_v40 = vmax.f32 %v1019_v29, 0.0 }
 0x196   : > { %v1258_v59 = vpack.c.bf16 %v1170_v47, %v1166_v46  ;;  %v841_v60 = vpop.f32.mrb[40].mxu0  ;;  %v1164_v45 = vmax.f32 %v1021_v35, 0.0 }
 0x197   : > { %v842_v63 = vadd.f32 %v841_v60, %v7607_v57  ;;  %v843_v1 = vpop.f32.mrb[41].mxu0  ;;  %v7736_v48 = vpack.c.bf16 %v1163_v40, %v1159_v27  ;;  %v1026_v60 = vpop.f32.mrb[37].mxu1 }
 0x198   : > { %v844_v5 = vadd.f32 %v843_v1, %v7610_v58  ;;  %v845_v6 = vpop.f32.mrb[42].mxu0  ;;  %2197 = vmatprep.mubr.bf16.mxu0 %v1258_v59  ;;  %2583 = vmatprep.mubr.bf16.mxu1 %v1258_v59  ;;  %v1025_v59 = vadd.f32 %v1024_v55, %v7625_v36  ;;  %v1027_v1 = vadd.f32 %v1026_v60, %v7629_v41  ;;  %v1028_v3 = vpop.f32.mrb[38].mxu1 }
 0x199   : > { %v846_v9 = vadd.f32 %v845_v6, %v7607_v57  ;;  %v847_v10 = vpop.f32.mrb[43].mxu0  ;;  %2198 = vmatmul.mubr.bf16.gmra.mrb[100].mxu0 %v1257_v52  ;;  %2584 = vmatmul.mubr.bf16.gmra.mrb[100].mxu1 %v1257_v52  ;;  %v1173_v16 = vmax.f32 %v842_v63, 0.0  ;;  %v7739_v52 = vpack.c.bf16 %v1164_v45, %v1160_v34  ;;  %v1030_v12 = vpop.f32.mrb[39].mxu1 }
 0x19a   : > { %v848_v13 = vadd.f32 %v847_v10, %v7610_v58  ;;  %v1174_v23 = vmax.f32 %v844_v5, 0.0  ;;  %v1029_v10 = vadd.f32 %v1028_v3, %v7625_v36  ;;  %v1168_v14 = vmax.f32 %v1027_v1, 0.0 }
 0x19b   : > { %v1177_v17 = vmax.f32 %v846_v9, 0.0  ;;  %v1167_v9 = vmax.f32 %v1025_v59, 0.0  ;;  %v1031_v15 = vadd.f32 %v1030_v12, %v7629_v41 }
 0x19c   : > { %v1178_v26 = vmax.f32 %v848_v13, 0.0  ;;  %v1171_v20 = vmax.f32 %v1029_v10, 0.0 }
 0x19d   : > { %v1261_v32 = vpack.c.bf16 %v1177_v17, %v1173_v16 }
 0x19e   : > { %v1262_v37 = vpack.c.bf16 %v1178_v26, %v1174_v23  ;;  %v851_v38 = vpop.f32.mrb[44].mxu0  ;;  %v1172_v26 = vmax.f32 %v1031_v15, 0.0  ;;  %v7748_v31 = vpack.c.bf16 %v1171_v20, %v1167_v9 }
 0x19f   : > { %v852_v42 = vadd.f32 %v851_v38, %v7607_v57  ;;  %v853_v43 = vpop.f32.mrb[45].mxu0 }
 0x1a0   : > { %v854_v46 = vadd.f32 %v853_v43, %v7610_v58  ;;  %v855_v47 = vpop.f32.mrb[46].mxu0  ;;  %2207 = vmatprep.mubr.bf16.mxu0 %v1262_v37  ;;  %2593 = vmatprep.mubr.bf16.mxu1 %v1262_v37  ;;  %v7751_v35 = vpack.c.bf16 %v1172_v26, %v1168_v14  ;;  %v1034_v37 = vpop.f32.mrb[40].mxu1  ;;  %v6921_v43 = vld [vmem:[#allocation5 + $0x4] ss:$16 sps:$4 sm:$0xff]  }
 0x1a1   : > { %v856_v49 = vadd.f32 %v855_v47, %v7607_v57  ;;  %v857_v51 = vpop.f32.mrb[47].mxu0  ;;  %2208 = vmatmul.mubr.bf16.gmra.mrb[104].mxu0 %v1261_v32  ;;  %2594 = vmatmul.mubr.bf16.gmra.mrb[104].mxu1 %v1261_v32  ;;  %v1181_v62 = vmax.f32 %v852_v42, 0.0  ;;  %v1035_v40 = vadd.f32 %v1034_v37, %v7625_v36  ;;  %v1036_v42 = vpop.f32.mrb[41].mxu1 }
 0x1a2   : > { %v858_v0 = vadd.f32 %v857_v51, %v7610_v58  ;;  %v1182_v5 = vmax.f32 %v854_v46, 0.0  ;;  %v1037_v47 = vadd.f32 %v1036_v42, %v7629_v41  ;;  %v6924_v51 = vld [vmem:[#allocation5 + $0xc] ss:$16 sps:$4 sm:$0xff]   ;;  %3829 = vmatprep.subr.bf16.mxu0 %v6921_v43 }
 0x1a3   : > { %v1185_v63 = vmax.f32 %v856_v49, 0.0  ;;  %v1038_v49 = vpop.f32.mrb[42].mxu1  ;;  %v1175_v59 = vmax.f32 %v1035_v40, 0.0  ;;  %4215 = vmatprep.subr.bf16.mxu1 %v6924_v51 }
 0x1a4   : > { %v1186_v6 = vmax.f32 %v858_v0, 0.0  ;;  %v1039_v60 = vadd.f32 %v1038_v49, %v7625_v36  ;;  %v1176_v1 = vmax.f32 %v1037_v47, 0.0 }
 0x1a5   : > { %v1265_v13 = vpack.c.bf16 %v1185_v63, %v1181_v62  ;;  %v1040_v62 = vpop.f32.mrb[43].mxu1 }
 0x1a6   : > { %v1266_v16 = vpack.c.bf16 %v1186_v6, %v1182_v5  ;;  %v861_v17 = vpop.f32.mrb[48].mxu0  ;;  %v1041_v3 = vadd.f32 %v1040_v62, %v7629_v41  ;;  %v1179_v9 = vmax.f32 %v1039_v60, 0.0 }
 0x1a7   : > { %v862_v21 = vadd.f32 %v861_v17, %v7607_v57  ;;  %v863_v23 = vpop.f32.mrb[49].mxu0 }
 0x1a8   : > { %v864_v27 = vadd.f32 %v863_v23, %v7610_v58  ;;  %v865_v29 = vpop.f32.mrb[50].mxu0  ;;  %2217 = vmatprep.mubr.bf16.mxu0 %v1266_v16  ;;  %2603 = vmatprep.mubr.bf16.mxu1 %v1266_v16  ;;  %v7760_v16 = vpack.c.bf16 %v1179_v9, %v1175_v59  ;;  %v1044_v23 = vpop.f32.mrb[44].mxu1 }
 0x1a9   : > { %v866_v32 = vadd.f32 %v865_v29, %v7607_v57  ;;  %v867_v34 = vpop.f32.mrb[51].mxu0  ;;  %2218 = vmatmul.mubr.bf16.gmra.mrb[108].mxu0 %v1265_v13  ;;  %2604 = vmatmul.mubr.bf16.gmra.mrb[108].mxu1 %v1265_v13  ;;  %v1189_v45 = vmax.f32 %v862_v21, 0.0  ;;  %v1180_v13 = vmax.f32 %v1041_v3, 0.0  ;;  %v1046_v29 = vpop.f32.mrb[45].mxu1 }
 0x1aa   : > { %v868_v38 = vadd.f32 %v867_v34, %v7610_v58  ;;  %v1190_v55 = vmax.f32 %v864_v27, 0.0  ;;  %v1045_v27 = vadd.f32 %v1044_v23, %v7625_v36  ;;  %v1047_v37 = vadd.f32 %v1046_v29, %v7629_v41 }
 0x1ab   : > { %v1193_v46 = vmax.f32 %v866_v32, 0.0  ;;  %v7763_v21 = vpack.c.bf16 %v1180_v13, %v1176_v1 }
 0x1ac   : > { %v1194_v0 = vmax.f32 %v868_v38, 0.0  ;;  %v1048_v38 = vpop.f32.mrb[46].mxu1  ;;  %v1183_v43 = vmax.f32 %v1045_v27, 0.0  ;;  %v1184_v49 = vmax.f32 %v1047_v37, 0.0 }
 0x1ad   : > { %v1269_v63 = vpack.c.bf16 %v1193_v46, %v1189_v45  ;;  %v1049_v45 = vadd.f32 %v1048_v38, %v7625_v36  ;;  %v1050_v46 = vpop.f32.mrb[47].mxu1 }
 0x1ae   : > { %v1270_v5 = vpack.c.bf16 %v1194_v0, %v1190_v55  ;;  %v871_v6 = vpop.f32.mrb[52].mxu0  ;;  %v1051_v51 = vadd.f32 %v1050_v46, %v7629_v41 }
 0x1af   : > { %v872_v10 = vadd.f32 %v871_v6, %v7607_v57  ;;  %v873_v12 = vpop.f32.mrb[53].mxu0  ;;  %v1187_v59 = vmax.f32 %v1049_v45, 0.0 }
 0x1b0   : > { %v874_v14 = vadd.f32 %v873_v12, %v7610_v58  ;;  %v875_v15 = vpop.f32.mrb[54].mxu0  ;;  %2227 = vmatprep.mubr.bf16.mxu0 %v1270_v5  ;;  %2613 = vmatprep.mubr.bf16.mxu1 %v1270_v5  ;;  %v1054_v12 = vpop.f32.mrb[48].mxu1 }
 0x1b1   : > { %v876_v17 = vadd.f32 %v875_v15, %v7607_v57  ;;  %v877_v20 = vpop.f32.mrb[55].mxu0  ;;  %2228 = vmatmul.mubr.bf16.gmra.mrb[112].mxu0 %v1269_v63  ;;  %2614 = vmatmul.mubr.bf16.gmra.mrb[112].mxu1 %v1269_v63  ;;  %v1197_v32 = vmax.f32 %v872_v10, 0.0  ;;  %v1188_v63 = vmax.f32 %v1051_v51, 0.0  ;;  %v7772_v5 = vpack.c.bf16 %v1187_v59, %v1183_v43  ;;  %v1056_v15 = vpop.f32.mrb[49].mxu1 }
 0x1b2   : > { %v878_v26 = vadd.f32 %v877_v20, %v7610_v58  ;;  %v1198_v40 = vmax.f32 %v874_v14, 0.0  ;;  %v1055_v14 = vadd.f32 %v1054_v12, %v7625_v36  ;;  %v1057_v23 = vadd.f32 %v1056_v15, %v7629_v41 }
 0x1b3   : > { %v1201_v34 = vmax.f32 %v876_v17, 0.0  ;;  %v7775_v10 = vpack.c.bf16 %v1188_v63, %v1184_v49 }
 0x1b4   : > { %v1202_v42 = vmax.f32 %v878_v26, 0.0  ;;  %v1058_v26 = vpop.f32.mrb[50].mxu1 }
 0x1b5   : > { %v1273_v47 = vpack.c.bf16 %v1201_v34, %v1197_v32  ;;  %v1191_v32 = vmax.f32 %v1055_v14, 0.0  ;;  %v1059_v34 = vadd.f32 %v1058_v26, %v7625_v36  ;;  %v1060_v37 = vpop.f32.mrb[51].mxu1 }
 0x1b6   : > { %v1274_v55 = vpack.c.bf16 %v1202_v42, %v1198_v40  ;;  %v881_v0 = vpop.f32.mrb[56].mxu0  ;;  %v1192_v40 = vmax.f32 %v1057_v23, 0.0  ;;  %v1061_v42 = vadd.f32 %v1060_v37, %v7629_v41 }
 0x1b7   : > { %v882_v60 = vadd.f32 %v881_v0, %v7607_v57  ;;  %v883_v62 = vpop.f32.mrb[57].mxu0  ;;  %v1195_v46 = vmax.f32 %v1059_v34, 0.0 }
 0x1b8   : > { %v884_v1 = vadd.f32 %v883_v62, %v7610_v58  ;;  %v885_v3 = vpop.f32.mrb[58].mxu0  ;;  %2237 = vmatprep.mubr.bf16.mxu0 %v1274_v55  ;;  %2623 = vmatprep.mubr.bf16.mxu1 %v1274_v55  ;;  %v1196_v51 = vmax.f32 %v1061_v42, 0.0 }
 0x1b9   : > { %v886_v6 = vadd.f32 %v885_v3, %v7607_v57  ;;  %v887_v9 = vpop.f32.mrb[59].mxu0  ;;  %2238 = vmatmul.mubr.bf16.gmra.mrb[116].mxu0 %v1273_v47  ;;  %2624 = vmatmul.mubr.bf16.gmra.mrb[116].mxu1 %v1273_v47  ;;  %v1205_v17 = vmax.f32 %v882_v60, 0.0  ;;  %v7784_v59 = vpack.c.bf16 %v1195_v46, %v1191_v32 }
 0x1ba   : > { %v888_v13 = vadd.f32 %v887_v9, %v7610_v58  ;;  %v1206_v27 = vmax.f32 %v884_v1, 0.0  ;;  %v7787_v63 = vpack.c.bf16 %v1196_v51, %v1192_v40  ;;  %v1064_v1 = vpop.f32.mrb[52].mxu1 }
 0x1bb   : > { %v1209_v20 = vmax.f32 %v886_v6, 0.0  ;;  %v1065_v6 = vadd.f32 %v1064_v1, %v7625_v36  ;;  %v1066_v9 = vpop.f32.mrb[53].mxu1  ;;  %v6919_v1 = vld [vmem:[#allocation5] ss:$16 sps:$4 sm:$0xff]  }
 0x1bc   : > { %v1210_v29 = vmax.f32 %v888_v13, 0.0  ;;  %v1067_v14 = vadd.f32 %v1066_v9, %v7629_v41  ;;  %v1068_v15 = vpop.f32.mrb[54].mxu1 }
 0x1bd   : > { %v1277_v38 = vpack.c.bf16 %v1209_v20, %v1205_v17  ;;  %v1199_v23 = vmax.f32 %v1065_v6, 0.0  ;;  %v1070_v26 = vpop.f32.mrb[55].mxu1 }
 0x1be   : > { %v1278_v43 = vpack.c.bf16 %v1210_v29, %v1206_v27  ;;  %v891_v45 = vpop.f32.mrb[60].mxu0  ;;  %v1200_v29 = vmax.f32 %v1067_v14, 0.0  ;;  %v1071_v32 = vadd.f32 %v1070_v26, %v7629_v41  ;;  %v1074_v42 = vpop.f32.mrb[56].mxu1 }
 0x1bf   : > { %v892_v47 = vadd.f32 %v891_v45, %v7607_v57  ;;  %v893_v49 = vpop.f32.mrb[61].mxu0  ;;  %v1076_v45 = vpop.f32.mrb[57].mxu1 }
 0x1c0   : > { %v894_v55 = vadd.f32 %v893_v49, %v7610_v58  ;;  %v895_v0 = vpop.f32.mrb[62].mxu0  ;;  %2247 = vmatprep.mubr.bf16.mxu0 %v1278_v43  ;;  %2633 = vmatprep.mubr.bf16.mxu1 %v1278_v43  ;;  %v1204_v37 = vmax.f32 %v1071_v32, 0.0  ;;  %v1075_v43 = vadd.f32 %v1074_v42, %v7625_v36  ;;  %v1077_v46 = vadd.f32 %v1076_v45, %v7629_v41  ;;  %v6933_v32 = vld [vmem:[#allocation5 + $0x44] ss:$16 sps:$4 sm:$0xff]   ;;  %v6934_v45 = vld [vmem:[#allocation5 + $0x48] ss:$16 sps:$4 sm:$0xff]  }
 0x1c1   : > { %v896_v60 = vadd.f32 %v895_v0, %v7607_v57  ;;  %v897_v62 = vpop.f32.mrb[63].mxu0  ;;  %2248 = vmatmul.mubr.bf16.gmra.mrb[120].mxu0 %v1277_v38  ;;  %2634 = vmatmul.mubr.bf16.gmra.mrb[120].mxu1 %v1277_v38  ;;  %v1213_v12 = vmax.f32 %v892_v47, 0.0  ;;  %v1069_v57 = vadd.f32 %v1068_v15, %v7625_v36  ;;  %v1078_v47 = vpop.f32.mrb[58].mxu1 }
 0x1c2   : > { %v898_v3 = vadd.f32 %v897_v62, %v7610_v58  ;;  %v1214_v17 = vmax.f32 %v894_v55, 0.0  ;;  %v7796_v40 = vpack.c.bf16 %v1204_v37, %v1200_v29  ;;  %v1207_v49 = vmax.f32 %v1075_v43, 0.0  ;;  %v1080_v55 = vpop.f32.mrb[59].mxu1  ;;  %v6931_v43 = vld [vmem:[#allocation5 + $0x40] ss:$16 sps:$4 sm:$0xff]  }
 0x1c3   : > { %v1217_v13 = vmax.f32 %v896_v60, 0.0  ;;  %v1203_v58 = vmax.f32 %v1069_v57, 0.0  ;;  %v1079_v51 = vadd.f32 %v1078_v47, %v7625_v36  ;;  %v1208_v0 = vmax.f32 %v1077_v46, 0.0  ;;  %v1084_v14 = vpop.f32.mrb[60].mxu1  ;;  %v6939_v47 = vld [vmem:[#allocation5 + $0x64] ss:$16 sps:$4 sm:$0xff]  }
 0x1c4   : > { %v1218_v20 = vmax.f32 %v898_v3, 0.0  ;;  %v1081_v60 = vadd.f32 %v1080_v55, %v7629_v41  ;;  %v6922_v3 = vld [vmem:[#allocation5 + $0x8] ss:$16 sps:$4 sm:$0xff]   ;;  %v1085_v15 = vadd.f32 %v1084_v14, %v7625_v36  ;;  %v6945_v55 = vld [vmem:[#allocation5 + $0x84] ss:$16 sps:$4 sm:$0xff]  }
 0x1c5   : > { %v1281_v27 = vpack.c.bf16 %v1217_v13, %v1213_v12  ;;  %v7794_v38 = vpack.c.bf16 %v1203_v58, %v1199_v23  ;;  %v1211_v62 = vmax.f32 %v1079_v51, 0.0  ;;  %v6930_v12 = vld [vmem:[#allocation5 + $0x2c] ss:$16 sps:$4 sm:$0xff]   ;;  %v6928_v23 = vld [vmem:[#allocation5 + $0x28] ss:$16 sps:$4 sm:$0xff]  }
 0x1c6   : > { %v1282_v34 = vpack.c.bf16 %v1218_v20, %v1214_v17  ;;  %v1212_v6 = vmax.f32 %v1081_v60, 0.0  ;;  %v1086_v17 = vpop.f32.mrb[61].mxu1  ;;  %v6925_v20 = vld [vmem:[#allocation5 + $0x20] ss:$16 sps:$4 sm:$0xff]   ;;  %v6940_v51 = vld [vmem:[#allocation5 + $0x68] ss:$16 sps:$4 sm:$0xff]  }
 0x1c7   : > { %v7804_v9 = vpack.c.bf16 %v1211_v62, %v1207_v49  ;;  %v1087_v57 = vadd.f32 %v1086_v17, %v7629_v41  ;;  %v1088_v26 = vpop.f32.mrb[62].mxu1  ;;  %v6942_v49 = vld [vmem:[#allocation5 + $0x6c] ss:$16 sps:$4 sm:$0xff]   ;;  %v6943_v60 = vld [vmem:[#allocation5 + $0x80] ss:$16 sps:$4 sm:$0xff]  }
 0x1c8   : > { %2257 = vmatprep.mubr.bf16.mxu0 %v1282_v34  ;;  %2643 = vmatprep.mubr.bf16.mxu1 %v1282_v34  ;;  %v7808_v13 = vpack.c.bf16 %v1212_v6, %v1208_v0  ;;  %v1090_v29 = vpop.f32.mrb[63].mxu1  ;;  %v6936_v34 = vld [vmem:[#allocation5 + $0x4c] ss:$16 sps:$4 sm:$0xff]   ;;  %v6946_v62 = vld [vmem:[#allocation5 + $0x88] ss:$16 sps:$4 sm:$0xff]  }
 0x1c9   : > { %2258 = vmatmul.mubr.bf16.gmra.mrb[124].mxu0 %v1281_v27  ;;  %2644 = vmatmul.mubr.bf16.gmra.mrb[124].mxu1 %v1281_v27  ;;  %v1089_v27 = vadd.f32 %v1088_v26, %v7625_v36  ;;  %v1216_v58 = vmax.f32 %v1087_v57, 0.0  ;;  %v6948_v0 = vld [vmem:[#allocation5 + $0x8c] ss:$16 sps:$4 sm:$0xff]   ;;  %v6957_v6 = vld [vmem:[#allocation5 + $0xc4] ss:$16 sps:$4 sm:$0xff]  }
 0x1ca   : > { %2300 = vmatprep.mubr.bf16.mxu0 %v7643_v22  ;;  %2686 = vmatprep.mubr.bf16.mxu1 %v7643_v22  ;;  %v6927_v22 = vld [vmem:[#allocation5 + $0x24] ss:$16 sps:$4 sm:$0xff]   ;;  %v6958_v14 = vld [vmem:[#allocation5 + $0xc8] ss:$16 sps:$4 sm:$0xff]   ;;  %v6967_v57 = vld [vmem:[#allocation5 + $0x100] ss:$16 sps:$4 sm:$0xff]  }
 0x1cb   : > { %v1219_v37 = vmax.f32 %v1089_v27, 0.0  ;;  %v6964_v17 = vld [vmem:[#allocation5 + $0xe8] ss:$16 sps:$4 sm:$0xff]  }
 0x1cc   : > { %v6970_v26 = vld [vmem:[#allocation5 + $0x108] ss:$16 sps:$4 sm:$0xff]  }
 0x1cd   : > { %v6976_v27 = vld [vmem:[#allocation5 + $0x128] ss:$16 sps:$4 sm:$0xff]  }
 0x1d1   : > { %2301 = vmatmul.mubr.bf16.vlgmr.msra.gmra.mrb[64].mxu0 %v7640_v18  ;;  %2687 = vmatmul.mubr.bf16.vlgmr.msra.gmra.mrb[64].mxu1 %v7640_v18  ;;  %v1215_v18 = vmax.f32 %v1085_v15, 0.0  ;;  %v6963_v15 = vld [vmem:[#allocation5 + $0xe4] ss:$16 sps:$4 sm:$0xff]  }
 0x1d2   : > { %2310 = vmatprep.mubr.bf16.mxu0 %v7655_v2  ;;  %2696 = vmatprep.mubr.bf16.mxu1 %v7655_v2  ;;  %v1091_v2 = vadd.f32 %v1090_v29, %v7629_v41  ;;  %v6937_v41 = vld [vmem:[#allocation5 + $0x60] ss:$16 sps:$4 sm:$0xff]   ;;  %v6981_v29 = vld [vmem:[#allocation5 + $0x144] ss:$16 sps:$4 sm:$0xff]  }
 0x1d3   : > { %3830 = vmatpush1.bf16.msra.mxu0 %v6919_v1  ;;  %4216 = vmatpush1.bf16.msra.mxu1 %v6922_v3  ;;  %v7816_v46 = vpack.c.bf16 %v1219_v37, %v1215_v18  ;;  %v6954_v1 = vld [vmem:[#allocation5 + $0xac] ss:$16 sps:$4 sm:$0xff]   ;;  %v6952_v3 = vld [vmem:[#allocation5 + $0xa8] ss:$16 sps:$4 sm:$0xff]   ;;  %v6975_v18 = vld [vmem:[#allocation5 + $0x124] ss:$16 sps:$4 sm:$0xff]  }
 0x1d4   : > { %3831 = vmatprep.subr.bf16.mxu0 %v6927_v22  ;;  %4217 = vmatprep.subr.bf16.mxu1 %v6930_v12  ;;  %v1220_v42 = vmax.f32 %v1091_v2, 0.0  ;;  %v6960_v22 = vld [vmem:[#allocation5 + $0xcc] ss:$16 sps:$4 sm:$0xff]   ;;  %v6955_v12 = vld [vmem:[#allocation5 + $0xc0] ss:$16 sps:$4 sm:$0xff]  }
 0x1d5   : > { %v6987_v2 = vld [vmem:[#allocation5 + $0x164] ss:$16 sps:$4 sm:$0xff]   ;;  %v6988_v37 = vld [vmem:[#allocation5 + $0x168] ss:$16 sps:$4 sm:$0xff]  }
 0x1d6   : > { %v7820_v36 = vpack.c.bf16 %v1220_v42, %v1216_v58  ;;  %v6982_v58 = vld [vmem:[#allocation5 + $0x148] ss:$16 sps:$4 sm:$0xff]   ;;  %v6993_v42 = vld [vmem:[#allocation5 + $0x184] ss:$16 sps:$4 sm:$0xff]  }
 0x1d7   : > { %3832 = vmatpush1.bf16.msra.mxu0 %v6925_v20  ;;  %4218 = vmatpush1.bf16.msra.mxu1 %v6928_v23  ;;  %v6969_v20 = vld [vmem:[#allocation5 + $0x104] ss:$16 sps:$4 sm:$0xff]   ;;  %v6972_v23 = vld [vmem:[#allocation5 + $0x10c] ss:$16 sps:$4 sm:$0xff]  }
 0x1d8   : > { %3833 = vmatprep.subr.bf16.mxu0 %v6933_v32  ;;  %4219 = vmatprep.subr.bf16.mxu1 %v6936_v34  ;;  %v6984_v32 = vld [vmem:[#allocation5 + $0x14c] ss:$16 sps:$4 sm:$0xff]   ;;  %v6979_v34 = vld [vmem:[#allocation5 + $0x140] ss:$16 sps:$4 sm:$0xff]  }
 0x1d9   : > { %2311 = vmatmul.mubr.bf16.gmra.mrb[68].mxu0 %v7652_v61  ;;  %2697 = vmatmul.mubr.bf16.gmra.mrb[68].mxu1 %v7652_v61  ;;  %v6951_v61 = vld [vmem:[#allocation5 + $0xa4] ss:$16 sps:$4 sm:$0xff]  }
 0x1da   : > { %2320 = vmatprep.mubr.bf16.mxu0 %v7667_v44  ;;  %2706 = vmatprep.mubr.bf16.mxu1 %v7667_v44  ;;  %v6949_v44 = vld [vmem:[#allocation5 + $0xa0] ss:$16 sps:$4 sm:$0xff]  }
 0x1db   : > { %3834 = vmatpush1.bf16.msra.mxu0 %v6931_v43  ;;  %4220 = vmatpush1.bf16.msra.mxu1 %v6934_v45  ;;  %v6996_v43 = vld [vmem:[#allocation5 + $0x18c] ss:$16 sps:$4 sm:$0xff]   ;;  %v6991_v45 = vld [vmem:[#allocation5 + $0x180] ss:$16 sps:$4 sm:$0xff]  }
 0x1dc   : > { %3835 = vmatprep.subr.bf16.mxu0 %v6939_v47  ;;  %4221 = vmatprep.subr.bf16.mxu1 %v6942_v49  ;;  %v6994_v47 = vld [vmem:[#allocation5 + $0x188] ss:$16 sps:$4 sm:$0xff]   ;;  %v6999_v49 = vld [vmem:[#allocation5 + $0x1a4] ss:$16 sps:$4 sm:$0xff]  }
 0x1df   : > { %3836 = vmatpush1.bf16.msra.mxu0 %v6937_v41  ;;  %4222 = vmatpush1.bf16.msra.mxu1 %v6940_v51  ;;  %v7000_v41 = vld [vmem:[#allocation5 + $0x1a8] ss:$16 sps:$4 sm:$0xff]   ;;  %v7005_v51 = vld [vmem:[#allocation5 + $0x1c4] ss:$16 sps:$4 sm:$0xff]  }
 0x1e0   : > { %3837 = vmatprep.subr.bf16.mxu0 %v6945_v55  ;;  %4223 = vmatprep.subr.bf16.mxu1 %v6948_v0  ;;  %v7008_v55 = vld [vmem:[#allocation5 + $0x1cc] ss:$16 sps:$4 sm:$0xff]   ;;  %v7003_v0 = vld [vmem:[#allocation5 + $0x1c0] ss:$16 sps:$4 sm:$0xff]  }
 0x1e1   : > { %2321 = vmatmul.mubr.bf16.gmra.mrb[72].mxu0 %v7664_v39  ;;  %2707 = vmatmul.mubr.bf16.gmra.mrb[72].mxu1 %v7664_v39  ;;  %v6966_v39 = vld [vmem:[#allocation5 + $0xec] ss:$16 sps:$4 sm:$0xff]  }
 0x1e2   : > { %2330 = vmatprep.mubr.bf16.mxu0 %v7679_v25  ;;  %2716 = vmatprep.mubr.bf16.mxu1 %v7679_v25  ;;  %v6961_v25 = vld [vmem:[#allocation5 + $0xe0] ss:$16 sps:$4 sm:$0xff]  }
 0x1e3   : > { %3838 = vmatpush1.bf16.msra.mxu0 %v6943_v60  ;;  %4224 = vmatpush1.bf16.msra.mxu1 %v6946_v62  ;;  %v7006_v60 = vld [vmem:[#allocation5 + $0x1c8] ss:$16 sps:$4 sm:$0xff]  }
 0x1e4   : > { %3839 = vmatprep.subr.bf16.mxu0 %v6951_v61  ;;  %4225 = vmatprep.subr.bf16.mxu1 %v6954_v1 }
 0x1e7   : > { %3840 = vmatpush1.bf16.msra.mxu0 %v6949_v44  ;;  %4226 = vmatpush1.bf16.msra.mxu1 %v6952_v3 }
 0x1e8   : > { %3841 = vmatprep.subr.bf16.mxu0 %v6957_v6  ;;  %4227 = vmatprep.subr.bf16.mxu1 %v6960_v22 }
 0x1e9   : > { %2331 = vmatmul.mubr.bf16.gmra.mrb[76].mxu0 %v7676_v19  ;;  %2717 = vmatmul.mubr.bf16.gmra.mrb[76].mxu1 %v7676_v19  ;;  %v6978_v19 = vld [vmem:[#allocation5 + $0x12c] ss:$16 sps:$4 sm:$0xff]  }
 0x1ea   : > { %2340 = vmatprep.mubr.bf16.mxu0 %v7691_v8  ;;  %2726 = vmatprep.mubr.bf16.mxu1 %v7691_v8  ;;  %v6973_v8 = vld [vmem:[#allocation5 + $0x120] ss:$16 sps:$4 sm:$0xff]  }
 0x1eb   : > { %3842 = vmatpush1.bf16.msra.mxu0 %v6955_v12  ;;  %4228 = vmatpush1.bf16.msra.mxu1 %v6958_v14 }
 0x1ec   : > { %3843 = vmatprep.subr.bf16.mxu0 %v6963_v15  ;;  %4229 = vmatprep.subr.bf16.mxu1 %v6966_v39 }
 0x1ef   : > { %3844 = vmatpush1.bf16.msra.mxu0 %v6961_v25  ;;  %4230 = vmatpush1.bf16.msra.mxu1 %v6964_v17 }
 0x1f0   : > { %3845 = vmatprep.subr.bf16.mxu0 %v6969_v20  ;;  %4231 = vmatprep.subr.bf16.mxu1 %v6972_v23 }
 0x1f1   : > { %2341 = vmatmul.mubr.bf16.gmra.mrb[80].mxu0 %v7688_v4  ;;  %2727 = vmatmul.mubr.bf16.gmra.mrb[80].mxu1 %v7688_v4  ;;  %v6990_v4 = vld [vmem:[#allocation5 + $0x16c] ss:$16 sps:$4 sm:$0xff]  }
 0x1f2   : > { %2350 = vmatprep.mubr.bf16.mxu0 %v7703_v53  ;;  %2736 = vmatprep.mubr.bf16.mxu1 %v7703_v53  ;;  %v6985_v53 = vld [vmem:[#allocation5 + $0x160] ss:$16 sps:$4 sm:$0xff]  }
 0x1f3   : > { %3846 = vmatpush1.bf16.msra.mxu0 %v6967_v57  ;;  %4232 = vmatpush1.bf16.msra.mxu1 %v6970_v26 }
 0x1f4   : > { %3847 = vmatprep.subr.bf16.mxu0 %v6975_v18  ;;  %4233 = vmatprep.subr.bf16.mxu1 %v6978_v19 }
 0x1f7   : > { %3848 = vmatpush1.bf16.msra.mxu0 %v6973_v8  ;;  %4234 = vmatpush1.bf16.msra.mxu1 %v6976_v27 }
 0x1f8   : > { %3849 = vmatprep.subr.bf16.mxu0 %v6981_v29  ;;  %4235 = vmatprep.subr.bf16.mxu1 %v6984_v32  ;;  %v7015_v32 = vld [vmem:[#allocation5 + $0x200] ss:$16 sps:$4 sm:$0xff]  }
 0x1f9   : > { %2351 = vmatmul.mubr.bf16.gmra.mrb[84].mxu0 %v7700_v50  ;;  %2737 = vmatmul.mubr.bf16.gmra.mrb[84].mxu1 %v7700_v50  ;;  %v7002_v50 = vld [vmem:[#allocation5 + $0x1ac] ss:$16 sps:$4 sm:$0xff]  }
 0x1fa   : > { %2360 = vmatprep.mubr.bf16.mxu0 %v7715_v33  ;;  %2746 = vmatprep.mubr.bf16.mxu1 %v7715_v33  ;;  %v6997_v33 = vld [vmem:[#allocation5 + $0x1a0] ss:$16 sps:$4 sm:$0xff]  }
 0x1fb   : > { %3850 = vmatpush1.bf16.msra.mxu0 %v6979_v34  ;;  %4236 = vmatpush1.bf16.msra.mxu1 %v6982_v58  ;;  %v7018_v34 = vld [vmem:[#allocation5 + $0x208] ss:$16 sps:$4 sm:$0xff]  }
 0x1fc   : > { %3851 = vmatprep.subr.bf16.mxu0 %v6987_v2  ;;  %4237 = vmatprep.subr.bf16.mxu1 %v6990_v4 }
 0x1ff   : > { %3852 = vmatpush1.bf16.msra.mxu0 %v6985_v53  ;;  %4238 = vmatpush1.bf16.msra.mxu1 %v6988_v37  ;;  %v7023_v37 = vld [vmem:[#allocation5 + $0x224] ss:$16 sps:$4 sm:$0xff]  }
 0x200   : > { %3853 = vmatprep.subr.bf16.mxu0 %v6993_v42  ;;  %4239 = vmatprep.subr.bf16.mxu1 %v6996_v43  ;;  %v7026_v42 = vld [vmem:[#allocation5 + $0x22c] ss:$16 sps:$4 sm:$0xff]  }
 0x201   : > { %2361 = vmatmul.mubr.bf16.gmra.mrb[88].mxu0 %v7712_v30  ;;  %2747 = vmatmul.mubr.bf16.gmra.mrb[88].mxu1 %v7712_v30  ;;  %v7011_v30 = vld [vmem:[#allocation5 + $0x1e4] ss:$16 sps:$4 sm:$0xff]  }
 0x202   : > { %2370 = vmatprep.mubr.bf16.mxu0 %v7727_v11  ;;  %2756 = vmatprep.mubr.bf16.mxu1 %v7727_v11  ;;  %v7009_v11 = vld [vmem:[#allocation5 + $0x1e0] ss:$16 sps:$4 sm:$0xff]  }
 0x203   : > { %3854 = vmatpush1.bf16.msra.mxu0 %v6991_v45  ;;  %4240 = vmatpush1.bf16.msra.mxu1 %v6994_v47 }
 0x204   : > { %3855 = vmatprep.subr.bf16.mxu0 %v6999_v49  ;;  %4241 = vmatprep.subr.bf16.mxu1 %v7002_v50 }
 0x207   : > { %3856 = vmatpush1.bf16.msra.mxu0 %v6997_v33  ;;  %4242 = vmatpush1.bf16.msra.mxu1 %v7000_v41 }
 0x208   : > { %3857 = vmatprep.subr.bf16.mxu0 %v7005_v51  ;;  %4243 = vmatprep.subr.bf16.mxu1 %v7008_v55 }
 0x209   : > { %2371 = vmatmul.mubr.bf16.gmra.mrb[92].mxu0 %v7724_v7  ;;  %2757 = vmatmul.mubr.bf16.gmra.mrb[92].mxu1 %v7724_v7  ;;  %v7014_v7 = vld [vmem:[#allocation5 + $0x1ec] ss:$16 sps:$4 sm:$0xff]  }
 0x20a   : > { %2380 = vmatprep.mubr.bf16.mxu0 %v7739_v52  ;;  %2766 = vmatprep.mubr.bf16.mxu1 %v7739_v52  ;;  %v7017_v52 = vld [vmem:[#allocation5 + $0x204] ss:$16 sps:$4 sm:$0xff]  }
 0x20b   : > { %3858 = vmatpush1.bf16.msra.mxu0 %v7003_v0  ;;  %4244 = vmatpush1.bf16.msra.mxu1 %v7006_v60  ;;  %v7021_v60 = vld [vmem:[#allocation5 + $0x220] ss:$16 sps:$4 sm:$0xff]  }
 0x20c   : > { %3859 = vmatprep.subr.bf16.mxu0 %v7011_v30  ;;  %4245 = vmatprep.subr.bf16.mxu1 %v7014_v7  ;;  %v7024_v30 = vld [vmem:[#allocation5 + $0x228] ss:$16 sps:$4 sm:$0xff]   ;;  %v7029_v7 = vld [vmem:[#allocation5 + $0x244] ss:$16 sps:$4 sm:$0xff]  }
 0x20f   : > { %3860 = vmatpush1.bf16.msra.mxu0 %v7009_v11 }
 0x210   : > { %4022 = vmatprep.subr.bf16.mxu0 %v7017_v52 }
 0x211   : > { %2381 = vmatmul.mubr.bf16.gmra.mrb[96].mxu0 %v7736_v48  ;;  %2767 = vmatmul.mubr.bf16.gmra.mrb[96].mxu1 %v7736_v48  ;;  %v7012_v48 = vld [vmem:[#allocation5 + $0x1e8] ss:$16 sps:$4 sm:$0xff]  }
 0x212   : > { %2390 = vmatprep.mubr.bf16.mxu0 %v7751_v35  ;;  %2776 = vmatprep.mubr.bf16.mxu1 %v7751_v35  ;;  %v1413_v35 = vld [vmem:[%s8518_s4] sm:$0xf] }
 0x213   : > { %4246 = vmatpush1.bf16.msra.mxu1 %v7012_v48 }
 0x219   : > { %2391 = vmatmul.mubr.bf16.gmra.mrb[100].mxu0 %v7748_v31  ;;  %2777 = vmatmul.mubr.bf16.gmra.mrb[100].mxu1 %v7748_v31  ;;  %v7020_v31 = vld [vmem:[#allocation5 + $0x20c] ss:$16 sps:$4 sm:$0xff]  }
 0x21a   : > { %2400 = vmatprep.mubr.bf16.mxu0 %v7763_v21  ;;  %2786 = vmatprep.mubr.bf16.mxu1 %v7763_v21  ;;  %v7885_v21 = vrot.slane %v1413_v35, %v7620_v24 }
 0x21b   : > { %4408 = vmatprep.subr.bf16.mxu1 %v7020_v31 }
 0x221   : > { %2401 = vmatmul.mubr.bf16.gmra.mrb[104].mxu0 %v7760_v16  ;;  %2787 = vmatmul.mubr.bf16.gmra.mrb[104].mxu1 %v7760_v16  ;;  %v7882_v16 = vrot.slane %v1413_v35, %v7599_v54 }
 0x222   : > { %2410 = vmatprep.mubr.bf16.mxu0 %v7775_v10  ;;  %2796 = vmatprep.mubr.bf16.mxu1 %v7775_v10  ;;  %v7891_v10 = vrot.slane %v1413_v35, %v7622_v28 }
 0x229   : > { %2411 = vmatmul.mubr.bf16.gmra.mrb[108].mxu0 %v7772_v5  ;;  %2797 = vmatmul.mubr.bf16.gmra.mrb[108].mxu1 %v7772_v5  ;;  %v7888_v5 = vrot.slane %v1413_v35, %v7604_v56  ;;  %v7032_v35 = vld [vmem:[#allocation5 + $0x24c] ss:$16 sps:$4 sm:$0xff]  }
 0x22a   : > { %2420 = vmatprep.mubr.bf16.mxu0 %v7787_v63  ;;  %2806 = vmatprep.mubr.bf16.mxu1 %v7787_v63 }
 0x231   : > { %2421 = vmatmul.mubr.bf16.gmra.mrb[112].mxu0 %v7784_v59  ;;  %2807 = vmatmul.mubr.bf16.gmra.mrb[112].mxu1 %v7784_v59 }
 0x232   : > { %2430 = vmatprep.mubr.bf16.mxu0 %v7796_v40  ;;  %2816 = vmatprep.mubr.bf16.mxu1 %v7796_v40 }
 0x239   : > { %2431 = vmatmul.mubr.bf16.gmra.mrb[116].mxu0 %v7794_v38  ;;  %2817 = vmatmul.mubr.bf16.gmra.mrb[116].mxu1 %v7794_v38 }
 0x23a   : > { %2440 = vmatprep.mubr.bf16.mxu0 %v7808_v13  ;;  %2826 = vmatprep.mubr.bf16.mxu1 %v7808_v13 }
 0x241   : > { %2441 = vmatmul.mubr.bf16.gmra.mrb[120].mxu0 %v7804_v9  ;;  %2827 = vmatmul.mubr.bf16.gmra.mrb[120].mxu1 %v7804_v9 }
 0x242   : > { %2450 = vmatprep.mubr.bf16.mxu0 %v7820_v36  ;;  %2836 = vmatprep.mubr.bf16.mxu1 %v7820_v36 }
 0x249   : > { %2451 = vmatmul.mubr.bf16.gmra.mrb[124].mxu0 %v7816_v46  ;;  %2837 = vmatmul.mubr.bf16.gmra.mrb[124].mxu1 %v7816_v46 }
 0x2a4   : > { %v2302_v59 = vpop.f32.mrb[64].mxu0  ;;  %v2688_v63 = vpop.f32.mrb[64].mxu1 }
 0x2a5   : > { %v6086_v38 = vadd.f32 %v2302_v59, %v7882_v16  ;;  %v6150_v40 = vadd.f32 %v2688_v63, %v7885_v21  ;;  %v2304_v9 = vpop.f32.mrb[65].mxu0  ;;  %v2690_v13 = vpop.f32.mrb[65].mxu1 }
 0x2a6   : > { %v6087_v46 = vadd.f32 %v2304_v9, %v7888_v5  ;;  %v6151_v36 = vadd.f32 %v2690_v13, %v7891_v10  ;;  %v2306_v62 = vpop.f32.mrb[66].mxu0  ;;  %v2692_v61 = vpop.f32.mrb[66].mxu1 }
 0x2a7   : > { %v6088_v1 = vadd.f32 %v2306_v62, %v7882_v16  ;;  %v6152_v44 = vadd.f32 %v2692_v61, %v7885_v21  ;;  %v2308_v3 = vpop.f32.mrb[67].mxu0  ;;  %v2694_v6 = vpop.f32.mrb[67].mxu1  ;;  %v2847_v14 = vmax.f32 %v6086_v38, 0.0  ;;  %v2849_v15 = vmax.f32 %v6150_v40, 0.0 }
 0x2a8   : > { %v6089_v22 = vadd.f32 %v2308_v3, %v7888_v5  ;;  %v6153_v12 = vadd.f32 %v2694_v6, %v7891_v10  ;;  %v2848_v17 = vmax.f32 %v6087_v46, 0.0  ;;  %v2850_v20 = vmax.f32 %v6151_v36, 0.0 }
 0x2a9   : > { %v2851_v39 = vmax.f32 %v6088_v1, 0.0  ;;  %v2853_v25 = vmax.f32 %v6152_v44, 0.0  ;;  %v7027_v1 = vld [vmem:[#allocation5 + $0x240] ss:$16 sps:$4 sm:$0xff]   ;;  %v7030_v44 = vld [vmem:[#allocation5 + $0x248] ss:$16 sps:$4 sm:$0xff]  }
 0x2aa   : > { %v2852_v23 = vmax.f32 %v6089_v22, 0.0  ;;  %v2854_v57 = vmax.f32 %v6153_v12, 0.0 }
 0x2ab   : > { %v2975_v26 = vpack.c.bf16 %v2851_v39, %v2847_v14  ;;  %v7901_v18 = vpack.c.bf16 %v2853_v25, %v2849_v15  ;;  %v7035_v14 = vld [vmem:[#allocation5 + $0x264] ss:$16 sps:$4 sm:$0xff]   ;;  %v7038_v15 = vld [vmem:[#allocation5 + $0x26c] ss:$16 sps:$4 sm:$0xff]  }
 0x2ac   : > { %v2976_v19 = vpack.c.bf16 %v2852_v23, %v2848_v17  ;;  %v7903_v8 = vpack.c.bf16 %v2854_v57, %v2850_v20  ;;  %v2312_v27 = vpop.f32.mrb[68].mxu0  ;;  %v2698_v29 = vpop.f32.mrb[68].mxu1 }
 0x2ad   : > { %v6090_v58 = vadd.f32 %v2312_v27, %v7882_v16  ;;  %v6154_v2 = vadd.f32 %v2698_v29, %v7885_v21  ;;  %v2314_v4 = vpop.f32.mrb[69].mxu0  ;;  %v2700_v53 = vpop.f32.mrb[69].mxu1 }
 0x2ae   : > { %v6091_v43 = vadd.f32 %v2314_v4, %v7888_v5  ;;  %v6155_v45 = vadd.f32 %v2700_v53, %v7891_v10  ;;  %v2316_v47 = vpop.f32.mrb[70].mxu0  ;;  %v2702_v49 = vpop.f32.mrb[70].mxu1  ;;  %3861 = vmatprep.mubr.bf16.mxu0 %v2976_v19  ;;  %4247 = vmatprep.mubr.bf16.mxu1 %v2976_v19 }
 0x2af   : > { %v6092_v50 = vadd.f32 %v2316_v47, %v7882_v16  ;;  %v6156_v33 = vadd.f32 %v2702_v49, %v7885_v21  ;;  %v2318_v41 = vpop.f32.mrb[71].mxu0  ;;  %v2704_v51 = vpop.f32.mrb[71].mxu1  ;;  %3862 = vmatmul.mubr.bf16.vlgmr.msra.gmra.mrb[128].mxu0 %v2975_v26  ;;  %4248 = vmatmul.mubr.bf16.vlgmr.msra.gmra.mrb[128].mxu1 %v2975_v26  ;;  %v2855_v11 = vmax.f32 %v6090_v58, 0.0  ;;  %v2857_v48 = vmax.f32 %v6154_v2, 0.0  ;;  %v7041_v58 = vld [vmem:[#allocation5 + $0x284] ss:$16 sps:$4 sm:$0xff]  }
 0x2b0   : > { %v6093_v55 = vadd.f32 %v2318_v41, %v7888_v5  ;;  %v6157_v0 = vadd.f32 %v2704_v51, %v7891_v10  ;;  %4023 = vmatpush1.bf16.msra.mxu0 %v7015_v32  ;;  %4409 = vmatpush1.bf16.msra.mxu1 %v7018_v34  ;;  %v2856_v59 = vmax.f32 %v6091_v43, 0.0  ;;  %v2858_v63 = vmax.f32 %v6155_v45, 0.0  ;;  %v7033_v32 = vld [vmem:[#allocation5 + $0x260] ss:$16 sps:$4 sm:$0xff]   ;;  %v7036_v34 = vld [vmem:[#allocation5 + $0x268] ss:$16 sps:$4 sm:$0xff]  }
 0x2b1   : > { %v2859_v52 = vmax.f32 %v6092_v50, 0.0  ;;  %v2861_v31 = vmax.f32 %v6156_v33, 0.0  ;;  %4024 = vmatprep.subr.bf16.mxu0 %v7023_v37  ;;  %4410 = vmatprep.subr.bf16.mxu1 %v7026_v42  ;;  %v7044_v42 = vld [vmem:[#allocation5 + $0x28c] ss:$16 sps:$4 sm:$0xff]  }
 0x2b2   : > { %v2860_v38 = vmax.f32 %v6093_v55, 0.0  ;;  %v2862_v40 = vmax.f32 %v6157_v0, 0.0 }
 0x2b3   : > { %v2979_v9 = vpack.c.bf16 %v2859_v52, %v2855_v11  ;;  %v7913_v13 = vpack.c.bf16 %v2861_v31, %v2857_v48  ;;  %v7047_v31 = vld [vmem:[#allocation5 + $0x2a4] ss:$16 sps:$4 sm:$0xff]  }
 0x2b4   : > { %v2980_v46 = vpack.c.bf16 %v2860_v38, %v2856_v59  ;;  %v7915_v36 = vpack.c.bf16 %v2862_v40, %v2858_v63  ;;  %v2322_v62 = vpop.f32.mrb[72].mxu0  ;;  %v2708_v61 = vpop.f32.mrb[72].mxu1  ;;  %4025 = vmatpush1.bf16.msra.mxu0 %v7021_v60  ;;  %4411 = vmatpush1.bf16.msra.mxu1 %v7024_v30  ;;  %v7039_v60 = vld [vmem:[#allocation5 + $0x280] ss:$16 sps:$4 sm:$0xff]   ;;  %v7042_v30 = vld [vmem:[#allocation5 + $0x288] ss:$16 sps:$4 sm:$0xff]  }
 0x2b5   : > { %v6094_v3 = vadd.f32 %v2322_v62, %v7882_v16  ;;  %v6158_v6 = vadd.f32 %v2708_v61, %v7885_v21  ;;  %v2324_v22 = vpop.f32.mrb[73].mxu0  ;;  %v2710_v12 = vpop.f32.mrb[73].mxu1  ;;  %4026 = vmatprep.subr.bf16.mxu0 %v7029_v7  ;;  %4412 = vmatprep.subr.bf16.mxu1 %v7032_v35  ;;  %v7050_v35 = vld [vmem:[#allocation5 + $0x2ac] ss:$16 sps:$4 sm:$0xff]  }
 0x2b6   : > { %v6095_v39 = vadd.f32 %v2324_v22, %v7888_v5  ;;  %v6159_v25 = vadd.f32 %v2710_v12, %v7891_v10  ;;  %v2326_v17 = vpop.f32.mrb[74].mxu0  ;;  %v2712_v20 = vpop.f32.mrb[74].mxu1  ;;  %3871 = vmatprep.mubr.bf16.mxu0 %v2980_v46  ;;  %4257 = vmatprep.mubr.bf16.mxu1 %v2980_v46  ;;  %v7053_v22 = vld [vmem:[#allocation5 + $0x2c4] ss:$16 sps:$4 sm:$0xff]  }
 0x2b7   : > { %v6096_v23 = vadd.f32 %v2326_v17, %v7882_v16  ;;  %v6160_v57 = vadd.f32 %v2712_v20, %v7885_v21  ;;  %v2328_v26 = vpop.f32.mrb[75].mxu0  ;;  %v2714_v19 = vpop.f32.mrb[75].mxu1  ;;  %3872 = vmatmul.mubr.bf16.gmra.mrb[132].mxu0 %v2979_v9  ;;  %4258 = vmatmul.mubr.bf16.gmra.mrb[132].mxu1 %v2979_v9  ;;  %v2863_v2 = vmax.f32 %v6094_v3, 0.0  ;;  %v2865_v4 = vmax.f32 %v6158_v6, 0.0  ;;  %v7045_v3 = vld [vmem:[#allocation5 + $0x2a0] ss:$16 sps:$4 sm:$0xff]  }
 0x2b8   : > { %v6097_v27 = vadd.f32 %v2328_v26, %v7888_v5  ;;  %v6161_v29 = vadd.f32 %v2714_v19, %v7891_v10  ;;  %4027 = vmatpush1.bf16.msra.mxu0 %v7027_v1  ;;  %4413 = vmatpush1.bf16.msra.mxu1 %v7030_v44  ;;  %v2864_v43 = vmax.f32 %v6095_v39, 0.0  ;;  %v2866_v45 = vmax.f32 %v6159_v25, 0.0  ;;  %v7048_v6 = vld [vmem:[#allocation5 + $0x2a8] ss:$16 sps:$4 sm:$0xff]   ;;  %v7056_v25 = vld [vmem:[#allocation5 + $0x2cc] ss:$16 sps:$4 sm:$0xff]  }
 0x2b9   : > { %v2867_v53 = vmax.f32 %v6096_v23, 0.0  ;;  %v2869_v37 = vmax.f32 %v6160_v57, 0.0  ;;  %4028 = vmatprep.subr.bf16.mxu0 %v7035_v14  ;;  %4414 = vmatprep.subr.bf16.mxu1 %v7038_v15 }
 0x2ba   : > { %v2868_v47 = vmax.f32 %v6097_v27, 0.0  ;;  %v2870_v49 = vmax.f32 %v6161_v29, 0.0 }
 0x2bb   : > { %v2983_v50 = vpack.c.bf16 %v2867_v53, %v2863_v2  ;;  %v7925_v33 = vpack.c.bf16 %v2869_v37, %v2865_v4  ;;  %v7054_v2 = vld [vmem:[#allocation5 + $0x2c8] ss:$16 sps:$4 sm:$0xff]  }
 0x2bc   : > { %v2984_v41 = vpack.c.bf16 %v2868_v47, %v2864_v43  ;;  %v7927_v51 = vpack.c.bf16 %v2870_v49, %v2866_v45  ;;  %v2332_v55 = vpop.f32.mrb[76].mxu0  ;;  %v2718_v0 = vpop.f32.mrb[76].mxu1  ;;  %4029 = vmatpush1.bf16.msra.mxu0 %v7033_v32  ;;  %4415 = vmatpush1.bf16.msra.mxu1 %v7036_v34  ;;  %v7059_v43 = vld [vmem:[#allocation5 + $0x2e4] ss:$16 sps:$4 sm:$0xff]   ;;  %v7062_v45 = vld [vmem:[#allocation5 + $0x2ec] ss:$16 sps:$4 sm:$0xff]  }
 0x2bd   : > { %v6098_v7 = vadd.f32 %v2332_v55, %v7882_v16  ;;  %v6162_v11 = vadd.f32 %v2718_v0, %v7885_v21  ;;  %v2334_v48 = vpop.f32.mrb[77].mxu0  ;;  %v2720_v52 = vpop.f32.mrb[77].mxu1  ;;  %4030 = vmatprep.subr.bf16.mxu0 %v7041_v58  ;;  %4416 = vmatprep.subr.bf16.mxu1 %v7044_v42  ;;  %v7051_v58 = vld [vmem:[#allocation5 + $0x2c0] ss:$16 sps:$4 sm:$0xff]  }
 0x2be   : > { %v6099_v59 = vadd.f32 %v2334_v48, %v7888_v5  ;;  %v6163_v63 = vadd.f32 %v2720_v52, %v7891_v10  ;;  %v2336_v38 = vpop.f32.mrb[78].mxu0  ;;  %v2722_v40 = vpop.f32.mrb[78].mxu1  ;;  %3881 = vmatprep.mubr.bf16.mxu0 %v2984_v41  ;;  %4267 = vmatprep.mubr.bf16.mxu1 %v2984_v41  ;;  %v7057_v48 = vld [vmem:[#allocation5 + $0x2e0] ss:$16 sps:$4 sm:$0xff]   ;;  %v7060_v52 = vld [vmem:[#allocation5 + $0x2e8] ss:$16 sps:$4 sm:$0xff]  }
 0x2bf   : > { %v6100_v9 = vadd.f32 %v2336_v38, %v7882_v16  ;;  %v6164_v46 = vadd.f32 %v2722_v40, %v7885_v21  ;;  %v2338_v62 = vpop.f32.mrb[79].mxu0  ;;  %v2724_v61 = vpop.f32.mrb[79].mxu1  ;;  %3882 = vmatmul.mubr.bf16.gmra.mrb[136].mxu0 %v2983_v50  ;;  %4268 = vmatmul.mubr.bf16.gmra.mrb[136].mxu1 %v2983_v50  ;;  %v2871_v12 = vmax.f32 %v6098_v7, 0.0  ;;  %v2873_v14 = vmax.f32 %v6162_v11, 0.0  ;;  %v7068_v40 = vld [vmem:[#allocation5 + $0x30c] ss:$16 sps:$4 sm:$0xff]  }
 0x2c0   : > { %v6101_v1 = vadd.f32 %v2338_v62, %v7888_v5  ;;  %v6165_v44 = vadd.f32 %v2724_v61, %v7891_v10  ;;  %4031 = vmatpush1.bf16.msra.mxu0 %v7039_v60  ;;  %4417 = vmatpush1.bf16.msra.mxu1 %v7042_v30  ;;  %v2872_v17 = vmax.f32 %v6099_v59, 0.0  ;;  %v2874_v20 = vmax.f32 %v6163_v63, 0.0 }
 0x2c1   : > { %v2875_v15 = vmax.f32 %v6100_v9, 0.0  ;;  %v2877_v39 = vmax.f32 %v6164_v46, 0.0  ;;  %4032 = vmatprep.subr.bf16.mxu0 %v7047_v31  ;;  %4418 = vmatprep.subr.bf16.mxu1 %v7050_v35  ;;  %v7065_v31 = vld [vmem:[#allocation5 + $0x304] ss:$16 sps:$4 sm:$0xff]  }
 0x2c2   : > { %v2876_v23 = vmax.f32 %v6101_v1, 0.0  ;;  %v2878_v57 = vmax.f32 %v6165_v44, 0.0 }
 0x2c3   : > { %v2987_v26 = vpack.c.bf16 %v2875_v15, %v2871_v12  ;;  %v7937_v19 = vpack.c.bf16 %v2877_v39, %v2873_v14  ;;  %v7063_v14 = vld [vmem:[#allocation5 + $0x300] ss:$16 sps:$4 sm:$0xff]   ;;  %v7066_v15 = vld [vmem:[#allocation5 + $0x308] ss:$16 sps:$4 sm:$0xff]  }
 0x2c4   : > { %v2988_v27 = vpack.c.bf16 %v2876_v23, %v2872_v17  ;;  %v7939_v29 = vpack.c.bf16 %v2878_v57, %v2874_v20  ;;  %v2342_v32 = vpop.f32.mrb[80].mxu0  ;;  %v2728_v34 = vpop.f32.mrb[80].mxu1  ;;  %4033 = vmatpush1.bf16.msra.mxu0 %v7045_v3  ;;  %4419 = vmatpush1.bf16.msra.mxu1 %v7048_v6  ;;  %v7071_v23 = vld [vmem:[#allocation5 + $0x324] ss:$16 sps:$4 sm:$0xff]   ;;  %v7074_v57 = vld [vmem:[#allocation5 + $0x32c] ss:$16 sps:$4 sm:$0xff]  }
 0x2c5   : > { %v6102_v4 = vadd.f32 %v2342_v32, %v7882_v16  ;;  %v6166_v53 = vadd.f32 %v2728_v34, %v7885_v21  ;;  %v2344_v37 = vpop.f32.mrb[81].mxu0  ;;  %v2730_v42 = vpop.f32.mrb[81].mxu1  ;;  %4034 = vmatprep.subr.bf16.mxu0 %v7053_v22  ;;  %4420 = vmatprep.subr.bf16.mxu1 %v7056_v25 }
 0x2c6   : > { %v6103_v47 = vadd.f32 %v2344_v37, %v7888_v5  ;;  %v6167_v49 = vadd.f32 %v2730_v42, %v7891_v10  ;;  %v2346_v50 = vpop.f32.mrb[82].mxu0  ;;  %v2732_v41 = vpop.f32.mrb[82].mxu1  ;;  %3891 = vmatprep.mubr.bf16.mxu0 %v2988_v27  ;;  %4277 = vmatprep.mubr.bf16.mxu1 %v2988_v27 }
 0x2c7   : > { %v6104_v55 = vadd.f32 %v2346_v50, %v7882_v16  ;;  %v6168_v0 = vadd.f32 %v2732_v41, %v7885_v21  ;;  %v2348_v60 = vpop.f32.mrb[83].mxu0  ;;  %v2734_v30 = vpop.f32.mrb[83].mxu1  ;;  %3892 = vmatmul.mubr.bf16.gmra.mrb[140].mxu0 %v2987_v26  ;;  %4278 = vmatmul.mubr.bf16.gmra.mrb[140].mxu1 %v2987_v26  ;;  %v2879_v35 = vmax.f32 %v6102_v4, 0.0  ;;  %v2881_v59 = vmax.f32 %v6166_v53, 0.0 }
 0x2c8   : > { %v6105_v7 = vadd.f32 %v2348_v60, %v7888_v5  ;;  %v6169_v11 = vadd.f32 %v2734_v30, %v7891_v10  ;;  %4035 = vmatpush1.bf16.msra.mxu0 %v7051_v58  ;;  %4421 = vmatpush1.bf16.msra.mxu1 %v7054_v2  ;;  %v2880_v9 = vmax.f32 %v6103_v47, 0.0  ;;  %v2882_v46 = vmax.f32 %v6167_v49, 0.0  ;;  %v7077_v47 = vld [vmem:[#allocation5 + $0x344] ss:$16 sps:$4 sm:$0xff]  }
 0x2c9   : > { %v2883_v63 = vmax.f32 %v6104_v55, 0.0  ;;  %v2885_v38 = vmax.f32 %v6168_v0, 0.0  ;;  %4036 = vmatprep.subr.bf16.mxu0 %v7059_v43  ;;  %4422 = vmatprep.subr.bf16.mxu1 %v7062_v45  ;;  %v7069_v43 = vld [vmem:[#allocation5 + $0x320] ss:$16 sps:$4 sm:$0xff]   ;;  %v7072_v45 = vld [vmem:[#allocation5 + $0x328] ss:$16 sps:$4 sm:$0xff]  }
 0x2ca   : > { %v2884_v62 = vmax.f32 %v6105_v7, 0.0  ;;  %v2886_v61 = vmax.f32 %v6169_v11, 0.0  ;;  %v7080_v0 = vld [vmem:[#allocation5 + $0x34c] ss:$16 sps:$4 sm:$0xff]  }
 0x2cb   : > { %v2991_v1 = vpack.c.bf16 %v2883_v63, %v2879_v35  ;;  %v7949_v44 = vpack.c.bf16 %v2885_v38, %v2881_v59  ;;  %v7075_v38 = vld [vmem:[#allocation5 + $0x340] ss:$16 sps:$4 sm:$0xff]  }
 0x2cc   : > { %v2992_v3 = vpack.c.bf16 %v2884_v62, %v2880_v9  ;;  %v7951_v6 = vpack.c.bf16 %v2886_v61, %v2882_v46  ;;  %v2352_v22 = vpop.f32.mrb[84].mxu0  ;;  %v2738_v12 = vpop.f32.mrb[84].mxu1  ;;  %4037 = vmatpush1.bf16.msra.mxu0 %v7057_v48  ;;  %4423 = vmatpush1.bf16.msra.mxu1 %v7060_v52 }
 0x2cd   : > { %v6106_v39 = vadd.f32 %v2352_v22, %v7882_v16  ;;  %v6170_v25 = vadd.f32 %v2738_v12, %v7885_v21  ;;  %v2354_v17 = vpop.f32.mrb[85].mxu0  ;;  %v2740_v20 = vpop.f32.mrb[85].mxu1  ;;  %4038 = vmatprep.subr.bf16.mxu0 %v7065_v31  ;;  %4424 = vmatprep.subr.bf16.mxu1 %v7068_v40  ;;  %v7078_v40 = vld [vmem:[#allocation5 + $0x348] ss:$16 sps:$4 sm:$0xff]  }
 0x2ce   : > { %v6107_v26 = vadd.f32 %v2354_v17, %v7888_v5  ;;  %v6171_v27 = vadd.f32 %v2740_v20, %v7891_v10  ;;  %v2356_v32 = vpop.f32.mrb[86].mxu0  ;;  %v2742_v34 = vpop.f32.mrb[86].mxu1  ;;  %3901 = vmatprep.mubr.bf16.mxu0 %v2992_v3  ;;  %4287 = vmatprep.mubr.bf16.mxu1 %v2992_v3  ;;  %v7086_v3 = vld [vmem:[#allocation5 + $0x36c] ss:$16 sps:$4 sm:$0xff]  }
 0x2cf   : > { %v6108_v58 = vadd.f32 %v2356_v32, %v7882_v16  ;;  %v6172_v2 = vadd.f32 %v2742_v34, %v7885_v21  ;;  %v2358_v4 = vpop.f32.mrb[87].mxu0  ;;  %v2744_v53 = vpop.f32.mrb[87].mxu1  ;;  %3902 = vmatmul.mubr.bf16.gmra.mrb[144].mxu0 %v2991_v1  ;;  %4288 = vmatmul.mubr.bf16.gmra.mrb[144].mxu1 %v2991_v1  ;;  %v2887_v49 = vmax.f32 %v6106_v39, 0.0  ;;  %v2889_v50 = vmax.f32 %v6170_v25, 0.0  ;;  %v7083_v1 = vld [vmem:[#allocation5 + $0x364] ss:$16 sps:$4 sm:$0xff]  }
 0x2d0   : > { %v6109_v37 = vadd.f32 %v2358_v4, %v7888_v5  ;;  %v6173_v42 = vadd.f32 %v2744_v53, %v7891_v10  ;;  %4039 = vmatpush1.bf16.msra.mxu0 %v7063_v14  ;;  %4425 = vmatpush1.bf16.msra.mxu1 %v7066_v15  ;;  %v2888_v60 = vmax.f32 %v6107_v26, 0.0  ;;  %v2890_v30 = vmax.f32 %v6171_v27, 0.0  ;;  %v7081_v26 = vld [vmem:[#allocation5 + $0x360] ss:$16 sps:$4 sm:$0xff]   ;;  %v7084_v27 = vld [vmem:[#allocation5 + $0x368] ss:$16 sps:$4 sm:$0xff]  }
 0x2d1   : > { %v2891_v41 = vmax.f32 %v6108_v58, 0.0  ;;  %v2893_v55 = vmax.f32 %v6172_v2, 0.0  ;;  %4040 = vmatprep.subr.bf16.mxu0 %v7071_v23  ;;  %4426 = vmatprep.subr.bf16.mxu1 %v7074_v57  ;;  %v7089_v32 = vld [vmem:[#allocation5 + $0x384] ss:$16 sps:$4 sm:$0xff]   ;;  %v7092_v53 = vld [vmem:[#allocation5 + $0x38c] ss:$16 sps:$4 sm:$0xff]  }
 0x2d2   : > { %v2892_v7 = vmax.f32 %v6109_v37, 0.0  ;;  %v2894_v11 = vmax.f32 %v6173_v42, 0.0 }
 0x2d3   : > { %v2995_v48 = vpack.c.bf16 %v2891_v41, %v2887_v49  ;;  %v7961_v52 = vpack.c.bf16 %v2893_v55, %v2889_v50 }
 0x2d4   : > { %v2996_v31 = vpack.c.bf16 %v2892_v7, %v2888_v60  ;;  %v7963_v35 = vpack.c.bf16 %v2894_v11, %v2890_v30  ;;  %v2362_v59 = vpop.f32.mrb[88].mxu0  ;;  %v2748_v63 = vpop.f32.mrb[88].mxu1  ;;  %4041 = vmatpush1.bf16.msra.mxu0 %v7069_v43  ;;  %4427 = vmatpush1.bf16.msra.mxu1 %v7072_v45  ;;  %v7087_v60 = vld [vmem:[#allocation5 + $0x380] ss:$16 sps:$4 sm:$0xff]   ;;  %v7090_v30 = vld [vmem:[#allocation5 + $0x388] ss:$16 sps:$4 sm:$0xff]  }
 0x2d5   : > { %v6110_v9 = vadd.f32 %v2362_v59, %v7882_v16  ;;  %v6174_v46 = vadd.f32 %v2748_v63, %v7885_v21  ;;  %v2364_v62 = vpop.f32.mrb[89].mxu0  ;;  %v2750_v61 = vpop.f32.mrb[89].mxu1  ;;  %4042 = vmatprep.subr.bf16.mxu0 %v7077_v47  ;;  %4428 = vmatprep.subr.bf16.mxu1 %v7080_v0  ;;  %v7095_v59 = vld [vmem:[#allocation5 + $0x3a4] ss:$16 sps:$4 sm:$0xff]   ;;  %v7098_v63 = vld [vmem:[#allocation5 + $0x3ac] ss:$16 sps:$4 sm:$0xff]  }
 0x2d6   : > { %v6111_v22 = vadd.f32 %v2364_v62, %v7888_v5  ;;  %v6175_v12 = vadd.f32 %v2750_v61, %v7891_v10  ;;  %v2366_v14 = vpop.f32.mrb[90].mxu0  ;;  %v2752_v15 = vpop.f32.mrb[90].mxu1  ;;  %3911 = vmatprep.mubr.bf16.mxu0 %v2996_v31  ;;  %4297 = vmatprep.mubr.bf16.mxu1 %v2996_v31 }
 0x2d7   : > { %v6112_v39 = vadd.f32 %v2366_v14, %v7882_v16  ;;  %v6176_v25 = vadd.f32 %v2752_v15, %v7885_v21  ;;  %v2368_v17 = vpop.f32.mrb[91].mxu0  ;;  %v2754_v20 = vpop.f32.mrb[91].mxu1  ;;  %3912 = vmatmul.mubr.bf16.gmra.mrb[148].mxu0 %v2995_v48  ;;  %4298 = vmatmul.mubr.bf16.gmra.mrb[148].mxu1 %v2995_v48  ;;  %v2895_v34 = vmax.f32 %v6110_v9, 0.0  ;;  %v2897_v58 = vmax.f32 %v6174_v46, 0.0  ;;  %v7093_v14 = vld [vmem:[#allocation5 + $0x3a0] ss:$16 sps:$4 sm:$0xff]  }
 0x2d8   : > { %v6113_v23 = vadd.f32 %v2368_v17, %v7888_v5  ;;  %v6177_v57 = vadd.f32 %v2754_v20, %v7891_v10  ;;  %4043 = vmatpush1.bf16.msra.mxu0 %v7075_v38  ;;  %4429 = vmatpush1.bf16.msra.mxu1 %v7078_v40  ;;  %v2896_v37 = vmax.f32 %v6111_v22, 0.0  ;;  %v2898_v42 = vmax.f32 %v6175_v12, 0.0  ;;  %v7096_v15 = vld [vmem:[#allocation5 + $0x3a8] ss:$16 sps:$4 sm:$0xff]  }
 0x2d9   : > { %v2899_v2 = vmax.f32 %v6112_v39, 0.0  ;;  %v2901_v4 = vmax.f32 %v6176_v25, 0.0  ;;  %4044 = vmatprep.subr.bf16.mxu0 %v7083_v1  ;;  %4430 = vmatprep.subr.bf16.mxu1 %v7086_v3  ;;  %v7101_v39 = vld [vmem:[#allocation5 + $0x3c4] ss:$16 sps:$4 sm:$0xff]  }
 0x2da   : > { %v2900_v43 = vmax.f32 %v6113_v23, 0.0  ;;  %v2902_v45 = vmax.f32 %v6177_v57, 0.0  ;;  %v7104_v57 = vld [vmem:[#allocation5 + $0x3cc] ss:$16 sps:$4 sm:$0xff]  }
 0x2db   : > { %v2999_v47 = vpack.c.bf16 %v2899_v2, %v2895_v34  ;;  %v7973_v49 = vpack.c.bf16 %v2901_v4, %v2897_v58 }
 0x2dc   : > { %v3000_v50 = vpack.c.bf16 %v2900_v43, %v2896_v37  ;;  %v7975_v41 = vpack.c.bf16 %v2902_v45, %v2898_v42  ;;  %v2372_v55 = vpop.f32.mrb[92].mxu0  ;;  %v2758_v0 = vpop.f32.mrb[92].mxu1  ;;  %4045 = vmatpush1.bf16.msra.mxu0 %v7081_v26  ;;  %4431 = vmatpush1.bf16.msra.mxu1 %v7084_v27  ;;  %v7099_v43 = vld [vmem:[#allocation5 + $0x3c0] ss:$16 sps:$4 sm:$0xff]   ;;  %v7102_v45 = vld [vmem:[#allocation5 + $0x3c8] ss:$16 sps:$4 sm:$0xff]  }
 0x2dd   : > { %v6114_v7 = vadd.f32 %v2372_v55, %v7882_v16  ;;  %v6178_v11 = vadd.f32 %v2758_v0, %v7885_v21  ;;  %v2374_v48 = vpop.f32.mrb[93].mxu0  ;;  %v2760_v31 = vpop.f32.mrb[93].mxu1  ;;  %4046 = vmatprep.subr.bf16.mxu0 %v7089_v32  ;;  %4432 = vmatprep.subr.bf16.mxu1 %v7092_v53 }
 0x2de   : > { %v6115_v38 = vadd.f32 %v2374_v48, %v7888_v5  ;;  %v6179_v40 = vadd.f32 %v2760_v31, %v7891_v10  ;;  %v2376_v9 = vpop.f32.mrb[94].mxu0  ;;  %v2762_v46 = vpop.f32.mrb[94].mxu1  ;;  %3921 = vmatprep.mubr.bf16.mxu0 %v3000_v50  ;;  %4307 = vmatprep.mubr.bf16.mxu1 %v3000_v50 }
 0x2df   : > { %v6116_v62 = vadd.f32 %v2376_v9, %v7882_v16  ;;  %v6180_v61 = vadd.f32 %v2762_v46, %v7885_v21  ;;  %v2378_v1 = vpop.f32.mrb[95].mxu0  ;;  %v2764_v3 = vpop.f32.mrb[95].mxu1  ;;  %3922 = vmatmul.mubr.bf16.gmra.mrb[152].mxu0 %v2999_v47  ;;  %4308 = vmatmul.mubr.bf16.gmra.mrb[152].mxu1 %v2999_v47  ;;  %v2903_v25 = vmax.f32 %v6114_v7, 0.0  ;;  %v2905_v17 = vmax.f32 %v6178_v11, 0.0 }
 0x2e0   : > { %v6117_v22 = vadd.f32 %v2378_v1, %v7888_v5  ;;  %v6181_v12 = vadd.f32 %v2764_v3, %v7891_v10  ;;  %4047 = vmatpush1.bf16.msra.mxu0 %v7087_v60  ;;  %4433 = vmatpush1.bf16.msra.mxu1 %v7090_v30  ;;  %v2904_v26 = vmax.f32 %v6115_v38, 0.0  ;;  %v2906_v27 = vmax.f32 %v6179_v40, 0.0  ;;  %v7107_v60 = vld [vmem:[#allocation5 + $0x3e4] ss:$16 sps:$4 sm:$0xff]   ;;  %v7110_v30 = vld [vmem:[#allocation5 + $0x3ec] ss:$16 sps:$4 sm:$0xff]  }
 0x2e1   : > { %v2907_v20 = vmax.f32 %v6116_v62, 0.0  ;;  %v2909_v23 = vmax.f32 %v6180_v61, 0.0  ;;  %4048 = vmatprep.subr.bf16.mxu0 %v7095_v59  ;;  %4434 = vmatprep.subr.bf16.mxu1 %v7098_v63  ;;  %v7105_v62 = vld [vmem:[#allocation5 + $0x3e0] ss:$16 sps:$4 sm:$0xff]   ;;  %v7108_v61 = vld [vmem:[#allocation5 + $0x3e8] ss:$16 sps:$4 sm:$0xff]  }
 0x2e2   : > { %v2908_v32 = vmax.f32 %v6117_v22, 0.0  ;;  %v2910_v34 = vmax.f32 %v6181_v12, 0.0 }
 0x2e3   : > { %v3003_v58 = vpack.c.bf16 %v2907_v20, %v2903_v25  ;;  %v7985_v2 = vpack.c.bf16 %v2909_v23, %v2905_v17 }
 0x2e4   : > { %v3004_v4 = vpack.c.bf16 %v2908_v32, %v2904_v26  ;;  %v7987_v53 = vpack.c.bf16 %v2910_v34, %v2906_v27  ;;  %v2382_v37 = vpop.f32.mrb[96].mxu0  ;;  %v2768_v42 = vpop.f32.mrb[96].mxu1  ;;  %4049 = vmatpush1.bf16.msra.mxu0 %v7093_v14  ;;  %4435 = vmatpush1.bf16.msra.mxu1 %v7096_v15 }
 0x2e5   : > { %v6118_v47 = vadd.f32 %v2382_v37, %v7882_v16  ;;  %v6182_v50 = vadd.f32 %v2768_v42, %v7885_v21  ;;  %v2384_v55 = vpop.f32.mrb[97].mxu0  ;;  %v2770_v0 = vpop.f32.mrb[97].mxu1  ;;  %4050 = vmatprep.subr.bf16.mxu0 %v7101_v39  ;;  %4436 = vmatprep.subr.bf16.mxu1 %v7104_v57 }
 0x2e6   : > { %v6119_v7 = vadd.f32 %v2384_v55, %v7888_v5  ;;  %v6183_v11 = vadd.f32 %v2770_v0, %v7891_v10  ;;  %v2386_v48 = vpop.f32.mrb[98].mxu0  ;;  %v2772_v31 = vpop.f32.mrb[98].mxu1  ;;  %3931 = vmatprep.mubr.bf16.mxu0 %v3004_v4  ;;  %4317 = vmatprep.mubr.bf16.mxu1 %v3004_v4 }
 0x2e7   : > { %v6120_v59 = vadd.f32 %v2386_v48, %v7882_v16  ;;  %v6184_v63 = vadd.f32 %v2772_v31, %v7885_v21  ;;  %v2388_v38 = vpop.f32.mrb[99].mxu0  ;;  %v2774_v40 = vpop.f32.mrb[99].mxu1  ;;  %3932 = vmatmul.mubr.bf16.gmra.mrb[156].mxu0 %v3003_v58  ;;  %4318 = vmatmul.mubr.bf16.gmra.mrb[156].mxu1 %v3003_v58  ;;  %v2911_v1 = vmax.f32 %v6118_v47, 0.0  ;;  %v2913_v3 = vmax.f32 %v6182_v50, 0.0 }
 0x2e8   : > { %v6121_v9 = vadd.f32 %v2388_v38, %v7888_v5  ;;  %v6185_v46 = vadd.f32 %v2774_v40, %v7891_v10  ;;  %4051 = vmatpush1.bf16.msra.mxu0 %v7099_v43  ;;  %4437 = vmatpush1.bf16.msra.mxu1 %v7102_v45  ;;  %v2912_v14 = vmax.f32 %v6119_v7, 0.0  ;;  %v2914_v15 = vmax.f32 %v6183_v11, 0.0 }
 0x2e9   : > { %v2915_v22 = vmax.f32 %v6120_v59, 0.0  ;;  %v2917_v12 = vmax.f32 %v6184_v63, 0.0  ;;  %4052 = vmatprep.subr.bf16.mxu0 %v7107_v60  ;;  %4438 = vmatprep.subr.bf16.mxu1 %v7110_v30 }
 0x2ea   : > { %v2916_v39 = vmax.f32 %v6121_v9, 0.0  ;;  %v2918_v25 = vmax.f32 %v6185_v46, 0.0 }
 0x2eb   : > { %v3007_v17 = vpack.c.bf16 %v2915_v22, %v2911_v1  ;;  %v7997_v20 = vpack.c.bf16 %v2917_v12, %v2913_v3 }
 0x2ec   : > { %v3008_v23 = vpack.c.bf16 %v2916_v39, %v2912_v14  ;;  %v7999_v57 = vpack.c.bf16 %v2918_v25, %v2914_v15  ;;  %v2392_v26 = vpop.f32.mrb[100].mxu0  ;;  %v2778_v27 = vpop.f32.mrb[100].mxu1  ;;  %4053 = vmatpush1.bf16.msra.mxu0 %v7105_v62  ;;  %4439 = vmatpush1.bf16.msra.mxu1 %v7108_v61 }
 0x2ed   : > { %v6122_v32 = vadd.f32 %v2392_v26, %v7882_v16  ;;  %v6186_v34 = vadd.f32 %v2778_v27, %v7885_v21  ;;  %v2394_v58 = vpop.f32.mrb[101].mxu0  ;;  %v2780_v4 = vpop.f32.mrb[101].mxu1 }
 0x2ee   : > { %v6123_v37 = vadd.f32 %v2394_v58, %v7888_v5  ;;  %v6187_v42 = vadd.f32 %v2780_v4, %v7891_v10  ;;  %v2396_v43 = vpop.f32.mrb[102].mxu0  ;;  %v2782_v45 = vpop.f32.mrb[102].mxu1  ;;  %3941 = vmatprep.mubr.bf16.mxu0 %v3008_v23  ;;  %4327 = vmatprep.mubr.bf16.mxu1 %v3008_v23 }
 0x2ef   : > { %v6124_v47 = vadd.f32 %v2396_v43, %v7882_v16  ;;  %v6188_v50 = vadd.f32 %v2782_v45, %v7885_v21  ;;  %v2398_v55 = vpop.f32.mrb[103].mxu0  ;;  %v2784_v0 = vpop.f32.mrb[103].mxu1  ;;  %3942 = vmatmul.mubr.bf16.gmra.mrb[160].mxu0 %v3007_v17  ;;  %4328 = vmatmul.mubr.bf16.gmra.mrb[160].mxu1 %v3007_v17  ;;  %v2919_v7 = vmax.f32 %v6122_v32, 0.0  ;;  %v2921_v11 = vmax.f32 %v6186_v34, 0.0 }
 0x2f0   : > { %v6125_v60 = vadd.f32 %v2398_v55, %v7888_v5  ;;  %v6189_v30 = vadd.f32 %v2784_v0, %v7891_v10  ;;  %v2920_v59 = vmax.f32 %v6123_v37, 0.0  ;;  %v2922_v63 = vmax.f32 %v6187_v42, 0.0 }
 0x2f1   : > { %v2923_v48 = vmax.f32 %v6124_v47, 0.0  ;;  %v2925_v31 = vmax.f32 %v6188_v50, 0.0 }
 0x2f2   : > { %v2924_v38 = vmax.f32 %v6125_v60, 0.0  ;;  %v2926_v40 = vmax.f32 %v6189_v30, 0.0 }
 0x2f3   : > { %v3011_v9 = vpack.c.bf16 %v2923_v48, %v2919_v7  ;;  %v8009_v46 = vpack.c.bf16 %v2925_v31, %v2921_v11 }
 0x2f4   : > { %v3012_v62 = vpack.c.bf16 %v2924_v38, %v2920_v59  ;;  %v8011_v61 = vpack.c.bf16 %v2926_v40, %v2922_v63  ;;  %v2402_v1 = vpop.f32.mrb[104].mxu0  ;;  %v2788_v3 = vpop.f32.mrb[104].mxu1 }
 0x2f5   : > { %v6126_v22 = vadd.f32 %v2402_v1, %v7882_v16  ;;  %v6190_v12 = vadd.f32 %v2788_v3, %v7885_v21  ;;  %v2404_v14 = vpop.f32.mrb[105].mxu0  ;;  %v2790_v15 = vpop.f32.mrb[105].mxu1 }
 0x2f6   : > { %v6127_v39 = vadd.f32 %v2404_v14, %v7888_v5  ;;  %v6191_v25 = vadd.f32 %v2790_v15, %v7891_v10  ;;  %v2406_v17 = vpop.f32.mrb[106].mxu0  ;;  %v2792_v23 = vpop.f32.mrb[106].mxu1  ;;  %3951 = vmatprep.mubr.bf16.mxu0 %v3012_v62  ;;  %4337 = vmatprep.mubr.bf16.mxu1 %v3012_v62 }
 0x2f7   : > { %v6128_v26 = vadd.f32 %v2406_v17, %v7882_v16  ;;  %v6192_v27 = vadd.f32 %v2792_v23, %v7885_v21  ;;  %v2408_v32 = vpop.f32.mrb[107].mxu0  ;;  %v2794_v34 = vpop.f32.mrb[107].mxu1  ;;  %3952 = vmatmul.mubr.bf16.gmra.mrb[164].mxu0 %v3011_v9  ;;  %4338 = vmatmul.mubr.bf16.gmra.mrb[164].mxu1 %v3011_v9  ;;  %v2927_v37 = vmax.f32 %v6126_v22, 0.0  ;;  %v2929_v42 = vmax.f32 %v6190_v12, 0.0 }
 0x2f8   : > { %v6129_v58 = vadd.f32 %v2408_v32, %v7888_v5  ;;  %v6193_v4 = vadd.f32 %v2794_v34, %v7891_v10  ;;  %v2928_v47 = vmax.f32 %v6127_v39, 0.0  ;;  %v2930_v50 = vmax.f32 %v6191_v25, 0.0 }
 0x2f9   : > { %v2931_v43 = vmax.f32 %v6128_v26, 0.0  ;;  %v2933_v45 = vmax.f32 %v6192_v27, 0.0 }
 0x2fa   : > { %v2932_v55 = vmax.f32 %v6129_v58, 0.0  ;;  %v2934_v0 = vmax.f32 %v6193_v4, 0.0 }
 0x2fb   : > { %v3015_v60 = vpack.c.bf16 %v2931_v43, %v2927_v37  ;;  %v8021_v30 = vpack.c.bf16 %v2933_v45, %v2929_v42 }
 0x2fc   : > { %v3016_v7 = vpack.c.bf16 %v2932_v55, %v2928_v47  ;;  %v8023_v11 = vpack.c.bf16 %v2934_v0, %v2930_v50  ;;  %v2412_v48 = vpop.f32.mrb[108].mxu0  ;;  %v2798_v31 = vpop.f32.mrb[108].mxu1 }
 0x2fd   : > { %v6130_v59 = vadd.f32 %v2412_v48, %v7882_v16  ;;  %v6194_v63 = vadd.f32 %v2798_v31, %v7885_v21  ;;  %v2414_v38 = vpop.f32.mrb[109].mxu0  ;;  %v2800_v40 = vpop.f32.mrb[109].mxu1 }
 0x2fe   : > { %v6131_v9 = vadd.f32 %v2414_v38, %v7888_v5  ;;  %v6195_v62 = vadd.f32 %v2800_v40, %v7891_v10  ;;  %v2416_v1 = vpop.f32.mrb[110].mxu0  ;;  %v2802_v3 = vpop.f32.mrb[110].mxu1  ;;  %3961 = vmatprep.mubr.bf16.mxu0 %v3016_v7  ;;  %4347 = vmatprep.mubr.bf16.mxu1 %v3016_v7 }
 0x2ff   : > { %v6132_v22 = vadd.f32 %v2416_v1, %v7882_v16  ;;  %v6196_v12 = vadd.f32 %v2802_v3, %v7885_v21  ;;  %v2418_v14 = vpop.f32.mrb[111].mxu0  ;;  %v2804_v15 = vpop.f32.mrb[111].mxu1  ;;  %3962 = vmatmul.mubr.bf16.gmra.mrb[168].mxu0 %v3015_v60  ;;  %4348 = vmatmul.mubr.bf16.gmra.mrb[168].mxu1 %v3015_v60  ;;  %v2935_v17 = vmax.f32 %v6130_v59, 0.0  ;;  %v2937_v23 = vmax.f32 %v6194_v63, 0.0 }
 0x300   : > { %v6133_v39 = vadd.f32 %v2418_v14, %v7888_v5  ;;  %v6197_v25 = vadd.f32 %v2804_v15, %v7891_v10  ;;  %v2936_v32 = vmax.f32 %v6131_v9, 0.0  ;;  %v2938_v34 = vmax.f32 %v6195_v62, 0.0 }
 0x301   : > { %v2939_v26 = vmax.f32 %v6132_v22, 0.0  ;;  %v2941_v27 = vmax.f32 %v6196_v12, 0.0  ;;  %v7111_v22 = vld [vmem:[%s8521_s7 + $0x40] sm:$0xff]  }
 0x302   : > { %v2940_v58 = vmax.f32 %v6133_v39, 0.0  ;;  %v2942_v4 = vmax.f32 %v6197_v25, 0.0  ;;  %v7113_v12 = vld [vmem:[%s8521_s7 + $0xc0] sm:$0xff]   ;;  %5862 = vmatprep.subr.bf16.mxu0 %v7111_v22 }
 0x303   : > { %v3019_v37 = vpack.c.bf16 %v2939_v26, %v2935_v17  ;;  %v8033_v42 = vpack.c.bf16 %v2941_v27, %v2937_v23  ;;  %5974 = vmatprep.subr.bf16.mxu1 %v7113_v12 }
 0x304   : > { %v3020_v43 = vpack.c.bf16 %v2940_v58, %v2936_v32  ;;  %v8035_v45 = vpack.c.bf16 %v2942_v4, %v2938_v34  ;;  %v2422_v47 = vpop.f32.mrb[112].mxu0  ;;  %v2808_v50 = vpop.f32.mrb[112].mxu1 }
 0x305   : > { %v6134_v55 = vadd.f32 %v2422_v47, %v7882_v16  ;;  %v6198_v0 = vadd.f32 %v2808_v50, %v7885_v21  ;;  %v2424_v60 = vpop.f32.mrb[113].mxu0  ;;  %v2810_v7 = vpop.f32.mrb[113].mxu1 }
 0x306   : > { %v6135_v48 = vadd.f32 %v2424_v60, %v7888_v5  ;;  %v6199_v31 = vadd.f32 %v2810_v7, %v7891_v10  ;;  %v2426_v59 = vpop.f32.mrb[114].mxu0  ;;  %v2812_v63 = vpop.f32.mrb[114].mxu1  ;;  %3971 = vmatprep.mubr.bf16.mxu0 %v3020_v43  ;;  %4357 = vmatprep.mubr.bf16.mxu1 %v3020_v43 }
 0x307   : > { %v6136_v38 = vadd.f32 %v2426_v59, %v7882_v16  ;;  %v6200_v40 = vadd.f32 %v2812_v63, %v7885_v21  ;;  %v2428_v9 = vpop.f32.mrb[115].mxu0  ;;  %v2814_v62 = vpop.f32.mrb[115].mxu1  ;;  %3972 = vmatmul.mubr.bf16.gmra.mrb[172].mxu0 %v3019_v37  ;;  %4358 = vmatmul.mubr.bf16.gmra.mrb[172].mxu1 %v3019_v37  ;;  %v2943_v14 = vmax.f32 %v6134_v55, 0.0  ;;  %v2945_v15 = vmax.f32 %v6198_v0, 0.0 }
 0x308   : > { %v6137_v1 = vadd.f32 %v2428_v9, %v7888_v5  ;;  %v6201_v3 = vadd.f32 %v2814_v62, %v7891_v10  ;;  %v2944_v17 = vmax.f32 %v6135_v48, 0.0  ;;  %v2946_v23 = vmax.f32 %v6199_v31, 0.0 }
 0x309   : > { %v2947_v39 = vmax.f32 %v6136_v38, 0.0  ;;  %v2949_v25 = vmax.f32 %v6200_v40, 0.0 }
 0x30a   : > { %v2948_v26 = vmax.f32 %v6137_v1, 0.0  ;;  %v2950_v27 = vmax.f32 %v6201_v3, 0.0 }
 0x30b   : > { %v3023_v32 = vpack.c.bf16 %v2947_v39, %v2943_v14  ;;  %v8051_v34 = vpack.c.bf16 %v2949_v25, %v2945_v15 }
 0x30c   : > { %v3024_v58 = vpack.c.bf16 %v2948_v26, %v2944_v17  ;;  %v8053_v4 = vpack.c.bf16 %v2950_v27, %v2946_v23  ;;  %v2432_v37 = vpop.f32.mrb[116].mxu0  ;;  %v2818_v43 = vpop.f32.mrb[116].mxu1 }
 0x30d   : > { %v6138_v47 = vadd.f32 %v2432_v37, %v7882_v16  ;;  %v6202_v50 = vadd.f32 %v2818_v43, %v7885_v21  ;;  %v2434_v55 = vpop.f32.mrb[117].mxu0  ;;  %v2820_v0 = vpop.f32.mrb[117].mxu1 }
 0x30e   : > { %v6139_v60 = vadd.f32 %v2434_v55, %v7888_v5  ;;  %v6203_v7 = vadd.f32 %v2820_v0, %v7891_v10  ;;  %v2436_v48 = vpop.f32.mrb[118].mxu0  ;;  %v2822_v31 = vpop.f32.mrb[118].mxu1  ;;  %3981 = vmatprep.mubr.bf16.mxu0 %v3024_v58  ;;  %4367 = vmatprep.mubr.bf16.mxu1 %v3024_v58 }
 0x30f   : > { %v6140_v59 = vadd.f32 %v2436_v48, %v7882_v16  ;;  %v6204_v63 = vadd.f32 %v2822_v31, %v7885_v21  ;;  %v2438_v38 = vpop.f32.mrb[119].mxu0  ;;  %v2824_v40 = vpop.f32.mrb[119].mxu1  ;;  %3982 = vmatmul.mubr.bf16.gmra.mrb[176].mxu0 %v3023_v32  ;;  %4368 = vmatmul.mubr.bf16.gmra.mrb[176].mxu1 %v3023_v32  ;;  %v2951_v1 = vmax.f32 %v6138_v47, 0.0  ;;  %v2953_v3 = vmax.f32 %v6202_v50, 0.0 }
 0x310   : > { %v6141_v9 = vadd.f32 %v2438_v38, %v7888_v5  ;;  %v6205_v62 = vadd.f32 %v2824_v40, %v7891_v10  ;;  %v2952_v14 = vmax.f32 %v6139_v60, 0.0  ;;  %v2954_v15 = vmax.f32 %v6203_v7, 0.0 }
 0x311   : > { %v2955_v22 = vmax.f32 %v6140_v59, 0.0  ;;  %v2957_v12 = vmax.f32 %v6204_v63, 0.0 }
 0x312   : > { %v2956_v39 = vmax.f32 %v6141_v9, 0.0  ;;  %v2958_v25 = vmax.f32 %v6205_v62, 0.0 }
 0x313   : > { %v3027_v17 = vpack.c.bf16 %v2955_v22, %v2951_v1  ;;  %v8063_v23 = vpack.c.bf16 %v2957_v12, %v2953_v3 }
 0x314   : > { %v3028_v26 = vpack.c.bf16 %v2956_v39, %v2952_v14  ;;  %v8065_v27 = vpack.c.bf16 %v2958_v25, %v2954_v15  ;;  %v2442_v58 = vpop.f32.mrb[120].mxu0  ;;  %v2828_v32 = vpop.f32.mrb[120].mxu1 }
 0x315   : > { %v6142_v37 = vadd.f32 %v2442_v58, %v7882_v16  ;;  %v6206_v43 = vadd.f32 %v2828_v32, %v7885_v21  ;;  %v2444_v47 = vpop.f32.mrb[121].mxu0  ;;  %v2830_v50 = vpop.f32.mrb[121].mxu1 }
 0x316   : > { %v6143_v55 = vadd.f32 %v2444_v47, %v7888_v5  ;;  %v6207_v0 = vadd.f32 %v2830_v50, %v7891_v10  ;;  %v2446_v60 = vpop.f32.mrb[122].mxu0  ;;  %v2832_v7 = vpop.f32.mrb[122].mxu1  ;;  %3991 = vmatprep.mubr.bf16.mxu0 %v3028_v26  ;;  %4377 = vmatprep.mubr.bf16.mxu1 %v3028_v26 }
 0x317   : > { %v6144_v48 = vadd.f32 %v2446_v60, %v7882_v16  ;;  %v6208_v31 = vadd.f32 %v2832_v7, %v7885_v21  ;;  %v2448_v59 = vpop.f32.mrb[123].mxu0  ;;  %v2834_v63 = vpop.f32.mrb[123].mxu1  ;;  %3992 = vmatmul.mubr.bf16.gmra.mrb[180].mxu0 %v3027_v17  ;;  %4378 = vmatmul.mubr.bf16.gmra.mrb[180].mxu1 %v3027_v17  ;;  %v2959_v9 = vmax.f32 %v6142_v37, 0.0  ;;  %v2961_v62 = vmax.f32 %v6206_v43, 0.0 }
 0x318   : > { %v6145_v38 = vadd.f32 %v2448_v59, %v7888_v5  ;;  %v6209_v40 = vadd.f32 %v2834_v63, %v7891_v10  ;;  %v2960_v22 = vmax.f32 %v6143_v55, 0.0  ;;  %v2962_v12 = vmax.f32 %v6207_v0, 0.0 }
 0x319   : > { %v2963_v1 = vmax.f32 %v6144_v48, 0.0  ;;  %v2965_v3 = vmax.f32 %v6208_v31, 0.0 }
 0x31a   : > { %v2964_v14 = vmax.f32 %v6145_v38, 0.0  ;;  %v2966_v15 = vmax.f32 %v6209_v40, 0.0 }
 0x31b   : > { %v3031_v39 = vpack.c.bf16 %v2963_v1, %v2959_v9  ;;  %v8075_v25 = vpack.c.bf16 %v2965_v3, %v2961_v62 }
 0x31c   : > { %v3032_v26 = vpack.c.bf16 %v2964_v14, %v2960_v22  ;;  %v8077_v58 = vpack.c.bf16 %v2966_v15, %v2962_v12  ;;  %v2452_v32 = vpop.f32.mrb[124].mxu0  ;;  %v2838_v17 = vpop.f32.mrb[124].mxu1 }
 0x31d   : > { %v6146_v47 = vadd.f32 %v2452_v32, %v7882_v16  ;;  %v6210_v50 = vadd.f32 %v2838_v17, %v7885_v21  ;;  %v2454_v37 = vpop.f32.mrb[125].mxu0  ;;  %v2840_v43 = vpop.f32.mrb[125].mxu1  ;;  %v7117_v17 = vld [vmem:[%s8521_s7 + $0xc8] sm:$0xff]  }
 0x31e   : > { %v6147_v60 = vadd.f32 %v2454_v37, %v7888_v5  ;;  %v6211_v55 = vadd.f32 %v2840_v43, %v7891_v10  ;;  %v2456_v0 = vpop.f32.mrb[126].mxu0  ;;  %v2842_v7 = vpop.f32.mrb[126].mxu1  ;;  %4001 = vmatprep.mubr.bf16.mxu0 %v3032_v26  ;;  %4387 = vmatprep.mubr.bf16.mxu1 %v3032_v26  ;;  %v7122_v37 = vld [vmem:[%s8521_s7 + $0x90] sm:$0xff]   ;;  %v7123_v43 = vld [vmem:[%s8521_s7 + $0x58] sm:$0xff]  }
 0x31f   : > { %v6148_v48 = vadd.f32 %v2456_v0, %v7882_v16  ;;  %v6212_v31 = vadd.f32 %v2842_v7, %v7885_v21  ;;  %v2458_v59 = vpop.f32.mrb[127].mxu0  ;;  %v2844_v63 = vpop.f32.mrb[127].mxu1  ;;  %4002 = vmatmul.mubr.bf16.gmra.mrb[184].mxu0 %v3031_v39  ;;  %4388 = vmatmul.mubr.bf16.gmra.mrb[184].mxu1 %v3031_v39  ;;  %v2967_v9 = vmax.f32 %v6146_v47, 0.0  ;;  %v2969_v62 = vmax.f32 %v6210_v50, 0.0  ;;  %v7115_v39 = vld [vmem:[%s8521_s7 + $0x48] sm:$0xff]   ;;  %v7120_v50 = vld [vmem:[%s8521_s7 + $0x10] sm:$0xff]  }
 0x320   : > { %v6149_v38 = vadd.f32 %v2458_v59, %v7888_v5  ;;  %v6213_v40 = vadd.f32 %v2844_v63, %v7891_v10  ;;  %v2968_v22 = vmax.f32 %v6147_v60, 0.0  ;;  %v2970_v12 = vmax.f32 %v6211_v55, 0.0  ;;  %v7112_v5 = vld [vmem:[%s8521_s7] sm:$0xff]   ;;  %v7118_v47 = vld [vmem:[%s8521_s7 + $0x88] sm:$0xff]   ;;  %v7125_v60 = vld [vmem:[%s8521_s7 + $0xd8] sm:$0xff]  }
 0x321   : > { %v2971_v1 = vmax.f32 %v6148_v48, 0.0  ;;  %v2973_v3 = vmax.f32 %v6212_v31, 0.0  ;;  %v7114_v10 = vld [vmem:[%s8521_s7 + $0x80] sm:$0xff]   ;;  %v7124_v55 = vld [vmem:[%s8521_s7 + $0x18] sm:$0xff]   ;;  %v7131_v31 = vld [vmem:[%s8521_s7 + $0x68] sm:$0xff]  }
 0x322   : > { %v2972_v14 = vmax.f32 %v6149_v38, 0.0  ;;  %v2974_v15 = vmax.f32 %v6213_v40, 0.0  ;;  %v7126_v0 = vld [vmem:[%s8521_s7 + $0x98] sm:$0xff]   ;;  %v7128_v7 = vld [vmem:[%s8521_s7 + $0x20] sm:$0xff]   ;;  %v7133_v59 = vld [vmem:[%s8521_s7 + $0xe8] sm:$0xff]  }
 0x323   : > { %v3035_v26 = vpack.c.bf16 %v2971_v1, %v2967_v9  ;;  %v8087_v16 = vpack.c.bf16 %v2973_v3, %v2969_v62  ;;  %v7130_v48 = vld [vmem:[%s8521_s7 + $0xa0] sm:$0xff]   ;;  %v7132_v63 = vld [vmem:[%s8521_s7 + $0x28] sm:$0xff]   ;;  %v7136_v40 = vld [vmem:[%s8521_s7 + $0x30] sm:$0xff]  }
 0x324   : > { %v3036_v21 = vpack.c.bf16 %v2972_v14, %v2968_v22  ;;  %v8089_v32 = vpack.c.bf16 %v2974_v15, %v2970_v12  ;;  %v7134_v38 = vld [vmem:[%s8521_s7 + $0xa8] sm:$0xff]   ;;  %v7138_v9 = vld [vmem:[%s8521_s7 + $0xb0] sm:$0xff]   ;;  %v7139_v62 = vld [vmem:[%s8521_s7 + $0x78] sm:$0xff]  }
 0x325   : > { %v7141_v1 = vld [vmem:[%s8521_s7 + $0xf8] sm:$0xff]  }
 0x326   : > { %4011 = vmatprep.mubr.bf16.mxu0 %v3036_v21  ;;  %4397 = vmatprep.mubr.bf16.mxu1 %v3036_v21  ;;  %v7140_v3 = vld [vmem:[%s8521_s7 + $0x38] sm:$0xff]  }
 0x327   : > { %4012 = vmatmul.mubr.bf16.gmra.mrb[188].mxu0 %v3035_v26  ;;  %4398 = vmatmul.mubr.bf16.gmra.mrb[188].mxu1 %v3035_v26  ;;  %v7142_v22 = vld [vmem:[%s8521_s7 + $0xb8] sm:$0xff]  }
 0x328   : > { %4054 = vmatprep.mubr.bf16.mxu0 %v7903_v8  ;;  %4440 = vmatprep.mubr.bf16.mxu1 %v7903_v8  ;;  %v7116_v8 = vld [vmem:[%s8521_s7 + $0x8] sm:$0xff]  }
 0x32f   : > { %4055 = vmatmul.mubr.bf16.vlgmr.msra.gmra.mrb[128].mxu0 %v7901_v18  ;;  %4441 = vmatmul.mubr.bf16.vlgmr.msra.gmra.mrb[128].mxu1 %v7901_v18  ;;  %v7119_v18 = vld [vmem:[%s8521_s7 + $0x50] sm:$0xff]  }
 0x330   : > { %4064 = vmatprep.mubr.bf16.mxu0 %v7915_v36  ;;  %4450 = vmatprep.mubr.bf16.mxu1 %v7915_v36  ;;  %v7121_v36 = vld [vmem:[%s8521_s7 + $0xd0] sm:$0xff]  }
 0x331   : > { %5863 = vmatpush3.bf16.msra.mxu0 %v7112_v5  ;;  %5975 = vmatpush3.bf16.msra.mxu1 %v7114_v10 }
 0x332   : > { %5864 = vmatprep.subr.bf16.mxu0 %v7115_v39  ;;  %5976 = vmatprep.subr.bf16.mxu1 %v7117_v17 }
 0x335   : > { %5865 = vmatpush3.bf16.msra.mxu0 %v7116_v8  ;;  %5977 = vmatpush3.bf16.msra.mxu1 %v7118_v47 }
 0x336   : > { %5866 = vmatprep.subr.bf16.mxu0 %v7119_v18  ;;  %5978 = vmatprep.subr.bf16.mxu1 %v7121_v36 }
 0x337   : > { %4065 = vmatmul.mubr.bf16.gmra.mrb[132].mxu0 %v7913_v13  ;;  %4451 = vmatmul.mubr.bf16.gmra.mrb[132].mxu1 %v7913_v13  ;;  %v7127_v13 = vld [vmem:[%s8521_s7 + $0x60] sm:$0xff]  }
 0x338   : > { %4074 = vmatprep.mubr.bf16.mxu0 %v7927_v51  ;;  %4460 = vmatprep.mubr.bf16.mxu1 %v7927_v51  ;;  %v7129_v51 = vld [vmem:[%s8521_s7 + $0xe0] sm:$0xff]  }
 0x339   : > { %5867 = vmatpush3.bf16.msra.mxu0 %v7120_v50  ;;  %5979 = vmatpush3.bf16.msra.mxu1 %v7122_v37 }
 0x33a   : > { %5868 = vmatprep.subr.bf16.mxu0 %v7123_v43  ;;  %5980 = vmatprep.subr.bf16.mxu1 %v7125_v60 }
 0x33d   : > { %5869 = vmatpush3.bf16.msra.mxu0 %v7124_v55  ;;  %5981 = vmatpush3.bf16.msra.mxu1 %v7126_v0 }
 0x33e   : > { %5870 = vmatprep.subr.bf16.mxu0 %v7127_v13  ;;  %5982 = vmatprep.subr.bf16.mxu1 %v7129_v51 }
 0x33f   : > { %4075 = vmatmul.mubr.bf16.gmra.mrb[136].mxu0 %v7925_v33  ;;  %4461 = vmatmul.mubr.bf16.gmra.mrb[136].mxu1 %v7925_v33  ;;  %v7135_v33 = vld [vmem:[%s8521_s7 + $0x70] sm:$0xff]  }
 0x340   : > { %4084 = vmatprep.mubr.bf16.mxu0 %v7939_v29  ;;  %4470 = vmatprep.mubr.bf16.mxu1 %v7939_v29  ;;  %v7137_v29 = vld [vmem:[%s8521_s7 + $0xf0] sm:$0xff]  }
 0x341   : > { %5871 = vmatpush3.bf16.msra.mxu0 %v7128_v7  ;;  %5983 = vmatpush3.bf16.msra.mxu1 %v7130_v48 }
 0x342   : > { %5872 = vmatprep.subr.bf16.mxu0 %v7131_v31  ;;  %5984 = vmatprep.subr.bf16.mxu1 %v7133_v59 }
 0x345   : > { %5873 = vmatpush3.bf16.msra.mxu0 %v7132_v63  ;;  %5985 = vmatpush3.bf16.msra.mxu1 %v7134_v38 }
 0x346   : > { %5874 = vmatprep.subr.bf16.mxu0 %v7135_v33  ;;  %5986 = vmatprep.subr.bf16.mxu1 %v7137_v29 }
 0x347   : > { %4085 = vmatmul.mubr.bf16.gmra.mrb[140].mxu0 %v7937_v19  ;;  %4471 = vmatmul.mubr.bf16.gmra.mrb[140].mxu1 %v7937_v19  ;;  %v3167_v19 = vld [vmem:[%s8520_s6] sm:$0xf] }
 0x348   : > { %4094 = vmatprep.mubr.bf16.mxu0 %v7951_v6  ;;  %4480 = vmatprep.mubr.bf16.mxu1 %v7951_v6  ;;  %v8252_v6 = vrot.slane %v3167_v19, %v7620_v24 }
 0x349   : > { %5875 = vmatpush3.bf16.msra.mxu0 %v7136_v40  ;;  %5987 = vmatpush3.bf16.msra.mxu1 %v7138_v9 }
 0x34a   : > { %5876 = vmatprep.subr.bf16.mxu0 %v7139_v62  ;;  %5988 = vmatprep.subr.bf16.mxu1 %v7141_v1 }
 0x34d   : > { %5877 = vmatpush3.bf16.msra.mxu0 %v7140_v3  ;;  %5989 = vmatpush3.bf16.msra.mxu1 %v7142_v22 }
 0x34f   : > { %4095 = vmatmul.mubr.bf16.gmra.mrb[144].mxu0 %v7949_v44  ;;  %4481 = vmatmul.mubr.bf16.gmra.mrb[144].mxu1 %v7949_v44  ;;  %v8249_v44 = vrot.slane %v3167_v19, %v7599_v54 }
 0x350   : > { %4104 = vmatprep.mubr.bf16.mxu0 %v7963_v35  ;;  %4490 = vmatprep.mubr.bf16.mxu1 %v7963_v35  ;;  %v8258_v35 = vrot.slane %v3167_v19, %v7622_v28 }
 0x357   : > { %4105 = vmatmul.mubr.bf16.gmra.mrb[148].mxu0 %v7961_v52  ;;  %4491 = vmatmul.mubr.bf16.gmra.mrb[148].mxu1 %v7961_v52  ;;  %v8255_v52 = vrot.slane %v3167_v19, %v7604_v56 }
 0x358   : > { %4114 = vmatprep.mubr.bf16.mxu0 %v7975_v41  ;;  %4500 = vmatprep.mubr.bf16.mxu1 %v7975_v41 }
 0x35f   : > { %4115 = vmatmul.mubr.bf16.gmra.mrb[152].mxu0 %v7973_v49  ;;  %4501 = vmatmul.mubr.bf16.gmra.mrb[152].mxu1 %v7973_v49 }
 0x360   : > { %4124 = vmatprep.mubr.bf16.mxu0 %v7987_v53  ;;  %4510 = vmatprep.mubr.bf16.mxu1 %v7987_v53 }
 0x367   : > { %4125 = vmatmul.mubr.bf16.gmra.mrb[156].mxu0 %v7985_v2  ;;  %4511 = vmatmul.mubr.bf16.gmra.mrb[156].mxu1 %v7985_v2 }
 0x368   : > { %4134 = vmatprep.mubr.bf16.mxu0 %v7999_v57  ;;  %4520 = vmatprep.mubr.bf16.mxu1 %v7999_v57 }
 0x36f   : > { %4135 = vmatmul.mubr.bf16.gmra.mrb[160].mxu0 %v7997_v20  ;;  %4521 = vmatmul.mubr.bf16.gmra.mrb[160].mxu1 %v7997_v20 }
 0x370   : > { %4144 = vmatprep.mubr.bf16.mxu0 %v8011_v61  ;;  %4530 = vmatprep.mubr.bf16.mxu1 %v8011_v61 }
 0x377   : > { %4145 = vmatmul.mubr.bf16.gmra.mrb[164].mxu0 %v8009_v46  ;;  %4531 = vmatmul.mubr.bf16.gmra.mrb[164].mxu1 %v8009_v46 }
 0x378   : > { %4154 = vmatprep.mubr.bf16.mxu0 %v8023_v11  ;;  %4540 = vmatprep.mubr.bf16.mxu1 %v8023_v11 }
 0x37f   : > { %4155 = vmatmul.mubr.bf16.gmra.mrb[168].mxu0 %v8021_v30  ;;  %4541 = vmatmul.mubr.bf16.gmra.mrb[168].mxu1 %v8021_v30 }
 0x380   : > { %4164 = vmatprep.mubr.bf16.mxu0 %v8035_v45  ;;  %4550 = vmatprep.mubr.bf16.mxu1 %v8035_v45 }
 0x387   : > { %4165 = vmatmul.mubr.bf16.gmra.mrb[172].mxu0 %v8033_v42  ;;  %4551 = vmatmul.mubr.bf16.gmra.mrb[172].mxu1 %v8033_v42 }
 0x388   : > { %4174 = vmatprep.mubr.bf16.mxu0 %v8053_v4  ;;  %4560 = vmatprep.mubr.bf16.mxu1 %v8053_v4 }
 0x38f   : > { %4175 = vmatmul.mubr.bf16.gmra.mrb[176].mxu0 %v8051_v34  ;;  %4561 = vmatmul.mubr.bf16.gmra.mrb[176].mxu1 %v8051_v34 }
 0x390   : > { %4184 = vmatprep.mubr.bf16.mxu0 %v8065_v27  ;;  %4570 = vmatprep.mubr.bf16.mxu1 %v8065_v27 }
 0x397   : > { %4185 = vmatmul.mubr.bf16.gmra.mrb[180].mxu0 %v8063_v23  ;;  %4571 = vmatmul.mubr.bf16.gmra.mrb[180].mxu1 %v8063_v23 }
 0x398   : > { %4194 = vmatprep.mubr.bf16.mxu0 %v8077_v58  ;;  %4580 = vmatprep.mubr.bf16.mxu1 %v8077_v58 }
 0x39f   : > { %4195 = vmatmul.mubr.bf16.gmra.mrb[184].mxu0 %v8075_v25  ;;  %4581 = vmatmul.mubr.bf16.gmra.mrb[184].mxu1 %v8075_v25 }
 0x3a0   : > { %4204 = vmatprep.mubr.bf16.mxu0 %v8089_v32  ;;  %4590 = vmatprep.mubr.bf16.mxu1 %v8089_v32 }
 0x3a7   : > { %4205 = vmatmul.mubr.bf16.gmra.mrb[188].mxu0 %v8087_v16  ;;  %4591 = vmatmul.mubr.bf16.gmra.mrb[188].mxu1 %v8087_v16 }
 0x402   : > { %v4056_v49 = vpop.f32.mrb[128].mxu0  ;;  %v4442_v41 = vpop.f32.mrb[128].mxu1 }
 0x403   : > { %v6214_v2 = vadd.f32 %v4056_v49, %v8249_v44  ;;  %v6278_v53 = vadd.f32 %v4442_v41, %v8252_v6  ;;  %v4058_v20 = vpop.f32.mrb[129].mxu0  ;;  %v4444_v57 = vpop.f32.mrb[129].mxu1 }
 0x404   : > { %v6215_v54 = vadd.f32 %v4058_v20, %v8255_v52  ;;  %v6279_v46 = vadd.f32 %v4444_v57, %v8258_v35  ;;  %v4060_v24 = vpop.f32.mrb[130].mxu0  ;;  %v4446_v61 = vpop.f32.mrb[130].mxu1 }
 0x405   : > { %v6216_v56 = vadd.f32 %v4060_v24, %v8249_v44  ;;  %v6280_v30 = vadd.f32 %v4446_v61, %v8252_v6  ;;  %v4062_v28 = vpop.f32.mrb[131].mxu0  ;;  %v4448_v11 = vpop.f32.mrb[131].mxu1  ;;  %v4601_v34 = vmax.f32 %v6214_v2, 0.0  ;;  %v4603_v4 = vmax.f32 %v6278_v53, 0.0 }
 0x406   : > { %v6217_v42 = vadd.f32 %v4062_v28, %v8255_v52  ;;  %v6281_v45 = vadd.f32 %v4448_v11, %v8258_v35  ;;  %v4602_v25 = vmax.f32 %v6215_v54, 0.0  ;;  %v4604_v58 = vmax.f32 %v6279_v46, 0.0 }
 0x407   : > { %v4605_v23 = vmax.f32 %v6216_v56, 0.0  ;;  %v4607_v27 = vmax.f32 %v6280_v30, 0.0 }
 0x408   : > { %v4606_v12 = vmax.f32 %v6217_v42, 0.0  ;;  %v4608_v14 = vmax.f32 %v6281_v45, 0.0 }
 0x409   : > { %v4729_v15 = vpack.c.bf16 %v4605_v23, %v4601_v34  ;;  %v4731_v26 = vpack.c.bf16 %v4607_v27, %v4603_v4 }
 0x40a   : > { %v4730_v16 = vpack.c.bf16 %v4606_v12, %v4602_v25  ;;  %v4732_v21 = vpack.c.bf16 %v4608_v14, %v4604_v58  ;;  %v4066_v32 = vpop.f32.mrb[132].mxu0  ;;  %v4452_v5 = vpop.f32.mrb[132].mxu1 }
 0x40b   : > { %v6218_v10 = vadd.f32 %v4066_v32, %v8249_v44  ;;  %v6282_v39 = vadd.f32 %v4452_v5, %v8252_v6  ;;  %v4068_v17 = vpop.f32.mrb[133].mxu0  ;;  %v4454_v8 = vpop.f32.mrb[133].mxu1 }
 0x40c   : > { %v6219_v47 = vadd.f32 %v4068_v17, %v8255_v52  ;;  %v6283_v18 = vadd.f32 %v4454_v8, %v8258_v35  ;;  %v4070_v36 = vpop.f32.mrb[134].mxu0  ;;  %v4456_v50 = vpop.f32.mrb[134].mxu1  ;;  %5088 = vmatprep.mubr.bf16.mxu0 %v4730_v16  ;;  %5249 = vmatprep.mubr.bf16.mxu1 %v4732_v21 }
 0x40d   : > { %v6220_v37 = vadd.f32 %v4070_v36, %v8249_v44  ;;  %v6284_v43 = vadd.f32 %v4456_v50, %v8252_v6  ;;  %v4072_v60 = vpop.f32.mrb[135].mxu0  ;;  %v4458_v55 = vpop.f32.mrb[135].mxu1  ;;  %5089 = vmatmul.mubr.bf16.vlgmr.msra.gmra.mrb[192].mxu0 %v4729_v15  ;;  %5250 = vmatmul.mubr.bf16.vlgmr.msra.gmra.mrb[192].mxu1 %v4731_v26  ;;  %v4609_v51 = vmax.f32 %v6218_v10, 0.0  ;;  %v4611_v7 = vmax.f32 %v6282_v39, 0.0 }
 0x40e   : > { %v6221_v0 = vadd.f32 %v4072_v60, %v8255_v52  ;;  %v6285_v13 = vadd.f32 %v4458_v55, %v8258_v35  ;;  %v4610_v59 = vmax.f32 %v6219_v47, 0.0  ;;  %v4612_v63 = vmax.f32 %v6283_v18, 0.0 }
 0x40f   : > { %v4613_v48 = vmax.f32 %v6220_v37, 0.0  ;;  %v4615_v31 = vmax.f32 %v6284_v43, 0.0 }
 0x410   : > { %v4614_v38 = vmax.f32 %v6221_v0, 0.0  ;;  %v4616_v33 = vmax.f32 %v6285_v13, 0.0 }
 0x411   : > { %v4733_v29 = vpack.c.bf16 %v4613_v48, %v4609_v51  ;;  %v4735_v40 = vpack.c.bf16 %v4615_v31, %v4611_v7 }
 0x412   : > { %v4734_v9 = vpack.c.bf16 %v4614_v38, %v4610_v59  ;;  %v4736_v62 = vpack.c.bf16 %v4616_v33, %v4612_v63  ;;  %v4076_v1 = vpop.f32.mrb[136].mxu0  ;;  %v4462_v3 = vpop.f32.mrb[136].mxu1 }
 0x413   : > { %v6222_v22 = vadd.f32 %v4076_v1, %v8249_v44  ;;  %v6286_v19 = vadd.f32 %v4462_v3, %v8252_v6  ;;  %v4078_v49 = vpop.f32.mrb[137].mxu0  ;;  %v4464_v41 = vpop.f32.mrb[137].mxu1 }
 0x414   : > { %v6223_v2 = vadd.f32 %v4078_v49, %v8255_v52  ;;  %v6287_v53 = vadd.f32 %v4464_v41, %v8258_v35  ;;  %v4080_v20 = vpop.f32.mrb[138].mxu0  ;;  %v4466_v57 = vpop.f32.mrb[138].mxu1  ;;  %5096 = vmatprep.mubr.bf16.mxu0 %v4734_v9  ;;  %5257 = vmatprep.mubr.bf16.mxu1 %v4736_v62 }
 0x415   : > { %v6224_v54 = vadd.f32 %v4080_v20, %v8249_v44  ;;  %v6288_v46 = vadd.f32 %v4466_v57, %v8252_v6  ;;  %v4082_v24 = vpop.f32.mrb[139].mxu0  ;;  %v4468_v61 = vpop.f32.mrb[139].mxu1  ;;  %5097 = vmatmul.mubr.bf16.gmra.mrb[196].mxu0 %v4733_v29  ;;  %5258 = vmatmul.mubr.bf16.gmra.mrb[196].mxu1 %v4735_v40  ;;  %v4617_v28 = vmax.f32 %v6222_v22, 0.0  ;;  %v4619_v11 = vmax.f32 %v6286_v19, 0.0 }
 0x416   : > { %v6225_v56 = vadd.f32 %v4082_v24, %v8255_v52  ;;  %v6289_v30 = vadd.f32 %v4468_v61, %v8258_v35  ;;  %v4618_v34 = vmax.f32 %v6223_v2, 0.0  ;;  %v4620_v4 = vmax.f32 %v6287_v53, 0.0 }
 0x417   : > { %v4621_v42 = vmax.f32 %v6224_v54, 0.0  ;;  %v4623_v45 = vmax.f32 %v6288_v46, 0.0 }
 0x418   : > { %v4622_v23 = vmax.f32 %v6225_v56, 0.0  ;;  %v4624_v27 = vmax.f32 %v6289_v30, 0.0 }
 0x419   : > { %v4737_v25 = vpack.c.bf16 %v4621_v42, %v4617_v28  ;;  %v4739_v58 = vpack.c.bf16 %v4623_v45, %v4619_v11 }
 0x41a   : > { %v4738_v12 = vpack.c.bf16 %v4622_v23, %v4618_v34  ;;  %v4740_v14 = vpack.c.bf16 %v4624_v27, %v4620_v4  ;;  %v4086_v15 = vpop.f32.mrb[140].mxu0  ;;  %v4472_v26 = vpop.f32.mrb[140].mxu1 }
 0x41b   : > { %v6226_v16 = vadd.f32 %v4086_v15, %v8249_v44  ;;  %v6290_v21 = vadd.f32 %v4472_v26, %v8252_v6  ;;  %v4088_v32 = vpop.f32.mrb[141].mxu0  ;;  %v4474_v5 = vpop.f32.mrb[141].mxu1 }
 0x41c   : > { %v6227_v10 = vadd.f32 %v4088_v32, %v8255_v52  ;;  %v6291_v39 = vadd.f32 %v4474_v5, %v8258_v35  ;;  %v4090_v17 = vpop.f32.mrb[142].mxu0  ;;  %v4476_v8 = vpop.f32.mrb[142].mxu1  ;;  %5104 = vmatprep.mubr.bf16.mxu0 %v4738_v12  ;;  %5265 = vmatprep.mubr.bf16.mxu1 %v4740_v14 }
 0x41d   : > { %v6228_v47 = vadd.f32 %v4090_v17, %v8249_v44  ;;  %v6292_v18 = vadd.f32 %v4476_v8, %v8252_v6  ;;  %v4092_v36 = vpop.f32.mrb[143].mxu0  ;;  %v4478_v50 = vpop.f32.mrb[143].mxu1  ;;  %5105 = vmatmul.mubr.bf16.gmra.mrb[200].mxu0 %v4737_v25  ;;  %5266 = vmatmul.mubr.bf16.gmra.mrb[200].mxu1 %v4739_v58  ;;  %v4625_v60 = vmax.f32 %v6226_v16, 0.0  ;;  %v4627_v55 = vmax.f32 %v6290_v21, 0.0 }
 0x41e   : > { %v6229_v37 = vadd.f32 %v4092_v36, %v8255_v52  ;;  %v6293_v43 = vadd.f32 %v4478_v50, %v8258_v35  ;;  %v4626_v51 = vmax.f32 %v6227_v10, 0.0  ;;  %v4628_v7 = vmax.f32 %v6291_v39, 0.0 }
 0x41f   : > { %v4629_v0 = vmax.f32 %v6228_v47, 0.0  ;;  %v4631_v13 = vmax.f32 %v6292_v18, 0.0 }
 0x420   : > { %v4630_v48 = vmax.f32 %v6229_v37, 0.0  ;;  %v4632_v31 = vmax.f32 %v6293_v43, 0.0 }
 0x421   : > { %v4741_v59 = vpack.c.bf16 %v4629_v0, %v4625_v60  ;;  %v4743_v63 = vpack.c.bf16 %v4631_v13, %v4627_v55 }
 0x422   : > { %v4742_v38 = vpack.c.bf16 %v4630_v48, %v4626_v51  ;;  %v4744_v33 = vpack.c.bf16 %v4632_v31, %v4628_v7  ;;  %v4096_v29 = vpop.f32.mrb[144].mxu0  ;;  %v4482_v40 = vpop.f32.mrb[144].mxu1 }
 0x423   : > { %v6230_v9 = vadd.f32 %v4096_v29, %v8249_v44  ;;  %v6294_v62 = vadd.f32 %v4482_v40, %v8252_v6  ;;  %v4098_v1 = vpop.f32.mrb[145].mxu0  ;;  %v4484_v3 = vpop.f32.mrb[145].mxu1 }
 0x424   : > { %v6231_v22 = vadd.f32 %v4098_v1, %v8255_v52  ;;  %v6295_v19 = vadd.f32 %v4484_v3, %v8258_v35  ;;  %v4100_v49 = vpop.f32.mrb[146].mxu0  ;;  %v4486_v41 = vpop.f32.mrb[146].mxu1  ;;  %5112 = vmatprep.mubr.bf16.mxu0 %v4742_v38  ;;  %5273 = vmatprep.mubr.bf16.mxu1 %v4744_v33 }
 0x425   : > { %v6232_v2 = vadd.f32 %v4100_v49, %v8249_v44  ;;  %v6296_v53 = vadd.f32 %v4486_v41, %v8252_v6  ;;  %v4102_v20 = vpop.f32.mrb[147].mxu0  ;;  %v4488_v57 = vpop.f32.mrb[147].mxu1  ;;  %5113 = vmatmul.mubr.bf16.gmra.mrb[204].mxu0 %v4741_v59  ;;  %5274 = vmatmul.mubr.bf16.gmra.mrb[204].mxu1 %v4743_v63  ;;  %v4633_v24 = vmax.f32 %v6230_v9, 0.0  ;;  %v4635_v61 = vmax.f32 %v6294_v62, 0.0 }
 0x426   : > { %v6233_v54 = vadd.f32 %v4102_v20, %v8255_v52  ;;  %v6297_v46 = vadd.f32 %v4488_v57, %v8258_v35  ;;  %v4634_v28 = vmax.f32 %v6231_v22, 0.0  ;;  %v4636_v11 = vmax.f32 %v6295_v19, 0.0 }
 0x427   : > { %v4637_v56 = vmax.f32 %v6232_v2, 0.0  ;;  %v4639_v30 = vmax.f32 %v6296_v53, 0.0 }
 0x428   : > { %v4638_v42 = vmax.f32 %v6233_v54, 0.0  ;;  %v4640_v45 = vmax.f32 %v6297_v46, 0.0 }
 0x429   : > { %v4745_v34 = vpack.c.bf16 %v4637_v56, %v4633_v24  ;;  %v4747_v4 = vpack.c.bf16 %v4639_v30, %v4635_v61 }
 0x42a   : > { %v4746_v23 = vpack.c.bf16 %v4638_v42, %v4634_v28  ;;  %v4748_v27 = vpack.c.bf16 %v4640_v45, %v4636_v11  ;;  %v4106_v25 = vpop.f32.mrb[148].mxu0  ;;  %v4492_v58 = vpop.f32.mrb[148].mxu1 }
 0x42b   : > { %v6234_v12 = vadd.f32 %v4106_v25, %v8249_v44  ;;  %v6298_v14 = vadd.f32 %v4492_v58, %v8252_v6  ;;  %v4108_v15 = vpop.f32.mrb[149].mxu0  ;;  %v4494_v26 = vpop.f32.mrb[149].mxu1 }
 0x42c   : > { %v6235_v16 = vadd.f32 %v4108_v15, %v8255_v52  ;;  %v6299_v21 = vadd.f32 %v4494_v26, %v8258_v35  ;;  %v4110_v32 = vpop.f32.mrb[150].mxu0  ;;  %v4496_v5 = vpop.f32.mrb[150].mxu1  ;;  %5120 = vmatprep.mubr.bf16.mxu0 %v4746_v23  ;;  %5281 = vmatprep.mubr.bf16.mxu1 %v4748_v27 }
 0x42d   : > { %v6236_v10 = vadd.f32 %v4110_v32, %v8249_v44  ;;  %v6300_v39 = vadd.f32 %v4496_v5, %v8252_v6  ;;  %v4112_v17 = vpop.f32.mrb[151].mxu0  ;;  %v4498_v8 = vpop.f32.mrb[151].mxu1  ;;  %5121 = vmatmul.mubr.bf16.gmra.mrb[208].mxu0 %v4745_v34  ;;  %5282 = vmatmul.mubr.bf16.gmra.mrb[208].mxu1 %v4747_v4  ;;  %v4641_v36 = vmax.f32 %v6234_v12, 0.0  ;;  %v4643_v50 = vmax.f32 %v6298_v14, 0.0 }
 0x42e   : > { %v6237_v47 = vadd.f32 %v4112_v17, %v8255_v52  ;;  %v6301_v18 = vadd.f32 %v4498_v8, %v8258_v35  ;;  %v4642_v60 = vmax.f32 %v6235_v16, 0.0  ;;  %v4644_v55 = vmax.f32 %v6299_v21, 0.0 }
 0x42f   : > { %v4645_v37 = vmax.f32 %v6236_v10, 0.0  ;;  %v4647_v43 = vmax.f32 %v6300_v39, 0.0 }
 0x430   : > { %v4646_v0 = vmax.f32 %v6237_v47, 0.0  ;;  %v4648_v13 = vmax.f32 %v6301_v18, 0.0 }
 0x431   : > { %v4749_v51 = vpack.c.bf16 %v4645_v37, %v4641_v36  ;;  %v4751_v7 = vpack.c.bf16 %v4647_v43, %v4643_v50 }
 0x432   : > { %v4750_v48 = vpack.c.bf16 %v4646_v0, %v4642_v60  ;;  %v4752_v31 = vpack.c.bf16 %v4648_v13, %v4644_v55  ;;  %v4116_v59 = vpop.f32.mrb[152].mxu0  ;;  %v4502_v63 = vpop.f32.mrb[152].mxu1 }
 0x433   : > { %v6238_v38 = vadd.f32 %v4116_v59, %v8249_v44  ;;  %v6302_v33 = vadd.f32 %v4502_v63, %v8252_v6  ;;  %v4118_v29 = vpop.f32.mrb[153].mxu0  ;;  %v4504_v40 = vpop.f32.mrb[153].mxu1 }
 0x434   : > { %v6239_v9 = vadd.f32 %v4118_v29, %v8255_v52  ;;  %v6303_v62 = vadd.f32 %v4504_v40, %v8258_v35  ;;  %v4120_v1 = vpop.f32.mrb[154].mxu0  ;;  %v4506_v3 = vpop.f32.mrb[154].mxu1  ;;  %5128 = vmatprep.mubr.bf16.mxu0 %v4750_v48  ;;  %5289 = vmatprep.mubr.bf16.mxu1 %v4752_v31 }
 0x435   : > { %v6240_v22 = vadd.f32 %v4120_v1, %v8249_v44  ;;  %v6304_v19 = vadd.f32 %v4506_v3, %v8252_v6  ;;  %v4122_v49 = vpop.f32.mrb[155].mxu0  ;;  %v4508_v41 = vpop.f32.mrb[155].mxu1  ;;  %5129 = vmatmul.mubr.bf16.gmra.mrb[212].mxu0 %v4749_v51  ;;  %5290 = vmatmul.mubr.bf16.gmra.mrb[212].mxu1 %v4751_v7  ;;  %v4649_v20 = vmax.f32 %v6238_v38, 0.0  ;;  %v4651_v57 = vmax.f32 %v6302_v33, 0.0 }
 0x436   : > { %v6241_v2 = vadd.f32 %v4122_v49, %v8255_v52  ;;  %v6305_v53 = vadd.f32 %v4508_v41, %v8258_v35  ;;  %v4650_v24 = vmax.f32 %v6239_v9, 0.0  ;;  %v4652_v61 = vmax.f32 %v6303_v62, 0.0 }
 0x437   : > { %v4653_v54 = vmax.f32 %v6240_v22, 0.0  ;;  %v4655_v46 = vmax.f32 %v6304_v19, 0.0 }
 0x438   : > { %v4654_v56 = vmax.f32 %v6241_v2, 0.0  ;;  %v4656_v30 = vmax.f32 %v6305_v53, 0.0 }
 0x439   : > { %v4753_v28 = vpack.c.bf16 %v4653_v54, %v4649_v20  ;;  %v4755_v11 = vpack.c.bf16 %v4655_v46, %v4651_v57 }
 0x43a   : > { %v4754_v42 = vpack.c.bf16 %v4654_v56, %v4650_v24  ;;  %v4756_v45 = vpack.c.bf16 %v4656_v30, %v4652_v61  ;;  %v4126_v34 = vpop.f32.mrb[156].mxu0  ;;  %v4512_v4 = vpop.f32.mrb[156].mxu1 }
 0x43b   : > { %v6242_v23 = vadd.f32 %v4126_v34, %v8249_v44  ;;  %v6306_v27 = vadd.f32 %v4512_v4, %v8252_v6  ;;  %v4128_v25 = vpop.f32.mrb[157].mxu0  ;;  %v4514_v58 = vpop.f32.mrb[157].mxu1 }
 0x43c   : > { %v6243_v12 = vadd.f32 %v4128_v25, %v8255_v52  ;;  %v6307_v14 = vadd.f32 %v4514_v58, %v8258_v35  ;;  %v4130_v15 = vpop.f32.mrb[158].mxu0  ;;  %v4516_v26 = vpop.f32.mrb[158].mxu1  ;;  %5136 = vmatprep.mubr.bf16.mxu0 %v4754_v42  ;;  %5297 = vmatprep.mubr.bf16.mxu1 %v4756_v45 }
 0x43d   : > { %v6244_v16 = vadd.f32 %v4130_v15, %v8249_v44  ;;  %v6308_v21 = vadd.f32 %v4516_v26, %v8252_v6  ;;  %v4132_v32 = vpop.f32.mrb[159].mxu0  ;;  %v4518_v5 = vpop.f32.mrb[159].mxu1  ;;  %5137 = vmatmul.mubr.bf16.gmra.mrb[216].mxu0 %v4753_v28  ;;  %5298 = vmatmul.mubr.bf16.gmra.mrb[216].mxu1 %v4755_v11  ;;  %v4657_v17 = vmax.f32 %v6242_v23, 0.0  ;;  %v4659_v8 = vmax.f32 %v6306_v27, 0.0 }
 0x43e   : > { %v6245_v10 = vadd.f32 %v4132_v32, %v8255_v52  ;;  %v6309_v39 = vadd.f32 %v4518_v5, %v8258_v35  ;;  %v4658_v36 = vmax.f32 %v6243_v12, 0.0  ;;  %v4660_v50 = vmax.f32 %v6307_v14, 0.0 }
 0x43f   : > { %v4661_v47 = vmax.f32 %v6244_v16, 0.0  ;;  %v4663_v18 = vmax.f32 %v6308_v21, 0.0 }
 0x440   : > { %v4662_v37 = vmax.f32 %v6245_v10, 0.0  ;;  %v4664_v43 = vmax.f32 %v6309_v39, 0.0 }
 0x441   : > { %v4757_v60 = vpack.c.bf16 %v4661_v47, %v4657_v17  ;;  %v4759_v55 = vpack.c.bf16 %v4663_v18, %v4659_v8 }
 0x442   : > { %v4758_v0 = vpack.c.bf16 %v4662_v37, %v4658_v36  ;;  %v4760_v13 = vpack.c.bf16 %v4664_v43, %v4660_v50  ;;  %v4136_v51 = vpop.f32.mrb[160].mxu0  ;;  %v4522_v7 = vpop.f32.mrb[160].mxu1 }
 0x443   : > { %v6246_v48 = vadd.f32 %v4136_v51, %v8249_v44  ;;  %v6310_v31 = vadd.f32 %v4522_v7, %v8252_v6  ;;  %v4138_v59 = vpop.f32.mrb[161].mxu0  ;;  %v4524_v63 = vpop.f32.mrb[161].mxu1 }
 0x444   : > { %v6247_v38 = vadd.f32 %v4138_v59, %v8255_v52  ;;  %v6311_v33 = vadd.f32 %v4524_v63, %v8258_v35  ;;  %v4140_v29 = vpop.f32.mrb[162].mxu0  ;;  %v4526_v40 = vpop.f32.mrb[162].mxu1  ;;  %5144 = vmatprep.mubr.bf16.mxu0 %v4758_v0  ;;  %5305 = vmatprep.mubr.bf16.mxu1 %v4760_v13 }
 0x445   : > { %v6248_v9 = vadd.f32 %v4140_v29, %v8249_v44  ;;  %v6312_v62 = vadd.f32 %v4526_v40, %v8252_v6  ;;  %v4142_v1 = vpop.f32.mrb[163].mxu0  ;;  %v4528_v3 = vpop.f32.mrb[163].mxu1  ;;  %5145 = vmatmul.mubr.bf16.gmra.mrb[220].mxu0 %v4757_v60  ;;  %5306 = vmatmul.mubr.bf16.gmra.mrb[220].mxu1 %v4759_v55  ;;  %v4665_v49 = vmax.f32 %v6246_v48, 0.0  ;;  %v4667_v41 = vmax.f32 %v6310_v31, 0.0 }
 0x446   : > { %v6249_v22 = vadd.f32 %v4142_v1, %v8255_v52  ;;  %v6313_v19 = vadd.f32 %v4528_v3, %v8258_v35  ;;  %v4666_v20 = vmax.f32 %v6247_v38, 0.0  ;;  %v4668_v57 = vmax.f32 %v6311_v33, 0.0 }
 0x447   : > { %v4669_v2 = vmax.f32 %v6248_v9, 0.0  ;;  %v4671_v53 = vmax.f32 %v6312_v62, 0.0 }
 0x448   : > { %v4670_v54 = vmax.f32 %v6249_v22, 0.0  ;;  %v4672_v46 = vmax.f32 %v6313_v19, 0.0 }
 0x449   : > { %v4761_v24 = vpack.c.bf16 %v4669_v2, %v4665_v49  ;;  %v4763_v61 = vpack.c.bf16 %v4671_v53, %v4667_v41 }
 0x44a   : > { %v4762_v56 = vpack.c.bf16 %v4670_v54, %v4666_v20  ;;  %v4764_v30 = vpack.c.bf16 %v4672_v46, %v4668_v57  ;;  %v4146_v28 = vpop.f32.mrb[164].mxu0  ;;  %v4532_v11 = vpop.f32.mrb[164].mxu1 }
 0x44b   : > { %v6250_v42 = vadd.f32 %v4146_v28, %v8249_v44  ;;  %v6314_v45 = vadd.f32 %v4532_v11, %v8252_v6  ;;  %v4148_v34 = vpop.f32.mrb[165].mxu0  ;;  %v4534_v4 = vpop.f32.mrb[165].mxu1 }
 0x44c   : > { %v6251_v23 = vadd.f32 %v4148_v34, %v8255_v52  ;;  %v6315_v27 = vadd.f32 %v4534_v4, %v8258_v35  ;;  %v4150_v25 = vpop.f32.mrb[166].mxu0  ;;  %v4536_v58 = vpop.f32.mrb[166].mxu1  ;;  %5152 = vmatprep.mubr.bf16.mxu0 %v4762_v56  ;;  %5313 = vmatprep.mubr.bf16.mxu1 %v4764_v30 }
 0x44d   : > { %v6252_v12 = vadd.f32 %v4150_v25, %v8249_v44  ;;  %v6316_v14 = vadd.f32 %v4536_v58, %v8252_v6  ;;  %v4152_v15 = vpop.f32.mrb[167].mxu0  ;;  %v4538_v26 = vpop.f32.mrb[167].mxu1  ;;  %5153 = vmatmul.mubr.bf16.gmra.mrb[224].mxu0 %v4761_v24  ;;  %5314 = vmatmul.mubr.bf16.gmra.mrb[224].mxu1 %v4763_v61  ;;  %v4673_v32 = vmax.f32 %v6250_v42, 0.0  ;;  %v4675_v5 = vmax.f32 %v6314_v45, 0.0 }
 0x44e   : > { %v6253_v16 = vadd.f32 %v4152_v15, %v8255_v52  ;;  %v6317_v21 = vadd.f32 %v4538_v26, %v8258_v35  ;;  %v4674_v17 = vmax.f32 %v6251_v23, 0.0  ;;  %v4676_v8 = vmax.f32 %v6315_v27, 0.0 }
 0x44f   : > { %v4677_v10 = vmax.f32 %v6252_v12, 0.0  ;;  %v4679_v39 = vmax.f32 %v6316_v14, 0.0 }
 0x450   : > { %v4678_v47 = vmax.f32 %v6253_v16, 0.0  ;;  %v4680_v18 = vmax.f32 %v6317_v21, 0.0 }
 0x451   : > { %v4765_v36 = vpack.c.bf16 %v4677_v10, %v4673_v32  ;;  %v4767_v50 = vpack.c.bf16 %v4679_v39, %v4675_v5 }
 0x452   : > { %v4766_v37 = vpack.c.bf16 %v4678_v47, %v4674_v17  ;;  %v4768_v43 = vpack.c.bf16 %v4680_v18, %v4676_v8  ;;  %v4156_v60 = vpop.f32.mrb[168].mxu0  ;;  %v4542_v55 = vpop.f32.mrb[168].mxu1 }
 0x453   : > { %v6254_v0 = vadd.f32 %v4156_v60, %v8249_v44  ;;  %v6318_v13 = vadd.f32 %v4542_v55, %v8252_v6  ;;  %v4158_v51 = vpop.f32.mrb[169].mxu0  ;;  %v4544_v7 = vpop.f32.mrb[169].mxu1 }
 0x454   : > { %v6255_v48 = vadd.f32 %v4158_v51, %v8255_v52  ;;  %v6319_v31 = vadd.f32 %v4544_v7, %v8258_v35  ;;  %v4160_v59 = vpop.f32.mrb[170].mxu0  ;;  %v4546_v63 = vpop.f32.mrb[170].mxu1  ;;  %5160 = vmatprep.mubr.bf16.mxu0 %v4766_v37  ;;  %5321 = vmatprep.mubr.bf16.mxu1 %v4768_v43 }
 0x455   : > { %v6256_v38 = vadd.f32 %v4160_v59, %v8249_v44  ;;  %v6320_v33 = vadd.f32 %v4546_v63, %v8252_v6  ;;  %v4162_v29 = vpop.f32.mrb[171].mxu0  ;;  %v4548_v40 = vpop.f32.mrb[171].mxu1  ;;  %5161 = vmatmul.mubr.bf16.gmra.mrb[228].mxu0 %v4765_v36  ;;  %5322 = vmatmul.mubr.bf16.gmra.mrb[228].mxu1 %v4767_v50  ;;  %v4681_v1 = vmax.f32 %v6254_v0, 0.0  ;;  %v4683_v3 = vmax.f32 %v6318_v13, 0.0 }
 0x456   : > { %v6257_v9 = vadd.f32 %v4162_v29, %v8255_v52  ;;  %v6321_v62 = vadd.f32 %v4548_v40, %v8258_v35  ;;  %v4682_v49 = vmax.f32 %v6255_v48, 0.0  ;;  %v4684_v41 = vmax.f32 %v6319_v31, 0.0 }
 0x457   : > { %v4685_v22 = vmax.f32 %v6256_v38, 0.0  ;;  %v4687_v19 = vmax.f32 %v6320_v33, 0.0 }
 0x458   : > { %v4686_v2 = vmax.f32 %v6257_v9, 0.0  ;;  %v4688_v53 = vmax.f32 %v6321_v62, 0.0 }
 0x459   : > { %v4769_v20 = vpack.c.bf16 %v4685_v22, %v4681_v1  ;;  %v4771_v57 = vpack.c.bf16 %v4687_v19, %v4683_v3 }
 0x45a   : > { %v4770_v54 = vpack.c.bf16 %v4686_v2, %v4682_v49  ;;  %v4772_v46 = vpack.c.bf16 %v4688_v53, %v4684_v41  ;;  %v4166_v24 = vpop.f32.mrb[172].mxu0  ;;  %v4552_v61 = vpop.f32.mrb[172].mxu1 }
 0x45b   : > { %v6258_v56 = vadd.f32 %v4166_v24, %v8249_v44  ;;  %v6322_v30 = vadd.f32 %v4552_v61, %v8252_v6  ;;  %v4168_v28 = vpop.f32.mrb[173].mxu0  ;;  %v4554_v11 = vpop.f32.mrb[173].mxu1 }
 0x45c   : > { %v6259_v42 = vadd.f32 %v4168_v28, %v8255_v52  ;;  %v6323_v45 = vadd.f32 %v4554_v11, %v8258_v35  ;;  %v4170_v34 = vpop.f32.mrb[174].mxu0  ;;  %v4556_v4 = vpop.f32.mrb[174].mxu1  ;;  %5168 = vmatprep.mubr.bf16.mxu0 %v4770_v54  ;;  %5329 = vmatprep.mubr.bf16.mxu1 %v4772_v46 }
 0x45d   : > { %v6260_v23 = vadd.f32 %v4170_v34, %v8249_v44  ;;  %v6324_v27 = vadd.f32 %v4556_v4, %v8252_v6  ;;  %v4172_v25 = vpop.f32.mrb[175].mxu0  ;;  %v4558_v58 = vpop.f32.mrb[175].mxu1  ;;  %5169 = vmatmul.mubr.bf16.gmra.mrb[232].mxu0 %v4769_v20  ;;  %5330 = vmatmul.mubr.bf16.gmra.mrb[232].mxu1 %v4771_v57  ;;  %v4689_v15 = vmax.f32 %v6258_v56, 0.0  ;;  %v4691_v26 = vmax.f32 %v6322_v30, 0.0 }
 0x45e   : > { %v6261_v12 = vadd.f32 %v4172_v25, %v8255_v52  ;;  %v6325_v14 = vadd.f32 %v4558_v58, %v8258_v35  ;;  %v4690_v32 = vmax.f32 %v6259_v42, 0.0  ;;  %v4692_v5 = vmax.f32 %v6323_v45, 0.0 }
 0x45f   : > { %v4693_v16 = vmax.f32 %v6260_v23, 0.0  ;;  %v4695_v21 = vmax.f32 %v6324_v27, 0.0 }
 0x460   : > { %v4694_v10 = vmax.f32 %v6261_v12, 0.0  ;;  %v4696_v39 = vmax.f32 %v6325_v14, 0.0 }
 0x461   : > { %v4773_v17 = vpack.c.bf16 %v4693_v16, %v4689_v15  ;;  %v4775_v8 = vpack.c.bf16 %v4695_v21, %v4691_v26 }
 0x462   : > { %v4774_v47 = vpack.c.bf16 %v4694_v10, %v4690_v32  ;;  %v4776_v18 = vpack.c.bf16 %v4696_v39, %v4692_v5  ;;  %v4176_v36 = vpop.f32.mrb[176].mxu0  ;;  %v4562_v50 = vpop.f32.mrb[176].mxu1 }
 0x463   : > { %v6262_v37 = vadd.f32 %v4176_v36, %v8249_v44  ;;  %v6326_v43 = vadd.f32 %v4562_v50, %v8252_v6  ;;  %v4178_v60 = vpop.f32.mrb[177].mxu0  ;;  %v4564_v55 = vpop.f32.mrb[177].mxu1 }
 0x464   : > { %v6263_v0 = vadd.f32 %v4178_v60, %v8255_v52  ;;  %v6327_v13 = vadd.f32 %v4564_v55, %v8258_v35  ;;  %v4180_v51 = vpop.f32.mrb[178].mxu0  ;;  %v4566_v7 = vpop.f32.mrb[178].mxu1  ;;  %5176 = vmatprep.mubr.bf16.mxu0 %v4774_v47  ;;  %5337 = vmatprep.mubr.bf16.mxu1 %v4776_v18 }
 0x465   : > { %v6264_v48 = vadd.f32 %v4180_v51, %v8249_v44  ;;  %v6328_v31 = vadd.f32 %v4566_v7, %v8252_v6  ;;  %v4182_v59 = vpop.f32.mrb[179].mxu0  ;;  %v4568_v63 = vpop.f32.mrb[179].mxu1  ;;  %5177 = vmatmul.mubr.bf16.gmra.mrb[236].mxu0 %v4773_v17  ;;  %5338 = vmatmul.mubr.bf16.gmra.mrb[236].mxu1 %v4775_v8  ;;  %v4697_v29 = vmax.f32 %v6262_v37, 0.0  ;;  %v4699_v40 = vmax.f32 %v6326_v43, 0.0 }
 0x466   : > { %v6265_v38 = vadd.f32 %v4182_v59, %v8255_v52  ;;  %v6329_v33 = vadd.f32 %v4568_v63, %v8258_v35  ;;  %v4698_v1 = vmax.f32 %v6263_v0, 0.0  ;;  %v4700_v3 = vmax.f32 %v6327_v13, 0.0 }
 0x467   : > { %v4701_v9 = vmax.f32 %v6264_v48, 0.0  ;;  %v4703_v62 = vmax.f32 %v6328_v31, 0.0 }
 0x468   : > { %v4702_v22 = vmax.f32 %v6265_v38, 0.0  ;;  %v4704_v19 = vmax.f32 %v6329_v33, 0.0 }
 0x469   : > { %v4777_v49 = vpack.c.bf16 %v4701_v9, %v4697_v29  ;;  %v4779_v41 = vpack.c.bf16 %v4703_v62, %v4699_v40 }
 0x46a   : > { %v4778_v2 = vpack.c.bf16 %v4702_v22, %v4698_v1  ;;  %v4780_v53 = vpack.c.bf16 %v4704_v19, %v4700_v3  ;;  %v4186_v20 = vpop.f32.mrb[180].mxu0  ;;  %v4572_v57 = vpop.f32.mrb[180].mxu1 }
 0x46b   : > { %v6266_v54 = vadd.f32 %v4186_v20, %v8249_v44  ;;  %v6330_v46 = vadd.f32 %v4572_v57, %v8252_v6  ;;  %v4188_v24 = vpop.f32.mrb[181].mxu0  ;;  %v4574_v61 = vpop.f32.mrb[181].mxu1 }
 0x46c   : > { %v6267_v56 = vadd.f32 %v4188_v24, %v8255_v52  ;;  %v6331_v30 = vadd.f32 %v4574_v61, %v8258_v35  ;;  %v4190_v28 = vpop.f32.mrb[182].mxu0  ;;  %v4576_v11 = vpop.f32.mrb[182].mxu1  ;;  %5184 = vmatprep.mubr.bf16.mxu0 %v4778_v2  ;;  %5345 = vmatprep.mubr.bf16.mxu1 %v4780_v53 }
 0x46d   : > { %v6268_v42 = vadd.f32 %v4190_v28, %v8249_v44  ;;  %v6332_v45 = vadd.f32 %v4576_v11, %v8252_v6  ;;  %v4192_v34 = vpop.f32.mrb[183].mxu0  ;;  %v4578_v4 = vpop.f32.mrb[183].mxu1  ;;  %5185 = vmatmul.mubr.bf16.gmra.mrb[240].mxu0 %v4777_v49  ;;  %5346 = vmatmul.mubr.bf16.gmra.mrb[240].mxu1 %v4779_v41  ;;  %v4705_v25 = vmax.f32 %v6266_v54, 0.0  ;;  %v4707_v58 = vmax.f32 %v6330_v46, 0.0 }
 0x46e   : > { %v6269_v23 = vadd.f32 %v4192_v34, %v8255_v52  ;;  %v6333_v27 = vadd.f32 %v4578_v4, %v8258_v35  ;;  %v4706_v15 = vmax.f32 %v6267_v56, 0.0  ;;  %v4708_v26 = vmax.f32 %v6331_v30, 0.0 }
 0x46f   : > { %v4709_v12 = vmax.f32 %v6268_v42, 0.0  ;;  %v4711_v14 = vmax.f32 %v6332_v45, 0.0 }
 0x470   : > { %v4710_v16 = vmax.f32 %v6269_v23, 0.0  ;;  %v4712_v21 = vmax.f32 %v6333_v27, 0.0 }
 0x471   : > { %v4781_v32 = vpack.c.bf16 %v4709_v12, %v4705_v25  ;;  %v4783_v5 = vpack.c.bf16 %v4711_v14, %v4707_v58 }
 0x472   : > { %v4782_v10 = vpack.c.bf16 %v4710_v16, %v4706_v15  ;;  %v4784_v39 = vpack.c.bf16 %v4712_v21, %v4708_v26  ;;  %v4196_v17 = vpop.f32.mrb[184].mxu0  ;;  %v4582_v8 = vpop.f32.mrb[184].mxu1  ;;  %v8392_v16 = vld [vmem:[%s8522_s8] ss:$0 sm:$0xff] }
 0x473   : > { %v6270_v47 = vadd.f32 %v4196_v17, %v8249_v44  ;;  %v6334_v18 = vadd.f32 %v4582_v8, %v8252_v6  ;;  %v4198_v36 = vpop.f32.mrb[185].mxu0  ;;  %v4584_v50 = vpop.f32.mrb[185].mxu1 }
 0x474   : > { %v6271_v37 = vadd.f32 %v4198_v36, %v8255_v52  ;;  %v6335_v43 = vadd.f32 %v4584_v50, %v8258_v35  ;;  %v4200_v60 = vpop.f32.mrb[186].mxu0  ;;  %v4586_v55 = vpop.f32.mrb[186].mxu1  ;;  %5192 = vmatprep.mubr.bf16.mxu0 %v4782_v10  ;;  %5353 = vmatprep.mubr.bf16.mxu1 %v4784_v39 }
 0x475   : > { %v6272_v0 = vadd.f32 %v4200_v60, %v8249_v44  ;;  %v6336_v13 = vadd.f32 %v4586_v55, %v8252_v6  ;;  %v4202_v51 = vpop.f32.mrb[187].mxu0  ;;  %v4588_v7 = vpop.f32.mrb[187].mxu1  ;;  %5193 = vmatmul.mubr.bf16.gmra.mrb[244].mxu0 %v4781_v32  ;;  %5354 = vmatmul.mubr.bf16.gmra.mrb[244].mxu1 %v4783_v5  ;;  %v4713_v59 = vmax.f32 %v6270_v47, 0.0  ;;  %v4715_v63 = vmax.f32 %v6334_v18, 0.0 }
 0x476   : > { %v6273_v48 = vadd.f32 %v4202_v51, %v8255_v52  ;;  %v6337_v31 = vadd.f32 %v4588_v7, %v8258_v35  ;;  %v4714_v29 = vmax.f32 %v6271_v37, 0.0  ;;  %v4716_v40 = vmax.f32 %v6335_v43, 0.0 }
 0x477   : > { %v4717_v38 = vmax.f32 %v6272_v0, 0.0  ;;  %v4719_v33 = vmax.f32 %v6336_v13, 0.0 }
 0x478   : > { %v4718_v9 = vmax.f32 %v6273_v48, 0.0  ;;  %v4720_v62 = vmax.f32 %v6337_v31, 0.0 }
 0x479   : > { %v4785_v1 = vpack.c.bf16 %v4717_v38, %v4713_v59  ;;  %v4787_v3 = vpack.c.bf16 %v4719_v33, %v4715_v63 }
 0x47a   : > { %v4786_v22 = vpack.c.bf16 %v4718_v9, %v4714_v29  ;;  %v4788_v19 = vpack.c.bf16 %v4720_v62, %v4716_v40  ;;  %v4206_v49 = vpop.f32.mrb[188].mxu0  ;;  %v4592_v41 = vpop.f32.mrb[188].mxu1 }
 0x47b   : > { %v6274_v2 = vadd.f32 %v4206_v49, %v8249_v44  ;;  %v6338_v53 = vadd.f32 %v4592_v41, %v8252_v6  ;;  %v4208_v20 = vpop.f32.mrb[189].mxu0  ;;  %v4594_v57 = vpop.f32.mrb[189].mxu1 }
 0x47c   : > { %v6275_v54 = vadd.f32 %v4208_v20, %v8255_v52  ;;  %v6339_v46 = vadd.f32 %v4594_v57, %v8258_v35  ;;  %v4210_v24 = vpop.f32.mrb[190].mxu0  ;;  %v4596_v61 = vpop.f32.mrb[190].mxu1  ;;  %5200 = vmatprep.mubr.bf16.mxu0 %v4786_v22  ;;  %5361 = vmatprep.mubr.bf16.mxu1 %v4788_v19 }
 0x47d   : > { %v6276_v56 = vadd.f32 %v4210_v24, %v8249_v44  ;;  %v6340_v30 = vadd.f32 %v4596_v61, %v8252_v6  ;;  %v4212_v28 = vpop.f32.mrb[191].mxu0  ;;  %v4598_v11 = vpop.f32.mrb[191].mxu1  ;;  %5201 = vmatmul.mubr.bf16.gmra.mrb[248].mxu0 %v4785_v1  ;;  %5362 = vmatmul.mubr.bf16.gmra.mrb[248].mxu1 %v4787_v3  ;;  %v4721_v34 = vmax.f32 %v6274_v2, 0.0  ;;  %v4723_v4 = vmax.f32 %v6338_v53, 0.0 }
 0x47e   : > { %v6277_v42 = vadd.f32 %v4212_v28, %v8255_v52  ;;  %v6341_v45 = vadd.f32 %v4598_v11, %v8258_v35  ;;  %v4722_v25 = vmax.f32 %v6275_v54, 0.0  ;;  %v4724_v58 = vmax.f32 %v6339_v46, 0.0 }
 0x47f   : > { %v4725_v23 = vmax.f32 %v6276_v56, 0.0  ;;  %v4727_v27 = vmax.f32 %v6340_v30, 0.0 }
 0x480   : > { %v4726_v12 = vmax.f32 %v6277_v42, 0.0  ;;  %v4728_v14 = vmax.f32 %v6341_v45, 0.0 }
 0x481   : > { %v4789_v44 = vpack.c.bf16 %v4725_v23, %v4721_v34  ;;  %v4791_v6 = vpack.c.bf16 %v4727_v27, %v4723_v4 }
 0x482   : > { %v4790_v15 = vpack.c.bf16 %v4726_v12, %v4722_v25  ;;  %v4792_v26 = vpack.c.bf16 %v4728_v14, %v4724_v58 }
 0x484   : > { %5208 = vmatprep.mubr.bf16.mxu0 %v4790_v15  ;;  %5369 = vmatprep.mubr.bf16.mxu1 %v4792_v26 }
 0x485   : > { %5209 = vmatmul.mubr.bf16.gmra.mrb[252].mxu0 %v4789_v44  ;;  %5370 = vmatmul.mubr.bf16.gmra.mrb[252].mxu1 %v4791_v6 }
 0x4e0   : > { %v5878_v52 = vpop.f32.mrb[192].mxu0  ;;  %v5990_v35 = vpop.f32.mrb[192].mxu1 }
 0x4e1   : > { %v5879_v21 = vpop.f32.mrb[193].mxu0  ;;  %v5991_v32 = vpop.f32.mrb[193].mxu1 }
 0x4e2   : > { %v5880_v5 = vadd.f32 %v5879_v21, %v5878_v52  ;;  %v5992_v10 = vadd.f32 %v5991_v32, %v5990_v35  ;;  %v5881_v39 = vpop.f32.mrb[194].mxu0  ;;  %v5993_v17 = vpop.f32.mrb[194].mxu1 }
 0x4e3   : > { %v5882_v8 = vpop.f32.mrb[195].mxu0  ;;  %v5994_v47 = vpop.f32.mrb[195].mxu1 }
 0x4e4   : > { %v5091_v18 = vadd.f32 %v5880_v5, %v8392_v16  ;;  %v5883_v36 = vadd.f32 %v5882_v8, %v5881_v39  ;;  %v5995_v50 = vadd.f32 %v5994_v47, %v5993_v17 }
 0x4e6   : > { %v5252_v37 = vadd.f32 %v5992_v10, %v5091_v18  ;;  %v5094_v43 = vadd.f32 %v5883_v36, %v8392_v16 }
 0x4e8   : > { %5378 = vst [vmem:[%s8398_s23] sm:$0xff] %v5252_v37  ;;  %v5255_v60 = vadd.f32 %v5995_v50, %v5094_v43  ;;  %v5884_v55 = vpop.f32.mrb[196].mxu0  ;;  %v5996_v0 = vpop.f32.mrb[196].mxu1 }
 0x4e9   : > { %v5885_v13 = vpop.f32.mrb[197].mxu0  ;;  %v5997_v51 = vpop.f32.mrb[197].mxu1 }
 0x4ea   : > { %5379 = vst [vmem:[%s8398_s23 + $0x8] sm:$0xff] %v5255_v60  ;;  %v5886_v7 = vadd.f32 %v5885_v13, %v5884_v55  ;;  %v5998_v48 = vadd.f32 %v5997_v51, %v5996_v0  ;;  %v5887_v31 = vpop.f32.mrb[198].mxu0  ;;  %v5999_v59 = vpop.f32.mrb[198].mxu1 }
 0x4eb   : > { %v5888_v63 = vpop.f32.mrb[199].mxu0  ;;  %v6000_v38 = vpop.f32.mrb[199].mxu1 }
 0x4ec   : > { %v5099_v33 = vadd.f32 %v5886_v7, %v8392_v16  ;;  %v5889_v29 = vadd.f32 %v5888_v63, %v5887_v31  ;;  %v6001_v40 = vadd.f32 %v6000_v38, %v5999_v59 }
 0x4ee   : > { %v5260_v9 = vadd.f32 %v5998_v48, %v5099_v33  ;;  %v5102_v62 = vadd.f32 %v5889_v29, %v8392_v16 }
 0x4f0   : > { %5380 = vst [vmem:[%s8398_s23 + $0x10] sm:$0xff] %v5260_v9  ;;  %v5263_v1 = vadd.f32 %v6001_v40, %v5102_v62  ;;  %v5890_v3 = vpop.f32.mrb[200].mxu0  ;;  %v6002_v22 = vpop.f32.mrb[200].mxu1 }
 0x4f1   : > { %v5891_v19 = vpop.f32.mrb[201].mxu0  ;;  %v6003_v49 = vpop.f32.mrb[201].mxu1 }
 0x4f2   : > { %5381 = vst [vmem:[%s8398_s23 + $0x18] sm:$0xff] %v5263_v1  ;;  %v5892_v41 = vadd.f32 %v5891_v19, %v5890_v3  ;;  %v6004_v2 = vadd.f32 %v6003_v49, %v6002_v22  ;;  %v5893_v53 = vpop.f32.mrb[202].mxu0  ;;  %v6005_v20 = vpop.f32.mrb[202].mxu1 }
 0x4f3   : > { %v5894_v57 = vpop.f32.mrb[203].mxu0  ;;  %v6006_v54 = vpop.f32.mrb[203].mxu1 }
 0x4f4   : > { %v5107_v46 = vadd.f32 %v5892_v41, %v8392_v16  ;;  %v5895_v24 = vadd.f32 %v5894_v57, %v5893_v53  ;;  %v6007_v61 = vadd.f32 %v6006_v54, %v6005_v20 }
 0x4f6   : > { %v5268_v56 = vadd.f32 %v6004_v2, %v5107_v46  ;;  %v5110_v30 = vadd.f32 %v5895_v24, %v8392_v16 }
 0x4f8   : > { %5382 = vst [vmem:[%s8398_s23 + $0x20] sm:$0xff] %v5268_v56  ;;  %v5271_v28 = vadd.f32 %v6007_v61, %v5110_v30  ;;  %v5896_v11 = vpop.f32.mrb[204].mxu0  ;;  %v6008_v42 = vpop.f32.mrb[204].mxu1 }
 0x4f9   : > { %v5897_v45 = vpop.f32.mrb[205].mxu0  ;;  %v6009_v34 = vpop.f32.mrb[205].mxu1 }
 0x4fa   : > { %5383 = vst [vmem:[%s8398_s23 + $0x28] sm:$0xff] %v5271_v28  ;;  %v5898_v4 = vadd.f32 %v5897_v45, %v5896_v11  ;;  %v6010_v23 = vadd.f32 %v6009_v34, %v6008_v42  ;;  %v5899_v27 = vpop.f32.mrb[206].mxu0  ;;  %v6011_v25 = vpop.f32.mrb[206].mxu1 }
 0x4fb   : > { %v5900_v58 = vpop.f32.mrb[207].mxu0  ;;  %v6012_v12 = vpop.f32.mrb[207].mxu1 }
 0x4fc   : > { %v5115_v14 = vadd.f32 %v5898_v4, %v8392_v16  ;;  %v5901_v44 = vadd.f32 %v5900_v58, %v5899_v27  ;;  %v6013_v6 = vadd.f32 %v6012_v12, %v6011_v25 }
 0x4fe   : > { %v5276_v15 = vadd.f32 %v6010_v23, %v5115_v14  ;;  %v5118_v26 = vadd.f32 %v5901_v44, %v8392_v16 }
 0x500   : > { %5384 = vst [vmem:[%s8398_s23 + $0x30] sm:$0xff] %v5276_v15  ;;  %v5279_v52 = vadd.f32 %v6013_v6, %v5118_v26  ;;  %v5902_v35 = vpop.f32.mrb[208].mxu0  ;;  %v6014_v21 = vpop.f32.mrb[208].mxu1 }
 0x501   : > { %v5903_v32 = vpop.f32.mrb[209].mxu0  ;;  %v6015_v5 = vpop.f32.mrb[209].mxu1 }
 0x502   : > { %5385 = vst [vmem:[%s8398_s23 + $0x38] sm:$0xff] %v5279_v52  ;;  %v5904_v10 = vadd.f32 %v5903_v32, %v5902_v35  ;;  %v6016_v39 = vadd.f32 %v6015_v5, %v6014_v21  ;;  %v5905_v17 = vpop.f32.mrb[210].mxu0  ;;  %v6017_v8 = vpop.f32.mrb[210].mxu1 }
 0x503   : > { %v5906_v47 = vpop.f32.mrb[211].mxu0  ;;  %v6018_v18 = vpop.f32.mrb[211].mxu1 }
 0x504   : > { %v5123_v36 = vadd.f32 %v5904_v10, %v8392_v16  ;;  %v5907_v50 = vadd.f32 %v5906_v47, %v5905_v17  ;;  %v6019_v37 = vadd.f32 %v6018_v18, %v6017_v8 }
 0x506   : > { %v5284_v43 = vadd.f32 %v6016_v39, %v5123_v36  ;;  %v5126_v60 = vadd.f32 %v5907_v50, %v8392_v16 }
 0x508   : > { %5386 = vst [vmem:[%s8398_s23 + $0x40] sm:$0xff] %v5284_v43  ;;  %v5287_v55 = vadd.f32 %v6019_v37, %v5126_v60  ;;  %v5908_v0 = vpop.f32.mrb[212].mxu0  ;;  %v6020_v13 = vpop.f32.mrb[212].mxu1 }
 0x509   : > { %v5909_v51 = vpop.f32.mrb[213].mxu0  ;;  %v6021_v7 = vpop.f32.mrb[213].mxu1 }
 0x50a   : > { %5387 = vst [vmem:[%s8398_s23 + $0x48] sm:$0xff] %v5287_v55  ;;  %v5910_v48 = vadd.f32 %v5909_v51, %v5908_v0  ;;  %v6022_v31 = vadd.f32 %v6021_v7, %v6020_v13  ;;  %v5911_v59 = vpop.f32.mrb[214].mxu0  ;;  %v6023_v63 = vpop.f32.mrb[214].mxu1 }
 0x50b   : > { %v5912_v38 = vpop.f32.mrb[215].mxu0  ;;  %v6024_v33 = vpop.f32.mrb[215].mxu1 }
 0x50c   : > { %v5131_v29 = vadd.f32 %v5910_v48, %v8392_v16  ;;  %v5913_v40 = vadd.f32 %v5912_v38, %v5911_v59  ;;  %v6025_v9 = vadd.f32 %v6024_v33, %v6023_v63 }
 0x50e   : > { %v5292_v62 = vadd.f32 %v6022_v31, %v5131_v29  ;;  %v5134_v1 = vadd.f32 %v5913_v40, %v8392_v16 }
 0x510   : > { %5388 = vst [vmem:[%s8398_s23 + $0x50] sm:$0xff] %v5292_v62  ;;  %v5295_v3 = vadd.f32 %v6025_v9, %v5134_v1  ;;  %v5914_v22 = vpop.f32.mrb[216].mxu0  ;;  %v6026_v19 = vpop.f32.mrb[216].mxu1 }
 0x511   : > { %v5915_v49 = vpop.f32.mrb[217].mxu0  ;;  %v6027_v41 = vpop.f32.mrb[217].mxu1 }
 0x512   : > { %5389 = vst [vmem:[%s8398_s23 + $0x58] sm:$0xff] %v5295_v3  ;;  %v5916_v2 = vadd.f32 %v5915_v49, %v5914_v22  ;;  %v6028_v53 = vadd.f32 %v6027_v41, %v6026_v19  ;;  %v5917_v20 = vpop.f32.mrb[218].mxu0  ;;  %v6029_v57 = vpop.f32.mrb[218].mxu1 }
 0x513   : > { %v5918_v54 = vpop.f32.mrb[219].mxu0  ;;  %v6030_v46 = vpop.f32.mrb[219].mxu1 }
 0x514   : > { %v5139_v24 = vadd.f32 %v5916_v2, %v8392_v16  ;;  %v5919_v61 = vadd.f32 %v5918_v54, %v5917_v20  ;;  %v6031_v56 = vadd.f32 %v6030_v46, %v6029_v57 }
 0x516   : > { %v5300_v30 = vadd.f32 %v6028_v53, %v5139_v24  ;;  %v5142_v28 = vadd.f32 %v5919_v61, %v8392_v16 }
 0x518   : > { %5390 = vst [vmem:[%s8398_s23 + $0x60] sm:$0xff] %v5300_v30  ;;  %v5303_v11 = vadd.f32 %v6031_v56, %v5142_v28  ;;  %v5920_v42 = vpop.f32.mrb[220].mxu0  ;;  %v6032_v45 = vpop.f32.mrb[220].mxu1 }
 0x519   : > { %v5921_v34 = vpop.f32.mrb[221].mxu0  ;;  %v6033_v4 = vpop.f32.mrb[221].mxu1 }
 0x51a   : > { %5391 = vst [vmem:[%s8398_s23 + $0x68] sm:$0xff] %v5303_v11  ;;  %v5922_v23 = vadd.f32 %v5921_v34, %v5920_v42  ;;  %v6034_v27 = vadd.f32 %v6033_v4, %v6032_v45  ;;  %v5923_v25 = vpop.f32.mrb[222].mxu0  ;;  %v6035_v58 = vpop.f32.mrb[222].mxu1 }
 0x51b   : > { %v5924_v12 = vpop.f32.mrb[223].mxu0  ;;  %v6036_v14 = vpop.f32.mrb[223].mxu1 }
 0x51c   : > { %v5147_v44 = vadd.f32 %v5922_v23, %v8392_v16  ;;  %v5925_v6 = vadd.f32 %v5924_v12, %v5923_v25  ;;  %v6037_v15 = vadd.f32 %v6036_v14, %v6035_v58 }
 0x51e   : > { %v5308_v26 = vadd.f32 %v6034_v27, %v5147_v44  ;;  %v5150_v52 = vadd.f32 %v5925_v6, %v8392_v16 }
 0x520   : > { %5392 = vst [vmem:[%s8398_s23 + $0x70] sm:$0xff] %v5308_v26  ;;  %v5311_v35 = vadd.f32 %v6037_v15, %v5150_v52  ;;  %v5926_v21 = vpop.f32.mrb[224].mxu0  ;;  %v6038_v32 = vpop.f32.mrb[224].mxu1 }
 0x521   : > { %v5927_v5 = vpop.f32.mrb[225].mxu0  ;;  %v6039_v10 = vpop.f32.mrb[225].mxu1 }
 0x522   : > { %5393 = vst [vmem:[%s8398_s23 + $0x78] sm:$0xff] %v5311_v35  ;;  %v5928_v39 = vadd.f32 %v5927_v5, %v5926_v21  ;;  %v6040_v17 = vadd.f32 %v6039_v10, %v6038_v32  ;;  %v5929_v8 = vpop.f32.mrb[226].mxu0  ;;  %v6041_v47 = vpop.f32.mrb[226].mxu1 }
 0x523   : > { %v5930_v18 = vpop.f32.mrb[227].mxu0  ;;  %v6042_v36 = vpop.f32.mrb[227].mxu1 }
 0x524   : > { %v5155_v50 = vadd.f32 %v5928_v39, %v8392_v16  ;;  %v5931_v37 = vadd.f32 %v5930_v18, %v5929_v8  ;;  %v6043_v43 = vadd.f32 %v6042_v36, %v6041_v47 }
 0x526   : > { %v5316_v60 = vadd.f32 %v6040_v17, %v5155_v50  ;;  %v5158_v55 = vadd.f32 %v5931_v37, %v8392_v16 }
 0x528   : > { %5394 = vst [vmem:[%s8398_s23 + $0x80] sm:$0xff] %v5316_v60  ;;  %v5319_v0 = vadd.f32 %v6043_v43, %v5158_v55  ;;  %v5932_v13 = vpop.f32.mrb[228].mxu0  ;;  %v6044_v51 = vpop.f32.mrb[228].mxu1 }
 0x529   : > { %v5933_v7 = vpop.f32.mrb[229].mxu0  ;;  %v6045_v48 = vpop.f32.mrb[229].mxu1 }
 0x52a   : > { %5395 = vst [vmem:[%s8398_s23 + $0x88] sm:$0xff] %v5319_v0  ;;  %v5934_v31 = vadd.f32 %v5933_v7, %v5932_v13  ;;  %v6046_v59 = vadd.f32 %v6045_v48, %v6044_v51  ;;  %v5935_v63 = vpop.f32.mrb[230].mxu0  ;;  %v6047_v38 = vpop.f32.mrb[230].mxu1 }
 0x52b   : > { %v5936_v33 = vpop.f32.mrb[231].mxu0  ;;  %v6048_v29 = vpop.f32.mrb[231].mxu1 }
 0x52c   : > { %v5163_v40 = vadd.f32 %v5934_v31, %v8392_v16  ;;  %v5937_v9 = vadd.f32 %v5936_v33, %v5935_v63  ;;  %v6049_v62 = vadd.f32 %v6048_v29, %v6047_v38 }
 0x52e   : > { %v5324_v1 = vadd.f32 %v6046_v59, %v5163_v40  ;;  %v5166_v3 = vadd.f32 %v5937_v9, %v8392_v16 }
 0x530   : > { %5396 = vst [vmem:[%s8398_s23 + $0x90] sm:$0xff] %v5324_v1  ;;  %v5327_v22 = vadd.f32 %v6049_v62, %v5166_v3  ;;  %v5938_v19 = vpop.f32.mrb[232].mxu0  ;;  %v6050_v49 = vpop.f32.mrb[232].mxu1 }
 0x531   : > { %v5939_v41 = vpop.f32.mrb[233].mxu0  ;;  %v6051_v2 = vpop.f32.mrb[233].mxu1 }
 0x532   : > { %5397 = vst [vmem:[%s8398_s23 + $0x98] sm:$0xff] %v5327_v22  ;;  %v5940_v53 = vadd.f32 %v5939_v41, %v5938_v19  ;;  %v6052_v20 = vadd.f32 %v6051_v2, %v6050_v49  ;;  %v5941_v57 = vpop.f32.mrb[234].mxu0  ;;  %v6053_v54 = vpop.f32.mrb[234].mxu1 }
 0x533   : > { %v5942_v46 = vpop.f32.mrb[235].mxu0  ;;  %v6054_v24 = vpop.f32.mrb[235].mxu1 }
 0x534   : > { %v5171_v61 = vadd.f32 %v5940_v53, %v8392_v16  ;;  %v5943_v56 = vadd.f32 %v5942_v46, %v5941_v57  ;;  %v6055_v30 = vadd.f32 %v6054_v24, %v6053_v54 }
 0x536   : > { %v5332_v28 = vadd.f32 %v6052_v20, %v5171_v61  ;;  %v5174_v11 = vadd.f32 %v5943_v56, %v8392_v16 }
 0x538   : > { %5398 = vst [vmem:[%s8398_s23 + $0xa0] sm:$0xff] %v5332_v28  ;;  %v5335_v42 = vadd.f32 %v6055_v30, %v5174_v11  ;;  %v5944_v45 = vpop.f32.mrb[236].mxu0  ;;  %v6056_v34 = vpop.f32.mrb[236].mxu1 }
 0x539   : > { %v5945_v4 = vpop.f32.mrb[237].mxu0  ;;  %v6057_v23 = vpop.f32.mrb[237].mxu1 }
 0x53a   : > { %5399 = vst [vmem:[%s8398_s23 + $0xa8] sm:$0xff] %v5335_v42  ;;  %v5946_v27 = vadd.f32 %v5945_v4, %v5944_v45  ;;  %v6058_v25 = vadd.f32 %v6057_v23, %v6056_v34  ;;  %v5947_v58 = vpop.f32.mrb[238].mxu0  ;;  %v6059_v12 = vpop.f32.mrb[238].mxu1 }
 0x53b   : > { %v5948_v14 = vpop.f32.mrb[239].mxu0  ;;  %v6060_v44 = vpop.f32.mrb[239].mxu1 }
 0x53c   : > { %v5179_v6 = vadd.f32 %v5946_v27, %v8392_v16  ;;  %v5949_v15 = vadd.f32 %v5948_v14, %v5947_v58  ;;  %v6061_v26 = vadd.f32 %v6060_v44, %v6059_v12 }
 0x53e   : > { %v5340_v52 = vadd.f32 %v6058_v25, %v5179_v6  ;;  %v5182_v35 = vadd.f32 %v5949_v15, %v8392_v16 }
 0x540   : > { %5400 = vst [vmem:[%s8398_s23 + $0xb0] sm:$0xff] %v5340_v52  ;;  %v5343_v21 = vadd.f32 %v6061_v26, %v5182_v35  ;;  %v5950_v32 = vpop.f32.mrb[240].mxu0  ;;  %v6062_v5 = vpop.f32.mrb[240].mxu1 }
 0x541   : > { %v5951_v10 = vpop.f32.mrb[241].mxu0  ;;  %v6063_v39 = vpop.f32.mrb[241].mxu1 }
 0x542   : > { %5401 = vst [vmem:[%s8398_s23 + $0xb8] sm:$0xff] %v5343_v21  ;;  %v5952_v17 = vadd.f32 %v5951_v10, %v5950_v32  ;;  %v6064_v8 = vadd.f32 %v6063_v39, %v6062_v5  ;;  %v5953_v47 = vpop.f32.mrb[242].mxu0  ;;  %v6065_v18 = vpop.f32.mrb[242].mxu1 }
 0x543   : > { %v5954_v36 = vpop.f32.mrb[243].mxu0  ;;  %v6066_v50 = vpop.f32.mrb[243].mxu1 }
 0x544   : > { %v5187_v37 = vadd.f32 %v5952_v17, %v8392_v16  ;;  %v5955_v43 = vadd.f32 %v5954_v36, %v5953_v47  ;;  %v6067_v60 = vadd.f32 %v6066_v50, %v6065_v18 }
 0x546   : > { %v5348_v55 = vadd.f32 %v6064_v8, %v5187_v37  ;;  %v5190_v0 = vadd.f32 %v5955_v43, %v8392_v16 }
 0x548   : > { %5402 = vst [vmem:[%s8398_s23 + $0xc0] sm:$0xff] %v5348_v55  ;;  %v5351_v13 = vadd.f32 %v6067_v60, %v5190_v0  ;;  %v5956_v51 = vpop.f32.mrb[244].mxu0  ;;  %v6068_v7 = vpop.f32.mrb[244].mxu1 }
 0x549   : > { %v5957_v48 = vpop.f32.mrb[245].mxu0  ;;  %v6069_v31 = vpop.f32.mrb[245].mxu1 }
 0x54a   : > { %5403 = vst [vmem:[%s8398_s23 + $0xc8] sm:$0xff] %v5351_v13  ;;  %v5958_v59 = vadd.f32 %v5957_v48, %v5956_v51  ;;  %v6070_v63 = vadd.f32 %v6069_v31, %v6068_v7  ;;  %v5959_v38 = vpop.f32.mrb[246].mxu0  ;;  %v6071_v33 = vpop.f32.mrb[246].mxu1 }
 0x54b   : > { %v5960_v29 = vpop.f32.mrb[247].mxu0  ;;  %v6072_v40 = vpop.f32.mrb[247].mxu1 }
 0x54c   : > { %v5195_v9 = vadd.f32 %v5958_v59, %v8392_v16  ;;  %v5961_v62 = vadd.f32 %v5960_v29, %v5959_v38  ;;  %v6073_v1 = vadd.f32 %v6072_v40, %v6071_v33 }
 0x54e   : > { %v5356_v3 = vadd.f32 %v6070_v63, %v5195_v9  ;;  %v5198_v22 = vadd.f32 %v5961_v62, %v8392_v16 }
 0x550   : > { %5404 = vst [vmem:[%s8398_s23 + $0xd0] sm:$0xff] %v5356_v3  ;;  %v5359_v19 = vadd.f32 %v6073_v1, %v5198_v22  ;;  %v5962_v49 = vpop.f32.mrb[248].mxu0  ;;  %v6074_v41 = vpop.f32.mrb[248].mxu1 }
 0x551   : > { %v5963_v2 = vpop.f32.mrb[249].mxu0  ;;  %v6075_v53 = vpop.f32.mrb[249].mxu1 }
 0x552   : > { %5405 = vst [vmem:[%s8398_s23 + $0xd8] sm:$0xff] %v5359_v19  ;;  %v5964_v20 = vadd.f32 %v5963_v2, %v5962_v49  ;;  %v6076_v57 = vadd.f32 %v6075_v53, %v6074_v41  ;;  %v5965_v54 = vpop.f32.mrb[250].mxu0  ;;  %v6077_v46 = vpop.f32.mrb[250].mxu1 }
 0x553   : > { %v5966_v24 = vpop.f32.mrb[251].mxu0  ;;  %v6078_v61 = vpop.f32.mrb[251].mxu1 }
 0x554   : > { %v5203_v56 = vadd.f32 %v5964_v20, %v8392_v16  ;;  %v5967_v30 = vadd.f32 %v5966_v24, %v5965_v54  ;;  %v6079_v28 = vadd.f32 %v6078_v61, %v6077_v46 }
 0x556   : > { %v5364_v11 = vadd.f32 %v6076_v57, %v5203_v56  ;;  %v5206_v42 = vadd.f32 %v5967_v30, %v8392_v16 }
 0x558   : > { %5406 = vst [vmem:[%s8398_s23 + $0xe0] sm:$0xff] %v5364_v11  ;;  %v5367_v45 = vadd.f32 %v6079_v28, %v5206_v42  ;;  %v5968_v34 = vpop.f32.mrb[252].mxu0  ;;  %v6080_v4 = vpop.f32.mrb[252].mxu1 }
 0x559   : > { %v5969_v23 = vpop.f32.mrb[253].mxu0  ;;  %v6081_v27 = vpop.f32.mrb[253].mxu1 }
 0x55a   : > { %5407 = vst [vmem:[%s8398_s23 + $0xe8] sm:$0xff] %v5367_v45  ;;  %v5970_v25 = vadd.f32 %v5969_v23, %v5968_v34  ;;  %v6082_v58 = vadd.f32 %v6081_v27, %v6080_v4  ;;  %v5971_v12 = vpop.f32.mrb[254].mxu0  ;;  %v6083_v14 = vpop.f32.mrb[254].mxu1 }
 0x55b   : > { %v5972_v44 = vpop.f32.mrb[255].mxu0  ;;  %v6084_v6 = vpop.f32.mrb[255].mxu1 }
 0x55c   : > { %v5211_v15 = vadd.f32 %v5970_v25, %v8392_v16  ;;  %v5973_v26 = vadd.f32 %v5972_v44, %v5971_v12  ;;  %v6085_v52 = vadd.f32 %v6084_v6, %v6083_v14 }
 0x55e   : > { %v5372_v35 = vadd.f32 %v6082_v58, %v5211_v15  ;;  %v5214_v21 = vadd.f32 %v5973_v26, %v8392_v16 }
 0x560   : > { %5408 = vst [vmem:[%s8398_s23 + $0xf0] sm:$0xff] %v5372_v35  ;;  %v5375_v32 = vadd.f32 %v6085_v52, %v5214_v21 }
 0x562   : > { %5409 = vst [vmem:[%s8398_s23 + $0xf8] sm:$0xff] %v5375_v32 }
 0x563   : > { %7212 = shalt.err (!%p7209_p11)
}
 0x564   : > { %s7213_s18 = scalar_lea.hbm %s8465_s21, 4096  ;;  %s7217_s17 = scalar_lea.hbm %s8523_s9, 8192 }
 0x565   : > { %p7214_p13 = scmp.ne.s32.totalorder %s8465_s21, %s7213_s18  ;;  %p7218_p6 = scmp.lt.u32.totalorder %s8465_s21, %s8523_s9 }
 0x566   : > { %p7219_p9 = scmp.lt.u32.totalorder %s7217_s17, %s7213_s18  ;;  %p7221_p10 = scmp.lt.u32.totalorder %s7213_s18, %s8465_s21 }
 0x567   : > { %p7215_p5 = pnand %p7214_p13, %p8542_p1 }
 0x568   : > { %p7220_p12 = por %p7219_p9, %p7218_p6 }
 0x569   : > { %p7216_p0 = pneg %p7215_p5 }
 0x56a   : > { %p7222_p2 = por %p7221_p10, %p7220_p12 }
 0x56c   : > { %p7223_p3 = pnand %p7222_p2, %p7216_p0 }
 0x56e   : > { %7226 = shalt.err (!%p7223_p3)
}
 0x56f   : > { %s7277_s25 = smov 128   ;;  %s7278_s27 = smov 8  }
 0x570   : > { %6606 = dma.vmem_to_hbm [thread:$0]  (%p8542_p1), %s8467_s11, 4096, %s8465_s21, %s8473_s24, %s7277_s25, %s7277_s25, %s7278_s27  }
 0x571 PF: > { %p6623_p4 = scmp.ge.s32.totalorder %s7269_s12, 2  ;;  %s5439_s15 = sand.u32 1, %s7257_s30  }
 0x572   : > { %p8543_p7 = scmp.ne.s32.totalorder %s8534_s20, 0  ;;  %s5440_s13 = scalar_lea.sflag [#allocation4], %s5439_s15 }
 0x574   : > { %p6616_p8 = pnand %p6623_p4, %p8543_p7 }
 0x576   : > { %7252 = dma.done.wait (!%p6616_p8), %s5440_s13, 4096  }
 0x577   : > { %7254 = vsyncadd (!%p6616_p8), %s5440_s13, 4294963200  ;;  %s8544_s12 = sld [smem:[#allocation12_spill]]  ;;  %s8545_s26 = sld [smem:[#allocation11_spill]] }
 0x578   : > { %s8546_s11 = sld [smem:[#allocation13_spill]]  ;;  %s8547_s30 = smov %s7261_s10 }
 0x57d   : > { %p21_p11 = scmp.ge.s32.totalorder %s8544_s12, 4   ;;  %s8548_s10 = smov %s8545_s26 }
 0x57f   :  { %23 = sbr.rel (!%p21_p11) target bundleno = 5 (0x5), region = 100 }
 0x586   :  { %5445 = vsyncpa [#allocation3], 1 }
 0x587   :  { %5447 = vsyncpa [#allocation3 + $0x1], 1 }
 0x588   :  { %5448 = vsyncpa [#allocation6], 1 }
 0x589   :  { %5449 = vsyncpa [#allocation4], 1 }
 0x58a   :  { %5451 = vsyncpa [#allocation4 + $0x1], 1 }

// kernel: mlp_time_pallas_padded.1
= control target key start
LH: loop header
LB: loop body
LE: loop exit
PB: predicated region body
PF: predicated region fallthrough
CT: control target
= control target key end

     0   :  { %14 = vsyncpa [#allocation3], 0  ;;  %s8514_s0 = inlined_call_operand.vmem [shape: bf16[512,128], index: 0, kind: input, shape index: {}]   ;;  %s8515_s1 = inlined_call_operand.vmem [shape: bf16[128,512], index: 1, kind: input, shape index: {}]   ;;  %s8516_s2 = inlined_call_operand.vmem [shape: f32[1,512], index: 2, kind: input, shape index: {}]   ;;  %s8517_s3 = inlined_call_operand.hbm [shape: bf16[512,512], index: 3, kind: input, shape index: {}]   ;;  %s8518_s4 = inlined_call_operand.vmem [shape: f32[1,512], index: 4, kind: input, shape index: {}]   ;;  %s8519_s5 = inlined_call_operand.hbm [shape: bf16[512,512], index: 5, kind: input, shape index: {}]   ;;  %s8520_s6 = inlined_call_operand.vmem [shape: f32[1,512], index: 6, kind: input, shape index: {}]   ;;  %s8521_s7 = inlined_call_operand.vmem [shape: bf16[512,128], index: 7, kind: input, shape index: {}]   ;;  %s8522_s8 = inlined_call_operand.vmem [shape: f32[1,128], index: 8, kind: input, shape index: {}]   ;;  %s8523_s9 = inlined_call_operand.hbm [shape: f32[512,128], index: 9, kind: output, shape index: {}]  }
   0x1   :  { %15 = vsyncpa [#allocation6], 0 }
   0x2   :  { %16 = vsyncpa [#allocation4], 0 }
   0x3   :  { %18 = vsyncpa [#allocation4 + $0x1], 0  ;;  %s7329_s30 = smov 0   ;;  %s7331_s10 = smov 0  }
   0x4   :  { %s7333_s11 = smov 0   ;;  %s7335_s12 = smov 0  }
   0x5 LB: > { %8530 = sst [smem:[#allocation11_spill]] %s7265_s11  ;;  %s7350_s13 = sadd.s32 4294967295, %s7269_s12   ;;  %s7269_s12 = sphi %s7335_s12, %s8544_s12   ;;  %s7265_s11 = sphi %s7333_s11, %s8546_s11   ;;  %s7261_s10 = sphi %s7331_s10, %s8548_s10   ;;  %s7257_s30 = sphi %s7329_s30, %s8547_s30  }
   0x6   : > { %s5508_s14 = sadd.s32 4294967294, %s7269_s12   ;;  %s7354_s15 = sadd.s32 1, %s7269_s12  }
   0x7   : > { %8531 = sst [smem:[#allocation12_spill]] %s7354_s15  ;;  %s225_s16 = sadd.s32 1, %s7265_s11 }
   0x8   : > { %s222_s17 = ssub.s32 %s7269_s12, %s7354_s15  ;;  %p235_p0 = scmp.ne.s32.totalorder %s7265_s11, %s7261_s10 }
   0x9   : > { %p223_p1 = scmp.eq.s32.totalorder %s222_s17, 0  ;;  %p236_p2 = scmp.eq.s32.totalorder %s7350_s13, 1 }
   0xa   : > { %p241_p3 = scmp.ne.s32.totalorder %s7261_s10, %s7257_s30  ;;  %p242_p4 = scmp.eq.s32.totalorder %s5508_s14, 1 }
   0xb   : > { %s7365_s18 = scalar_select %p223_p1, %s7265_s11, %s225_s16  }
   0xc   : > { %p7367_p5 = por %p236_p2, %p235_p0  ;;  %p7371_p6 = por %p242_p4, %p241_p3 }
   0xd   : > { %8532 = sst [smem:[#allocation13_spill]] %s7365_s18  ;;  %p5509_p7 = scmp.ge.s32.totalorder %s7269_s12, 1 }
   0xe   : > { %s8533_s19 = scalar_select %p7367_p5, 1, 0 }
   0xf   : > { %s8534_s20 = scalar_select %p7371_p6, 1, 0 }
  0x10   : > { %p249_p8 = scmp.lt.s32.totalorder %s7269_s12, 3  ;;  %p8524_p9 = scmp.eq.s32.totalorder %s7350_s13, 0 }
  0x11   : > { %s7271_s22 = smov [#allocation2]   ;;  %s7272_s25 = smov [#allocation5]  }
  0x12   : > { %p7378_p10 = pnand %p5509_p7, %p249_p8  ;;  %s267_s23 = sshll.u32 %s7271_s22, 4  ;;  %s268_s23 = int_to_ptr.vmem [resolvable:$true] %s267_s23 }
  0x13   : > { %s283_s26 = sshll.u32 %s7272_s25, 4  ;;  %s7143_s29 = scalar_lea.hbm %s8517_s3, 16384  ;;  %s7390_s26 = int_to_ptr.vmem [resolvable:$true] %s283_s26 }
  0x14   : > { %s8535_s21 = scalar_select %p7378_p10, 1, 0 }
  0x15   : > { %p6608_p11 = pneg %p7378_p10  ;;  %p7144_p13 = scmp.ne.s32.totalorder %s8517_s3, %s7143_s29 }
  0x16   : > { %p7150_p3 = scmp.lt.u32.totalorder %s7143_s29, %s8517_s3 }
  0x17   : > { %p7386_p12 = pnand %p8524_p9, %p6608_p11 }
  0x19   : > { %p7145_p0 = pneg %p7386_p12 }
  0x1b   : > { %p7146_p1 = pnand %p7145_p0, %p7144_p13 }
  0x1d   : > { %p7147_p2 = pneg %p7146_p1 }
  0x1f   : > { %p7152_p4 = pnand %p7150_p3, %p7147_p2 }
  0x21   : > { %7155 = shalt.err (!%p7152_p4)
}
  0x22   : > { %s7156_s25 = scalar_lea.vmem %s268_s23, 16384  ;;  %p7164_p9 = scmp.lt.s32.totalorder %s268_s23, %s268_s23 }
  0x23   : > { %p7157_p7 = scmp.ne.s32.totalorder %s268_s23, %s7156_s25  ;;  %p7165_p6 = scmp.lt.s32.totalorder %s7156_s25, %s7156_s25 }
  0x25   : > { %p7159_p8 = pnand %p7157_p7, %p7145_p0  ;;  %p7166_p5 = por %p7165_p6, %p7164_p9 }
  0x27   : > { %p7160_p11 = pneg %p7159_p8 }
  0x29   : > { %p7167_p10 = pnand %p7166_p5, %p7160_p11 }
  0x2b   : > { %7170 = shalt.err (!%p7167_p10)
}
  0x2c   : > { %s7273_s27 = smov 256   ;;  %s7274_s28 = smov 16  }
  0x2d   : > { %6611 = dma.hbm_to_vmem [thread:$0]  (!%p7386_p12), %s8517_s3, 16384, %s268_s23, [#allocation3], %s7273_s27, %s7273_s27, %s7274_s28  }
  0x2e   : > { %s7171_s22 = scalar_lea.hbm %s8519_s5, 16384 }
  0x2f   : > { %p7172_p13 = scmp.ne.s32.totalorder %s8519_s5, %s7171_s22  ;;  %p7178_p9 = scmp.lt.u32.totalorder %s7171_s22, %s8519_s5 }
  0x31   : > { %p7174_p5 = pnand %p7172_p13, %p7145_p0 }
  0x33   : > { %p7175_p6 = pneg %p7174_p5 }
  0x35   : > { %p7180_p10 = pnand %p7178_p9, %p7175_p6 }
  0x37   : > { %7183 = shalt.err (!%p7180_p10)
}
  0x38   : > { %s7184_s23 = scalar_lea.vmem %s7390_s26, 16384  ;;  %p7192_p4 = scmp.lt.s32.totalorder %s7390_s26, %s7390_s26 }
  0x39   : > { %p7185_p1 = scmp.ne.s32.totalorder %s7390_s26, %s7184_s23  ;;  %p7193_p7 = scmp.lt.s32.totalorder %s7184_s23, %s7184_s23 }
  0x3b   : > { %p7187_p2 = pnand %p7185_p1, %p7145_p0  ;;  %p7194_p8 = por %p7193_p7, %p7192_p4 }
  0x3d   : > { %p7188_p3 = pneg %p7187_p2 }
  0x3f   : > { %p7195_p11 = pnand %p7194_p8, %p7188_p3 }
  0x41   : > { %7198 = shalt.err (!%p7195_p11)
}
  0x42   : > { %6614 = dma.hbm_to_vmem [thread:$0]  (!%p7386_p12), %s8519_s5, 16384, %s7390_s26, [#allocation6], %s7273_s27, %s7273_s27, %s7274_s28  }
  0x43   : > { %p8537_p13 = scmp.ne.s32.totalorder %s8535_s21, 0 }
  0x44   : > { %p8538_p5 = scmp.eq.s32.totalorder (!%p8537_p13), %s7350_s13, 0 }
  0x45   : > { %317 = sbr.rel (%p8537_p13) target bundleno = 1393 (0x571), region = 56 }
  0x4c   : > { %7244 = dma.done.wait (%p8538_p5), [#allocation3], 16384   ;;  %p8539_p0 = pmov %p8538_p5 }
  0x4e   : > { %7246 = vsyncadd (%p8539_p0), [#allocation3], 4294950912  ;;  %p8540_p6 = pmov %p8539_p0 }
  0x4f   : > { %p8541_p9 = pmov %p8539_p0 }
  0x50   : > { %7248 = dma.done.wait (%p8540_p6), [#allocation6], 16384  }
  0x51   : > { %7250 = vsyncadd (%p8541_p9), [#allocation6], 4294950912  ;;  %v7275_v0 = vmov 0   ;;  %s5517_s18 = sshll.u32 %s7350_s13, 5  ;;  %v6663_v1 = vld [vmem:[%s8515_s1 + $0x4] ss:$16 sps:$4 sm:$0xff]  }
  0x52   : > { %739 = vmatprep.mubr.bf16.mxu0 %v7275_v0  ;;  %932 = vmatprep.mubr.bf16.mxu1 %v7275_v0  ;;  %p358_p12 = scmp.lt.s32.totalorder %s5517_s18, 63  ;;  %v6665_v2 = vld [vmem:[%s8515_s1] ss:$16 sps:$4 sm:$0xff]   ;;  %v6666_v3 = vld [vmem:[%s8515_s1 + $0x24] ss:$16 sps:$4 sm:$0xff]   ;;  %s354_s14 = sand.u32 1, %s7261_s10  }
  0x53   : > { %707 = vmatprep.subr.bf16.mxu0 %v6663_v1  ;;  %v6668_v4 = vld [vmem:[%s8515_s1 + $0x20] ss:$16 sps:$4 sm:$0xff]   ;;  %v6669_v5 = vld [vmem:[%s8515_s1 + $0x44] ss:$16 sps:$4 sm:$0xff]   ;;  %v6695_v13 = vld [vmem:[%s8515_s1 + $0xc] ss:$16 sps:$4 sm:$0xff]  }
  0x54   : > { %s8550_s18 = smov (!%p358_p12, %s5517_s18), 63  ;;  %708 = vmatpush1.bf16.msra.mxu0 %v6665_v2  ;;  %v6671_v6 = vld [vmem:[%s8515_s1 + $0x40] ss:$16 sps:$4 sm:$0xff]   ;;  %v6672_v7 = vld [vmem:[%s8515_s1 + $0x64] ss:$16 sps:$4 sm:$0xff]   ;;  %900 = vmatprep.subr.bf16.mxu1 %v6695_v13  ;;  %s5516_s22 = sshll.u32 %s354_s14, 8 }
  0x55   : > { %709 = vmatprep.subr.bf16.mxu0 %v6666_v3  ;;  %s5518_s25 = sshll.u32 %s8550_s18, 2  ;;  %v6674_v8 = vld [vmem:[%s8515_s1 + $0x60] ss:$16 sps:$4 sm:$0xff]   ;;  %v6675_v9 = vld [vmem:[%s8515_s1 + $0x84] ss:$16 sps:$4 sm:$0xff]   ;;  %s8398_s23 = scalar_lea.vmem [#allocation7], %s5516_s22 }
  0x56   : > { %s7476_s27 = scalar_lea.vmem %s8514_s0, %s5518_s25  ;;  %v6677_v10 = vld [vmem:[%s8515_s1 + $0x80] ss:$16 sps:$4 sm:$0xff]   ;;  %v6678_v11 = vld [vmem:[%s8515_s1 + $0xa4] ss:$16 sps:$4 sm:$0xff]   ;;  %v6697_v14 = vld [vmem:[%s8515_s1 + $0x8] ss:$16 sps:$4 sm:$0xff]  }
  0x57   : > { %v6680_v12 = vld [vmem:[%s8515_s1 + $0xa0] ss:$16 sps:$4 sm:$0xff]   ;;  %v6681_v15 = vld [vmem:[%s8515_s1 + $0xc4] ss:$16 sps:$4 sm:$0xff]   ;;  %v6699_v16 = vld [vmem:[%s8515_s1 + $0x2c] ss:$16 sps:$4 sm:$0xff]   ;;  %901 = vmatpush1.bf16.msra.mxu1 %v6697_v14 }
  0x58   : > { %710 = vmatpush1.bf16.msra.mxu0 %v6668_v4  ;;  %v6701_v17 = vld [vmem:[%s8515_s1 + $0x28] ss:$16 sps:$4 sm:$0xff]   ;;  %v6683_v18 = vld [vmem:[%s8515_s1 + $0xc0] ss:$16 sps:$4 sm:$0xff]   ;;  %902 = vmatprep.subr.bf16.mxu1 %v6699_v16  ;;  %v6702_v19 = vld [vmem:[%s8515_s1 + $0x4c] ss:$16 sps:$4 sm:$0xff]  }
  0x59   : > { %711 = vmatprep.subr.bf16.mxu0 %v6669_v5  ;;  %v6684_v20 = vld [vmem:[%s8515_s1 + $0xe4] ss:$16 sps:$4 sm:$0xff]   ;;  %v6686_v21 = vld [vmem:[%s8515_s1 + $0xe0] ss:$16 sps:$4 sm:$0xff]   ;;  %v6704_v22 = vld [vmem:[%s8515_s1 + $0x48] ss:$16 sps:$4 sm:$0xff]  }
  0x5a   : > { %v6706_v23 = vld [vmem:[%s8515_s1 + $0x6c] ss:$16 sps:$4 sm:$0xff]   ;;  %v6687_v24 = vld [vmem:[%s7476_s27] sm:$0xff]   ;;  %v6708_v25 = vld [vmem:[%s8515_s1 + $0x68] ss:$16 sps:$4 sm:$0xff]   ;;  %s5861_s25 = sshll.u32 %s7350_s13, 12 }
  0x5b   : > { %903 = vmatpush1.bf16.msra.mxu1 %v6701_v17  ;;  %v6709_v26 = vld [vmem:[%s8515_s1 + $0x8c] ss:$16 sps:$4 sm:$0xff]   ;;  %v6711_v27 = vld [vmem:[%s8515_s1 + $0x88] ss:$16 sps:$4 sm:$0xff]   ;;  %v6723_v28 = vld [vmem:[#allocation2] ss:$16 sps:$4 sm:$0xff]   ;;  %s8465_s21 = scalar_lea.hbm %s8523_s9, %s5861_s25 }
  0x5c   : > { %712 = vmatpush1.bf16.msra.mxu0 %v6671_v6  ;;  %904 = vmatprep.subr.bf16.mxu1 %v6702_v19  ;;  %v6725_v29 = vld [vmem:[#allocation2 + $0x4] ss:$16 sps:$4 sm:$0xff]   ;;  %v6713_v30 = vld [vmem:[%s8515_s1 + $0xac] ss:$16 sps:$4 sm:$0xff]   ;;  %v6727_v33 = vld [vmem:[#allocation2 + $0x20] ss:$16 sps:$4 sm:$0xff]  }
  0x5d   : > { %713 = vmatprep.subr.bf16.mxu0 %v6672_v7  ;;  %v6688_v31 = vld [vmem:[%s7476_s27 + $0x8] sm:$0xff]   ;;  %v6729_v32 = vld [vmem:[#allocation2 + $0x24] ss:$16 sps:$4 sm:$0xff]   ;;  %v6731_v38 = vld [vmem:[#allocation2 + $0x40] ss:$16 sps:$4 sm:$0xff]   ;;  %s5424_s11 = sshll.u32 %s8398_s23, 4  ;;  %s8467_s11 = int_to_ptr.vmem [resolvable:$true] %s5424_s11 }
  0x5e   : > { %v6715_v34 = vld [vmem:[%s8515_s1 + $0xa8] ss:$16 sps:$4 sm:$0xff]   ;;  %v6716_v35 = vld [vmem:[%s8515_s1 + $0xcc] ss:$16 sps:$4 sm:$0xff]   ;;  %v6733_v36 = vld [vmem:[#allocation2 + $0x44] ss:$16 sps:$4 sm:$0xff]  }
  0x5f   : > { %905 = vmatpush1.bf16.msra.mxu1 %v6704_v22  ;;  %v6718_v37 = vld [vmem:[%s8515_s1 + $0xc8] ss:$16 sps:$4 sm:$0xff]   ;;  %v6737_v39 = vld [vmem:[#allocation2 + $0x64] ss:$16 sps:$4 sm:$0xff]   ;;  %v6720_v40 = vld [vmem:[%s8515_s1 + $0xec] ss:$16 sps:$4 sm:$0xff]  }
  0x60   : > { %714 = vmatpush1.bf16.msra.mxu0 %v6674_v8  ;;  %906 = vmatprep.subr.bf16.mxu1 %v6706_v23  ;;  %v6735_v41 = vld [vmem:[#allocation2 + $0x60] ss:$16 sps:$4 sm:$0xff]   ;;  %v6722_v43 = vld [vmem:[%s8515_s1 + $0xe8] ss:$16 sps:$4 sm:$0xff]   ;;  %v6741_v44 = vld [vmem:[#allocation2 + $0x84] ss:$16 sps:$4 sm:$0xff]  }
  0x61   : > { %715 = vmatprep.subr.bf16.mxu0 %v6675_v9  ;;  %v6689_v42 = vld [vmem:[%s7476_s27 + $0x10] sm:$0xff]   ;;  %v6756_v47 = vld [vmem:[#allocation2 + $0xc] ss:$16 sps:$4 sm:$0xff]   ;;  %v6754_v48 = vld [vmem:[#allocation2 + $0x8] ss:$16 sps:$4 sm:$0xff]   ;;  %s8473_s24 = scalar_lea.sflag [#allocation4], %s354_s14 }
  0x62   : > { %v6739_v45 = vld [vmem:[#allocation2 + $0x80] ss:$16 sps:$4 sm:$0xff]   ;;  %v6744_v46 = vld [vmem:[#allocation2 + $0xa4] ss:$16 sps:$4 sm:$0xff]   ;;  %v6759_v49 = vld [vmem:[#allocation2 + $0x2c] ss:$16 sps:$4 sm:$0xff]  }
  0x63   : > { %907 = vmatpush1.bf16.msra.mxu1 %v6708_v25  ;;  %v6742_v50 = vld [vmem:[#allocation2 + $0xa0] ss:$16 sps:$4 sm:$0xff]   ;;  %v6690_v51 = vld [vmem:[%s7476_s27 + $0x18] sm:$0xff]   ;;  %v6747_v52 = vld [vmem:[#allocation2 + $0xc4] ss:$16 sps:$4 sm:$0xff]   ;;  %s7199_s13 = scalar_lea.vmem %s8467_s11, 4096 }
  0x64   : > { %716 = vmatpush1.bf16.msra.mxu0 %v6677_v10  ;;  %908 = vmatprep.subr.bf16.mxu1 %v6709_v26  ;;  %v6757_v53 = vld [vmem:[#allocation2 + $0x28] ss:$16 sps:$4 sm:$0xff]   ;;  %v6765_v54 = vld [vmem:[#allocation2 + $0x4c] ss:$16 sps:$4 sm:$0xff]   ;;  %v6745_v55 = vld [vmem:[#allocation2 + $0xc0] ss:$16 sps:$4 sm:$0xff]   ;;  %p7200_p10 = scmp.ne.s32.totalorder %s8467_s11, %s7199_s13 }
  0x65   : > { %717 = vmatprep.subr.bf16.mxu0 %v6678_v11  ;;  %v6750_v56 = vld [vmem:[#allocation2 + $0xe4] ss:$16 sps:$4 sm:$0xff]   ;;  %v6763_v57 = vld [vmem:[#allocation2 + $0x48] ss:$16 sps:$4 sm:$0xff]   ;;  %v6768_v58 = vld [vmem:[#allocation2 + $0x6c] ss:$16 sps:$4 sm:$0xff]  }
  0x66   : > { %v6748_v59 = vld [vmem:[#allocation2 + $0xe0] ss:$16 sps:$4 sm:$0xff]   ;;  %v6753_v61 = vld [vmem:[#allocation2 + $0x104] ss:$16 sps:$4 sm:$0xff]   ;;  %v6766_v62 = vld [vmem:[#allocation2 + $0x68] ss:$16 sps:$4 sm:$0xff]  }
  0x67   : > { %909 = vmatpush1.bf16.msra.mxu1 %v6711_v27  ;;  %v6691_v60 = vld [vmem:[%s7476_s27 + $0x20] sm:$0xff]   ;;  %v6774_v63 = vld [vmem:[#allocation2 + $0x8c] ss:$16 sps:$4 sm:$0xff]   ;;  %v6772_v3 = vld [vmem:[#allocation2 + $0x88] ss:$16 sps:$4 sm:$0xff]   ;;  %p8542_p1 = scmp.ne.s32.totalorder %s8533_s19, 0 }
  0x68   : > { %718 = vmatpush1.bf16.msra.mxu0 %v6680_v12  ;;  %910 = vmatprep.subr.bf16.mxu1 %v6713_v30  ;;  %v6751_v1 = vld [vmem:[#allocation2 + $0x100] ss:$16 sps:$4 sm:$0xff]   ;;  %v6762_v2 = vld [vmem:[#allocation2 + $0x124] ss:$16 sps:$4 sm:$0xff]   ;;  %v6777_v4 = vld [vmem:[#allocation2 + $0xac] ss:$16 sps:$4 sm:$0xff]  }
  0x69   : > { %719 = vmatprep.subr.bf16.mxu0 %v6681_v15  ;;  %v6760_v5 = vld [vmem:[#allocation2 + $0x120] ss:$16 sps:$4 sm:$0xff]   ;;  %v6692_v6 = vld [vmem:[%s7476_s27 + $0x28] sm:$0xff]   ;;  %v6771_v7 = vld [vmem:[#allocation2 + $0x144] ss:$16 sps:$4 sm:$0xff]   ;;  %p7201_p2 = pnand %p7200_p10, %p8542_p1  ;;  %s7276_s26 = smov [#allocation7]  }
  0x6a   : > { %v6775_v8 = vld [vmem:[#allocation2 + $0xa8] ss:$16 sps:$4 sm:$0xff]   ;;  %v6783_v9 = vld [vmem:[#allocation2 + $0xcc] ss:$16 sps:$4 sm:$0xff]   ;;  %v6769_v10 = vld [vmem:[#allocation2 + $0x140] ss:$16 sps:$4 sm:$0xff]  }
  0x6b   : > { %911 = vmatpush1.bf16.msra.mxu1 %v6715_v34  ;;  %v6780_v11 = vld [vmem:[#allocation2 + $0x164] ss:$16 sps:$4 sm:$0xff]   ;;  %v6778_v12 = vld [vmem:[#allocation2 + $0x160] ss:$16 sps:$4 sm:$0xff]   ;;  %v6781_v13 = vld [vmem:[#allocation2 + $0xc8] ss:$16 sps:$4 sm:$0xff]   ;;  %p7202_p3 = pneg %p7201_p2 }
  0x6c   : > { %720 = vmatpush1.bf16.msra.mxu0 %v6683_v18  ;;  %912 = vmatprep.subr.bf16.mxu1 %v6716_v35  ;;  %v6786_v14 = vld [vmem:[#allocation2 + $0xec] ss:$16 sps:$4 sm:$0xff]   ;;  %v6693_v15 = vld [vmem:[%s7476_s27 + $0x30] sm:$0xff]   ;;  %v6784_v17 = vld [vmem:[#allocation2 + $0xe8] ss:$16 sps:$4 sm:$0xff]   ;;  %s7203_s28 = sshll.u32 %s7276_s26, 4  ;;  %s7204_s28 = int_to_ptr.vmem [resolvable:$false] %s7203_s28 }
  0x6d   : > { %721 = vmatprep.subr.bf16.mxu0 %v6684_v20  ;;  %v6789_v16 = vld [vmem:[#allocation2 + $0x184] ss:$16 sps:$4 sm:$0xff]   ;;  %v6792_v18 = vld [vmem:[#allocation2 + $0x10c] ss:$16 sps:$4 sm:$0xff]   ;;  %v6787_v19 = vld [vmem:[#allocation2 + $0x180] ss:$16 sps:$4 sm:$0xff]   ;;  %p7206_p4 = scmp.lt.s32.totalorder %s8467_s11, %s7204_s28 }
  0x6e   : > { %v6798_v20 = vld [vmem:[#allocation2 + $0x1a4] ss:$16 sps:$4 sm:$0xff]   ;;  %v6795_v22 = vld [vmem:[#allocation2 + $0x12c] ss:$16 sps:$4 sm:$0xff]   ;;  %v6796_v23 = vld [vmem:[#allocation2 + $0x1a0] ss:$16 sps:$4 sm:$0xff]  }
  0x6f   : > { %913 = vmatpush1.bf16.msra.mxu1 %v6718_v37  ;;  %v6807_v25 = vld [vmem:[#allocation2 + $0x1c4] ss:$16 sps:$4 sm:$0xff]   ;;  %v6793_v26 = vld [vmem:[#allocation2 + $0x128] ss:$16 sps:$4 sm:$0xff]   ;;  %v6801_v27 = vld [vmem:[#allocation2 + $0x14c] ss:$16 sps:$4 sm:$0xff]  }
  0x70   : > { %722 = vmatpush1.bf16.msra.mxu0 %v6686_v21  ;;  %914 = vmatprep.subr.bf16.mxu1 %v6720_v40  ;;  %v6790_v21 = vld [vmem:[#allocation2 + $0x108] ss:$16 sps:$4 sm:$0xff]   ;;  %v6804_v30 = vld [vmem:[#allocation2 + $0x16c] ss:$16 sps:$4 sm:$0xff]   ;;  %s7205_s29 = scalar_lea.vmem %s7204_s28, 8192 }
  0x71   : > { %2075 = vmatprep.subr.bf16.mxu0 %v6725_v29  ;;  %v6799_v29 = vld [vmem:[#allocation2 + $0x148] ss:$16 sps:$4 sm:$0xff]   ;;  %v6813_v35 = vld [vmem:[#allocation2 + $0x1ac] ss:$16 sps:$4 sm:$0xff]   ;;  %p7207_p7 = scmp.lt.s32.totalorder %s7205_s29, %s7199_s13 }
  0x72   : > { %v6808_v34 = vld [vmem:[#allocation2 + $0x188] ss:$16 sps:$4 sm:$0xff]   ;;  %v6819_v40 = vld [vmem:[#allocation2 + $0x1cc] ss:$16 sps:$4 sm:$0xff]  }
  0x73   : > { %740 = vmatmul.mubr.bf16.vlgmr.msra.gmra.mrb[0].mxu0 %v6687_v24  ;;  %915 = vmatpush1.bf16.msra.mxu1 %v6722_v43  ;;  %v6811_v37 = vld [vmem:[#allocation2 + $0x1a8] ss:$16 sps:$4 sm:$0xff]   ;;  %v6822_v43 = vld [vmem:[#allocation2 + $0x1ec] ss:$16 sps:$4 sm:$0xff]   ;;  %p7208_p8 = por %p7207_p7, %p7206_p4 }
  0x74   : > { %749 = vmatprep.mubr.bf16.mxu0 %v7275_v0  ;;  %2076 = vmatpush1.bf16.msra.mxu0 %v6723_v28  ;;  %v6805_v28 = vld [vmem:[#allocation2 + $0x1c0] ss:$16 sps:$4 sm:$0xff]  }
  0x75   : > { %2077 = vmatprep.subr.bf16.mxu0 %v6729_v32  ;;  %2461 = vmatprep.subr.bf16.mxu1 %v6756_v47  ;;  %v6802_v32 = vld [vmem:[#allocation2 + $0x168] ss:$16 sps:$4 sm:$0xff]   ;;  %p7209_p11 = pnand %p7208_p8, %p7202_p3 }
  0x76   : > { %933 = vmatmul.mubr.bf16.vlgmr.msra.gmra.mrb[0].mxu1 %v6687_v24  ;;  %v6694_v24 = vld [vmem:[%s7476_s27 + $0x38] sm:$0xff]   ;;  %v6730_v47 = vld [vmem:[%s7476_s27 + $0x68] sm:$0xff]  }
  0x77   : > { %942 = vmatprep.mubr.bf16.mxu1 %v7275_v0  ;;  %2462 = vmatpush1.bf16.msra.mxu1 %v6754_v48  ;;  %v6825_v48 = vld [vmem:[#allocation2 + $0x204] ss:$16 sps:$4 sm:$0xff]  }
  0x78   : > { %2078 = vmatpush1.bf16.msra.mxu0 %v6727_v33  ;;  %2463 = vmatprep.subr.bf16.mxu1 %v6759_v49  ;;  %v6810_v33 = vld [vmem:[#allocation2 + $0x18c] ss:$16 sps:$4 sm:$0xff]   ;;  %v6734_v49 = vld [vmem:[%s7476_s27 + $0x70] sm:$0xff]  }
  0x79   : > { %2079 = vmatprep.subr.bf16.mxu0 %v6733_v36  ;;  %v6705_v36 = vld [vmem:[%s7476_s27 + $0x48] sm:$0xff]  }
  0x7b   : > { %750 = vmatmul.mubr.bf16.gmra.mrb[4].mxu0 %v6688_v31  ;;  %2464 = vmatpush1.bf16.msra.mxu1 %v6757_v53 }
  0x7c   : > { %759 = vmatprep.mubr.bf16.mxu0 %v7275_v0  ;;  %2080 = vmatpush1.bf16.msra.mxu0 %v6731_v38  ;;  %v6712_v38 = vld [vmem:[%s7476_s27 + $0x50] sm:$0xff]  }
  0x7d   : > { %2081 = vmatprep.subr.bf16.mxu0 %v6737_v39  ;;  %2465 = vmatprep.subr.bf16.mxu1 %v6765_v54  ;;  %v6719_v39 = vld [vmem:[%s7476_s27 + $0x58] sm:$0xff]  }
  0x7e   : > { %943 = vmatmul.mubr.bf16.gmra.mrb[4].mxu1 %v6688_v31  ;;  %v6698_v31 = vld [vmem:[%s7476_s27 + $0x40] sm:$0xff]  }
  0x7f   : > { %952 = vmatprep.mubr.bf16.mxu1 %v7275_v0  ;;  %2466 = vmatpush1.bf16.msra.mxu1 %v6763_v57 }
  0x80   : > { %2082 = vmatpush1.bf16.msra.mxu0 %v6735_v41  ;;  %2467 = vmatprep.subr.bf16.mxu1 %v6768_v58  ;;  %v6817_v41 = vld [vmem:[#allocation2 + $0x1c8] ss:$16 sps:$4 sm:$0xff]  }
  0x81   : > { %2083 = vmatprep.subr.bf16.mxu0 %v6741_v44  ;;  %v6814_v44 = vld [vmem:[#allocation2 + $0x1e0] ss:$16 sps:$4 sm:$0xff]  }
  0x83   : > { %760 = vmatmul.mubr.bf16.gmra.mrb[8].mxu0 %v6689_v42  ;;  %2468 = vmatpush1.bf16.msra.mxu1 %v6766_v62 }
  0x84   : > { %769 = vmatprep.mubr.bf16.mxu0 %v7275_v0  ;;  %2084 = vmatpush1.bf16.msra.mxu0 %v6739_v45  ;;  %v6820_v45 = vld [vmem:[#allocation2 + $0x1e8] ss:$16 sps:$4 sm:$0xff]  }
  0x85   : > { %2085 = vmatprep.subr.bf16.mxu0 %v6744_v46  ;;  %2469 = vmatprep.subr.bf16.mxu1 %v6774_v63  ;;  %v6726_v46 = vld [vmem:[%s7476_s27 + $0x60] sm:$0xff]  }
  0x86   : > { %953 = vmatmul.mubr.bf16.gmra.mrb[8].mxu1 %v6689_v42  ;;  %v6816_v42 = vld [vmem:[#allocation2 + $0x1e4] ss:$16 sps:$4 sm:$0xff]  }
  0x87   : > { %962 = vmatprep.mubr.bf16.mxu1 %v7275_v0  ;;  %2470 = vmatpush1.bf16.msra.mxu1 %v6772_v3 }
  0x88   : > { %2086 = vmatpush1.bf16.msra.mxu0 %v6742_v50  ;;  %2471 = vmatprep.subr.bf16.mxu1 %v6777_v4  ;;  %v6738_v50 = vld [vmem:[%s7476_s27 + $0x78] sm:$0xff]  }
  0x89   : > { %2087 = vmatprep.subr.bf16.mxu0 %v6747_v52  ;;  %v431_v52 = vlaneseq }
  0x8b   : > { %770 = vmatmul.mubr.bf16.gmra.mrb[12].mxu0 %v6690_v51  ;;  %2472 = vmatpush1.bf16.msra.mxu1 %v6775_v8  ;;  %v432_v53 = vshrl.u32 %v431_v52, 7 }
  0x8c   : > { %779 = vmatprep.mubr.bf16.mxu0 %v7275_v0  ;;  %2088 = vmatpush1.bf16.msra.mxu0 %v6745_v55  ;;  %v429_v55 = vld [vmem:[%s8516_s2] sm:$0xf] }
  0x8d   : > { %2089 = vmatprep.subr.bf16.mxu0 %v6750_v56  ;;  %2473 = vmatprep.subr.bf16.mxu1 %v6783_v9  ;;  %v7599_v54 = vsub.s32 0, %v432_v53  ;;  %v7604_v56 = vsub.s32 1, %v432_v53 }
  0x8e   : > { %963 = vmatmul.mubr.bf16.gmra.mrb[12].mxu1 %v6690_v51  ;;  %v6852_v51 = vld [vmem:[#allocation2 + $0x20c] ss:$16 sps:$4 sm:$0xff]  }
  0x8f   : > { %972 = vmatprep.mubr.bf16.mxu1 %v7275_v0  ;;  %2474 = vmatpush1.bf16.msra.mxu1 %v6781_v13  ;;  %v7607_v57 = vrot.slane %v429_v55, %v7599_v54  ;;  %v7610_v58 = vrot.slane %v429_v55, %v7604_v56 }
  0x90   : > { %2090 = vmatpush1.bf16.msra.mxu0 %v6748_v59  ;;  %2475 = vmatprep.subr.bf16.mxu1 %v6786_v14  ;;  %v6828_v14 = vld [vmem:[#allocation2 + $0x224] ss:$16 sps:$4 sm:$0xff]  }
  0x91   : > { %2091 = vmatprep.subr.bf16.mxu0 %v6753_v61 }
  0x93   : > { %780 = vmatmul.mubr.bf16.gmra.mrb[16].mxu0 %v6691_v60  ;;  %2476 = vmatpush1.bf16.msra.mxu1 %v6784_v17 }
  0x94   : > { %789 = vmatprep.mubr.bf16.mxu0 %v7275_v0  ;;  %2092 = vmatpush1.bf16.msra.mxu0 %v6751_v1 }
  0x95   : > { %2093 = vmatprep.subr.bf16.mxu0 %v6762_v2  ;;  %2477 = vmatprep.subr.bf16.mxu1 %v6792_v18 }
  0x96   : > { %973 = vmatmul.mubr.bf16.gmra.mrb[16].mxu1 %v6691_v60 }
  0x97   : > { %982 = vmatprep.mubr.bf16.mxu1 %v7275_v0  ;;  %2478 = vmatpush1.bf16.msra.mxu1 %v6790_v21 }
  0x98   : > { %2094 = vmatpush1.bf16.msra.mxu0 %v6760_v5  ;;  %2479 = vmatprep.subr.bf16.mxu1 %v6795_v22  ;;  %v6831_v22 = vld [vmem:[#allocation2 + $0x244] ss:$16 sps:$4 sm:$0xff]  }
  0x99   : > { %2095 = vmatprep.subr.bf16.mxu0 %v6771_v7 }
  0x9b   : > { %790 = vmatmul.mubr.bf16.gmra.mrb[20].mxu0 %v6692_v6  ;;  %2480 = vmatpush1.bf16.msra.mxu1 %v6793_v26 }
  0x9c   : > { %799 = vmatprep.mubr.bf16.mxu0 %v7275_v0  ;;  %2096 = vmatpush1.bf16.msra.mxu0 %v6769_v10  ;;  %v6823_v10 = vld [vmem:[#allocation2 + $0x200] ss:$16 sps:$4 sm:$0xff]  }
  0x9d   : > { %2097 = vmatprep.subr.bf16.mxu0 %v6780_v11  ;;  %2481 = vmatprep.subr.bf16.mxu1 %v6801_v27  ;;  %v6850_v11 = vld [vmem:[#allocation2 + $0x208] ss:$16 sps:$4 sm:$0xff]   ;;  %v6861_v27 = vld [vmem:[#allocation2 + $0x24c] ss:$16 sps:$4 sm:$0xff]  }
  0x9e   : > { %983 = vmatmul.mubr.bf16.gmra.mrb[20].mxu1 %v6692_v6 }
  0x9f   : > { %992 = vmatprep.mubr.bf16.mxu1 %v7275_v0  ;;  %2482 = vmatpush1.bf16.msra.mxu1 %v6799_v29 }
  0xa0   : > { %2098 = vmatpush1.bf16.msra.mxu0 %v6778_v12  ;;  %2483 = vmatprep.subr.bf16.mxu1 %v6804_v30 }
  0xa1   : > { %2099 = vmatprep.subr.bf16.mxu0 %v6789_v16 }
  0xa3   : > { %800 = vmatmul.mubr.bf16.gmra.mrb[24].mxu0 %v6693_v15  ;;  %2484 = vmatpush1.bf16.msra.mxu1 %v6802_v32 }
  0xa4   : > { %809 = vmatprep.mubr.bf16.mxu0 %v7275_v0  ;;  %2100 = vmatpush1.bf16.msra.mxu0 %v6787_v19 }
  0xa5   : > { %2101 = vmatprep.subr.bf16.mxu0 %v6798_v20  ;;  %2485 = vmatprep.subr.bf16.mxu1 %v6810_v33  ;;  %v6826_v20 = vld [vmem:[#allocation2 + $0x220] ss:$16 sps:$4 sm:$0xff]  }
  0xa6   : > { %993 = vmatmul.mubr.bf16.gmra.mrb[24].mxu1 %v6693_v15  ;;  %v6855_v15 = vld [vmem:[#allocation2 + $0x22c] ss:$16 sps:$4 sm:$0xff]  }
  0xa7   : > { %1002 = vmatprep.mubr.bf16.mxu1 %v7275_v0  ;;  %2486 = vmatpush1.bf16.msra.mxu1 %v6808_v34  ;;  %v6829_v34 = vld [vmem:[#allocation2 + $0x240] ss:$16 sps:$4 sm:$0xff]  }
  0xa8   : > { %2102 = vmatpush1.bf16.msra.mxu0 %v6796_v23  ;;  %2487 = vmatprep.subr.bf16.mxu1 %v6813_v35  ;;  %v6853_v23 = vld [vmem:[#allocation2 + $0x228] ss:$16 sps:$4 sm:$0xff]  }
  0xa9   : > { %2103 = vmatprep.subr.bf16.mxu0 %v6807_v25  ;;  %v6859_v35 = vld [vmem:[#allocation2 + $0x248] ss:$16 sps:$4 sm:$0xff]  }
  0xab   : > { %810 = vmatmul.mubr.bf16.gmra.mrb[28].mxu0 %v6694_v24  ;;  %2488 = vmatpush1.bf16.msra.mxu1 %v6811_v37 }
  0xac   : > { %819 = vmatprep.mubr.bf16.mxu0 %v7275_v0  ;;  %2104 = vmatpush1.bf16.msra.mxu0 %v6805_v28  ;;  %v7622_v28 = vsub.s32 3, %v432_v53 }
  0xad   : > { %2489 = vmatprep.subr.bf16.mxu1 %v6819_v40  ;;  %2105 = vmatprep.subr.bf16.mxu0 %v6816_v42  ;;  %v6864_v40 = vld [vmem:[#allocation2 + $0x26c] ss:$16 sps:$4 sm:$0xff]  }
  0xae   : > { %1003 = vmatmul.mubr.bf16.gmra.mrb[28].mxu1 %v6694_v24  ;;  %v7620_v24 = vsub.s32 2, %v432_v53 }
  0xaf   : > { %1012 = vmatprep.mubr.bf16.mxu1 %v7275_v0  ;;  %2490 = vmatpush1.bf16.msra.mxu1 %v6817_v41  ;;  %v7629_v41 = vrot.slane %v429_v55, %v7622_v28 }
  0xb0   : > { %2491 = vmatprep.subr.bf16.mxu1 %v6822_v43  ;;  %2106 = vmatpush1.bf16.msra.mxu0 %v6814_v44 }
  0xb1   : > { %2268 = vmatprep.subr.bf16.mxu0 %v6825_v48 }
  0xb3   : > { %820 = vmatmul.mubr.bf16.gmra.mrb[32].mxu0 %v6698_v31  ;;  %2492 = vmatpush1.bf16.msra.mxu1 %v6820_v45 }
  0xb4   : > { %829 = vmatprep.mubr.bf16.mxu0 %v7275_v0  ;;  %2654 = vmatprep.subr.bf16.mxu1 %v6852_v51 }
  0xb6   : > { %1013 = vmatmul.mubr.bf16.gmra.mrb[32].mxu1 %v6698_v31 }
  0xb7   : > { %1022 = vmatprep.mubr.bf16.mxu1 %v7275_v0 }
  0xbb   : > { %830 = vmatmul.mubr.bf16.gmra.mrb[36].mxu0 %v6705_v36 }
  0xbc   : > { %839 = vmatprep.mubr.bf16.mxu0 %v7275_v0 }
  0xbe   : > { %1023 = vmatmul.mubr.bf16.gmra.mrb[36].mxu1 %v6705_v36  ;;  %v7625_v36 = vrot.slane %v429_v55, %v7620_v24 }
  0xbf   : > { %1032 = vmatprep.mubr.bf16.mxu1 %v7275_v0 }
  0xc3   : > { %840 = vmatmul.mubr.bf16.gmra.mrb[40].mxu0 %v6712_v38 }
  0xc4   : > { %849 = vmatprep.mubr.bf16.mxu0 %v7275_v0 }
  0xc6   : > { %1033 = vmatmul.mubr.bf16.gmra.mrb[40].mxu1 %v6712_v38 }
  0xc7   : > { %1042 = vmatprep.mubr.bf16.mxu1 %v7275_v0 }
  0xcb   : > { %850 = vmatmul.mubr.bf16.gmra.mrb[44].mxu0 %v6719_v39 }
  0xcc   : > { %859 = vmatprep.mubr.bf16.mxu0 %v7275_v0 }
  0xce   : > { %1043 = vmatmul.mubr.bf16.gmra.mrb[44].mxu1 %v6719_v39  ;;  %v6834_v39 = vld [vmem:[#allocation2 + $0x264] ss:$16 sps:$4 sm:$0xff]  }
  0xcf   : > { %1052 = vmatprep.mubr.bf16.mxu1 %v7275_v0 }
  0xd3   : > { %860 = vmatmul.mubr.bf16.gmra.mrb[48].mxu0 %v6726_v46 }
  0xd4   : > { %869 = vmatprep.mubr.bf16.mxu0 %v7275_v0 }
  0xd6   : > { %1053 = vmatmul.mubr.bf16.gmra.mrb[48].mxu1 %v6726_v46  ;;  %v6832_v46 = vld [vmem:[#allocation2 + $0x260] ss:$16 sps:$4 sm:$0xff]  }
  0xd7   : > { %1062 = vmatprep.mubr.bf16.mxu1 %v7275_v0 }
  0xdb   : > { %870 = vmatmul.mubr.bf16.gmra.mrb[52].mxu0 %v6730_v47 }
  0xdc   : > { %879 = vmatprep.mubr.bf16.mxu0 %v7275_v0 }
  0xde   : > { %1063 = vmatmul.mubr.bf16.gmra.mrb[52].mxu1 %v6730_v47 }
  0xdf   : > { %1072 = vmatprep.mubr.bf16.mxu1 %v7275_v0 }
  0xe3   : > { %880 = vmatmul.mubr.bf16.gmra.mrb[56].mxu0 %v6734_v49 }
  0xe4   : > { %889 = vmatprep.mubr.bf16.mxu0 %v7275_v0 }
  0xe6   : > { %1073 = vmatmul.mubr.bf16.gmra.mrb[56].mxu1 %v6734_v49  ;;  %v6837_v49 = vld [vmem:[#allocation2 + $0x284] ss:$16 sps:$4 sm:$0xff]  }
  0xe7   : > { %1082 = vmatprep.mubr.bf16.mxu1 %v7275_v0 }
  0xeb   : > { %890 = vmatmul.mubr.bf16.gmra.mrb[60].mxu0 %v6738_v50 }
  0xee   : > { %1083 = vmatmul.mubr.bf16.gmra.mrb[60].mxu1 %v6738_v50  ;;  %v6862_v50 = vld [vmem:[#allocation2 + $0x268] ss:$16 sps:$4 sm:$0xff]  }
 0x146   : > { %v741_v0 = vpop.f32.mrb[0].mxu0 }
 0x147   : > { %v742_v59 = vadd.f32 %v741_v0, %v7607_v57  ;;  %v743_v60 = vpop.f32.mrb[1].mxu0  ;;  %v6870_v0 = vld [vmem:[#allocation2 + $0x28c] ss:$16 sps:$4 sm:$0xff]  }
 0x148   : > { %v744_v61 = vadd.f32 %v743_v60, %v7610_v58  ;;  %v745_v62 = vpop.f32.mrb[2].mxu0 }
 0x149   : > { %v746_v63 = vadd.f32 %v745_v62, %v7607_v57  ;;  %v747_v1 = vpop.f32.mrb[3].mxu0  ;;  %v1093_v3 = vmax.f32 %v742_v59, 0.0  ;;  %v934_v47 = vpop.f32.mrb[0].mxu1 }
 0x14a   : > { %v748_v2 = vadd.f32 %v747_v1, %v7610_v58  ;;  %v1094_v5 = vmax.f32 %v744_v61, 0.0  ;;  %v935_v51 = vadd.f32 %v934_v47, %v7625_v36  ;;  %v936_v52 = vpop.f32.mrb[1].mxu1 }
 0x14b   : > { %v1097_v4 = vmax.f32 %v746_v63, 0.0  ;;  %v937_v59 = vadd.f32 %v936_v52, %v7629_v41  ;;  %v938_v60 = vpop.f32.mrb[2].mxu1 }
 0x14c   : > { %v1098_v6 = vmax.f32 %v748_v2, 0.0  ;;  %v1095_v63 = vmax.f32 %v935_v51, 0.0  ;;  %v939_v1 = vadd.f32 %v938_v60, %v7625_v36  ;;  %v940_v2 = vpop.f32.mrb[3].mxu1 }
 0x14d   : > { %v1221_v7 = vpack.c.bf16 %v1097_v4, %v1093_v3  ;;  %v1096_v4 = vmax.f32 %v937_v59, 0.0 }
 0x14e   : > { %v1222_v8 = vpack.c.bf16 %v1098_v6, %v1094_v5  ;;  %v751_v9 = vpop.f32.mrb[4].mxu0  ;;  %v941_v5 = vadd.f32 %v940_v2, %v7629_v41 }
 0x14f   : > { %v752_v12 = vadd.f32 %v751_v9, %v7607_v57  ;;  %v753_v13 = vpop.f32.mrb[5].mxu0  ;;  %v6868_v9 = vld [vmem:[#allocation2 + $0x288] ss:$16 sps:$4 sm:$0xff]  }
 0x150   : > { %v754_v16 = vadd.f32 %v753_v13, %v7610_v58  ;;  %v755_v17 = vpop.f32.mrb[6].mxu0  ;;  %2107 = vmatprep.mubr.bf16.mxu0 %v1222_v8  ;;  %2493 = vmatprep.mubr.bf16.mxu1 %v1222_v8  ;;  %v6835_v8 = vld [vmem:[#allocation2 + $0x280] ss:$16 sps:$4 sm:$0xff]   ;;  %v6840_v13 = vld [vmem:[#allocation2 + $0x2a4] ss:$16 sps:$4 sm:$0xff]  }
 0x151   : > { %v756_v18 = vadd.f32 %v755_v17, %v7607_v57  ;;  %v757_v19 = vpop.f32.mrb[7].mxu0  ;;  %2108 = vmatmul.mubr.bf16.vlgmr.msra.gmra.mrb[64].mxu0 %v1221_v7  ;;  %2494 = vmatmul.mubr.bf16.vlgmr.msra.gmra.mrb[64].mxu1 %v1221_v7  ;;  %v1101_v25 = vmax.f32 %v752_v12, 0.0 }
 0x152   : > { %v758_v21 = vadd.f32 %v757_v19, %v7610_v58  ;;  %2269 = vmatpush1.bf16.msra.mxu0 %v6823_v10  ;;  %2655 = vmatpush1.bf16.msra.mxu1 %v6850_v11  ;;  %v1102_v29 = vmax.f32 %v754_v16, 0.0  ;;  %v1099_v10 = vmax.f32 %v939_v1, 0.0  ;;  %v6844_v1 = vld [vmem:[#allocation2 + $0x2e0] ss:$16 sps:$4 sm:$0xff]  }
 0x153   : > { %v1105_v26 = vmax.f32 %v756_v18, 0.0  ;;  %2270 = vmatprep.subr.bf16.mxu0 %v6828_v14  ;;  %2656 = vmatprep.subr.bf16.mxu1 %v6855_v15  ;;  %v6873_v14 = vld [vmem:[#allocation2 + $0x2ac] ss:$16 sps:$4 sm:$0xff]   ;;  %v1100_v15 = vmax.f32 %v941_v5, 0.0  ;;  %v6849_v5 = vld [vmem:[#allocation2 + $0x304] ss:$16 sps:$4 sm:$0xff]  }
 0x154   : > { %v1106_v30 = vmax.f32 %v758_v21, 0.0  ;;  %v7640_v18 = vpack.c.bf16 %v1099_v10, %v1095_v63  ;;  %v6838_v21 = vld [vmem:[#allocation2 + $0x2a0] ss:$16 sps:$4 sm:$0xff]  }
 0x155   : > { %v1225_v31 = vpack.c.bf16 %v1105_v26, %v1101_v25  ;;  %v6843_v26 = vld [vmem:[#allocation2 + $0x2c4] ss:$16 sps:$4 sm:$0xff]  }
 0x156   : > { %v1226_v32 = vpack.c.bf16 %v1106_v30, %v1102_v29  ;;  %v761_v33 = vpop.f32.mrb[8].mxu0  ;;  %2271 = vmatpush1.bf16.msra.mxu0 %v6826_v20  ;;  %2657 = vmatpush1.bf16.msra.mxu1 %v6853_v23  ;;  %v944_v23 = vpop.f32.mrb[4].mxu1 }
 0x157   : > { %v762_v37 = vadd.f32 %v761_v33, %v7607_v57  ;;  %v763_v38 = vpop.f32.mrb[9].mxu0  ;;  %2272 = vmatprep.subr.bf16.mxu0 %v6831_v22  ;;  %2658 = vmatprep.subr.bf16.mxu1 %v6861_v27  ;;  %v7643_v22 = vpack.c.bf16 %v1100_v15, %v1096_v4  ;;  %v6871_v27 = vld [vmem:[#allocation2 + $0x2a8] ss:$16 sps:$4 sm:$0xff]   ;;  %v945_v29 = vadd.f32 %v944_v23, %v7625_v36  ;;  %v946_v30 = vpop.f32.mrb[5].mxu1  ;;  %v6879_v33 = vld [vmem:[#allocation2 + $0x2cc] ss:$16 sps:$4 sm:$0xff]  }
 0x158   : > { %v764_v42 = vadd.f32 %v763_v38, %v7610_v58  ;;  %v765_v43 = vpop.f32.mrb[10].mxu0  ;;  %2117 = vmatprep.mubr.bf16.mxu0 %v1226_v32  ;;  %2503 = vmatprep.mubr.bf16.mxu1 %v1226_v32 }
 0x159   : > { %v766_v44 = vadd.f32 %v765_v43, %v7607_v57  ;;  %v767_v45 = vpop.f32.mrb[11].mxu0  ;;  %2118 = vmatmul.mubr.bf16.gmra.mrb[68].mxu0 %v1225_v31  ;;  %2504 = vmatmul.mubr.bf16.gmra.mrb[68].mxu1 %v1225_v31  ;;  %v1109_v53 = vmax.f32 %v762_v37, 0.0 }
 0x15a   : > { %v768_v48 = vadd.f32 %v767_v45, %v7610_v58  ;;  %2273 = vmatpush1.bf16.msra.mxu0 %v6829_v34  ;;  %2659 = vmatpush1.bf16.msra.mxu1 %v6859_v35  ;;  %v1110_v61 = vmax.f32 %v764_v42, 0.0  ;;  %v947_v34 = vadd.f32 %v946_v30, %v7629_v41  ;;  %v948_v35 = vpop.f32.mrb[6].mxu1 }
 0x15b   : > { %v1113_v55 = vmax.f32 %v766_v44, 0.0  ;;  %2274 = vmatprep.subr.bf16.mxu0 %v6834_v39  ;;  %2660 = vmatprep.subr.bf16.mxu1 %v6864_v40  ;;  %v1103_v39 = vmax.f32 %v945_v29, 0.0  ;;  %v949_v40 = vadd.f32 %v948_v35, %v7625_v36  ;;  %v950_v42 = vpop.f32.mrb[7].mxu1  ;;  %v6886_v29 = vld [vmem:[#allocation2 + $0x308] ss:$16 sps:$4 sm:$0xff]  }
 0x15c   : > { %v1114_v62 = vmax.f32 %v768_v48, 0.0  ;;  %v1104_v44 = vmax.f32 %v947_v34, 0.0  ;;  %v951_v45 = vadd.f32 %v950_v42, %v7629_v41  ;;  %v6841_v48 = vld [vmem:[#allocation2 + $0x2c0] ss:$16 sps:$4 sm:$0xff]   ;;  %v6891_v34 = vld [vmem:[#allocation2 + $0x32c] ss:$16 sps:$4 sm:$0xff]  }
 0x15d   : > { %v1229_v3 = vpack.c.bf16 %v1113_v55, %v1109_v53  ;;  %v6846_v53 = vld [vmem:[#allocation2 + $0x2e4] ss:$16 sps:$4 sm:$0xff]   ;;  %v6882_v55 = vld [vmem:[#allocation2 + $0x2ec] ss:$16 sps:$4 sm:$0xff]  }
 0x15e   : > { %v1230_v6 = vpack.c.bf16 %v1114_v62, %v1110_v61  ;;  %v771_v7 = vpop.f32.mrb[12].mxu0  ;;  %2275 = vmatpush1.bf16.msra.mxu0 %v6832_v46  ;;  %2661 = vmatpush1.bf16.msra.mxu1 %v6862_v50  ;;  %v1107_v50 = vmax.f32 %v949_v40, 0.0 }
 0x15f   : > { %v772_v11 = vadd.f32 %v771_v7, %v7607_v57  ;;  %v773_v12 = vpop.f32.mrb[13].mxu0  ;;  %2276 = vmatprep.subr.bf16.mxu0 %v6837_v49  ;;  %2662 = vmatprep.subr.bf16.mxu1 %v6870_v0  ;;  %v6877_v49 = vld [vmem:[#allocation2 + $0x2c8] ss:$16 sps:$4 sm:$0xff]   ;;  %v1108_v0 = vmax.f32 %v951_v45, 0.0 }
 0x160   : > { %v774_v16 = vadd.f32 %v773_v12, %v7610_v58  ;;  %v775_v17 = vpop.f32.mrb[14].mxu0  ;;  %2127 = vmatprep.mubr.bf16.mxu0 %v1230_v6  ;;  %2513 = vmatprep.mubr.bf16.mxu1 %v1230_v6  ;;  %v7652_v61 = vpack.c.bf16 %v1107_v50, %v1103_v39  ;;  %v6880_v6 = vld [vmem:[#allocation2 + $0x2e8] ss:$16 sps:$4 sm:$0xff]  }
 0x161   : > { %v776_v19 = vadd.f32 %v775_v17, %v7607_v57  ;;  %v777_v20 = vpop.f32.mrb[15].mxu0  ;;  %2128 = vmatmul.mubr.bf16.gmra.mrb[72].mxu0 %v1229_v3  ;;  %2514 = vmatmul.mubr.bf16.gmra.mrb[72].mxu1 %v1229_v3  ;;  %v1117_v31 = vmax.f32 %v772_v11, 0.0  ;;  %v7655_v2 = vpack.c.bf16 %v1108_v0, %v1104_v44  ;;  %v954_v3 = vpop.f32.mrb[8].mxu1  ;;  %v6888_v11 = vld [vmem:[#allocation2 + $0x30c] ss:$16 sps:$4 sm:$0xff]  }
 0x162   : > { %v778_v25 = vadd.f32 %v777_v20, %v7610_v58  ;;  %2277 = vmatpush1.bf16.msra.mxu0 %v6835_v8  ;;  %2663 = vmatpush1.bf16.msra.mxu1 %v6868_v9  ;;  %v1118_v37 = vmax.f32 %v774_v16, 0.0  ;;  %v955_v7 = vadd.f32 %v954_v3, %v7625_v36  ;;  %v956_v8 = vpop.f32.mrb[9].mxu1 }
 0x163   : > { %v1121_v32 = vmax.f32 %v776_v19, 0.0  ;;  %2278 = vmatprep.subr.bf16.mxu0 %v6840_v13  ;;  %2664 = vmatprep.subr.bf16.mxu1 %v6873_v14  ;;  %v957_v12 = vadd.f32 %v956_v8, %v7629_v41  ;;  %v958_v13 = vpop.f32.mrb[10].mxu1  ;;  %v6865_v8 = vld [vmem:[#allocation2 + $0x340] ss:$16 sps:$4 sm:$0xff]  }
 0x164   : > { %v1122_v38 = vmax.f32 %v778_v25, 0.0  ;;  %v1111_v16 = vmax.f32 %v955_v7, 0.0  ;;  %v959_v17 = vadd.f32 %v958_v13, %v7625_v36  ;;  %v960_v19 = vpop.f32.mrb[11].mxu1  ;;  %v6876_v13 = vld [vmem:[#allocation2 + $0x364] ss:$16 sps:$4 sm:$0xff]  }
 0x165   : > { %v1233_v43 = vpack.c.bf16 %v1121_v32, %v1117_v31  ;;  %v961_v23 = vadd.f32 %v960_v19, %v7629_v41  ;;  %v964_v45 = vpop.f32.mrb[12].mxu1 }
 0x166   : > { %v1234_v46 = vpack.c.bf16 %v1122_v38, %v1118_v37  ;;  %v781_v47 = vpop.f32.mrb[16].mxu0  ;;  %2279 = vmatpush1.bf16.msra.mxu0 %v6838_v21  ;;  %2665 = vmatpush1.bf16.msra.mxu1 %v6871_v27  ;;  %v1112_v21 = vmax.f32 %v957_v12, 0.0  ;;  %v6847_v27 = vld [vmem:[#allocation2 + $0x300] ss:$16 sps:$4 sm:$0xff]   ;;  %v1115_v30 = vmax.f32 %v959_v17, 0.0  ;;  %v966_v50 = vpop.f32.mrb[13].mxu1 }
 0x167   : > { %v782_v51 = vadd.f32 %v781_v47, %v7607_v57  ;;  %v783_v52 = vpop.f32.mrb[17].mxu0  ;;  %2280 = vmatprep.subr.bf16.mxu0 %v6843_v26  ;;  %2666 = vmatprep.subr.bf16.mxu1 %v6879_v33  ;;  %v6858_v33 = vld [vmem:[#allocation2 + $0x324] ss:$16 sps:$4 sm:$0xff]   ;;  %v1116_v35 = vmax.f32 %v961_v23, 0.0  ;;  %v968_v0 = vpop.f32.mrb[14].mxu1 }
 0x168   : > { %v784_v59 = vadd.f32 %v783_v52, %v7610_v58  ;;  %v785_v60 = vpop.f32.mrb[18].mxu0  ;;  %2137 = vmatprep.mubr.bf16.mxu0 %v1234_v46  ;;  %2523 = vmatprep.mubr.bf16.mxu1 %v1234_v46  ;;  %v7664_v39 = vpack.c.bf16 %v1115_v30, %v1111_v16  ;;  %v6867_v47 = vld [vmem:[#allocation2 + $0x344] ss:$16 sps:$4 sm:$0xff]   ;;  %v6874_v23 = vld [vmem:[#allocation2 + $0x360] ss:$16 sps:$4 sm:$0xff]  }
 0x169   : > { %v786_v62 = vadd.f32 %v785_v60, %v7607_v57  ;;  %v787_v63 = vpop.f32.mrb[19].mxu0  ;;  %2138 = vmatmul.mubr.bf16.gmra.mrb[76].mxu0 %v1233_v43  ;;  %2524 = vmatmul.mubr.bf16.gmra.mrb[76].mxu1 %v1233_v43  ;;  %v1125_v9 = vmax.f32 %v782_v51, 0.0  ;;  %v6856_v43 = vld [vmem:[#allocation2 + $0x320] ss:$16 sps:$4 sm:$0xff]   ;;  %v7667_v44 = vpack.c.bf16 %v1116_v35, %v1112_v21  ;;  %v6898_v30 = vld [vmem:[#allocation2 + $0x368] ss:$16 sps:$4 sm:$0xff]  }
 0x16a   : > { %v788_v4 = vadd.f32 %v787_v63, %v7610_v58  ;;  %2281 = vmatpush1.bf16.msra.mxu0 %v6841_v48  ;;  %2667 = vmatpush1.bf16.msra.mxu1 %v6877_v49  ;;  %v1126_v14 = vmax.f32 %v784_v59, 0.0  ;;  %v6889_v48 = vld [vmem:[#allocation2 + $0x328] ss:$16 sps:$4 sm:$0xff]   ;;  %v965_v49 = vadd.f32 %v964_v45, %v7625_v36  ;;  %v969_v63 = vadd.f32 %v968_v0, %v7625_v36  ;;  %v6906_v35 = vld [vmem:[#allocation2 + $0x38c] ss:$16 sps:$4 sm:$0xff]  }
 0x16b   : > { %v1129_v10 = vmax.f32 %v786_v62, 0.0  ;;  %2282 = vmatprep.subr.bf16.mxu0 %v6846_v53  ;;  %2668 = vmatprep.subr.bf16.mxu1 %v6882_v55  ;;  %v6897_v53 = vld [vmem:[#allocation2 + $0x34c] ss:$16 sps:$4 sm:$0xff]   ;;  %v967_v55 = vadd.f32 %v966_v50, %v7629_v41 }
 0x16c   : > { %v1130_v15 = vmax.f32 %v788_v4, 0.0  ;;  %v1119_v62 = vmax.f32 %v965_v49, 0.0 }
 0x16d   : > { %v1237_v20 = vpack.c.bf16 %v1129_v10, %v1125_v9  ;;  %v1120_v4 = vmax.f32 %v967_v55, 0.0  ;;  %v6895_v9 = vld [vmem:[#allocation2 + $0x348] ss:$16 sps:$4 sm:$0xff]   ;;  %v1123_v10 = vmax.f32 %v969_v63, 0.0 }
 0x16e   : > { %v1238_v25 = vpack.c.bf16 %v1130_v15, %v1126_v14  ;;  %v791_v26 = vpop.f32.mrb[20].mxu0  ;;  %2283 = vmatpush1.bf16.msra.mxu0 %v6844_v1  ;;  %2669 = vmatpush1.bf16.msra.mxu1 %v6880_v6  ;;  %v970_v1 = vpop.f32.mrb[15].mxu1  ;;  %v6900_v14 = vld [vmem:[#allocation2 + $0x36c] ss:$16 sps:$4 sm:$0xff]  }
 0x16f   : > { %v792_v31 = vadd.f32 %v791_v26, %v7607_v57  ;;  %v793_v32 = vpop.f32.mrb[21].mxu0  ;;  %2284 = vmatprep.subr.bf16.mxu0 %v6849_v5  ;;  %2670 = vmatprep.subr.bf16.mxu1 %v6888_v11  ;;  %v971_v5 = vadd.f32 %v970_v1, %v7629_v41  ;;  %v7676_v19 = vpack.c.bf16 %v1123_v10, %v1119_v62  ;;  %v974_v26 = vpop.f32.mrb[16].mxu1  ;;  %v6909_v62 = vld [vmem:[#allocation2 + $0x3ac] ss:$16 sps:$4 sm:$0xff]  }
 0x170   : > { %v794_v37 = vadd.f32 %v793_v32, %v7610_v58  ;;  %v795_v38 = vpop.f32.mrb[22].mxu0  ;;  %2147 = vmatprep.mubr.bf16.mxu0 %v1238_v25  ;;  %2533 = vmatprep.mubr.bf16.mxu1 %v1238_v25  ;;  %v976_v32 = vpop.f32.mrb[17].mxu1 }
 0x171   : > { %v796_v40 = vadd.f32 %v795_v38, %v7607_v57  ;;  %v797_v42 = vpop.f32.mrb[23].mxu0  ;;  %2148 = vmatmul.mubr.bf16.gmra.mrb[80].mxu0 %v1237_v20  ;;  %2534 = vmatmul.mubr.bf16.gmra.mrb[80].mxu1 %v1237_v20  ;;  %v1133_v51 = vmax.f32 %v792_v31, 0.0  ;;  %v1124_v15 = vmax.f32 %v971_v5, 0.0  ;;  %v975_v31 = vadd.f32 %v974_v26, %v7625_v36  ;;  %v978_v38 = vpop.f32.mrb[18].mxu1 }
 0x172   : > { %v798_v46 = vadd.f32 %v797_v42, %v7610_v58  ;;  %2285 = vmatpush1.bf16.msra.mxu0 %v6847_v27  ;;  %2671 = vmatpush1.bf16.msra.mxu1 %v6886_v29  ;;  %v1134_v59 = vmax.f32 %v794_v37, 0.0  ;;  %v6885_v29 = vld [vmem:[#allocation2 + $0x384] ss:$16 sps:$4 sm:$0xff]   ;;  %v977_v37 = vadd.f32 %v976_v32, %v7629_v41  ;;  %v979_v45 = vadd.f32 %v978_v38, %v7625_v36  ;;  %v6913_v38 = vld [vmem:[#allocation2 + $0x3c8] ss:$16 sps:$4 sm:$0xff]  }
 0x173   : > { %v1137_v52 = vmax.f32 %v796_v40, 0.0  ;;  %2286 = vmatprep.subr.bf16.mxu0 %v6858_v33  ;;  %2672 = vmatprep.subr.bf16.mxu1 %v6891_v34  ;;  %v7679_v25 = vpack.c.bf16 %v1124_v15, %v1120_v4 }
 0x174   : > { %v1138_v60 = vmax.f32 %v798_v46, 0.0  ;;  %v980_v46 = vpop.f32.mrb[19].mxu1  ;;  %v1131_v55 = vmax.f32 %v979_v45, 0.0  ;;  %v6912_v45 = vld [vmem:[#allocation2 + $0x3e4] ss:$16 sps:$4 sm:$0xff]  }
 0x175   : > { %v1241_v3 = vpack.c.bf16 %v1137_v52, %v1133_v51  ;;  %v981_v49 = vadd.f32 %v980_v46, %v7629_v41  ;;  %v6883_v52 = vld [vmem:[#allocation2 + $0x380] ss:$16 sps:$4 sm:$0xff]   ;;  %v6918_v46 = vld [vmem:[#allocation2 + $0x3ec] ss:$16 sps:$4 sm:$0xff]  }
 0x176   : > { %v1242_v6 = vpack.c.bf16 %v1138_v60, %v1134_v59  ;;  %v801_v7 = vpop.f32.mrb[24].mxu0  ;;  %2287 = vmatpush1.bf16.msra.mxu0 %v6856_v43  ;;  %2673 = vmatpush1.bf16.msra.mxu1 %v6889_v48  ;;  %v1127_v43 = vmax.f32 %v975_v31, 0.0  ;;  %v1128_v48 = vmax.f32 %v977_v37, 0.0  ;;  %v6894_v60 = vld [vmem:[#allocation2 + $0x3a4] ss:$16 sps:$4 sm:$0xff]  }
 0x177   : > { %v802_v11 = vadd.f32 %v801_v7, %v7607_v57  ;;  %v803_v12 = vpop.f32.mrb[25].mxu0  ;;  %2288 = vmatprep.subr.bf16.mxu0 %v6867_v47  ;;  %2674 = vmatprep.subr.bf16.mxu1 %v6897_v53  ;;  %v6904_v53 = vld [vmem:[#allocation2 + $0x388] ss:$16 sps:$4 sm:$0xff]   ;;  %v1132_v63 = vmax.f32 %v981_v49, 0.0  ;;  %v6892_v7 = vld [vmem:[#allocation2 + $0x3a0] ss:$16 sps:$4 sm:$0xff]  }
 0x178   : > { %v804_v16 = vadd.f32 %v803_v12, %v7610_v58  ;;  %v805_v17 = vpop.f32.mrb[26].mxu0  ;;  %2157 = vmatprep.mubr.bf16.mxu0 %v1242_v6  ;;  %2543 = vmatprep.mubr.bf16.mxu1 %v1242_v6  ;;  %v7688_v4 = vpack.c.bf16 %v1131_v55, %v1127_v43  ;;  %v6907_v12 = vld [vmem:[#allocation2 + $0x3a8] ss:$16 sps:$4 sm:$0xff]   ;;  %v6901_v37 = vld [vmem:[#allocation2 + $0x3c0] ss:$16 sps:$4 sm:$0xff]  }
 0x179   : > { %v806_v20 = vadd.f32 %v805_v17, %v7607_v57  ;;  %v807_v21 = vpop.f32.mrb[27].mxu0  ;;  %2158 = vmatmul.mubr.bf16.gmra.mrb[84].mxu0 %v1241_v3  ;;  %2544 = vmatmul.mubr.bf16.gmra.mrb[84].mxu1 %v1241_v3  ;;  %v1141_v33 = vmax.f32 %v802_v11, 0.0  ;;  %v6903_v11 = vld [vmem:[#allocation2 + $0x3c4] ss:$16 sps:$4 sm:$0xff]   ;;  %v6915_v17 = vld [vmem:[#allocation2 + $0x3cc] ss:$16 sps:$4 sm:$0xff]  }
 0x17a   : > { %v808_v27 = vadd.f32 %v807_v21, %v7610_v58  ;;  %2289 = vmatpush1.bf16.msra.mxu0 %v6865_v8  ;;  %2675 = vmatpush1.bf16.msra.mxu1 %v6895_v9  ;;  %v1142_v40 = vmax.f32 %v804_v16, 0.0  ;;  %v7691_v8 = vpack.c.bf16 %v1132_v63, %v1128_v48  ;;  %v984_v9 = vpop.f32.mrb[20].mxu1 }
 0x17b   : > { %v1145_v34 = vmax.f32 %v806_v20, 0.0  ;;  %2290 = vmatprep.subr.bf16.mxu0 %v6876_v13  ;;  %2676 = vmatprep.subr.bf16.mxu1 %v6900_v14  ;;  %v985_v13 = vadd.f32 %v984_v9, %v7625_v36  ;;  %v986_v14 = vpop.f32.mrb[21].mxu1 }
 0x17c   : > { %v1146_v42 = vmax.f32 %v808_v27, 0.0  ;;  %v987_v20 = vadd.f32 %v986_v14, %v7629_v41  ;;  %v988_v21 = vpop.f32.mrb[22].mxu1 }
 0x17d   : > { %v1245_v47 = vpack.c.bf16 %v1145_v34, %v1141_v33  ;;  %v1135_v27 = vmax.f32 %v985_v13, 0.0 }
 0x17e   : > { %v1246_v50 = vpack.c.bf16 %v1146_v42, %v1142_v40  ;;  %v811_v51 = vpop.f32.mrb[28].mxu0  ;;  %2291 = vmatpush1.bf16.msra.mxu0 %v6874_v23  ;;  %2677 = vmatpush1.bf16.msra.mxu1 %v6898_v30  ;;  %v990_v30 = vpop.f32.mrb[23].mxu1  ;;  %v1136_v32 = vmax.f32 %v987_v20, 0.0 }
 0x17f   : > { %v812_v0 = vadd.f32 %v811_v51, %v7607_v57  ;;  %v813_v59 = vpop.f32.mrb[29].mxu0  ;;  %2292 = vmatprep.subr.bf16.mxu0 %v6885_v29  ;;  %2678 = vmatprep.subr.bf16.mxu1 %v6906_v35  ;;  %v989_v29 = vadd.f32 %v988_v21, %v7625_v36  ;;  %v991_v33 = vadd.f32 %v990_v30, %v7629_v41  ;;  %v994_v55 = vpop.f32.mrb[24].mxu1 }
 0x180   : > { %v814_v1 = vadd.f32 %v813_v59, %v7610_v58  ;;  %v815_v3 = vpop.f32.mrb[30].mxu0  ;;  %2167 = vmatprep.mubr.bf16.mxu0 %v1246_v50  ;;  %2553 = vmatprep.mubr.bf16.mxu1 %v1246_v50  ;;  %v6910_v59 = vld [vmem:[#allocation2 + $0x3e0] ss:$16 sps:$4 sm:$0xff]   ;;  %v996_v63 = vpop.f32.mrb[25].mxu1 }
 0x181   : > { %v816_v5 = vadd.f32 %v815_v3, %v7607_v57  ;;  %v817_v6 = vpop.f32.mrb[31].mxu0  ;;  %2168 = vmatmul.mubr.bf16.gmra.mrb[88].mxu0 %v1245_v47  ;;  %2554 = vmatmul.mubr.bf16.gmra.mrb[88].mxu1 %v1245_v47  ;;  %v1149_v15 = vmax.f32 %v812_v0, 0.0  ;;  %v1139_v40 = vmax.f32 %v989_v29, 0.0  ;;  %v1140_v47 = vmax.f32 %v991_v33, 0.0 }
 0x182   : > { %v818_v10 = vadd.f32 %v817_v6, %v7610_v58  ;;  %2293 = vmatpush1.bf16.msra.mxu0 %v6883_v52  ;;  %2679 = vmatpush1.bf16.msra.mxu1 %v6904_v53  ;;  %v1150_v23 = vmax.f32 %v814_v1, 0.0  ;;  %v998_v6 = vpop.f32.mrb[26].mxu1 }
 0x183   : > { %v1153_v16 = vmax.f32 %v816_v5, 0.0  ;;  %2294 = vmatprep.subr.bf16.mxu0 %v6894_v60  ;;  %2680 = vmatprep.subr.bf16.mxu1 %v6909_v62  ;;  %v7700_v50 = vpack.c.bf16 %v1139_v40, %v1135_v27  ;;  %v7703_v53 = vpack.c.bf16 %v1140_v47, %v1136_v32  ;;  %v6916_v60 = vld [vmem:[#allocation2 + $0x3e8] ss:$16 sps:$4 sm:$0xff]   ;;  %v995_v62 = vadd.f32 %v994_v55, %v7625_v36 }
 0x184   : > { %v1154_v26 = vmax.f32 %v818_v10, 0.0  ;;  %v997_v5 = vadd.f32 %v996_v63, %v7629_v41 }
 0x185   : > { %v1249_v31 = vpack.c.bf16 %v1153_v16, %v1149_v15  ;;  %v1143_v10 = vmax.f32 %v995_v62, 0.0 }
 0x186   : > { %v1250_v34 = vpack.c.bf16 %v1154_v26, %v1150_v23  ;;  %v821_v35 = vpop.f32.mrb[32].mxu0  ;;  %2295 = vmatpush1.bf16.msra.mxu0 %v6892_v7  ;;  %2681 = vmatpush1.bf16.msra.mxu1 %v6907_v12  ;;  %v1000_v12 = vpop.f32.mrb[27].mxu1  ;;  %v1144_v14 = vmax.f32 %v997_v5, 0.0 }
 0x187   : > { %v822_v42 = vadd.f32 %v821_v35, %v7607_v57  ;;  %v823_v43 = vpop.f32.mrb[33].mxu0  ;;  %2296 = vmatprep.subr.bf16.mxu0 %v6903_v11  ;;  %2682 = vmatprep.subr.bf16.mxu1 %v6915_v17  ;;  %v999_v11 = vadd.f32 %v998_v6, %v7625_v36  ;;  %v1001_v15 = vadd.f32 %v1000_v12, %v7629_v41 }
 0x188   : > { %v824_v48 = vadd.f32 %v823_v43, %v7610_v58  ;;  %v825_v49 = vpop.f32.mrb[34].mxu0  ;;  %2177 = vmatprep.mubr.bf16.mxu0 %v1250_v34  ;;  %2563 = vmatprep.mubr.bf16.mxu1 %v1250_v34  ;;  %v1004_v34 = vpop.f32.mrb[28].mxu1 }
 0x189   : > { %v826_v51 = vadd.f32 %v825_v49, %v7607_v57  ;;  %v827_v52 = vpop.f32.mrb[35].mxu0  ;;  %2178 = vmatmul.mubr.bf16.gmra.mrb[92].mxu0 %v1249_v31  ;;  %2564 = vmatmul.mubr.bf16.gmra.mrb[92].mxu1 %v1249_v31  ;;  %v1157_v1 = vmax.f32 %v822_v42, 0.0  ;;  %v1147_v20 = vmax.f32 %v999_v11, 0.0  ;;  %v1148_v26 = vmax.f32 %v1001_v15, 0.0 }
 0x18a   : > { %v828_v0 = vadd.f32 %v827_v52, %v7610_v58  ;;  %2297 = vmatpush1.bf16.msra.mxu0 %v6901_v37  ;;  %2683 = vmatpush1.bf16.msra.mxu1 %v6913_v38  ;;  %v1158_v7 = vmax.f32 %v824_v48, 0.0  ;;  %v1005_v37 = vadd.f32 %v1004_v34, %v7625_v36  ;;  %v1006_v38 = vpop.f32.mrb[29].mxu1 }
 0x18b   : > { %v1161_v3 = vmax.f32 %v826_v51, 0.0  ;;  %2298 = vmatprep.subr.bf16.mxu0 %v6912_v45  ;;  %2684 = vmatprep.subr.bf16.mxu1 %v6918_v46  ;;  %v7712_v30 = vpack.c.bf16 %v1147_v20, %v1143_v10  ;;  %v7715_v33 = vpack.c.bf16 %v1148_v26, %v1144_v14  ;;  %v1007_v43 = vadd.f32 %v1006_v38, %v7629_v41  ;;  %v1008_v45 = vpop.f32.mrb[30].mxu1 }
 0x18c   : > { %v1162_v9 = vmax.f32 %v828_v0, 0.0  ;;  %v1151_v48 = vmax.f32 %v1005_v37, 0.0  ;;  %v1009_v49 = vadd.f32 %v1008_v45, %v7625_v36  ;;  %v1010_v51 = vpop.f32.mrb[31].mxu1 }
 0x18d   : > { %v1253_v13 = vpack.c.bf16 %v1161_v3, %v1157_v1  ;;  %v1152_v55 = vmax.f32 %v1007_v43, 0.0  ;;  %v1011_v0 = vadd.f32 %v1010_v51, %v7629_v41  ;;  %v1014_v12 = vpop.f32.mrb[32].mxu1 }
 0x18e   : > { %v1254_v16 = vpack.c.bf16 %v1162_v9, %v1158_v7  ;;  %v831_v17 = vpop.f32.mrb[36].mxu0  ;;  %2299 = vmatpush1.bf16.msra.mxu0 %v6910_v59  ;;  %2685 = vmatpush1.bf16.msra.mxu1 %v6916_v60  ;;  %v1155_v62 = vmax.f32 %v1009_v49, 0.0  ;;  %v1015_v14 = vadd.f32 %v1014_v12, %v7625_v36  ;;  %v1016_v15 = vpop.f32.mrb[33].mxu1 }
 0x18f   : > { %v832_v21 = vadd.f32 %v831_v17, %v7607_v57  ;;  %v833_v23 = vpop.f32.mrb[37].mxu0  ;;  %v1156_v3 = vmax.f32 %v1011_v0, 0.0  ;;  %v1017_v20 = vadd.f32 %v1016_v15, %v7629_v41 }
 0x190   : > { %v834_v27 = vadd.f32 %v833_v23, %v7610_v58  ;;  %v835_v29 = vpop.f32.mrb[38].mxu0  ;;  %2187 = vmatprep.mubr.bf16.mxu0 %v1254_v16  ;;  %2573 = vmatprep.mubr.bf16.mxu1 %v1254_v16  ;;  %v7724_v7 = vpack.c.bf16 %v1155_v62, %v1151_v48 }
 0x191   : > { %v836_v31 = vadd.f32 %v835_v29, %v7607_v57  ;;  %v837_v32 = vpop.f32.mrb[39].mxu0  ;;  %2188 = vmatmul.mubr.bf16.gmra.mrb[96].mxu0 %v1253_v13  ;;  %2574 = vmatmul.mubr.bf16.gmra.mrb[96].mxu1 %v1253_v13  ;;  %v1165_v40 = vmax.f32 %v832_v21, 0.0  ;;  %v7727_v11 = vpack.c.bf16 %v1156_v3, %v1152_v55  ;;  %v1018_v21 = vpop.f32.mrb[34].mxu1  ;;  %v1160_v34 = vmax.f32 %v1017_v20, 0.0 }
 0x192   : > { %v838_v35 = vadd.f32 %v837_v32, %v7610_v58  ;;  %v1166_v46 = vmax.f32 %v834_v27, 0.0  ;;  %v1159_v27 = vmax.f32 %v1015_v14, 0.0  ;;  %v1019_v29 = vadd.f32 %v1018_v21, %v7625_v36 }
 0x193   : > { %v1169_v42 = vmax.f32 %v836_v31, 0.0  ;;  %v1020_v31 = vpop.f32.mrb[35].mxu1 }
 0x194   : > { %v1170_v47 = vmax.f32 %v838_v35, 0.0  ;;  %v1021_v35 = vadd.f32 %v1020_v31, %v7629_v41  ;;  %v1024_v55 = vpop.f32.mrb[36].mxu1 }
 0x195   : > { %v1257_v52 = vpack.c.bf16 %v1169_v42, %v1165_v40  ;;  %v1163_v40 = vmax.f32 %v1019_v29, 0.0 }
 0x196   : > { %v1258_v59 = vpack.c.bf16 %v1170_v47, %v1166_v46  ;;  %v841_v60 = vpop.f32.mrb[40].mxu0  ;;  %v1164_v45 = vmax.f32 %v1021_v35, 0.0 }
 0x197   : > { %v842_v63 = vadd.f32 %v841_v60, %v7607_v57  ;;  %v843_v1 = vpop.f32.mrb[41].mxu0  ;;  %v7736_v48 = vpack.c.bf16 %v1163_v40, %v1159_v27  ;;  %v1026_v60 = vpop.f32.mrb[37].mxu1 }
 0x198   : > { %v844_v5 = vadd.f32 %v843_v1, %v7610_v58  ;;  %v845_v6 = vpop.f32.mrb[42].mxu0  ;;  %2197 = vmatprep.mubr.bf16.mxu0 %v1258_v59  ;;  %2583 = vmatprep.mubr.bf16.mxu1 %v1258_v59  ;;  %v1025_v59 = vadd.f32 %v1024_v55, %v7625_v36  ;;  %v1027_v1 = vadd.f32 %v1026_v60, %v7629_v41  ;;  %v1028_v3 = vpop.f32.mrb[38].mxu1 }
 0x199   : > { %v846_v9 = vadd.f32 %v845_v6, %v7607_v57  ;;  %v847_v10 = vpop.f32.mrb[43].mxu0  ;;  %2198 = vmatmul.mubr.bf16.gmra.mrb[100].mxu0 %v1257_v52  ;;  %2584 = vmatmul.mubr.bf16.gmra.mrb[100].mxu1 %v1257_v52  ;;  %v1173_v16 = vmax.f32 %v842_v63, 0.0  ;;  %v7739_v52 = vpack.c.bf16 %v1164_v45, %v1160_v34  ;;  %v1030_v12 = vpop.f32.mrb[39].mxu1 }
 0x19a   : > { %v848_v13 = vadd.f32 %v847_v10, %v7610_v58  ;;  %v1174_v23 = vmax.f32 %v844_v5, 0.0  ;;  %v1029_v10 = vadd.f32 %v1028_v3, %v7625_v36  ;;  %v1168_v14 = vmax.f32 %v1027_v1, 0.0 }
 0x19b   : > { %v1177_v17 = vmax.f32 %v846_v9, 0.0  ;;  %v1167_v9 = vmax.f32 %v1025_v59, 0.0  ;;  %v1031_v15 = vadd.f32 %v1030_v12, %v7629_v41 }
 0x19c   : > { %v1178_v26 = vmax.f32 %v848_v13, 0.0  ;;  %v1171_v20 = vmax.f32 %v1029_v10, 0.0 }
 0x19d   : > { %v1261_v32 = vpack.c.bf16 %v1177_v17, %v1173_v16 }
 0x19e   : > { %v1262_v37 = vpack.c.bf16 %v1178_v26, %v1174_v23  ;;  %v851_v38 = vpop.f32.mrb[44].mxu0  ;;  %v1172_v26 = vmax.f32 %v1031_v15, 0.0  ;;  %v7748_v31 = vpack.c.bf16 %v1171_v20, %v1167_v9 }
 0x19f   : > { %v852_v42 = vadd.f32 %v851_v38, %v7607_v57  ;;  %v853_v43 = vpop.f32.mrb[45].mxu0 }
 0x1a0   : > { %v854_v46 = vadd.f32 %v853_v43, %v7610_v58  ;;  %v855_v47 = vpop.f32.mrb[46].mxu0  ;;  %2207 = vmatprep.mubr.bf16.mxu0 %v1262_v37  ;;  %2593 = vmatprep.mubr.bf16.mxu1 %v1262_v37  ;;  %v7751_v35 = vpack.c.bf16 %v1172_v26, %v1168_v14  ;;  %v1034_v37 = vpop.f32.mrb[40].mxu1  ;;  %v6921_v43 = vld [vmem:[#allocation5 + $0x4] ss:$16 sps:$4 sm:$0xff]  }
 0x1a1   : > { %v856_v49 = vadd.f32 %v855_v47, %v7607_v57  ;;  %v857_v51 = vpop.f32.mrb[47].mxu0  ;;  %2208 = vmatmul.mubr.bf16.gmra.mrb[104].mxu0 %v1261_v32  ;;  %2594 = vmatmul.mubr.bf16.gmra.mrb[104].mxu1 %v1261_v32  ;;  %v1181_v62 = vmax.f32 %v852_v42, 0.0  ;;  %v1035_v40 = vadd.f32 %v1034_v37, %v7625_v36  ;;  %v1036_v42 = vpop.f32.mrb[41].mxu1 }
 0x1a2   : > { %v858_v0 = vadd.f32 %v857_v51, %v7610_v58  ;;  %v1182_v5 = vmax.f32 %v854_v46, 0.0  ;;  %v1037_v47 = vadd.f32 %v1036_v42, %v7629_v41  ;;  %v6924_v51 = vld [vmem:[#allocation5 + $0xc] ss:$16 sps:$4 sm:$0xff]   ;;  %3829 = vmatprep.subr.bf16.mxu0 %v6921_v43 }
 0x1a3   : > { %v1185_v63 = vmax.f32 %v856_v49, 0.0  ;;  %v1038_v49 = vpop.f32.mrb[42].mxu1  ;;  %v1175_v59 = vmax.f32 %v1035_v40, 0.0  ;;  %4215 = vmatprep.subr.bf16.mxu1 %v6924_v51 }
 0x1a4   : > { %v1186_v6 = vmax.f32 %v858_v0, 0.0  ;;  %v1039_v60 = vadd.f32 %v1038_v49, %v7625_v36  ;;  %v1176_v1 = vmax.f32 %v1037_v47, 0.0 }
 0x1a5   : > { %v1265_v13 = vpack.c.bf16 %v1185_v63, %v1181_v62  ;;  %v1040_v62 = vpop.f32.mrb[43].mxu1 }
 0x1a6   : > { %v1266_v16 = vpack.c.bf16 %v1186_v6, %v1182_v5  ;;  %v861_v17 = vpop.f32.mrb[48].mxu0  ;;  %v1041_v3 = vadd.f32 %v1040_v62, %v7629_v41  ;;  %v1179_v9 = vmax.f32 %v1039_v60, 0.0 }
 0x1a7   : > { %v862_v21 = vadd.f32 %v861_v17, %v7607_v57  ;;  %v863_v23 = vpop.f32.mrb[49].mxu0 }
 0x1a8   : > { %v864_v27 = vadd.f32 %v863_v23, %v7610_v58  ;;  %v865_v29 = vpop.f32.mrb[50].mxu0  ;;  %2217 = vmatprep.mubr.bf16.mxu0 %v1266_v16  ;;  %2603 = vmatprep.mubr.bf16.mxu1 %v1266_v16  ;;  %v7760_v16 = vpack.c.bf16 %v1179_v9, %v1175_v59  ;;  %v1044_v23 = vpop.f32.mrb[44].mxu1 }
 0x1a9   : > { %v866_v32 = vadd.f32 %v865_v29, %v7607_v57  ;;  %v867_v34 = vpop.f32.mrb[51].mxu0  ;;  %2218 = vmatmul.mubr.bf16.gmra.mrb[108].mxu0 %v1265_v13  ;;  %2604 = vmatmul.mubr.bf16.gmra.mrb[108].mxu1 %v1265_v13  ;;  %v1189_v45 = vmax.f32 %v862_v21, 0.0  ;;  %v1180_v13 = vmax.f32 %v1041_v3, 0.0  ;;  %v1046_v29 = vpop.f32.mrb[45].mxu1 }
 0x1aa   : > { %v868_v38 = vadd.f32 %v867_v34, %v7610_v58  ;;  %v1190_v55 = vmax.f32 %v864_v27, 0.0  ;;  %v1045_v27 = vadd.f32 %v1044_v23, %v7625_v36  ;;  %v1047_v37 = vadd.f32 %v1046_v29, %v7629_v41 }
 0x1ab   : > { %v1193_v46 = vmax.f32 %v866_v32, 0.0  ;;  %v7763_v21 = vpack.c.bf16 %v1180_v13, %v1176_v1 }
 0x1ac   : > { %v1194_v0 = vmax.f32 %v868_v38, 0.0  ;;  %v1048_v38 = vpop.f32.mrb[46].mxu1  ;;  %v1183_v43 = vmax.f32 %v1045_v27, 0.0  ;;  %v1184_v49 = vmax.f32 %v1047_v37, 0.0 }
 0x1ad   : > { %v1269_v63 = vpack.c.bf16 %v1193_v46, %v1189_v45  ;;  %v1049_v45 = vadd.f32 %v1048_v38, %v7625_v36  ;;  %v1050_v46 = vpop.f32.mrb[47].mxu1 }
 0x1ae   : > { %v1270_v5 = vpack.c.bf16 %v1194_v0, %v1190_v55  ;;  %v871_v6 = vpop.f32.mrb[52].mxu0  ;;  %v1051_v51 = vadd.f32 %v1050_v46, %v7629_v41 }
 0x1af   : > { %v872_v10 = vadd.f32 %v871_v6, %v7607_v57  ;;  %v873_v12 = vpop.f32.mrb[53].mxu0  ;;  %v1187_v59 = vmax.f32 %v1049_v45, 0.0 }
 0x1b0   : > { %v874_v14 = vadd.f32 %v873_v12, %v7610_v58  ;;  %v875_v15 = vpop.f32.mrb[54].mxu0  ;;  %2227 = vmatprep.mubr.bf16.mxu0 %v1270_v5  ;;  %2613 = vmatprep.mubr.bf16.mxu1 %v1270_v5  ;;  %v1054_v12 = vpop.f32.mrb[48].mxu1 }
 0x1b1   : > { %v876_v17 = vadd.f32 %v875_v15, %v7607_v57  ;;  %v877_v20 = vpop.f32.mrb[55].mxu0  ;;  %2228 = vmatmul.mubr.bf16.gmra.mrb[112].mxu0 %v1269_v63  ;;  %2614 = vmatmul.mubr.bf16.gmra.mrb[112].mxu1 %v1269_v63  ;;  %v1197_v32 = vmax.f32 %v872_v10, 0.0  ;;  %v1188_v63 = vmax.f32 %v1051_v51, 0.0  ;;  %v7772_v5 = vpack.c.bf16 %v1187_v59, %v1183_v43  ;;  %v1056_v15 = vpop.f32.mrb[49].mxu1 }
 0x1b2   : > { %v878_v26 = vadd.f32 %v877_v20, %v7610_v58  ;;  %v1198_v40 = vmax.f32 %v874_v14, 0.0  ;;  %v1055_v14 = vadd.f32 %v1054_v12, %v7625_v36  ;;  %v1057_v23 = vadd.f32 %v1056_v15, %v7629_v41 }
 0x1b3   : > { %v1201_v34 = vmax.f32 %v876_v17, 0.0  ;;  %v7775_v10 = vpack.c.bf16 %v1188_v63, %v1184_v49 }
 0x1b4   : > { %v1202_v42 = vmax.f32 %v878_v26, 0.0  ;;  %v1058_v26 = vpop.f32.mrb[50].mxu1 }
 0x1b5   : > { %v1273_v47 = vpack.c.bf16 %v1201_v34, %v1197_v32  ;;  %v1191_v32 = vmax.f32 %v1055_v14, 0.0  ;;  %v1059_v34 = vadd.f32 %v1058_v26, %v7625_v36  ;;  %v1060_v37 = vpop.f32.mrb[51].mxu1 }
 0x1b6   : > { %v1274_v55 = vpack.c.bf16 %v1202_v42, %v1198_v40  ;;  %v881_v0 = vpop.f32.mrb[56].mxu0  ;;  %v1192_v40 = vmax.f32 %v1057_v23, 0.0  ;;  %v1061_v42 = vadd.f32 %v1060_v37, %v7629_v41 }
 0x1b7   : > { %v882_v60 = vadd.f32 %v881_v0, %v7607_v57  ;;  %v883_v62 = vpop.f32.mrb[57].mxu0  ;;  %v1195_v46 = vmax.f32 %v1059_v34, 0.0 }
 0x1b8   : > { %v884_v1 = vadd.f32 %v883_v62, %v7610_v58  ;;  %v885_v3 = vpop.f32.mrb[58].mxu0  ;;  %2237 = vmatprep.mubr.bf16.mxu0 %v1274_v55  ;;  %2623 = vmatprep.mubr.bf16.mxu1 %v1274_v55  ;;  %v1196_v51 = vmax.f32 %v1061_v42, 0.0 }
 0x1b9   : > { %v886_v6 = vadd.f32 %v885_v3, %v7607_v57  ;;  %v887_v9 = vpop.f32.mrb[59].mxu0  ;;  %2238 = vmatmul.mubr.bf16.gmra.mrb[116].mxu0 %v1273_v47  ;;  %2624 = vmatmul.mubr.bf16.gmra.mrb[116].mxu1 %v1273_v47  ;;  %v1205_v17 = vmax.f32 %v882_v60, 0.0  ;;  %v7784_v59 = vpack.c.bf16 %v1195_v46, %v1191_v32 }
 0x1ba   : > { %v888_v13 = vadd.f32 %v887_v9, %v7610_v58  ;;  %v1206_v27 = vmax.f32 %v884_v1, 0.0  ;;  %v7787_v63 = vpack.c.bf16 %v1196_v51, %v1192_v40  ;;  %v1064_v1 = vpop.f32.mrb[52].mxu1 }
 0x1bb   : > { %v1209_v20 = vmax.f32 %v886_v6, 0.0  ;;  %v1065_v6 = vadd.f32 %v1064_v1, %v7625_v36  ;;  %v1066_v9 = vpop.f32.mrb[53].mxu1  ;;  %v6919_v1 = vld [vmem:[#allocation5] ss:$16 sps:$4 sm:$0xff]  }
 0x1bc   : > { %v1210_v29 = vmax.f32 %v888_v13, 0.0  ;;  %v1067_v14 = vadd.f32 %v1066_v9, %v7629_v41  ;;  %v1068_v15 = vpop.f32.mrb[54].mxu1 }
 0x1bd   : > { %v1277_v38 = vpack.c.bf16 %v1209_v20, %v1205_v17  ;;  %v1199_v23 = vmax.f32 %v1065_v6, 0.0  ;;  %v1070_v26 = vpop.f32.mrb[55].mxu1 }
 0x1be   : > { %v1278_v43 = vpack.c.bf16 %v1210_v29, %v1206_v27  ;;  %v891_v45 = vpop.f32.mrb[60].mxu0  ;;  %v1200_v29 = vmax.f32 %v1067_v14, 0.0  ;;  %v1071_v32 = vadd.f32 %v1070_v26, %v7629_v41  ;;  %v1074_v42 = vpop.f32.mrb[56].mxu1 }
 0x1bf   : > { %v892_v47 = vadd.f32 %v891_v45, %v7607_v57  ;;  %v893_v49 = vpop.f32.mrb[61].mxu0  ;;  %v1076_v45 = vpop.f32.mrb[57].mxu1 }
 0x1c0   : > { %v894_v55 = vadd.f32 %v893_v49, %v7610_v58  ;;  %v895_v0 = vpop.f32.mrb[62].mxu0  ;;  %2247 = vmatprep.mubr.bf16.mxu0 %v1278_v43  ;;  %2633 = vmatprep.mubr.bf16.mxu1 %v1278_v43  ;;  %v1204_v37 = vmax.f32 %v1071_v32, 0.0  ;;  %v1075_v43 = vadd.f32 %v1074_v42, %v7625_v36  ;;  %v1077_v46 = vadd.f32 %v1076_v45, %v7629_v41  ;;  %v6933_v32 = vld [vmem:[#allocation5 + $0x44] ss:$16 sps:$4 sm:$0xff]   ;;  %v6934_v45 = vld [vmem:[#allocation5 + $0x48] ss:$16 sps:$4 sm:$0xff]  }
 0x1c1   : > { %v896_v60 = vadd.f32 %v895_v0, %v7607_v57  ;;  %v897_v62 = vpop.f32.mrb[63].mxu0  ;;  %2248 = vmatmul.mubr.bf16.gmra.mrb[120].mxu0 %v1277_v38  ;;  %2634 = vmatmul.mubr.bf16.gmra.mrb[120].mxu1 %v1277_v38  ;;  %v1213_v12 = vmax.f32 %v892_v47, 0.0  ;;  %v1069_v57 = vadd.f32 %v1068_v15, %v7625_v36  ;;  %v1078_v47 = vpop.f32.mrb[58].mxu1 }
 0x1c2   : > { %v898_v3 = vadd.f32 %v897_v62, %v7610_v58  ;;  %v1214_v17 = vmax.f32 %v894_v55, 0.0  ;;  %v7796_v40 = vpack.c.bf16 %v1204_v37, %v1200_v29  ;;  %v1207_v49 = vmax.f32 %v1075_v43, 0.0  ;;  %v1080_v55 = vpop.f32.mrb[59].mxu1  ;;  %v6931_v43 = vld [vmem:[#allocation5 + $0x40] ss:$16 sps:$4 sm:$0xff]  }
 0x1c3   : > { %v1217_v13 = vmax.f32 %v896_v60, 0.0  ;;  %v1203_v58 = vmax.f32 %v1069_v57, 0.0  ;;  %v1079_v51 = vadd.f32 %v1078_v47, %v7625_v36  ;;  %v1208_v0 = vmax.f32 %v1077_v46, 0.0  ;;  %v1084_v14 = vpop.f32.mrb[60].mxu1  ;;  %v6939_v47 = vld [vmem:[#allocation5 + $0x64] ss:$16 sps:$4 sm:$0xff]  }
 0x1c4   : > { %v1218_v20 = vmax.f32 %v898_v3, 0.0  ;;  %v1081_v60 = vadd.f32 %v1080_v55, %v7629_v41  ;;  %v6922_v3 = vld [vmem:[#allocation5 + $0x8] ss:$16 sps:$4 sm:$0xff]   ;;  %v1085_v15 = vadd.f32 %v1084_v14, %v7625_v36  ;;  %v6945_v55 = vld [vmem:[#allocation5 + $0x84] ss:$16 sps:$4 sm:$0xff]  }
 0x1c5   : > { %v1281_v27 = vpack.c.bf16 %v1217_v13, %v1213_v12  ;;  %v7794_v38 = vpack.c.bf16 %v1203_v58, %v1199_v23  ;;  %v1211_v62 = vmax.f32 %v1079_v51, 0.0  ;;  %v6930_v12 = vld [vmem:[#allocation5 + $0x2c] ss:$16 sps:$4 sm:$0xff]   ;;  %v6928_v23 = vld [vmem:[#allocation5 + $0x28] ss:$16 sps:$4 sm:$0xff]  }
 0x1c6   : > { %v1282_v34 = vpack.c.bf16 %v1218_v20, %v1214_v17  ;;  %v1212_v6 = vmax.f32 %v1081_v60, 0.0  ;;  %v1086_v17 = vpop.f32.mrb[61].mxu1  ;;  %v6925_v20 = vld [vmem:[#allocation5 + $0x20] ss:$16 sps:$4 sm:$0xff]   ;;  %v6940_v51 = vld [vmem:[#allocation5 + $0x68] ss:$16 sps:$4 sm:$0xff]  }
 0x1c7   : > { %v7804_v9 = vpack.c.bf16 %v1211_v62, %v1207_v49  ;;  %v1087_v57 = vadd.f32 %v1086_v17, %v7629_v41  ;;  %v1088_v26 = vpop.f32.mrb[62].mxu1  ;;  %v6942_v49 = vld [vmem:[#allocation5 + $0x6c] ss:$16 sps:$4 sm:$0xff]   ;;  %v6943_v60 = vld [vmem:[#allocation5 + $0x80] ss:$16 sps:$4 sm:$0xff]  }
 0x1c8   : > { %2257 = vmatprep.mubr.bf16.mxu0 %v1282_v34  ;;  %2643 = vmatprep.mubr.bf16.mxu1 %v1282_v34  ;;  %v7808_v13 = vpack.c.bf16 %v1212_v6, %v1208_v0  ;;  %v1090_v29 = vpop.f32.mrb[63].mxu1  ;;  %v6936_v34 = vld [vmem:[#allocation5 + $0x4c] ss:$16 sps:$4 sm:$0xff]   ;;  %v6946_v62 = vld [vmem:[#allocation5 + $0x88] ss:$16 sps:$4 sm:$0xff]  }
 0x1c9   : > { %2258 = vmatmul.mubr.bf16.gmra.mrb[124].mxu0 %v1281_v27  ;;  %2644 = vmatmul.mubr.bf16.gmra.mrb[124].mxu1 %v1281_v27  ;;  %v1089_v27 = vadd.f32 %v1088_v26, %v7625_v36  ;;  %v1216_v58 = vmax.f32 %v1087_v57, 0.0  ;;  %v6948_v0 = vld [vmem:[#allocation5 + $0x8c] ss:$16 sps:$4 sm:$0xff]   ;;  %v6957_v6 = vld [vmem:[#allocation5 + $0xc4] ss:$16 sps:$4 sm:$0xff]  }
 0x1ca   : > { %2300 = vmatprep.mubr.bf16.mxu0 %v7643_v22  ;;  %2686 = vmatprep.mubr.bf16.mxu1 %v7643_v22  ;;  %v6927_v22 = vld [vmem:[#allocation5 + $0x24] ss:$16 sps:$4 sm:$0xff]   ;;  %v6958_v14 = vld [vmem:[#allocation5 + $0xc8] ss:$16 sps:$4 sm:$0xff]   ;;  %v6967_v57 = vld [vmem:[#allocation5 + $0x100] ss:$16 sps:$4 sm:$0xff]  }
 0x1cb   : > { %v1219_v37 = vmax.f32 %v1089_v27, 0.0  ;;  %v6964_v17 = vld [vmem:[#allocation5 + $0xe8] ss:$16 sps:$4 sm:$0xff]  }
 0x1cc   : > { %v6970_v26 = vld [vmem:[#allocation5 + $0x108] ss:$16 sps:$4 sm:$0xff]  }
 0x1cd   : > { %v6976_v27 = vld [vmem:[#allocation5 + $0x128] ss:$16 sps:$4 sm:$0xff]  }
 0x1d1   : > { %2301 = vmatmul.mubr.bf16.vlgmr.msra.gmra.mrb[64].mxu0 %v7640_v18  ;;  %2687 = vmatmul.mubr.bf16.vlgmr.msra.gmra.mrb[64].mxu1 %v7640_v18  ;;  %v1215_v18 = vmax.f32 %v1085_v15, 0.0  ;;  %v6963_v15 = vld [vmem:[#allocation5 + $0xe4] ss:$16 sps:$4 sm:$0xff]  }
 0x1d2   : > { %2310 = vmatprep.mubr.bf16.mxu0 %v7655_v2  ;;  %2696 = vmatprep.mubr.bf16.mxu1 %v7655_v2  ;;  %v1091_v2 = vadd.f32 %v1090_v29, %v7629_v41  ;;  %v6937_v41 = vld [vmem:[#allocation5 + $0x60] ss:$16 sps:$4 sm:$0xff]   ;;  %v6981_v29 = vld [vmem:[#allocation5 + $0x144] ss:$16 sps:$4 sm:$0xff]  }
 0x1d3   : > { %3830 = vmatpush1.bf16.msra.mxu0 %v6919_v1  ;;  %4216 = vmatpush1.bf16.msra.mxu1 %v6922_v3  ;;  %v7816_v46 = vpack.c.bf16 %v1219_v37, %v1215_v18  ;;  %v6954_v1 = vld [vmem:[#allocation5 + $0xac] ss:$16 sps:$4 sm:$0xff]   ;;  %v6952_v3 = vld [vmem:[#allocation5 + $0xa8] ss:$16 sps:$4 sm:$0xff]   ;;  %v6975_v18 = vld [vmem:[#allocation5 + $0x124] ss:$16 sps:$4 sm:$0xff]  }
 0x1d4   : > { %3831 = vmatprep.subr.bf16.mxu0 %v6927_v22  ;;  %4217 = vmatprep.subr.bf16.mxu1 %v6930_v12  ;;  %v1220_v42 = vmax.f32 %v1091_v2, 0.0  ;;  %v6960_v22 = vld [vmem:[#allocation5 + $0xcc] ss:$16 sps:$4 sm:$0xff]   ;;  %v6955_v12 = vld [vmem:[#allocation5 + $0xc0] ss:$16 sps:$4 sm:$0xff]  }
 0x1d5   : > { %v6987_v2 = vld [vmem:[#allocation5 + $0x164] ss:$16 sps:$4 sm:$0xff]   ;;  %v6988_v37 = vld [vmem:[#allocation5 + $0x168] ss:$16 sps:$4 sm:$0xff]  }
 0x1d6   : > { %v7820_v36 = vpack.c.bf16 %v1220_v42, %v1216_v58  ;;  %v6982_v58 = vld [vmem:[#allocation5 + $0x148] ss:$16 sps:$4 sm:$0xff]   ;;  %v6993_v42 = vld [vmem:[#allocation5 + $0x184] ss:$16 sps:$4 sm:$0xff]  }
 0x1d7   : > { %3832 = vmatpush1.bf16.msra.mxu0 %v6925_v20  ;;  %4218 = vmatpush1.bf16.msra.mxu1 %v6928_v23  ;;  %v6969_v20 = vld [vmem:[#allocation5 + $0x104] ss:$16 sps:$4 sm:$0xff]   ;;  %v6972_v23 = vld [vmem:[#allocation5 + $0x10c] ss:$16 sps:$4 sm:$0xff]  }
 0x1d8   : > { %3833 = vmatprep.subr.bf16.mxu0 %v6933_v32  ;;  %4219 = vmatprep.subr.bf16.mxu1 %v6936_v34  ;;  %v6984_v32 = vld [vmem:[#allocation5 + $0x14c] ss:$16 sps:$4 sm:$0xff]   ;;  %v6979_v34 = vld [vmem:[#allocation5 + $0x140] ss:$16 sps:$4 sm:$0xff]  }
 0x1d9   : > { %2311 = vmatmul.mubr.bf16.gmra.mrb[68].mxu0 %v7652_v61  ;;  %2697 = vmatmul.mubr.bf16.gmra.mrb[68].mxu1 %v7652_v61  ;;  %v6951_v61 = vld [vmem:[#allocation5 + $0xa4] ss:$16 sps:$4 sm:$0xff]  }
 0x1da   : > { %2320 = vmatprep.mubr.bf16.mxu0 %v7667_v44  ;;  %2706 = vmatprep.mubr.bf16.mxu1 %v7667_v44  ;;  %v6949_v44 = vld [vmem:[#allocation5 + $0xa0] ss:$16 sps:$4 sm:$0xff]  }
 0x1db   : > { %3834 = vmatpush1.bf16.msra.mxu0 %v6931_v43  ;;  %4220 = vmatpush1.bf16.msra.mxu1 %v6934_v45  ;;  %v6996_v43 = vld [vmem:[#allocation5 + $0x18c] ss:$16 sps:$4 sm:$0xff]   ;;  %v6991_v45 = vld [vmem:[#allocation5 + $0x180] ss:$16 sps:$4 sm:$0xff]  }
 0x1dc   : > { %3835 = vmatprep.subr.bf16.mxu0 %v6939_v47  ;;  %4221 = vmatprep.subr.bf16.mxu1 %v6942_v49  ;;  %v6994_v47 = vld [vmem:[#allocation5 + $0x188] ss:$16 sps:$4 sm:$0xff]   ;;  %v6999_v49 = vld [vmem:[#allocation5 + $0x1a4] ss:$16 sps:$4 sm:$0xff]  }
 0x1df   : > { %3836 = vmatpush1.bf16.msra.mxu0 %v6937_v41  ;;  %4222 = vmatpush1.bf16.msra.mxu1 %v6940_v51  ;;  %v7000_v41 = vld [vmem:[#allocation5 + $0x1a8] ss:$16 sps:$4 sm:$0xff]   ;;  %v7005_v51 = vld [vmem:[#allocation5 + $0x1c4] ss:$16 sps:$4 sm:$0xff]  }
 0x1e0   : > { %3837 = vmatprep.subr.bf16.mxu0 %v6945_v55  ;;  %4223 = vmatprep.subr.bf16.mxu1 %v6948_v0  ;;  %v7008_v55 = vld [vmem:[#allocation5 + $0x1cc] ss:$16 sps:$4 sm:$0xff]   ;;  %v7003_v0 = vld [vmem:[#allocation5 + $0x1c0] ss:$16 sps:$4 sm:$0xff]  }
 0x1e1   : > { %2321 = vmatmul.mubr.bf16.gmra.mrb[72].mxu0 %v7664_v39  ;;  %2707 = vmatmul.mubr.bf16.gmra.mrb[72].mxu1 %v7664_v39  ;;  %v6966_v39 = vld [vmem:[#allocation5 + $0xec] ss:$16 sps:$4 sm:$0xff]  }
 0x1e2   : > { %2330 = vmatprep.mubr.bf16.mxu0 %v7679_v25  ;;  %2716 = vmatprep.mubr.bf16.mxu1 %v7679_v25  ;;  %v6961_v25 = vld [vmem:[#allocation5 + $0xe0] ss:$16 sps:$4 sm:$0xff]  }
 0x1e3   : > { %3838 = vmatpush1.bf16.msra.mxu0 %v6943_v60  ;;  %4224 = vmatpush1.bf16.msra.mxu1 %v6946_v62  ;;  %v7006_v60 = vld [vmem:[#allocation5 + $0x1c8] ss:$16 sps:$4 sm:$0xff]  }
 0x1e4   : > { %3839 = vmatprep.subr.bf16.mxu0 %v6951_v61  ;;  %4225 = vmatprep.subr.bf16.mxu1 %v6954_v1 }
 0x1e7   : > { %3840 = vmatpush1.bf16.msra.mxu0 %v6949_v44  ;;  %4226 = vmatpush1.bf16.msra.mxu1 %v6952_v3 }
 0x1e8   : > { %3841 = vmatprep.subr.bf16.mxu0 %v6957_v6  ;;  %4227 = vmatprep.subr.bf16.mxu1 %v6960_v22 }
 0x1e9   : > { %2331 = vmatmul.mubr.bf16.gmra.mrb[76].mxu0 %v7676_v19  ;;  %2717 = vmatmul.mubr.bf16.gmra.mrb[76].mxu1 %v7676_v19  ;;  %v6978_v19 = vld [vmem:[#allocation5 + $0x12c] ss:$16 sps:$4 sm:$0xff]  }
 0x1ea   : > { %2340 = vmatprep.mubr.bf16.mxu0 %v7691_v8  ;;  %2726 = vmatprep.mubr.bf16.mxu1 %v7691_v8  ;;  %v6973_v8 = vld [vmem:[#allocation5 + $0x120] ss:$16 sps:$4 sm:$0xff]  }
 0x1eb   : > { %3842 = vmatpush1.bf16.msra.mxu0 %v6955_v12  ;;  %4228 = vmatpush1.bf16.msra.mxu1 %v6958_v14 }
 0x1ec   : > { %3843 = vmatprep.subr.bf16.mxu0 %v6963_v15  ;;  %4229 = vmatprep.subr.bf16.mxu1 %v6966_v39 }
 0x1ef   : > { %3844 = vmatpush1.bf16.msra.mxu0 %v6961_v25  ;;  %4230 = vmatpush1.bf16.msra.mxu1 %v6964_v17 }
 0x1f0   : > { %3845 = vmatprep.subr.bf16.mxu0 %v6969_v20  ;;  %4231 = vmatprep.subr.bf16.mxu1 %v6972_v23 }
 0x1f1   : > { %2341 = vmatmul.mubr.bf16.gmra.mrb[80].mxu0 %v7688_v4  ;;  %2727 = vmatmul.mubr.bf16.gmra.mrb[80].mxu1 %v7688_v4  ;;  %v6990_v4 = vld [vmem:[#allocation5 + $0x16c] ss:$16 sps:$4 sm:$0xff]  }
 0x1f2   : > { %2350 = vmatprep.mubr.bf16.mxu0 %v7703_v53  ;;  %2736 = vmatprep.mubr.bf16.mxu1 %v7703_v53  ;;  %v6985_v53 = vld [vmem:[#allocation5 + $0x160] ss:$16 sps:$4 sm:$0xff]  }
 0x1f3   : > { %3846 = vmatpush1.bf16.msra.mxu0 %v6967_v57  ;;  %4232 = vmatpush1.bf16.msra.mxu1 %v6970_v26 }
 0x1f4   : > { %3847 = vmatprep.subr.bf16.mxu0 %v6975_v18  ;;  %4233 = vmatprep.subr.bf16.mxu1 %v6978_v19 }
 0x1f7   : > { %3848 = vmatpush1.bf16.msra.mxu0 %v6973_v8  ;;  %4234 = vmatpush1.bf16.msra.mxu1 %v6976_v27 }
 0x1f8   : > { %3849 = vmatprep.subr.bf16.mxu0 %v6981_v29  ;;  %4235 = vmatprep.subr.bf16.mxu1 %v6984_v32  ;;  %v7015_v32 = vld [vmem:[#allocation5 + $0x200] ss:$16 sps:$4 sm:$0xff]  }
 0x1f9   : > { %2351 = vmatmul.mubr.bf16.gmra.mrb[84].mxu0 %v7700_v50  ;;  %2737 = vmatmul.mubr.bf16.gmra.mrb[84].mxu1 %v7700_v50  ;;  %v7002_v50 = vld [vmem:[#allocation5 + $0x1ac] ss:$16 sps:$4 sm:$0xff]  }
 0x1fa   : > { %2360 = vmatprep.mubr.bf16.mxu0 %v7715_v33  ;;  %2746 = vmatprep.mubr.bf16.mxu1 %v7715_v33  ;;  %v6997_v33 = vld [vmem:[#allocation5 + $0x1a0] ss:$16 sps:$4 sm:$0xff]  }
 0x1fb   : > { %3850 = vmatpush1.bf16.msra.mxu0 %v6979_v34  ;;  %4236 = vmatpush1.bf16.msra.mxu1 %v6982_v58  ;;  %v7018_v34 = vld [vmem:[#allocation5 + $0x208] ss:$16 sps:$4 sm:$0xff]  }
 0x1fc   : > { %3851 = vmatprep.subr.bf16.mxu0 %v6987_v2  ;;  %4237 = vmatprep.subr.bf16.mxu1 %v6990_v4 }
 0x1ff   : > { %3852 = vmatpush1.bf16.msra.mxu0 %v6985_v53  ;;  %4238 = vmatpush1.bf16.msra.mxu1 %v6988_v37  ;;  %v7023_v37 = vld [vmem:[#allocation5 + $0x224] ss:$16 sps:$4 sm:$0xff]  }
 0x200   : > { %3853 = vmatprep.subr.bf16.mxu0 %v6993_v42  ;;  %4239 = vmatprep.subr.bf16.mxu1 %v6996_v43  ;;  %v7026_v42 = vld [vmem:[#allocation5 + $0x22c] ss:$16 sps:$4 sm:$0xff]  }
 0x201   : > { %2361 = vmatmul.mubr.bf16.gmra.mrb[88].mxu0 %v7712_v30  ;;  %2747 = vmatmul.mubr.bf16.gmra.mrb[88].mxu1 %v7712_v30  ;;  %v7011_v30 = vld [vmem:[#allocation5 + $0x1e4] ss:$16 sps:$4 sm:$0xff]  }
 0x202   : > { %2370 = vmatprep.mubr.bf16.mxu0 %v7727_v11  ;;  %2756 = vmatprep.mubr.bf16.mxu1 %v7727_v11  ;;  %v7009_v11 = vld [vmem:[#allocation5 + $0x1e0] ss:$16 sps:$4 sm:$0xff]  }
 0x203   : > { %3854 = vmatpush1.bf16.msra.mxu0 %v6991_v45  ;;  %4240 = vmatpush1.bf16.msra.mxu1 %v6994_v47 }
 0x204   : > { %3855 = vmatprep.subr.bf16.mxu0 %v6999_v49  ;;  %4241 = vmatprep.subr.bf16.mxu1 %v7002_v50 }
 0x207   : > { %3856 = vmatpush1.bf16.msra.mxu0 %v6997_v33  ;;  %4242 = vmatpush1.bf16.msra.mxu1 %v7000_v41 }
 0x208   : > { %3857 = vmatprep.subr.bf16.mxu0 %v7005_v51  ;;  %4243 = vmatprep.subr.bf16.mxu1 %v7008_v55 }
 0x209   : > { %2371 = vmatmul.mubr.bf16.gmra.mrb[92].mxu0 %v7724_v7  ;;  %2757 = vmatmul.mubr.bf16.gmra.mrb[92].mxu1 %v7724_v7  ;;  %v7014_v7 = vld [vmem:[#allocation5 + $0x1ec] ss:$16 sps:$4 sm:$0xff]  }
 0x20a   : > { %2380 = vmatprep.mubr.bf16.mxu0 %v7739_v52  ;;  %2766 = vmatprep.mubr.bf16.mxu1 %v7739_v52  ;;  %v7017_v52 = vld [vmem:[#allocation5 + $0x204] ss:$16 sps:$4 sm:$0xff]  }
 0x20b   : > { %3858 = vmatpush1.bf16.msra.mxu0 %v7003_v0  ;;  %4244 = vmatpush1.bf16.msra.mxu1 %v7006_v60  ;;  %v7021_v60 = vld [vmem:[#allocation5 + $0x220] ss:$16 sps:$4 sm:$0xff]  }
 0x20c   : > { %3859 = vmatprep.subr.bf16.mxu0 %v7011_v30  ;;  %4245 = vmatprep.subr.bf16.mxu1 %v7014_v7  ;;  %v7024_v30 = vld [vmem:[#allocation5 + $0x228] ss:$16 sps:$4 sm:$0xff]   ;;  %v7029_v7 = vld [vmem:[#allocation5 + $0x244] ss:$16 sps:$4 sm:$0xff]  }
 0x20f   : > { %3860 = vmatpush1.bf16.msra.mxu0 %v7009_v11 }
 0x210   : > { %4022 = vmatprep.subr.bf16.mxu0 %v7017_v52 }
 0x211   : > { %2381 = vmatmul.mubr.bf16.gmra.mrb[96].mxu0 %v7736_v48  ;;  %2767 = vmatmul.mubr.bf16.gmra.mrb[96].mxu1 %v7736_v48  ;;  %v7012_v48 = vld [vmem:[#allocation5 + $0x1e8] ss:$16 sps:$4 sm:$0xff]  }
 0x212   : > { %2390 = vmatprep.mubr.bf16.mxu0 %v7751_v35  ;;  %2776 = vmatprep.mubr.bf16.mxu1 %v7751_v35  ;;  %v1413_v35 = vld [vmem:[%s8518_s4] sm:$0xf] }
 0x213   : > { %4246 = vmatpush1.bf16.msra.mxu1 %v7012_v48 }
 0x219   : > { %2391 = vmatmul.mubr.bf16.gmra.mrb[100].mxu0 %v7748_v31  ;;  %2777 = vmatmul.mubr.bf16.gmra.mrb[100].mxu1 %v7748_v31  ;;  %v7020_v31 = vld [vmem:[#allocation5 + $0x20c] ss:$16 sps:$4 sm:$0xff]  }
 0x21a   : > { %2400 = vmatprep.mubr.bf16.mxu0 %v7763_v21  ;;  %2786 = vmatprep.mubr.bf16.mxu1 %v7763_v21  ;;  %v7885_v21 = vrot.slane %v1413_v35, %v7620_v24 }
 0x21b   : > { %4408 = vmatprep.subr.bf16.mxu1 %v7020_v31 }
 0x221   : > { %2401 = vmatmul.mubr.bf16.gmra.mrb[104].mxu0 %v7760_v16  ;;  %2787 = vmatmul.mubr.bf16.gmra.mrb[104].mxu1 %v7760_v16  ;;  %v7882_v16 = vrot.slane %v1413_v35, %v7599_v54 }
 0x222   : > { %2410 = vmatprep.mubr.bf16.mxu0 %v7775_v10  ;;  %2796 = vmatprep.mubr.bf16.mxu1 %v7775_v10  ;;  %v7891_v10 = vrot.slane %v1413_v35, %v7622_v28 }
 0x229   : > { %2411 = vmatmul.mubr.bf16.gmra.mrb[108].mxu0 %v7772_v5  ;;  %2797 = vmatmul.mubr.bf16.gmra.mrb[108].mxu1 %v7772_v5  ;;  %v7888_v5 = vrot.slane %v1413_v35, %v7604_v56  ;;  %v7032_v35 = vld [vmem:[#allocation5 + $0x24c] ss:$16 sps:$4 sm:$0xff]  }
 0x22a   : > { %2420 = vmatprep.mubr.bf16.mxu0 %v7787_v63  ;;  %2806 = vmatprep.mubr.bf16.mxu1 %v7787_v63 }
 0x231   : > { %2421 = vmatmul.mubr.bf16.gmra.mrb[112].mxu0 %v7784_v59  ;;  %2807 = vmatmul.mubr.bf16.gmra.mrb[112].mxu1 %v7784_v59 }
 0x232   : > { %2430 = vmatprep.mubr.bf16.mxu0 %v7796_v40  ;;  %2816 = vmatprep.mubr.bf16.mxu1 %v7796_v40 }
 0x239   : > { %2431 = vmatmul.mubr.bf16.gmra.mrb[116].mxu0 %v7794_v38  ;;  %2817 = vmatmul.mubr.bf16.gmra.mrb[116].mxu1 %v7794_v38 }
 0x23a   : > { %2440 = vmatprep.mubr.bf16.mxu0 %v7808_v13  ;;  %2826 = vmatprep.mubr.bf16.mxu1 %v7808_v13 }
 0x241   : > { %2441 = vmatmul.mubr.bf16.gmra.mrb[120].mxu0 %v7804_v9  ;;  %2827 = vmatmul.mubr.bf16.gmra.mrb[120].mxu1 %v7804_v9 }
 0x242   : > { %2450 = vmatprep.mubr.bf16.mxu0 %v7820_v36  ;;  %2836 = vmatprep.mubr.bf16.mxu1 %v7820_v36 }
 0x249   : > { %2451 = vmatmul.mubr.bf16.gmra.mrb[124].mxu0 %v7816_v46  ;;  %2837 = vmatmul.mubr.bf16.gmra.mrb[124].mxu1 %v7816_v46 }
 0x2a4   : > { %v2302_v59 = vpop.f32.mrb[64].mxu0  ;;  %v2688_v63 = vpop.f32.mrb[64].mxu1 }
 0x2a5   : > { %v6086_v38 = vadd.f32 %v2302_v59, %v7882_v16  ;;  %v6150_v40 = vadd.f32 %v2688_v63, %v7885_v21  ;;  %v2304_v9 = vpop.f32.mrb[65].mxu0  ;;  %v2690_v13 = vpop.f32.mrb[65].mxu1 }
 0x2a6   : > { %v6087_v46 = vadd.f32 %v2304_v9, %v7888_v5  ;;  %v6151_v36 = vadd.f32 %v2690_v13, %v7891_v10  ;;  %v2306_v62 = vpop.f32.mrb[66].mxu0  ;;  %v2692_v61 = vpop.f32.mrb[66].mxu1 }
 0x2a7   : > { %v6088_v1 = vadd.f32 %v2306_v62, %v7882_v16  ;;  %v6152_v44 = vadd.f32 %v2692_v61, %v7885_v21  ;;  %v2308_v3 = vpop.f32.mrb[67].mxu0  ;;  %v2694_v6 = vpop.f32.mrb[67].mxu1  ;;  %v2847_v14 = vmax.f32 %v6086_v38, 0.0  ;;  %v2849_v15 = vmax.f32 %v6150_v40, 0.0 }
 0x2a8   : > { %v6089_v22 = vadd.f32 %v2308_v3, %v7888_v5  ;;  %v6153_v12 = vadd.f32 %v2694_v6, %v7891_v10  ;;  %v2848_v17 = vmax.f32 %v6087_v46, 0.0  ;;  %v2850_v20 = vmax.f32 %v6151_v36, 0.0 }
 0x2a9   : > { %v2851_v39 = vmax.f32 %v6088_v1, 0.0  ;;  %v2853_v25 = vmax.f32 %v6152_v44, 0.0  ;;  %v7027_v1 = vld [vmem:[#allocation5 + $0x240] ss:$16 sps:$4 sm:$0xff]   ;;  %v7030_v44 = vld [vmem:[#allocation5 + $0x248] ss:$16 sps:$4 sm:$0xff]  }
 0x2aa   : > { %v2852_v23 = vmax.f32 %v6089_v22, 0.0  ;;  %v2854_v57 = vmax.f32 %v6153_v12, 0.0 }
 0x2ab   : > { %v2975_v26 = vpack.c.bf16 %v2851_v39, %v2847_v14  ;;  %v7901_v18 = vpack.c.bf16 %v2853_v25, %v2849_v15  ;;  %v7035_v14 = vld [vmem:[#allocation5 + $0x264] ss:$16 sps:$4 sm:$0xff]   ;;  %v7038_v15 = vld [vmem:[#allocation5 + $0x26c] ss:$16 sps:$4 sm:$0xff]  }
 0x2ac   : > { %v2976_v19 = vpack.c.bf16 %v2852_v23, %v2848_v17  ;;  %v7903_v8 = vpack.c.bf16 %v2854_v57, %v2850_v20  ;;  %v2312_v27 = vpop.f32.mrb[68].mxu0  ;;  %v2698_v29 = vpop.f32.mrb[68].mxu1 }
 0x2ad   : > { %v6090_v58 = vadd.f32 %v2312_v27, %v7882_v16  ;;  %v6154_v2 = vadd.f32 %v2698_v29, %v7885_v21  ;;  %v2314_v4 = vpop.f32.mrb[69].mxu0  ;;  %v2700_v53 = vpop.f32.mrb[69].mxu1 }
 0x2ae   : > { %v6091_v43 = vadd.f32 %v2314_v4, %v7888_v5  ;;  %v6155_v45 = vadd.f32 %v2700_v53, %v7891_v10  ;;  %v2316_v47 = vpop.f32.mrb[70].mxu0  ;;  %v2702_v49 = vpop.f32.mrb[70].mxu1  ;;  %3861 = vmatprep.mubr.bf16.mxu0 %v2976_v19  ;;  %4247 = vmatprep.mubr.bf16.mxu1 %v2976_v19 }
 0x2af   : > { %v6092_v50 = vadd.f32 %v2316_v47, %v7882_v16  ;;  %v6156_v33 = vadd.f32 %v2702_v49, %v7885_v21  ;;  %v2318_v41 = vpop.f32.mrb[71].mxu0  ;;  %v2704_v51 = vpop.f32.mrb[71].mxu1  ;;  %3862 = vmatmul.mubr.bf16.vlgmr.msra.gmra.mrb[128].mxu0 %v2975_v26  ;;  %4248 = vmatmul.mubr.bf16.vlgmr.msra.gmra.mrb[128].mxu1 %v2975_v26  ;;  %v2855_v11 = vmax.f32 %v6090_v58, 0.0  ;;  %v2857_v48 = vmax.f32 %v6154_v2, 0.0  ;;  %v7041_v58 = vld [vmem:[#allocation5 + $0x284] ss:$16 sps:$4 sm:$0xff]  }
 0x2b0   : > { %v6093_v55 = vadd.f32 %v2318_v41, %v7888_v5  ;;  %v6157_v0 = vadd.f32 %v2704_v51, %v7891_v10  ;;  %4023 = vmatpush1.bf16.msra.mxu0 %v7015_v32  ;;  %4409 = vmatpush1.bf16.msra.mxu1 %v7018_v34  ;;  %v2856_v59 = vmax.f32 %v6091_v43, 0.0  ;;  %v2858_v63 = vmax.f32 %v6155_v45, 0.0  ;;  %v7033_v32 = vld [vmem:[#allocation5 + $0x260] ss:$16 sps:$4 sm:$0xff]   ;;  %v7036_v34 = vld [vmem:[#allocation5 + $0x268] ss:$16 sps:$4 sm:$0xff]  }
 0x2b1   : > { %v2859_v52 = vmax.f32 %v6092_v50, 0.0  ;;  %v2861_v31 = vmax.f32 %v6156_v33, 0.0  ;;  %4024 = vmatprep.subr.bf16.mxu0 %v7023_v37  ;;  %4410 = vmatprep.subr.bf16.mxu1 %v7026_v42  ;;  %v7044_v42 = vld [vmem:[#allocation5 + $0x28c] ss:$16 sps:$4 sm:$0xff]  }
 0x2b2   : > { %v2860_v38 = vmax.f32 %v6093_v55, 0.0  ;;  %v2862_v40 = vmax.f32 %v6157_v0, 0.0 }
 0x2b3   : > { %v2979_v9 = vpack.c.bf16 %v2859_v52, %v2855_v11  ;;  %v7913_v13 = vpack.c.bf16 %v2861_v31, %v2857_v48  ;;  %v7047_v31 = vld [vmem:[#allocation5 + $0x2a4] ss:$16 sps:$4 sm:$0xff]  }
 0x2b4   : > { %v2980_v46 = vpack.c.bf16 %v2860_v38, %v2856_v59  ;;  %v7915_v36 = vpack.c.bf16 %v2862_v40, %v2858_v63  ;;  %v2322_v62 = vpop.f32.mrb[72].mxu0  ;;  %v2708_v61 = vpop.f32.mrb[72].mxu1  ;;  %4025 = vmatpush1.bf16.msra.mxu0 %v7021_v60  ;;  %4411 = vmatpush1.bf16.msra.mxu1 %v7024_v30  ;;  %v7039_v60 = vld [vmem:[#allocation5 + $0x280] ss:$16 sps:$4 sm:$0xff]   ;;  %v7042_v30 = vld [vmem:[#allocation5 + $0x288] ss:$16 sps:$4 sm:$0xff]  }
 0x2b5   : > { %v6094_v3 = vadd.f32 %v2322_v62, %v7882_v16  ;;  %v6158_v6 = vadd.f32 %v2708_v61, %v7885_v21  ;;  %v2324_v22 = vpop.f32.mrb[73].mxu0  ;;  %v2710_v12 = vpop.f32.mrb[73].mxu1  ;;  %4026 = vmatprep.subr.bf16.mxu0 %v7029_v7  ;;  %4412 = vmatprep.subr.bf16.mxu1 %v7032_v35  ;;  %v7050_v35 = vld [vmem:[#allocation5 + $0x2ac] ss:$16 sps:$4 sm:$0xff]  }
 0x2b6   : > { %v6095_v39 = vadd.f32 %v2324_v22, %v7888_v5  ;;  %v6159_v25 = vadd.f32 %v2710_v12, %v7891_v10  ;;  %v2326_v17 = vpop.f32.mrb[74].mxu0  ;;  %v2712_v20 = vpop.f32.mrb[74].mxu1  ;;  %3871 = vmatprep.mubr.bf16.mxu0 %v2980_v46  ;;  %4257 = vmatprep.mubr.bf16.mxu1 %v2980_v46  ;;  %v7053_v22 = vld [vmem:[#allocation5 + $0x2c4] ss:$16 sps:$4 sm:$0xff]  }
 0x2b7   : > { %v6096_v23 = vadd.f32 %v2326_v17, %v7882_v16  ;;  %v6160_v57 = vadd.f32 %v2712_v20, %v7885_v21  ;;  %v2328_v26 = vpop.f32.mrb[75].mxu0  ;;  %v2714_v19 = vpop.f32.mrb[75].mxu1  ;;  %3872 = vmatmul.mubr.bf16.gmra.mrb[132].mxu0 %v2979_v9  ;;  %4258 = vmatmul.mubr.bf16.gmra.mrb[132].mxu1 %v2979_v9  ;;  %v2863_v2 = vmax.f32 %v6094_v3, 0.0  ;;  %v2865_v4 = vmax.f32 %v6158_v6, 0.0  ;;  %v7045_v3 = vld [vmem:[#allocation5 + $0x2a0] ss:$16 sps:$4 sm:$0xff]  }
 0x2b8   : > { %v6097_v27 = vadd.f32 %v2328_v26, %v7888_v5  ;;  %v6161_v29 = vadd.f32 %v2714_v19, %v7891_v10  ;;  %4027 = vmatpush1.bf16.msra.mxu0 %v7027_v1  ;;  %4413 = vmatpush1.bf16.msra.mxu1 %v7030_v44  ;;  %v2864_v43 = vmax.f32 %v6095_v39, 0.0  ;;  %v2866_v45 = vmax.f32 %v6159_v25, 0.0  ;;  %v7048_v6 = vld [vmem:[#allocation5 + $0x2a8] ss:$16 sps:$4 sm:$0xff]   ;;  %v7056_v25 = vld [vmem:[#allocation5 + $0x2cc] ss:$16 sps:$4 sm:$0xff]  }
 0x2b9   : > { %v2867_v53 = vmax.f32 %v6096_v23, 0.0  ;;  %v2869_v37 = vmax.f32 %v6160_v57, 0.0  ;;  %4028 = vmatprep.subr.bf16.mxu0 %v7035_v14  ;;  %4414 = vmatprep.subr.bf16.mxu1 %v7038_v15 }
 0x2ba   : > { %v2868_v47 = vmax.f32 %v6097_v27, 0.0  ;;  %v2870_v49 = vmax.f32 %v6161_v29, 0.0 }
 0x2bb   : > { %v2983_v50 = vpack.c.bf16 %v2867_v53, %v2863_v2  ;;  %v7925_v33 = vpack.c.bf16 %v2869_v37, %v2865_v4  ;;  %v7054_v2 = vld [vmem:[#allocation5 + $0x2c8] ss:$16 sps:$4 sm:$0xff]  }
 0x2bc   : > { %v2984_v41 = vpack.c.bf16 %v2868_v47, %v2864_v43  ;;  %v7927_v51 = vpack.c.bf16 %v2870_v49, %v2866_v45  ;;  %v2332_v55 = vpop.f32.mrb[76].mxu0  ;;  %v2718_v0 = vpop.f32.mrb[76].mxu1  ;;  %4029 = vmatpush1.bf16.msra.mxu0 %v7033_v32  ;;  %4415 = vmatpush1.bf16.msra.mxu1 %v7036_v34  ;;  %v7059_v43 = vld [vmem:[#allocation5 + $0x2e4] ss:$16 sps:$4 sm:$0xff]   ;;  %v7062_v45 = vld [vmem:[#allocation5 + $0x2ec] ss:$16 sps:$4 sm:$0xff]  }
 0x2bd   : > { %v6098_v7 = vadd.f32 %v2332_v55, %v7882_v16  ;;  %v6162_v11 = vadd.f32 %v2718_v0, %v7885_v21  ;;  %v2334_v48 = vpop.f32.mrb[77].mxu0  ;;  %v2720_v52 = vpop.f32.mrb[77].mxu1  ;;  %4030 = vmatprep.subr.bf16.mxu0 %v7041_v58  ;;  %4416 = vmatprep.subr.bf16.mxu1 %v7044_v42  ;;  %v7051_v58 = vld [vmem:[#allocation5 + $0x2c0] ss:$16 sps:$4 sm:$0xff]  }
 0x2be   : > { %v6099_v59 = vadd.f32 %v2334_v48, %v7888_v5  ;;  %v6163_v63 = vadd.f32 %v2720_v52, %v7891_v10  ;;  %v2336_v38 = vpop.f32.mrb[78].mxu0  ;;  %v2722_v40 = vpop.f32.mrb[78].mxu1  ;;  %3881 = vmatprep.mubr.bf16.mxu0 %v2984_v41  ;;  %4267 = vmatprep.mubr.bf16.mxu1 %v2984_v41  ;;  %v7057_v48 = vld [vmem:[#allocation5 + $0x2e0] ss:$16 sps:$4 sm:$0xff]   ;;  %v7060_v52 = vld [vmem:[#allocation5 + $0x2e8] ss:$16 sps:$4 sm:$0xff]  }
 0x2bf   : > { %v6100_v9 = vadd.f32 %v2336_v38, %v7882_v16  ;;  %v6164_v46 = vadd.f32 %v2722_v40, %v7885_v21  ;;  %v2338_v62 = vpop.f32.mrb[79].mxu0  ;;  %v2724_v61 = vpop.f32.mrb[79].mxu1  ;;  %3882 = vmatmul.mubr.bf16.gmra.mrb[136].mxu0 %v2983_v50  ;;  %4268 = vmatmul.mubr.bf16.gmra.mrb[136].mxu1 %v2983_v50  ;;  %v2871_v12 = vmax.f32 %v6098_v7, 0.0  ;;  %v2873_v14 = vmax.f32 %v6162_v11, 0.0  ;;  %v7068_v40 = vld [vmem:[#allocation5 + $0x30c] ss:$16 sps:$4 sm:$0xff]  }
 0x2c0   : > { %v6101_v1 = vadd.f32 %v2338_v62, %v7888_v5  ;;  %v6165_v44 = vadd.f32 %v2724_v61, %v7891_v10  ;;  %4031 = vmatpush1.bf16.msra.mxu0 %v7039_v60  ;;  %4417 = vmatpush1.bf16.msra.mxu1 %v7042_v30  ;;  %v2872_v17 = vmax.f32 %v6099_v59, 0.0  ;;  %v2874_v20 = vmax.f32 %v6163_v63, 0.0 }
 0x2c1   : > { %v2875_v15 = vmax.f32 %v6100_v9, 0.0  ;;  %v2877_v39 = vmax.f32 %v6164_v46, 0.0  ;;  %4032 = vmatprep.subr.bf16.mxu0 %v7047_v31  ;;  %4418 = vmatprep.subr.bf16.mxu1 %v7050_v35  ;;  %v7065_v31 = vld [vmem:[#allocation5 + $0x304] ss:$16 sps:$4 sm:$0xff]  }
 0x2c2   : > { %v2876_v23 = vmax.f32 %v6101_v1, 0.0  ;;  %v2878_v57 = vmax.f32 %v6165_v44, 0.0 }
 0x2c3   : > { %v2987_v26 = vpack.c.bf16 %v2875_v15, %v2871_v12  ;;  %v7937_v19 = vpack.c.bf16 %v2877_v39, %v2873_v14  ;;  %v7063_v14 = vld [vmem:[#allocation5 + $0x300] ss:$16 sps:$4 sm:$0xff]   ;;  %v7066_v15 = vld [vmem:[#allocation5 + $0x308] ss:$16 sps:$4 sm:$0xff]  }
 0x2c4   : > { %v2988_v27 = vpack.c.bf16 %v2876_v23, %v2872_v17  ;;  %v7939_v29 = vpack.c.bf16 %v2878_v57, %v2874_v20  ;;  %v2342_v32 = vpop.f32.mrb[80].mxu0  ;;  %v2728_v34 = vpop.f32.mrb[80].mxu1  ;;  %4033 = vmatpush1.bf16.msra.mxu0 %v7045_v3  ;;  %4419 = vmatpush1.bf16.msra.mxu1 %v7048_v6  ;;  %v7071_v23 = vld [vmem:[#allocation5 + $0x324] ss:$16 sps:$4 sm:$0xff]   ;;  %v7074_v57 = vld [vmem:[#allocation5 + $0x32c] ss:$16 sps:$4 sm:$0xff]  }
 0x2c5   : > { %v6102_v4 = vadd.f32 %v2342_v32, %v7882_v16  ;;  %v6166_v53 = vadd.f32 %v2728_v34, %v7885_v21  ;;  %v2344_v37 = vpop.f32.mrb[81].mxu0  ;;  %v2730_v42 = vpop.f32.mrb[81].mxu1  ;;  %4034 = vmatprep.subr.bf16.mxu0 %v7053_v22  ;;  %4420 = vmatprep.subr.bf16.mxu1 %v7056_v25 }
 0x2c6   : > { %v6103_v47 = vadd.f32 %v2344_v37, %v7888_v5  ;;  %v6167_v49 = vadd.f32 %v2730_v42, %v7891_v10  ;;  %v2346_v50 = vpop.f32.mrb[82].mxu0  ;;  %v2732_v41 = vpop.f32.mrb[82].mxu1  ;;  %3891 = vmatprep.mubr.bf16.mxu0 %v2988_v27  ;;  %4277 = vmatprep.mubr.bf16.mxu1 %v2988_v27 }
 0x2c7   : > { %v6104_v55 = vadd.f32 %v2346_v50, %v7882_v16  ;;  %v6168_v0 = vadd.f32 %v2732_v41, %v7885_v21  ;;  %v2348_v60 = vpop.f32.mrb[83].mxu0  ;;  %v2734_v30 = vpop.f32.mrb[83].mxu1  ;;  %3892 = vmatmul.mubr.bf16.gmra.mrb[140].mxu0 %v2987_v26  ;;  %4278 = vmatmul.mubr.bf16.gmra.mrb[140].mxu1 %v2987_v26  ;;  %v2879_v35 = vmax.f32 %v6102_v4, 0.0  ;;  %v2881_v59 = vmax.f32 %v6166_v53, 0.0 }
 0x2c8   : > { %v6105_v7 = vadd.f32 %v2348_v60, %v7888_v5  ;;  %v6169_v11 = vadd.f32 %v2734_v30, %v7891_v10  ;;  %4035 = vmatpush1.bf16.msra.mxu0 %v7051_v58  ;;  %4421 = vmatpush1.bf16.msra.mxu1 %v7054_v2  ;;  %v2880_v9 = vmax.f32 %v6103_v47, 0.0  ;;  %v2882_v46 = vmax.f32 %v6167_v49, 0.0  ;;  %v7077_v47 = vld [vmem:[#allocation5 + $0x344] ss:$16 sps:$4 sm:$0xff]  }
 0x2c9   : > { %v2883_v63 = vmax.f32 %v6104_v55, 0.0  ;;  %v2885_v38 = vmax.f32 %v6168_v0, 0.0  ;;  %4036 = vmatprep.subr.bf16.mxu0 %v7059_v43  ;;  %4422 = vmatprep.subr.bf16.mxu1 %v7062_v45  ;;  %v7069_v43 = vld [vmem:[#allocation5 + $0x320] ss:$16 sps:$4 sm:$0xff]   ;;  %v7072_v45 = vld [vmem:[#allocation5 + $0x328] ss:$16 sps:$4 sm:$0xff]  }
 0x2ca   : > { %v2884_v62 = vmax.f32 %v6105_v7, 0.0  ;;  %v2886_v61 = vmax.f32 %v6169_v11, 0.0  ;;  %v7080_v0 = vld [vmem:[#allocation5 + $0x34c] ss:$16 sps:$4 sm:$0xff]  }
 0x2cb   : > { %v2991_v1 = vpack.c.bf16 %v2883_v63, %v2879_v35  ;;  %v7949_v44 = vpack.c.bf16 %v2885_v38, %v2881_v59  ;;  %v7075_v38 = vld [vmem:[#allocation5 + $0x340] ss:$16 sps:$4 sm:$0xff]  }
 0x2cc   : > { %v2992_v3 = vpack.c.bf16 %v2884_v62, %v2880_v9  ;;  %v7951_v6 = vpack.c.bf16 %v2886_v61, %v2882_v46  ;;  %v2352_v22 = vpop.f32.mrb[84].mxu0  ;;  %v2738_v12 = vpop.f32.mrb[84].mxu1  ;;  %4037 = vmatpush1.bf16.msra.mxu0 %v7057_v48  ;;  %4423 = vmatpush1.bf16.msra.mxu1 %v7060_v52 }
 0x2cd   : > { %v6106_v39 = vadd.f32 %v2352_v22, %v7882_v16  ;;  %v6170_v25 = vadd.f32 %v2738_v12, %v7885_v21  ;;  %v2354_v17 = vpop.f32.mrb[85].mxu0  ;;  %v2740_v20 = vpop.f32.mrb[85].mxu1  ;;  %4038 = vmatprep.subr.bf16.mxu0 %v7065_v31  ;;  %4424 = vmatprep.subr.bf16.mxu1 %v7068_v40  ;;  %v7078_v40 = vld [vmem:[#allocation5 + $0x348] ss:$16 sps:$4 sm:$0xff]  }
 0x2ce   : > { %v6107_v26 = vadd.f32 %v2354_v17, %v7888_v5  ;;  %v6171_v27 = vadd.f32 %v2740_v20, %v7891_v10  ;;  %v2356_v32 = vpop.f32.mrb[86].mxu0  ;;  %v2742_v34 = vpop.f32.mrb[86].mxu1  ;;  %3901 = vmatprep.mubr.bf16.mxu0 %v2992_v3  ;;  %4287 = vmatprep.mubr.bf16.mxu1 %v2992_v3  ;;  %v7086_v3 = vld [vmem:[#allocation5 + $0x36c] ss:$16 sps:$4 sm:$0xff]  }
 0x2cf   : > { %v6108_v58 = vadd.f32 %v2356_v32, %v7882_v16  ;;  %v6172_v2 = vadd.f32 %v2742_v34, %v7885_v21  ;;  %v2358_v4 = vpop.f32.mrb[87].mxu0  ;;  %v2744_v53 = vpop.f32.mrb[87].mxu1  ;;  %3902 = vmatmul.mubr.bf16.gmra.mrb[144].mxu0 %v2991_v1  ;;  %4288 = vmatmul.mubr.bf16.gmra.mrb[144].mxu1 %v2991_v1  ;;  %v2887_v49 = vmax.f32 %v6106_v39, 0.0  ;;  %v2889_v50 = vmax.f32 %v6170_v25, 0.0  ;;  %v7083_v1 = vld [vmem:[#allocation5 + $0x364] ss:$16 sps:$4 sm:$0xff]  }
 0x2d0   : > { %v6109_v37 = vadd.f32 %v2358_v4, %v7888_v5  ;;  %v6173_v42 = vadd.f32 %v2744_v53, %v7891_v10  ;;  %4039 = vmatpush1.bf16.msra.mxu0 %v7063_v14  ;;  %4425 = vmatpush1.bf16.msra.mxu1 %v7066_v15  ;;  %v2888_v60 = vmax.f32 %v6107_v26, 0.0  ;;  %v2890_v30 = vmax.f32 %v6171_v27, 0.0  ;;  %v7081_v26 = vld [vmem:[#allocation5 + $0x360] ss:$16 sps:$4 sm:$0xff]   ;;  %v7084_v27 = vld [vmem:[#allocation5 + $0x368] ss:$16 sps:$4 sm:$0xff]  }
 0x2d1   : > { %v2891_v41 = vmax.f32 %v6108_v58, 0.0  ;;  %v2893_v55 = vmax.f32 %v6172_v2, 0.0  ;;  %4040 = vmatprep.subr.bf16.mxu0 %v7071_v23  ;;  %4426 = vmatprep.subr.bf16.mxu1 %v7074_v57  ;;  %v7089_v32 = vld [vmem:[#allocation5 + $0x384] ss:$16 sps:$4 sm:$0xff]   ;;  %v7092_v53 = vld [vmem:[#allocation5 + $0x38c] ss:$16 sps:$4 sm:$0xff]  }
 0x2d2   : > { %v2892_v7 = vmax.f32 %v6109_v37, 0.0  ;;  %v2894_v11 = vmax.f32 %v6173_v42, 0.0 }
 0x2d3   : > { %v2995_v48 = vpack.c.bf16 %v2891_v41, %v2887_v49  ;;  %v7961_v52 = vpack.c.bf16 %v2893_v55, %v2889_v50 }
 0x2d4   : > { %v2996_v31 = vpack.c.bf16 %v2892_v7, %v2888_v60  ;;  %v7963_v35 = vpack.c.bf16 %v2894_v11, %v2890_v30  ;;  %v2362_v59 = vpop.f32.mrb[88].mxu0  ;;  %v2748_v63 = vpop.f32.mrb[88].mxu1  ;;  %4041 = vmatpush1.bf16.msra.mxu0 %v7069_v43  ;;  %4427 = vmatpush1.bf16.msra.mxu1 %v7072_v45  ;;  %v7087_v60 = vld [vmem:[#allocation5 + $0x380] ss:$16 sps:$4 sm:$0xff]   ;;  %v7090_v30 = vld [vmem:[#allocation5 + $0x388] ss:$16 sps:$4 sm:$0xff]  }
 0x2d5   : > { %v6110_v9 = vadd.f32 %v2362_v59, %v7882_v16  ;;  %v6174_v46 = vadd.f32 %v2748_v63, %v7885_v21  ;;  %v2364_v62 = vpop.f32.mrb[89].mxu0  ;;  %v2750_v61 = vpop.f32.mrb[89].mxu1  ;;  %4042 = vmatprep.subr.bf16.mxu0 %v7077_v47  ;;  %4428 = vmatprep.subr.bf16.mxu1 %v7080_v0  ;;  %v7095_v59 = vld [vmem:[#allocation5 + $0x3a4] ss:$16 sps:$4 sm:$0xff]   ;;  %v7098_v63 = vld [vmem:[#allocation5 + $0x3ac] ss:$16 sps:$4 sm:$0xff]  }
 0x2d6   : > { %v6111_v22 = vadd.f32 %v2364_v62, %v7888_v5  ;;  %v6175_v12 = vadd.f32 %v2750_v61, %v7891_v10  ;;  %v2366_v14 = vpop.f32.mrb[90].mxu0  ;;  %v2752_v15 = vpop.f32.mrb[90].mxu1  ;;  %3911 = vmatprep.mubr.bf16.mxu0 %v2996_v31  ;;  %4297 = vmatprep.mubr.bf16.mxu1 %v2996_v31 }
 0x2d7   : > { %v6112_v39 = vadd.f32 %v2366_v14, %v7882_v16  ;;  %v6176_v25 = vadd.f32 %v2752_v15, %v7885_v21  ;;  %v2368_v17 = vpop.f32.mrb[91].mxu0  ;;  %v2754_v20 = vpop.f32.mrb[91].mxu1  ;;  %3912 = vmatmul.mubr.bf16.gmra.mrb[148].mxu0 %v2995_v48  ;;  %4298 = vmatmul.mubr.bf16.gmra.mrb[148].mxu1 %v2995_v48  ;;  %v2895_v34 = vmax.f32 %v6110_v9, 0.0  ;;  %v2897_v58 = vmax.f32 %v6174_v46, 0.0  ;;  %v7093_v14 = vld [vmem:[#allocation5 + $0x3a0] ss:$16 sps:$4 sm:$0xff]  }
 0x2d8   : > { %v6113_v23 = vadd.f32 %v2368_v17, %v7888_v5  ;;  %v6177_v57 = vadd.f32 %v2754_v20, %v7891_v10  ;;  %4043 = vmatpush1.bf16.msra.mxu0 %v7075_v38  ;;  %4429 = vmatpush1.bf16.msra.mxu1 %v7078_v40  ;;  %v2896_v37 = vmax.f32 %v6111_v22, 0.0  ;;  %v2898_v42 = vmax.f32 %v6175_v12, 0.0  ;;  %v7096_v15 = vld [vmem:[#allocation5 + $0x3a8] ss:$16 sps:$4 sm:$0xff]  }
 0x2d9   : > { %v2899_v2 = vmax.f32 %v6112_v39, 0.0  ;;  %v2901_v4 = vmax.f32 %v6176_v25, 0.0  ;;  %4044 = vmatprep.subr.bf16.mxu0 %v7083_v1  ;;  %4430 = vmatprep.subr.bf16.mxu1 %v7086_v3  ;;  %v7101_v39 = vld [vmem:[#allocation5 + $0x3c4] ss:$16 sps:$4 sm:$0xff]  }
 0x2da   : > { %v2900_v43 = vmax.f32 %v6113_v23, 0.0  ;;  %v2902_v45 = vmax.f32 %v6177_v57, 0.0  ;;  %v7104_v57 = vld [vmem:[#allocation5 + $0x3cc] ss:$16 sps:$4 sm:$0xff]  }
 0x2db   : > { %v2999_v47 = vpack.c.bf16 %v2899_v2, %v2895_v34  ;;  %v7973_v49 = vpack.c.bf16 %v2901_v4, %v2897_v58 }
 0x2dc   : > { %v3000_v50 = vpack.c.bf16 %v2900_v43, %v2896_v37  ;;  %v7975_v41 = vpack.c.bf16 %v2902_v45, %v2898_v42  ;;  %v2372_v55 = vpop.f32.mrb[92].mxu0  ;;  %v2758_v0 = vpop.f32.mrb[92].mxu1  ;;  %4045 = vmatpush1.bf16.msra.mxu0 %v7081_v26  ;;  %4431 = vmatpush1.bf16.msra.mxu1 %v7084_v27  ;;  %v7099_v43 = vld [vmem:[#allocation5 + $0x3c0] ss:$16 sps:$4 sm:$0xff]   ;;  %v7102_v45 = vld [vmem:[#allocation5 + $0x3c8] ss:$16 sps:$4 sm:$0xff]  }
 0x2dd   : > { %v6114_v7 = vadd.f32 %v2372_v55, %v7882_v16  ;;  %v6178_v11 = vadd.f32 %v2758_v0, %v7885_v21  ;;  %v2374_v48 = vpop.f32.mrb[93].mxu0  ;;  %v2760_v31 = vpop.f32.mrb[93].mxu1  ;;  %4046 = vmatprep.subr.bf16.mxu0 %v7089_v32  ;;  %4432 = vmatprep.subr.bf16.mxu1 %v7092_v53 }
 0x2de   : > { %v6115_v38 = vadd.f32 %v2374_v48, %v7888_v5  ;;  %v6179_v40 = vadd.f32 %v2760_v31, %v7891_v10  ;;  %v2376_v9 = vpop.f32.mrb[94].mxu0  ;;  %v2762_v46 = vpop.f32.mrb[94].mxu1  ;;  %3921 = vmatprep.mubr.bf16.mxu0 %v3000_v50  ;;  %4307 = vmatprep.mubr.bf16.mxu1 %v3000_v50 }
 0x2df   : > { %v6116_v62 = vadd.f32 %v2376_v9, %v7882_v16  ;;  %v6180_v61 = vadd.f32 %v2762_v46, %v7885_v21  ;;  %v2378_v1 = vpop.f32.mrb[95].mxu0  ;;  %v2764_v3 = vpop.f32.mrb[95].mxu1  ;;  %3922 = vmatmul.mubr.bf16.gmra.mrb[152].mxu0 %v2999_v47  ;;  %4308 = vmatmul.mubr.bf16.gmra.mrb[152].mxu1 %v2999_v47  ;;  %v2903_v25 = vmax.f32 %v6114_v7, 0.0  ;;  %v2905_v17 = vmax.f32 %v6178_v11, 0.0 }
 0x2e0   : > { %v6117_v22 = vadd.f32 %v2378_v1, %v7888_v5  ;;  %v6181_v12 = vadd.f32 %v2764_v3, %v7891_v10  ;;  %4047 = vmatpush1.bf16.msra.mxu0 %v7087_v60  ;;  %4433 = vmatpush1.bf16.msra.mxu1 %v7090_v30  ;;  %v2904_v26 = vmax.f32 %v6115_v38, 0.0  ;;  %v2906_v27 = vmax.f32 %v6179_v40, 0.0  ;;  %v7107_v60 = vld [vmem:[#allocation5 + $0x3e4] ss:$16 sps:$4 sm:$0xff]   ;;  %v7110_v30 = vld [vmem:[#allocation5 + $0x3ec] ss:$16 sps:$4 sm:$0xff]  }
 0x2e1   : > { %v2907_v20 = vmax.f32 %v6116_v62, 0.0  ;;  %v2909_v23 = vmax.f32 %v6180_v61, 0.0  ;;  %4048 = vmatprep.subr.bf16.mxu0 %v7095_v59  ;;  %4434 = vmatprep.subr.bf16.mxu1 %v7098_v63  ;;  %v7105_v62 = vld [vmem:[#allocation5 + $0x3e0] ss:$16 sps:$4 sm:$0xff]   ;;  %v7108_v61 = vld [vmem:[#allocation5 + $0x3e8] ss:$16 sps:$4 sm:$0xff]  }
 0x2e2   : > { %v2908_v32 = vmax.f32 %v6117_v22, 0.0  ;;  %v2910_v34 = vmax.f32 %v6181_v12, 0.0 }
 0x2e3   : > { %v3003_v58 = vpack.c.bf16 %v2907_v20, %v2903_v25  ;;  %v7985_v2 = vpack.c.bf16 %v2909_v23, %v2905_v17 }
 0x2e4   : > { %v3004_v4 = vpack.c.bf16 %v2908_v32, %v2904_v26  ;;  %v7987_v53 = vpack.c.bf16 %v2910_v34, %v2906_v27  ;;  %v2382_v37 = vpop.f32.mrb[96].mxu0  ;;  %v2768_v42 = vpop.f32.mrb[96].mxu1  ;;  %4049 = vmatpush1.bf16.msra.mxu0 %v7093_v14  ;;  %4435 = vmatpush1.bf16.msra.mxu1 %v7096_v15 }
 0x2e5   : > { %v6118_v47 = vadd.f32 %v2382_v37, %v7882_v16  ;;  %v6182_v50 = vadd.f32 %v2768_v42, %v7885_v21  ;;  %v2384_v55 = vpop.f32.mrb[97].mxu0  ;;  %v2770_v0 = vpop.f32.mrb[97].mxu1  ;;  %4050 = vmatprep.subr.bf16.mxu0 %v7101_v39  ;;  %4436 = vmatprep.subr.bf16.mxu1 %v7104_v57 }
 0x2e6   : > { %v6119_v7 = vadd.f32 %v2384_v55, %v7888_v5  ;;  %v6183_v11 = vadd.f32 %v2770_v0, %v7891_v10  ;;  %v2386_v48 = vpop.f32.mrb[98].mxu0  ;;  %v2772_v31 = vpop.f32.mrb[98].mxu1  ;;  %3931 = vmatprep.mubr.bf16.mxu0 %v3004_v4  ;;  %4317 = vmatprep.mubr.bf16.mxu1 %v3004_v4 }
 0x2e7   : > { %v6120_v59 = vadd.f32 %v2386_v48, %v7882_v16  ;;  %v6184_v63 = vadd.f32 %v2772_v31, %v7885_v21  ;;  %v2388_v38 = vpop.f32.mrb[99].mxu0  ;;  %v2774_v40 = vpop.f32.mrb[99].mxu1  ;;  %3932 = vmatmul.mubr.bf16.gmra.mrb[156].mxu0 %v3003_v58  ;;  %4318 = vmatmul.mubr.bf16.gmra.mrb[156].mxu1 %v3003_v58  ;;  %v2911_v1 = vmax.f32 %v6118_v47, 0.0  ;;  %v2913_v3 = vmax.f32 %v6182_v50, 0.0 }
 0x2e8   : > { %v6121_v9 = vadd.f32 %v2388_v38, %v7888_v5  ;;  %v6185_v46 = vadd.f32 %v2774_v40, %v7891_v10  ;;  %4051 = vmatpush1.bf16.msra.mxu0 %v7099_v43  ;;  %4437 = vmatpush1.bf16.msra.mxu1 %v7102_v45  ;;  %v2912_v14 = vmax.f32 %v6119_v7, 0.0  ;;  %v2914_v15 = vmax.f32 %v6183_v11, 0.0 }
 0x2e9   : > { %v2915_v22 = vmax.f32 %v6120_v59, 0.0  ;;  %v2917_v12 = vmax.f32 %v6184_v63, 0.0  ;;  %4052 = vmatprep.subr.bf16.mxu0 %v7107_v60  ;;  %4438 = vmatprep.subr.bf16.mxu1 %v7110_v30 }
 0x2ea   : > { %v2916_v39 = vmax.f32 %v6121_v9, 0.0  ;;  %v2918_v25 = vmax.f32 %v6185_v46, 0.0 }
 0x2eb   : > { %v3007_v17 = vpack.c.bf16 %v2915_v22, %v2911_v1  ;;  %v7997_v20 = vpack.c.bf16 %v2917_v12, %v2913_v3 }
 0x2ec   : > { %v3008_v23 = vpack.c.bf16 %v2916_v39, %v2912_v14  ;;  %v7999_v57 = vpack.c.bf16 %v2918_v25, %v2914_v15  ;;  %v2392_v26 = vpop.f32.mrb[100].mxu0  ;;  %v2778_v27 = vpop.f32.mrb[100].mxu1  ;;  %4053 = vmatpush1.bf16.msra.mxu0 %v7105_v62  ;;  %4439 = vmatpush1.bf16.msra.mxu1 %v7108_v61 }
 0x2ed   : > { %v6122_v32 = vadd.f32 %v2392_v26, %v7882_v16  ;;  %v6186_v34 = vadd.f32 %v2778_v27, %v7885_v21  ;;  %v2394_v58 = vpop.f32.mrb[101].mxu0  ;;  %v2780_v4 = vpop.f32.mrb[101].mxu1 }
 0x2ee   : > { %v6123_v37 = vadd.f32 %v2394_v58, %v7888_v5  ;;  %v6187_v42 = vadd.f32 %v2780_v4, %v7891_v10  ;;  %v2396_v43 = vpop.f32.mrb[102].mxu0  ;;  %v2782_v45 = vpop.f32.mrb[102].mxu1  ;;  %3941 = vmatprep.mubr.bf16.mxu0 %v3008_v23  ;;  %4327 = vmatprep.mubr.bf16.mxu1 %v3008_v23 }
 0x2ef   : > { %v6124_v47 = vadd.f32 %v2396_v43, %v7882_v16  ;;  %v6188_v50 = vadd.f32 %v2782_v45, %v7885_v21  ;;  %v2398_v55 = vpop.f32.mrb[103].mxu0  ;;  %v2784_v0 = vpop.f32.mrb[103].mxu1  ;;  %3942 = vmatmul.mubr.bf16.gmra.mrb[160].mxu0 %v3007_v17  ;;  %4328 = vmatmul.mubr.bf16.gmra.mrb[160].mxu1 %v3007_v17  ;;  %v2919_v7 = vmax.f32 %v6122_v32, 0.0  ;;  %v2921_v11 = vmax.f32 %v6186_v34, 0.0 }
 0x2f0   : > { %v6125_v60 = vadd.f32 %v2398_v55, %v7888_v5  ;;  %v6189_v30 = vadd.f32 %v2784_v0, %v7891_v10  ;;  %v2920_v59 = vmax.f32 %v6123_v37, 0.0  ;;  %v2922_v63 = vmax.f32 %v6187_v42, 0.0 }
 0x2f1   : > { %v2923_v48 = vmax.f32 %v6124_v47, 0.0  ;;  %v2925_v31 = vmax.f32 %v6188_v50, 0.0 }
 0x2f2   : > { %v2924_v38 = vmax.f32 %v6125_v60, 0.0  ;;  %v2926_v40 = vmax.f32 %v6189_v30, 0.0 }
 0x2f3   : > { %v3011_v9 = vpack.c.bf16 %v2923_v48, %v2919_v7  ;;  %v8009_v46 = vpack.c.bf16 %v2925_v31, %v2921_v11 }
 0x2f4   : > { %v3012_v62 = vpack.c.bf16 %v2924_v38, %v2920_v59  ;;  %v8011_v61 = vpack.c.bf16 %v2926_v40, %v2922_v63  ;;  %v2402_v1 = vpop.f32.mrb[104].mxu0  ;;  %v2788_v3 = vpop.f32.mrb[104].mxu1 }
 0x2f5   : > { %v6126_v22 = vadd.f32 %v2402_v1, %v7882_v16  ;;  %v6190_v12 = vadd.f32 %v2788_v3, %v7885_v21  ;;  %v2404_v14 = vpop.f32.mrb[105].mxu0  ;;  %v2790_v15 = vpop.f32.mrb[105].mxu1 }
 0x2f6   : > { %v6127_v39 = vadd.f32 %v2404_v14, %v7888_v5  ;;  %v6191_v25 = vadd.f32 %v2790_v15, %v7891_v10  ;;  %v2406_v17 = vpop.f32.mrb[106].mxu0  ;;  %v2792_v23 = vpop.f32.mrb[106].mxu1  ;;  %3951 = vmatprep.mubr.bf16.mxu0 %v3012_v62  ;;  %4337 = vmatprep.mubr.bf16.mxu1 %v3012_v62 }
 0x2f7   : > { %v6128_v26 = vadd.f32 %v2406_v17, %v7882_v16  ;;  %v6192_v27 = vadd.f32 %v2792_v23, %v7885_v21  ;;  %v2408_v32 = vpop.f32.mrb[107].mxu0  ;;  %v2794_v34 = vpop.f32.mrb[107].mxu1  ;;  %3952 = vmatmul.mubr.bf16.gmra.mrb[164].mxu0 %v3011_v9  ;;  %4338 = vmatmul.mubr.bf16.gmra.mrb[164].mxu1 %v3011_v9  ;;  %v2927_v37 = vmax.f32 %v6126_v22, 0.0  ;;  %v2929_v42 = vmax.f32 %v6190_v12, 0.0 }
 0x2f8   : > { %v6129_v58 = vadd.f32 %v2408_v32, %v7888_v5  ;;  %v6193_v4 = vadd.f32 %v2794_v34, %v7891_v10  ;;  %v2928_v47 = vmax.f32 %v6127_v39, 0.0  ;;  %v2930_v50 = vmax.f32 %v6191_v25, 0.0 }
 0x2f9   : > { %v2931_v43 = vmax.f32 %v6128_v26, 0.0  ;;  %v2933_v45 = vmax.f32 %v6192_v27, 0.0 }
 0x2fa   : > { %v2932_v55 = vmax.f32 %v6129_v58, 0.0  ;;  %v2934_v0 = vmax.f32 %v6193_v4, 0.0 }
 0x2fb   : > { %v3015_v60 = vpack.c.bf16 %v2931_v43, %v2927_v37  ;;  %v8021_v30 = vpack.c.bf16 %v2933_v45, %v2929_v42 }
 0x2fc   : > { %v3016_v7 = vpack.c.bf16 %v2932_v55, %v2928_v47  ;;  %v8023_v11 = vpack.c.bf16 %v2934_v0, %v2930_v50  ;;  %v2412_v48 = vpop.f32.mrb[108].mxu0  ;;  %v2798_v31 = vpop.f32.mrb[108].mxu1 }
 0x2fd   : > { %v6130_v59 = vadd.f32 %v2412_v48, %v7882_v16  ;;  %v6194_v63 = vadd.f32 %v2798_v31, %v7885_v21  ;;  %v2414_v38 = vpop.f32.mrb[109].mxu0  ;;  %v2800_v40 = vpop.f32.mrb[109].mxu1 }
 0x2fe   : > { %v6131_v9 = vadd.f32 %v2414_v38, %v7888_v5  ;;  %v6195_v62 = vadd.f32 %v2800_v40, %v7891_v10  ;;  %v2416_v1 = vpop.f32.mrb[110].mxu0  ;;  %v2802_v3 = vpop.f32.mrb[110].mxu1  ;;  %3961 = vmatprep.mubr.bf16.mxu0 %v3016_v7  ;;  %4347 = vmatprep.mubr.bf16.mxu1 %v3016_v7 }
 0x2ff   : > { %v6132_v22 = vadd.f32 %v2416_v1, %v7882_v16  ;;  %v6196_v12 = vadd.f32 %v2802_v3, %v7885_v21  ;;  %v2418_v14 = vpop.f32.mrb[111].mxu0  ;;  %v2804_v15 = vpop.f32.mrb[111].mxu1  ;;  %3962 = vmatmul.mubr.bf16.gmra.mrb[168].mxu0 %v3015_v60  ;;  %4348 = vmatmul.mubr.bf16.gmra.mrb[168].mxu1 %v3015_v60  ;;  %v2935_v17 = vmax.f32 %v6130_v59, 0.0  ;;  %v2937_v23 = vmax.f32 %v6194_v63, 0.0 }
 0x300   : > { %v6133_v39 = vadd.f32 %v2418_v14, %v7888_v5  ;;  %v6197_v25 = vadd.f32 %v2804_v15, %v7891_v10  ;;  %v2936_v32 = vmax.f32 %v6131_v9, 0.0  ;;  %v2938_v34 = vmax.f32 %v6195_v62, 0.0 }
 0x301   : > { %v2939_v26 = vmax.f32 %v6132_v22, 0.0  ;;  %v2941_v27 = vmax.f32 %v6196_v12, 0.0  ;;  %v7111_v22 = vld [vmem:[%s8521_s7 + $0x40] sm:$0xff]  }
 0x302   : > { %v2940_v58 = vmax.f32 %v6133_v39, 0.0  ;;  %v2942_v4 = vmax.f32 %v6197_v25, 0.0  ;;  %v7113_v12 = vld [vmem:[%s8521_s7 + $0xc0] sm:$0xff]   ;;  %5862 = vmatprep.subr.bf16.mxu0 %v7111_v22 }
 0x303   : > { %v3019_v37 = vpack.c.bf16 %v2939_v26, %v2935_v17  ;;  %v8033_v42 = vpack.c.bf16 %v2941_v27, %v2937_v23  ;;  %5974 = vmatprep.subr.bf16.mxu1 %v7113_v12 }
 0x304   : > { %v3020_v43 = vpack.c.bf16 %v2940_v58, %v2936_v32  ;;  %v8035_v45 = vpack.c.bf16 %v2942_v4, %v2938_v34  ;;  %v2422_v47 = vpop.f32.mrb[112].mxu0  ;;  %v2808_v50 = vpop.f32.mrb[112].mxu1 }
 0x305   : > { %v6134_v55 = vadd.f32 %v2422_v47, %v7882_v16  ;;  %v6198_v0 = vadd.f32 %v2808_v50, %v7885_v21  ;;  %v2424_v60 = vpop.f32.mrb[113].mxu0  ;;  %v2810_v7 = vpop.f32.mrb[113].mxu1 }
 0x306   : > { %v6135_v48 = vadd.f32 %v2424_v60, %v7888_v5  ;;  %v6199_v31 = vadd.f32 %v2810_v7, %v7891_v10  ;;  %v2426_v59 = vpop.f32.mrb[114].mxu0  ;;  %v2812_v63 = vpop.f32.mrb[114].mxu1  ;;  %3971 = vmatprep.mubr.bf16.mxu0 %v3020_v43  ;;  %4357 = vmatprep.mubr.bf16.mxu1 %v3020_v43 }
 0x307   : > { %v6136_v38 = vadd.f32 %v2426_v59, %v7882_v16  ;;  %v6200_v40 = vadd.f32 %v2812_v63, %v7885_v21  ;;  %v2428_v9 = vpop.f32.mrb[115].mxu0  ;;  %v2814_v62 = vpop.f32.mrb[115].mxu1  ;;  %3972 = vmatmul.mubr.bf16.gmra.mrb[172].mxu0 %v3019_v37  ;;  %4358 = vmatmul.mubr.bf16.gmra.mrb[172].mxu1 %v3019_v37  ;;  %v2943_v14 = vmax.f32 %v6134_v55, 0.0  ;;  %v2945_v15 = vmax.f32 %v6198_v0, 0.0 }
 0x308   : > { %v6137_v1 = vadd.f32 %v2428_v9, %v7888_v5  ;;  %v6201_v3 = vadd.f32 %v2814_v62, %v7891_v10  ;;  %v2944_v17 = vmax.f32 %v6135_v48, 0.0  ;;  %v2946_v23 = vmax.f32 %v6199_v31, 0.0 }
 0x309   : > { %v2947_v39 = vmax.f32 %v6136_v38, 0.0  ;;  %v2949_v25 = vmax.f32 %v6200_v40, 0.0 }
 0x30a   : > { %v2948_v26 = vmax.f32 %v6137_v1, 0.0  ;;  %v2950_v27 = vmax.f32 %v6201_v3, 0.0 }
 0x30b   : > { %v3023_v32 = vpack.c.bf16 %v2947_v39, %v2943_v14  ;;  %v8051_v34 = vpack.c.bf16 %v2949_v25, %v2945_v15 }
 0x30c   : > { %v3024_v58 = vpack.c.bf16 %v2948_v26, %v2944_v17  ;;  %v8053_v4 = vpack.c.bf16 %v2950_v27, %v2946_v23  ;;  %v2432_v37 = vpop.f32.mrb[116].mxu0  ;;  %v2818_v43 = vpop.f32.mrb[116].mxu1 }
 0x30d   : > { %v6138_v47 = vadd.f32 %v2432_v37, %v7882_v16  ;;  %v6202_v50 = vadd.f32 %v2818_v43, %v7885_v21  ;;  %v2434_v55 = vpop.f32.mrb[117].mxu0  ;;  %v2820_v0 = vpop.f32.mrb[117].mxu1 }
 0x30e   : > { %v6139_v60 = vadd.f32 %v2434_v55, %v7888_v5  ;;  %v6203_v7 = vadd.f32 %v2820_v0, %v7891_v10  ;;  %v2436_v48 = vpop.f32.mrb[118].mxu0  ;;  %v2822_v31 = vpop.f32.mrb[118].mxu1  ;;  %3981 = vmatprep.mubr.bf16.mxu0 %v3024_v58  ;;  %4367 = vmatprep.mubr.bf16.mxu1 %v3024_v58 }
 0x30f   : > { %v6140_v59 = vadd.f32 %v2436_v48, %v7882_v16  ;;  %v6204_v63 = vadd.f32 %v2822_v31, %v7885_v21  ;;  %v2438_v38 = vpop.f32.mrb[119].mxu0  ;;  %v2824_v40 = vpop.f32.mrb[119].mxu1  ;;  %3982 = vmatmul.mubr.bf16.gmra.mrb[176].mxu0 %v3023_v32  ;;  %4368 = vmatmul.mubr.bf16.gmra.mrb[176].mxu1 %v3023_v32  ;;  %v2951_v1 = vmax.f32 %v6138_v47, 0.0  ;;  %v2953_v3 = vmax.f32 %v6202_v50, 0.0 }
 0x310   : > { %v6141_v9 = vadd.f32 %v2438_v38, %v7888_v5  ;;  %v6205_v62 = vadd.f32 %v2824_v40, %v7891_v10  ;;  %v2952_v14 = vmax.f32 %v6139_v60, 0.0  ;;  %v2954_v15 = vmax.f32 %v6203_v7, 0.0 }
 0x311   : > { %v2955_v22 = vmax.f32 %v6140_v59, 0.0  ;;  %v2957_v12 = vmax.f32 %v6204_v63, 0.0 }
 0x312   : > { %v2956_v39 = vmax.f32 %v6141_v9, 0.0  ;;  %v2958_v25 = vmax.f32 %v6205_v62, 0.0 }
 0x313   : > { %v3027_v17 = vpack.c.bf16 %v2955_v22, %v2951_v1  ;;  %v8063_v23 = vpack.c.bf16 %v2957_v12, %v2953_v3 }
 0x314   : > { %v3028_v26 = vpack.c.bf16 %v2956_v39, %v2952_v14  ;;  %v8065_v27 = vpack.c.bf16 %v2958_v25, %v2954_v15  ;;  %v2442_v58 = vpop.f32.mrb[120].mxu0  ;;  %v2828_v32 = vpop.f32.mrb[120].mxu1 }
 0x315   : > { %v6142_v37 = vadd.f32 %v2442_v58, %v7882_v16  ;;  %v6206_v43 = vadd.f32 %v2828_v32, %v7885_v21  ;;  %v2444_v47 = vpop.f32.mrb[121].mxu0  ;;  %v2830_v50 = vpop.f32.mrb[121].mxu1 }
 0x316   : > { %v6143_v55 = vadd.f32 %v2444_v47, %v7888_v5  ;;  %v6207_v0 = vadd.f32 %v2830_v50, %v7891_v10  ;;  %v2446_v60 = vpop.f32.mrb[122].mxu0  ;;  %v2832_v7 = vpop.f32.mrb[122].mxu1  ;;  %3991 = vmatprep.mubr.bf16.mxu0 %v3028_v26  ;;  %4377 = vmatprep.mubr.bf16.mxu1 %v3028_v26 }
 0x317   : > { %v6144_v48 = vadd.f32 %v2446_v60, %v7882_v16  ;;  %v6208_v31 = vadd.f32 %v2832_v7, %v7885_v21  ;;  %v2448_v59 = vpop.f32.mrb[123].mxu0  ;;  %v2834_v63 = vpop.f32.mrb[123].mxu1  ;;  %3992 = vmatmul.mubr.bf16.gmra.mrb[180].mxu0 %v3027_v17  ;;  %4378 = vmatmul.mubr.bf16.gmra.mrb[180].mxu1 %v3027_v17  ;;  %v2959_v9 = vmax.f32 %v6142_v37, 0.0  ;;  %v2961_v62 = vmax.f32 %v6206_v43, 0.0 }
 0x318   : > { %v6145_v38 = vadd.f32 %v2448_v59, %v7888_v5  ;;  %v6209_v40 = vadd.f32 %v2834_v63, %v7891_v10  ;;  %v2960_v22 = vmax.f32 %v6143_v55, 0.0  ;;  %v2962_v12 = vmax.f32 %v6207_v0, 0.0 }
 0x319   : > { %v2963_v1 = vmax.f32 %v6144_v48, 0.0  ;;  %v2965_v3 = vmax.f32 %v6208_v31, 0.0 }
 0x31a   : > { %v2964_v14 = vmax.f32 %v6145_v38, 0.0  ;;  %v2966_v15 = vmax.f32 %v6209_v40, 0.0 }
 0x31b   : > { %v3031_v39 = vpack.c.bf16 %v2963_v1, %v2959_v9  ;;  %v8075_v25 = vpack.c.bf16 %v2965_v3, %v2961_v62 }
 0x31c   : > { %v3032_v26 = vpack.c.bf16 %v2964_v14, %v2960_v22  ;;  %v8077_v58 = vpack.c.bf16 %v2966_v15, %v2962_v12  ;;  %v2452_v32 = vpop.f32.mrb[124].mxu0  ;;  %v2838_v17 = vpop.f32.mrb[124].mxu1 }
 0x31d   : > { %v6146_v47 = vadd.f32 %v2452_v32, %v7882_v16  ;;  %v6210_v50 = vadd.f32 %v2838_v17, %v7885_v21  ;;  %v2454_v37 = vpop.f32.mrb[125].mxu0  ;;  %v2840_v43 = vpop.f32.mrb[125].mxu1  ;;  %v7117_v17 = vld [vmem:[%s8521_s7 + $0xc8] sm:$0xff]  }
 0x31e   : > { %v6147_v60 = vadd.f32 %v2454_v37, %v7888_v5  ;;  %v6211_v55 = vadd.f32 %v2840_v43, %v7891_v10  ;;  %v2456_v0 = vpop.f32.mrb[126].mxu0  ;;  %v2842_v7 = vpop.f32.mrb[126].mxu1  ;;  %4001 = vmatprep.mubr.bf16.mxu0 %v3032_v26  ;;  %4387 = vmatprep.mubr.bf16.mxu1 %v3032_v26  ;;  %v7122_v37 = vld [vmem:[%s8521_s7 + $0x90] sm:$0xff]   ;;  %v7123_v43 = vld [vmem:[%s8521_s7 + $0x58] sm:$0xff]  }
 0x31f   : > { %v6148_v48 = vadd.f32 %v2456_v0, %v7882_v16  ;;  %v6212_v31 = vadd.f32 %v2842_v7, %v7885_v21  ;;  %v2458_v59 = vpop.f32.mrb[127].mxu0  ;;  %v2844_v63 = vpop.f32.mrb[127].mxu1  ;;  %4002 = vmatmul.mubr.bf16.gmra.mrb[184].mxu0 %v3031_v39  ;;  %4388 = vmatmul.mubr.bf16.gmra.mrb[184].mxu1 %v3031_v39  ;;  %v2967_v9 = vmax.f32 %v6146_v47, 0.0  ;;  %v2969_v62 = vmax.f32 %v6210_v50, 0.0  ;;  %v7115_v39 = vld [vmem:[%s8521_s7 + $0x48] sm:$0xff]   ;;  %v7120_v50 = vld [vmem:[%s8521_s7 + $0x10] sm:$0xff]  }
 0x320   : > { %v6149_v38 = vadd.f32 %v2458_v59, %v7888_v5  ;;  %v6213_v40 = vadd.f32 %v2844_v63, %v7891_v10  ;;  %v2968_v22 = vmax.f32 %v6147_v60, 0.0  ;;  %v2970_v12 = vmax.f32 %v6211_v55, 0.0  ;;  %v7112_v5 = vld [vmem:[%s8521_s7] sm:$0xff]   ;;  %v7118_v47 = vld [vmem:[%s8521_s7 + $0x88] sm:$0xff]   ;;  %v7125_v60 = vld [vmem:[%s8521_s7 + $0xd8] sm:$0xff]  }
 0x321   : > { %v2971_v1 = vmax.f32 %v6148_v48, 0.0  ;;  %v2973_v3 = vmax.f32 %v6212_v31, 0.0  ;;  %v7114_v10 = vld [vmem:[%s8521_s7 + $0x80] sm:$0xff]   ;;  %v7124_v55 = vld [vmem:[%s8521_s7 + $0x18] sm:$0xff]   ;;  %v7131_v31 = vld [vmem:[%s8521_s7 + $0x68] sm:$0xff]  }
 0x322   : > { %v2972_v14 = vmax.f32 %v6149_v38, 0.0  ;;  %v2974_v15 = vmax.f32 %v6213_v40, 0.0  ;;  %v7126_v0 = vld [vmem:[%s8521_s7 + $0x98] sm:$0xff]   ;;  %v7128_v7 = vld [vmem:[%s8521_s7 + $0x20] sm:$0xff]   ;;  %v7133_v59 = vld [vmem:[%s8521_s7 + $0xe8] sm:$0xff]  }
 0x323   : > { %v3035_v26 = vpack.c.bf16 %v2971_v1, %v2967_v9  ;;  %v8087_v16 = vpack.c.bf16 %v2973_v3, %v2969_v62  ;;  %v7130_v48 = vld [vmem:[%s8521_s7 + $0xa0] sm:$0xff]   ;;  %v7132_v63 = vld [vmem:[%s8521_s7 + $0x28] sm:$0xff]   ;;  %v7136_v40 = vld [vmem:[%s8521_s7 + $0x30] sm:$0xff]  }
 0x324   : > { %v3036_v21 = vpack.c.bf16 %v2972_v14, %v2968_v22  ;;  %v8089_v32 = vpack.c.bf16 %v2974_v15, %v2970_v12  ;;  %v7134_v38 = vld [vmem:[%s8521_s7 + $0xa8] sm:$0xff]   ;;  %v7138_v9 = vld [vmem:[%s8521_s7 + $0xb0] sm:$0xff]   ;;  %v7139_v62 = vld [vmem:[%s8521_s7 + $0x78] sm:$0xff]  }
 0x325   : > { %v7141_v1 = vld [vmem:[%s8521_s7 + $0xf8] sm:$0xff]  }
 0x326   : > { %4011 = vmatprep.mubr.bf16.mxu0 %v3036_v21  ;;  %4397 = vmatprep.mubr.bf16.mxu1 %v3036_v21  ;;  %v7140_v3 = vld [vmem:[%s8521_s7 + $0x38] sm:$0xff]  }
 0x327   : > { %4012 = vmatmul.mubr.bf16.gmra.mrb[188].mxu0 %v3035_v26  ;;  %4398 = vmatmul.mubr.bf16.gmra.mrb[188].mxu1 %v3035_v26  ;;  %v7142_v22 = vld [vmem:[%s8521_s7 + $0xb8] sm:$0xff]  }
 0x328   : > { %4054 = vmatprep.mubr.bf16.mxu0 %v7903_v8  ;;  %4440 = vmatprep.mubr.bf16.mxu1 %v7903_v8  ;;  %v7116_v8 = vld [vmem:[%s8521_s7 + $0x8] sm:$0xff]  }
 0x32f   : > { %4055 = vmatmul.mubr.bf16.vlgmr.msra.gmra.mrb[128].mxu0 %v7901_v18  ;;  %4441 = vmatmul.mubr.bf16.vlgmr.msra.gmra.mrb[128].mxu1 %v7901_v18  ;;  %v7119_v18 = vld [vmem:[%s8521_s7 + $0x50] sm:$0xff]  }
 0x330   : > { %4064 = vmatprep.mubr.bf16.mxu0 %v7915_v36  ;;  %4450 = vmatprep.mubr.bf16.mxu1 %v7915_v36  ;;  %v7121_v36 = vld [vmem:[%s8521_s7 + $0xd0] sm:$0xff]  }
 0x331   : > { %5863 = vmatpush3.bf16.msra.mxu0 %v7112_v5  ;;  %5975 = vmatpush3.bf16.msra.mxu1 %v7114_v10 }
 0x332   : > { %5864 = vmatprep.subr.bf16.mxu0 %v7115_v39  ;;  %5976 = vmatprep.subr.bf16.mxu1 %v7117_v17 }
 0x335   : > { %5865 = vmatpush3.bf16.msra.mxu0 %v7116_v8  ;;  %5977 = vmatpush3.bf16.msra.mxu1 %v7118_v47 }
 0x336   : > { %5866 = vmatprep.subr.bf16.mxu0 %v7119_v18  ;;  %5978 = vmatprep.subr.bf16.mxu1 %v7121_v36 }
 0x337   : > { %4065 = vmatmul.mubr.bf16.gmra.mrb[132].mxu0 %v7913_v13  ;;  %4451 = vmatmul.mubr.bf16.gmra.mrb[132].mxu1 %v7913_v13  ;;  %v7127_v13 = vld [vmem:[%s8521_s7 + $0x60] sm:$0xff]  }
 0x338   : > { %4074 = vmatprep.mubr.bf16.mxu0 %v7927_v51  ;;  %4460 = vmatprep.mubr.bf16.mxu1 %v7927_v51  ;;  %v7129_v51 = vld [vmem:[%s8521_s7 + $0xe0] sm:$0xff]  }
 0x339   : > { %5867 = vmatpush3.bf16.msra.mxu0 %v7120_v50  ;;  %5979 = vmatpush3.bf16.msra.mxu1 %v7122_v37 }
 0x33a   : > { %5868 = vmatprep.subr.bf16.mxu0 %v7123_v43  ;;  %5980 = vmatprep.subr.bf16.mxu1 %v7125_v60 }
 0x33d   : > { %5869 = vmatpush3.bf16.msra.mxu0 %v7124_v55  ;;  %5981 = vmatpush3.bf16.msra.mxu1 %v7126_v0 }
 0x33e   : > { %5870 = vmatprep.subr.bf16.mxu0 %v7127_v13  ;;  %5982 = vmatprep.subr.bf16.mxu1 %v7129_v51 }
 0x33f   : > { %4075 = vmatmul.mubr.bf16.gmra.mrb[136].mxu0 %v7925_v33  ;;  %4461 = vmatmul.mubr.bf16.gmra.mrb[136].mxu1 %v7925_v33  ;;  %v7135_v33 = vld [vmem:[%s8521_s7 + $0x70] sm:$0xff]  }
 0x340   : > { %4084 = vmatprep.mubr.bf16.mxu0 %v7939_v29  ;;  %4470 = vmatprep.mubr.bf16.mxu1 %v7939_v29  ;;  %v7137_v29 = vld [vmem:[%s8521_s7 + $0xf0] sm:$0xff]  }
 0x341   : > { %5871 = vmatpush3.bf16.msra.mxu0 %v7128_v7  ;;  %5983 = vmatpush3.bf16.msra.mxu1 %v7130_v48 }
 0x342   : > { %5872 = vmatprep.subr.bf16.mxu0 %v7131_v31  ;;  %5984 = vmatprep.subr.bf16.mxu1 %v7133_v59 }
 0x345   : > { %5873 = vmatpush3.bf16.msra.mxu0 %v7132_v63  ;;  %5985 = vmatpush3.bf16.msra.mxu1 %v7134_v38 }
 0x346   : > { %5874 = vmatprep.subr.bf16.mxu0 %v7135_v33  ;;  %5986 = vmatprep.subr.bf16.mxu1 %v7137_v29 }
 0x347   : > { %4085 = vmatmul.mubr.bf16.gmra.mrb[140].mxu0 %v7937_v19  ;;  %4471 = vmatmul.mubr.bf16.gmra.mrb[140].mxu1 %v7937_v19  ;;  %v3167_v19 = vld [vmem:[%s8520_s6] sm:$0xf] }
 0x348   : > { %4094 = vmatprep.mubr.bf16.mxu0 %v7951_v6  ;;  %4480 = vmatprep.mubr.bf16.mxu1 %v7951_v6  ;;  %v8252_v6 = vrot.slane %v3167_v19, %v7620_v24 }
 0x349   : > { %5875 = vmatpush3.bf16.msra.mxu0 %v7136_v40  ;;  %5987 = vmatpush3.bf16.msra.mxu1 %v7138_v9 }
 0x34a   : > { %5876 = vmatprep.subr.bf16.mxu0 %v7139_v62  ;;  %5988 = vmatprep.subr.bf16.mxu1 %v7141_v1 }
 0x34d   : > { %5877 = vmatpush3.bf16.msra.mxu0 %v7140_v3  ;;  %5989 = vmatpush3.bf16.msra.mxu1 %v7142_v22 }
 0x34f   : > { %4095 = vmatmul.mubr.bf16.gmra.mrb[144].mxu0 %v7949_v44  ;;  %4481 = vmatmul.mubr.bf16.gmra.mrb[144].mxu1 %v7949_v44  ;;  %v8249_v44 = vrot.slane %v3167_v19, %v7599_v54 }
 0x350   : > { %4104 = vmatprep.mubr.bf16.mxu0 %v7963_v35  ;;  %4490 = vmatprep.mubr.bf16.mxu1 %v7963_v35  ;;  %v8258_v35 = vrot.slane %v3167_v19, %v7622_v28 }
 0x357   : > { %4105 = vmatmul.mubr.bf16.gmra.mrb[148].mxu0 %v7961_v52  ;;  %4491 = vmatmul.mubr.bf16.gmra.mrb[148].mxu1 %v7961_v52  ;;  %v8255_v52 = vrot.slane %v3167_v19, %v7604_v56 }
 0x358   : > { %4114 = vmatprep.mubr.bf16.mxu0 %v7975_v41  ;;  %4500 = vmatprep.mubr.bf16.mxu1 %v7975_v41 }
 0x35f   : > { %4115 = vmatmul.mubr.bf16.gmra.mrb[152].mxu0 %v7973_v49  ;;  %4501 = vmatmul.mubr.bf16.gmra.mrb[152].mxu1 %v7973_v49 }
 0x360   : > { %4124 = vmatprep.mubr.bf16.mxu0 %v7987_v53  ;;  %4510 = vmatprep.mubr.bf16.mxu1 %v7987_v53 }
 0x367   : > { %4125 = vmatmul.mubr.bf16.gmra.mrb[156].mxu0 %v7985_v2  ;;  %4511 = vmatmul.mubr.bf16.gmra.mrb[156].mxu1 %v7985_v2 }
 0x368   : > { %4134 = vmatprep.mubr.bf16.mxu0 %v7999_v57  ;;  %4520 = vmatprep.mubr.bf16.mxu1 %v7999_v57 }
 0x36f   : > { %4135 = vmatmul.mubr.bf16.gmra.mrb[160].mxu0 %v7997_v20  ;;  %4521 = vmatmul.mubr.bf16.gmra.mrb[160].mxu1 %v7997_v20 }
 0x370   : > { %4144 = vmatprep.mubr.bf16.mxu0 %v8011_v61  ;;  %4530 = vmatprep.mubr.bf16.mxu1 %v8011_v61 }
 0x377   : > { %4145 = vmatmul.mubr.bf16.gmra.mrb[164].mxu0 %v8009_v46  ;;  %4531 = vmatmul.mubr.bf16.gmra.mrb[164].mxu1 %v8009_v46 }
 0x378   : > { %4154 = vmatprep.mubr.bf16.mxu0 %v8023_v11  ;;  %4540 = vmatprep.mubr.bf16.mxu1 %v8023_v11 }
 0x37f   : > { %4155 = vmatmul.mubr.bf16.gmra.mrb[168].mxu0 %v8021_v30  ;;  %4541 = vmatmul.mubr.bf16.gmra.mrb[168].mxu1 %v8021_v30 }
 0x380   : > { %4164 = vmatprep.mubr.bf16.mxu0 %v8035_v45  ;;  %4550 = vmatprep.mubr.bf16.mxu1 %v8035_v45 }
 0x387   : > { %4165 = vmatmul.mubr.bf16.gmra.mrb[172].mxu0 %v8033_v42  ;;  %4551 = vmatmul.mubr.bf16.gmra.mrb[172].mxu1 %v8033_v42 }
 0x388   : > { %4174 = vmatprep.mubr.bf16.mxu0 %v8053_v4  ;;  %4560 = vmatprep.mubr.bf16.mxu1 %v8053_v4 }
 0x38f   : > { %4175 = vmatmul.mubr.bf16.gmra.mrb[176].mxu0 %v8051_v34  ;;  %4561 = vmatmul.mubr.bf16.gmra.mrb[176].mxu1 %v8051_v34 }
 0x390   : > { %4184 = vmatprep.mubr.bf16.mxu0 %v8065_v27  ;;  %4570 = vmatprep.mubr.bf16.mxu1 %v8065_v27 }
 0x397   : > { %4185 = vmatmul.mubr.bf16.gmra.mrb[180].mxu0 %v8063_v23  ;;  %4571 = vmatmul.mubr.bf16.gmra.mrb[180].mxu1 %v8063_v23 }
 0x398   : > { %4194 = vmatprep.mubr.bf16.mxu0 %v8077_v58  ;;  %4580 = vmatprep.mubr.bf16.mxu1 %v8077_v58 }
 0x39f   : > { %4195 = vmatmul.mubr.bf16.gmra.mrb[184].mxu0 %v8075_v25  ;;  %4581 = vmatmul.mubr.bf16.gmra.mrb[184].mxu1 %v8075_v25 }
 0x3a0   : > { %4204 = vmatprep.mubr.bf16.mxu0 %v8089_v32  ;;  %4590 = vmatprep.mubr.bf16.mxu1 %v8089_v32 }
 0x3a7   : > { %4205 = vmatmul.mubr.bf16.gmra.mrb[188].mxu0 %v8087_v16  ;;  %4591 = vmatmul.mubr.bf16.gmra.mrb[188].mxu1 %v8087_v16 }
 0x402   : > { %v4056_v49 = vpop.f32.mrb[128].mxu0  ;;  %v4442_v41 = vpop.f32.mrb[128].mxu1 }
 0x403   : > { %v6214_v2 = vadd.f32 %v4056_v49, %v8249_v44  ;;  %v6278_v53 = vadd.f32 %v4442_v41, %v8252_v6  ;;  %v4058_v20 = vpop.f32.mrb[129].mxu0  ;;  %v4444_v57 = vpop.f32.mrb[129].mxu1 }
 0x404   : > { %v6215_v54 = vadd.f32 %v4058_v20, %v8255_v52  ;;  %v6279_v46 = vadd.f32 %v4444_v57, %v8258_v35  ;;  %v4060_v24 = vpop.f32.mrb[130].mxu0  ;;  %v4446_v61 = vpop.f32.mrb[130].mxu1 }
 0x405   : > { %v6216_v56 = vadd.f32 %v4060_v24, %v8249_v44  ;;  %v6280_v30 = vadd.f32 %v4446_v61, %v8252_v6  ;;  %v4062_v28 = vpop.f32.mrb[131].mxu0  ;;  %v4448_v11 = vpop.f32.mrb[131].mxu1  ;;  %v4601_v34 = vmax.f32 %v6214_v2, 0.0  ;;  %v4603_v4 = vmax.f32 %v6278_v53, 0.0 }
 0x406   : > { %v6217_v42 = vadd.f32 %v4062_v28, %v8255_v52  ;;  %v6281_v45 = vadd.f32 %v4448_v11, %v8258_v35  ;;  %v4602_v25 = vmax.f32 %v6215_v54, 0.0  ;;  %v4604_v58 = vmax.f32 %v6279_v46, 0.0 }
 0x407   : > { %v4605_v23 = vmax.f32 %v6216_v56, 0.0  ;;  %v4607_v27 = vmax.f32 %v6280_v30, 0.0 }
 0x408   : > { %v4606_v12 = vmax.f32 %v6217_v42, 0.0  ;;  %v4608_v14 = vmax.f32 %v6281_v45, 0.0 }
 0x409   : > { %v4729_v15 = vpack.c.bf16 %v4605_v23, %v4601_v34  ;;  %v4731_v26 = vpack.c.bf16 %v4607_v27, %v4603_v4 }
 0x40a   : > { %v4730_v16 = vpack.c.bf16 %v4606_v12, %v4602_v25  ;;  %v4732_v21 = vpack.c.bf16 %v4608_v14, %v4604_v58  ;;  %v4066_v32 = vpop.f32.mrb[132].mxu0  ;;  %v4452_v5 = vpop.f32.mrb[132].mxu1 }
 0x40b   : > { %v6218_v10 = vadd.f32 %v4066_v32, %v8249_v44  ;;  %v6282_v39 = vadd.f32 %v4452_v5, %v8252_v6  ;;  %v4068_v17 = vpop.f32.mrb[133].mxu0  ;;  %v4454_v8 = vpop.f32.mrb[133].mxu1 }
 0x40c   : > { %v6219_v47 = vadd.f32 %v4068_v17, %v8255_v52  ;;  %v6283_v18 = vadd.f32 %v4454_v8, %v8258_v35  ;;  %v4070_v36 = vpop.f32.mrb[134].mxu0  ;;  %v4456_v50 = vpop.f32.mrb[134].mxu1  ;;  %5088 = vmatprep.mubr.bf16.mxu0 %v4730_v16  ;;  %5249 = vmatprep.mubr.bf16.mxu1 %v4732_v21 }
 0x40d   : > { %v6220_v37 = vadd.f32 %v4070_v36, %v8249_v44  ;;  %v6284_v43 = vadd.f32 %v4456_v50, %v8252_v6  ;;  %v4072_v60 = vpop.f32.mrb[135].mxu0  ;;  %v4458_v55 = vpop.f32.mrb[135].mxu1  ;;  %5089 = vmatmul.mubr.bf16.vlgmr.msra.gmra.mrb[192].mxu0 %v4729_v15  ;;  %5250 = vmatmul.mubr.bf16.vlgmr.msra.gmra.mrb[192].mxu1 %v4731_v26  ;;  %v4609_v51 = vmax.f32 %v6218_v10, 0.0  ;;  %v4611_v7 = vmax.f32 %v6282_v39, 0.0 }
 0x40e   : > { %v6221_v0 = vadd.f32 %v4072_v60, %v8255_v52  ;;  %v6285_v13 = vadd.f32 %v4458_v55, %v8258_v35  ;;  %v4610_v59 = vmax.f32 %v6219_v47, 0.0  ;;  %v4612_v63 = vmax.f32 %v6283_v18, 0.0 }
 0x40f   : > { %v4613_v48 = vmax.f32 %v6220_v37, 0.0  ;;  %v4615_v31 = vmax.f32 %v6284_v43, 0.0 }
 0x410   : > { %v4614_v38 = vmax.f32 %v6221_v0, 0.0  ;;  %v4616_v33 = vmax.f32 %v6285_v13, 0.0 }
 0x411   : > { %v4733_v29 = vpack.c.bf16 %v4613_v48, %v4609_v51  ;;  %v4735_v40 = vpack.c.bf16 %v4615_v31, %v4611_v7 }
 0x412   : > { %v4734_v9 = vpack.c.bf16 %v4614_v38, %v4610_v59  ;;  %v4736_v62 = vpack.c.bf16 %v4616_v33, %v4612_v63  ;;  %v4076_v1 = vpop.f32.mrb[136].mxu0  ;;  %v4462_v3 = vpop.f32.mrb[136].mxu1 }
 0x413   : > { %v6222_v22 = vadd.f32 %v4076_v1, %v8249_v44  ;;  %v6286_v19 = vadd.f32 %v4462_v3, %v8252_v6  ;;  %v4078_v49 = vpop.f32.mrb[137].mxu0  ;;  %v4464_v41 = vpop.f32.mrb[137].mxu1 }
 0x414   : > { %v6223_v2 = vadd.f32 %v4078_v49, %v8255_v52  ;;  %v6287_v53 = vadd.f32 %v4464_v41, %v8258_v35  ;;  %v4080_v20 = vpop.f32.mrb[138].mxu0  ;;  %v4466_v57 = vpop.f32.mrb[138].mxu1  ;;  %5096 = vmatprep.mubr.bf16.mxu0 %v4734_v9  ;;  %5257 = vmatprep.mubr.bf16.mxu1 %v4736_v62 }
 0x415   : > { %v6224_v54 = vadd.f32 %v4080_v20, %v8249_v44  ;;  %v6288_v46 = vadd.f32 %v4466_v57, %v8252_v6  ;;  %v4082_v24 = vpop.f32.mrb[139].mxu0  ;;  %v4468_v61 = vpop.f32.mrb[139].mxu1  ;;  %5097 = vmatmul.mubr.bf16.gmra.mrb[196].mxu0 %v4733_v29  ;;  %5258 = vmatmul.mubr.bf16.gmra.mrb[196].mxu1 %v4735_v40  ;;  %v4617_v28 = vmax.f32 %v6222_v22, 0.0  ;;  %v4619_v11 = vmax.f32 %v6286_v19, 0.0 }
 0x416   : > { %v6225_v56 = vadd.f32 %v4082_v24, %v8255_v52  ;;  %v6289_v30 = vadd.f32 %v4468_v61, %v8258_v35  ;;  %v4618_v34 = vmax.f32 %v6223_v2, 0.0  ;;  %v4620_v4 = vmax.f32 %v6287_v53, 0.0 }
 0x417   : > { %v4621_v42 = vmax.f32 %v6224_v54, 0.0  ;;  %v4623_v45 = vmax.f32 %v6288_v46, 0.0 }
 0x418   : > { %v4622_v23 = vmax.f32 %v6225_v56, 0.0  ;;  %v4624_v27 = vmax.f32 %v6289_v30, 0.0 }
 0x419   : > { %v4737_v25 = vpack.c.bf16 %v4621_v42, %v4617_v28  ;;  %v4739_v58 = vpack.c.bf16 %v4623_v45, %v4619_v11 }
 0x41a   : > { %v4738_v12 = vpack.c.bf16 %v4622_v23, %v4618_v34  ;;  %v4740_v14 = vpack.c.bf16 %v4624_v27, %v4620_v4  ;;  %v4086_v15 = vpop.f32.mrb[140].mxu0  ;;  %v4472_v26 = vpop.f32.mrb[140].mxu1 }
 0x41b   : > { %v6226_v16 = vadd.f32 %v4086_v15, %v8249_v44  ;;  %v6290_v21 = vadd.f32 %v4472_v26, %v8252_v6  ;;  %v4088_v32 = vpop.f32.mrb[141].mxu0  ;;  %v4474_v5 = vpop.f32.mrb[141].mxu1 }
 0x41c   : > { %v6227_v10 = vadd.f32 %v4088_v32, %v8255_v52  ;;  %v6291_v39 = vadd.f32 %v4474_v5, %v8258_v35  ;;  %v4090_v17 = vpop.f32.mrb[142].mxu0  ;;  %v4476_v8 = vpop.f32.mrb[142].mxu1  ;;  %5104 = vmatprep.mubr.bf16.mxu0 %v4738_v12  ;;  %5265 = vmatprep.mubr.bf16.mxu1 %v4740_v14 }
 0x41d   : > { %v6228_v47 = vadd.f32 %v4090_v17, %v8249_v44  ;;  %v6292_v18 = vadd.f32 %v4476_v8, %v8252_v6  ;;  %v4092_v36 = vpop.f32.mrb[143].mxu0  ;;  %v4478_v50 = vpop.f32.mrb[143].mxu1  ;;  %5105 = vmatmul.mubr.bf16.gmra.mrb[200].mxu0 %v4737_v25  ;;  %5266 = vmatmul.mubr.bf16.gmra.mrb[200].mxu1 %v4739_v58  ;;  %v4625_v60 = vmax.f32 %v6226_v16, 0.0  ;;  %v4627_v55 = vmax.f32 %v6290_v21, 0.0 }
 0x41e   : > { %v6229_v37 = vadd.f32 %v4092_v36, %v8255_v52  ;;  %v6293_v43 = vadd.f32 %v4478_v50, %v8258_v35  ;;  %v4626_v51 = vmax.f32 %v6227_v10, 0.0  ;;  %v4628_v7 = vmax.f32 %v6291_v39, 0.0 }
 0x41f   : > { %v4629_v0 = vmax.f32 %v6228_v47, 0.0  ;;  %v4631_v13 = vmax.f32 %v6292_v18, 0.0 }
 0x420   : > { %v4630_v48 = vmax.f32 %v6229_v37, 0.0  ;;  %v4632_v31 = vmax.f32 %v6293_v43, 0.0 }
 0x421   : > { %v4741_v59 = vpack.c.bf16 %v4629_v0, %v4625_v60  ;;  %v4743_v63 = vpack.c.bf16 %v4631_v13, %v4627_v55 }
 0x422   : > { %v4742_v38 = vpack.c.bf16 %v4630_v48, %v4626_v51  ;;  %v4744_v33 = vpack.c.bf16 %v4632_v31, %v4628_v7  ;;  %v4096_v29 = vpop.f32.mrb[144].mxu0  ;;  %v4482_v40 = vpop.f32.mrb[144].mxu1 }
 0x423   : > { %v6230_v9 = vadd.f32 %v4096_v29, %v8249_v44  ;;  %v6294_v62 = vadd.f32 %v4482_v40, %v8252_v6  ;;  %v4098_v1 = vpop.f32.mrb[145].mxu0  ;;  %v4484_v3 = vpop.f32.mrb[145].mxu1 }
 0x424   : > { %v6231_v22 = vadd.f32 %v4098_v1, %v8255_v52  ;;  %v6295_v19 = vadd.f32 %v4484_v3, %v8258_v35  ;;  %v4100_v49 = vpop.f32.mrb[146].mxu0  ;;  %v4486_v41 = vpop.f32.mrb[146].mxu1  ;;  %5112 = vmatprep.mubr.bf16.mxu0 %v4742_v38  ;;  %5273 = vmatprep.mubr.bf16.mxu1 %v4744_v33 }
 0x425   : > { %v6232_v2 = vadd.f32 %v4100_v49, %v8249_v44  ;;  %v6296_v53 = vadd.f32 %v4486_v41, %v8252_v6  ;;  %v4102_v20 = vpop.f32.mrb[147].mxu0  ;;  %v4488_v57 = vpop.f32.mrb[147].mxu1  ;;  %5113 = vmatmul.mubr.bf16.gmra.mrb[204].mxu0 %v4741_v59  ;;  %5274 = vmatmul.mubr.bf16.gmra.mrb[204].mxu1 %v4743_v63  ;;  %v4633_v24 = vmax.f32 %v6230_v9, 0.0  ;;  %v4635_v61 = vmax.f32 %v6294_v62, 0.0 }
 0x426   : > { %v6233_v54 = vadd.f32 %v4102_v20, %v8255_v52  ;;  %v6297_v46 = vadd.f32 %v4488_v57, %v8258_v35  ;;  %v4634_v28 = vmax.f32 %v6231_v22, 0.0  ;;  %v4636_v11 = vmax.f32 %v6295_v19, 0.0 }
 0x427   : > { %v4637_v56 = vmax.f32 %v6232_v2, 0.0  ;;  %v4639_v30 = vmax.f32 %v6296_v53, 0.0 }
 0x428   : > { %v4638_v42 = vmax.f32 %v6233_v54, 0.0  ;;  %v4640_v45 = vmax.f32 %v6297_v46, 0.0 }
 0x429   : > { %v4745_v34 = vpack.c.bf16 %v4637_v56, %v4633_v24  ;;  %v4747_v4 = vpack.c.bf16 %v4639_v30, %v4635_v61 }
 0x42a   : > { %v4746_v23 = vpack.c.bf16 %v4638_v42, %v4634_v28  ;;  %v4748_v27 = vpack.c.bf16 %v4640_v45, %v4636_v11  ;;  %v4106_v25 = vpop.f32.mrb[148].mxu0  ;;  %v4492_v58 = vpop.f32.mrb[148].mxu1 }
 0x42b   : > { %v6234_v12 = vadd.f32 %v4106_v25, %v8249_v44  ;;  %v6298_v14 = vadd.f32 %v4492_v58, %v8252_v6  ;;  %v4108_v15 = vpop.f32.mrb[149].mxu0  ;;  %v4494_v26 = vpop.f32.mrb[149].mxu1 }
 0x42c   : > { %v6235_v16 = vadd.f32 %v4108_v15, %v8255_v52  ;;  %v6299_v21 = vadd.f32 %v4494_v26, %v8258_v35  ;;  %v4110_v32 = vpop.f32.mrb[150].mxu0  ;;  %v4496_v5 = vpop.f32.mrb[150].mxu1  ;;  %5120 = vmatprep.mubr.bf16.mxu0 %v4746_v23  ;;  %5281 = vmatprep.mubr.bf16.mxu1 %v4748_v27 }
 0x42d   : > { %v6236_v10 = vadd.f32 %v4110_v32, %v8249_v44  ;;  %v6300_v39 = vadd.f32 %v4496_v5, %v8252_v6  ;;  %v4112_v17 = vpop.f32.mrb[151].mxu0  ;;  %v4498_v8 = vpop.f32.mrb[151].mxu1  ;;  %5121 = vmatmul.mubr.bf16.gmra.mrb[208].mxu0 %v4745_v34  ;;  %5282 = vmatmul.mubr.bf16.gmra.mrb[208].mxu1 %v4747_v4  ;;  %v4641_v36 = vmax.f32 %v6234_v12, 0.0  ;;  %v4643_v50 = vmax.f32 %v6298_v14, 0.0 }
 0x42e   : > { %v6237_v47 = vadd.f32 %v4112_v17, %v8255_v52  ;;  %v6301_v18 = vadd.f32 %v4498_v8, %v8258_v35  ;;  %v4642_v60 = vmax.f32 %v6235_v16, 0.0  ;;  %v4644_v55 = vmax.f32 %v6299_v21, 0.0 }
 0x42f   : > { %v4645_v37 = vmax.f32 %v6236_v10, 0.0  ;;  %v4647_v43 = vmax.f32 %v6300_v39, 0.0 }
 0x430   : > { %v4646_v0 = vmax.f32 %v6237_v47, 0.0  ;;  %v4648_v13 = vmax.f32 %v6301_v18, 0.0 }
 0x431   : > { %v4749_v51 = vpack.c.bf16 %v4645_v37, %v4641_v36  ;;  %v4751_v7 = vpack.c.bf16 %v4647_v43, %v4643_v50 }
 0x432   : > { %v4750_v48 = vpack.c.bf16 %v4646_v0, %v4642_v60  ;;  %v4752_v31 = vpack.c.bf16 %v4648_v13, %v4644_v55  ;;  %v4116_v59 = vpop.f32.mrb[152].mxu0  ;;  %v4502_v63 = vpop.f32.mrb[152].mxu1 }
 0x433   : > { %v6238_v38 = vadd.f32 %v4116_v59, %v8249_v44  ;;  %v6302_v33 = vadd.f32 %v4502_v63, %v8252_v6  ;;  %v4118_v29 = vpop.f32.mrb[153].mxu0  ;;  %v4504_v40 = vpop.f32.mrb[153].mxu1 }
 0x434   : > { %v6239_v9 = vadd.f32 %v4118_v29, %v8255_v52  ;;  %v6303_v62 = vadd.f32 %v4504_v40, %v8258_v35  ;;  %v4120_v1 = vpop.f32.mrb[154].mxu0  ;;  %v4506_v3 = vpop.f32.mrb[154].mxu1  ;;  %5128 = vmatprep.mubr.bf16.mxu0 %v4750_v48  ;;  %5289 = vmatprep.mubr.bf16.mxu1 %v4752_v31 }
 0x435   : > { %v6240_v22 = vadd.f32 %v4120_v1, %v8249_v44  ;;  %v6304_v19 = vadd.f32 %v4506_v3, %v8252_v6  ;;  %v4122_v49 = vpop.f32.mrb[155].mxu0  ;;  %v4508_v41 = vpop.f32.mrb[155].mxu1  ;;  %5129 = vmatmul.mubr.bf16.gmra.mrb[212].mxu0 %v4749_v51  ;;  %5290 = vmatmul.mubr.bf16.gmra.mrb[212].mxu1 %v4751_v7  ;;  %v4649_v20 = vmax.f32 %v6238_v38, 0.0  ;;  %v4651_v57 = vmax.f32 %v6302_v33, 0.0 }
 0x436   : > { %v6241_v2 = vadd.f32 %v4122_v49, %v8255_v52  ;;  %v6305_v53 = vadd.f32 %v4508_v41, %v8258_v35  ;;  %v4650_v24 = vmax.f32 %v6239_v9, 0.0  ;;  %v4652_v61 = vmax.f32 %v6303_v62, 0.0 }
 0x437   : > { %v4653_v54 = vmax.f32 %v6240_v22, 0.0  ;;  %v4655_v46 = vmax.f32 %v6304_v19, 0.0 }
 0x438   : > { %v4654_v56 = vmax.f32 %v6241_v2, 0.0  ;;  %v4656_v30 = vmax.f32 %v6305_v53, 0.0 }
 0x439   : > { %v4753_v28 = vpack.c.bf16 %v4653_v54, %v4649_v20  ;;  %v4755_v11 = vpack.c.bf16 %v4655_v46, %v4651_v57 }
 0x43a   : > { %v4754_v42 = vpack.c.bf16 %v4654_v56, %v4650_v24  ;;  %v4756_v45 = vpack.c.bf16 %v4656_v30, %v4652_v61  ;;  %v4126_v34 = vpop.f32.mrb[156].mxu0  ;;  %v4512_v4 = vpop.f32.mrb[156].mxu1 }
 0x43b   : > { %v6242_v23 = vadd.f32 %v4126_v34, %v8249_v44  ;;  %v6306_v27 = vadd.f32 %v4512_v4, %v8252_v6  ;;  %v4128_v25 = vpop.f32.mrb[157].mxu0  ;;  %v4514_v58 = vpop.f32.mrb[157].mxu1 }
 0x43c   : > { %v6243_v12 = vadd.f32 %v4128_v25, %v8255_v52  ;;  %v6307_v14 = vadd.f32 %v4514_v58, %v8258_v35  ;;  %v4130_v15 = vpop.f32.mrb[158].mxu0  ;;  %v4516_v26 = vpop.f32.mrb[158].mxu1  ;;  %5136 = vmatprep.mubr.bf16.mxu0 %v4754_v42  ;;  %5297 = vmatprep.mubr.bf16.mxu1 %v4756_v45 }
 0x43d   : > { %v6244_v16 = vadd.f32 %v4130_v15, %v8249_v44  ;;  %v6308_v21 = vadd.f32 %v4516_v26, %v8252_v6  ;;  %v4132_v32 = vpop.f32.mrb[159].mxu0  ;;  %v4518_v5 = vpop.f32.mrb[159].mxu1  ;;  %5137 = vmatmul.mubr.bf16.gmra.mrb[216].mxu0 %v4753_v28  ;;  %5298 = vmatmul.mubr.bf16.gmra.mrb[216].mxu1 %v4755_v11  ;;  %v4657_v17 = vmax.f32 %v6242_v23, 0.0  ;;  %v4659_v8 = vmax.f32 %v6306_v27, 0.0 }
 0x43e   : > { %v6245_v10 = vadd.f32 %v4132_v32, %v8255_v52  ;;  %v6309_v39 = vadd.f32 %v4518_v5, %v8258_v35  ;;  %v4658_v36 = vmax.f32 %v6243_v12, 0.0  ;;  %v4660_v50 = vmax.f32 %v6307_v14, 0.0 }
 0x43f   : > { %v4661_v47 = vmax.f32 %v6244_v16, 0.0  ;;  %v4663_v18 = vmax.f32 %v6308_v21, 0.0 }
 0x440   : > { %v4662_v37 = vmax.f32 %v6245_v10, 0.0  ;;  %v4664_v43 = vmax.f32 %v6309_v39, 0.0 }
 0x441   : > { %v4757_v60 = vpack.c.bf16 %v4661_v47, %v4657_v17  ;;  %v4759_v55 = vpack.c.bf16 %v4663_v18, %v4659_v8 }
 0x442   : > { %v4758_v0 = vpack.c.bf16 %v4662_v37, %v4658_v36  ;;  %v4760_v13 = vpack.c.bf16 %v4664_v43, %v4660_v50  ;;  %v4136_v51 = vpop.f32.mrb[160].mxu0  ;;  %v4522_v7 = vpop.f32.mrb[160].mxu1 }
 0x443   : > { %v6246_v48 = vadd.f32 %v4136_v51, %v8249_v44  ;;  %v6310_v31 = vadd.f32 %v4522_v7, %v8252_v6  ;;  %v4138_v59 = vpop.f32.mrb[161].mxu0  ;;  %v4524_v63 = vpop.f32.mrb[161].mxu1 }
 0x444   : > { %v6247_v38 = vadd.f32 %v4138_v59, %v8255_v52  ;;  %v6311_v33 = vadd.f32 %v4524_v63, %v8258_v35  ;;  %v4140_v29 = vpop.f32.mrb[162].mxu0  ;;  %v4526_v40 = vpop.f32.mrb[162].mxu1  ;;  %5144 = vmatprep.mubr.bf16.mxu0 %v4758_v0  ;;  %5305 = vmatprep.mubr.bf16.mxu1 %v4760_v13 }
 0x445   : > { %v6248_v9 = vadd.f32 %v4140_v29, %v8249_v44  ;;  %v6312_v62 = vadd.f32 %v4526_v40, %v8252_v6  ;;  %v4142_v1 = vpop.f32.mrb[163].mxu0  ;;  %v4528_v3 = vpop.f32.mrb[163].mxu1  ;;  %5145 = vmatmul.mubr.bf16.gmra.mrb[220].mxu0 %v4757_v60  ;;  %5306 = vmatmul.mubr.bf16.gmra.mrb[220].mxu1 %v4759_v55  ;;  %v4665_v49 = vmax.f32 %v6246_v48, 0.0  ;;  %v4667_v41 = vmax.f32 %v6310_v31, 0.0 }
 0x446   : > { %v6249_v22 = vadd.f32 %v4142_v1, %v8255_v52  ;;  %v6313_v19 = vadd.f32 %v4528_v3, %v8258_v35  ;;  %v4666_v20 = vmax.f32 %v6247_v38, 0.0  ;;  %v4668_v57 = vmax.f32 %v6311_v33, 0.0 }
 0x447   : > { %v4669_v2 = vmax.f32 %v6248_v9, 0.0  ;;  %v4671_v53 = vmax.f32 %v6312_v62, 0.0 }
 0x448   : > { %v4670_v54 = vmax.f32 %v6249_v22, 0.0  ;;  %v4672_v46 = vmax.f32 %v6313_v19, 0.0 }
 0x449   : > { %v4761_v24 = vpack.c.bf16 %v4669_v2, %v4665_v49  ;;  %v4763_v61 = vpack.c.bf16 %v4671_v53, %v4667_v41 }
 0x44a   : > { %v4762_v56 = vpack.c.bf16 %v4670_v54, %v4666_v20  ;;  %v4764_v30 = vpack.c.bf16 %v4672_v46, %v4668_v57  ;;  %v4146_v28 = vpop.f32.mrb[164].mxu0  ;;  %v4532_v11 = vpop.f32.mrb[164].mxu1 }
 0x44b   : > { %v6250_v42 = vadd.f32 %v4146_v28, %v8249_v44  ;;  %v6314_v45 = vadd.f32 %v4532_v11, %v8252_v6  ;;  %v4148_v34 = vpop.f32.mrb[165].mxu0  ;;  %v4534_v4 = vpop.f32.mrb[165].mxu1 }
 0x44c   : > { %v6251_v23 = vadd.f32 %v4148_v34, %v8255_v52  ;;  %v6315_v27 = vadd.f32 %v4534_v4, %v8258_v35  ;;  %v4150_v25 = vpop.f32.mrb[166].mxu0  ;;  %v4536_v58 = vpop.f32.mrb[166].mxu1  ;;  %5152 = vmatprep.mubr.bf16.mxu0 %v4762_v56  ;;  %5313 = vmatprep.mubr.bf16.mxu1 %v4764_v30 }
 0x44d   : > { %v6252_v12 = vadd.f32 %v4150_v25, %v8249_v44  ;;  %v6316_v14 = vadd.f32 %v4536_v58, %v8252_v6  ;;  %v4152_v15 = vpop.f32.mrb[167].mxu0  ;;  %v4538_v26 = vpop.f32.mrb[167].mxu1  ;;  %5153 = vmatmul.mubr.bf16.gmra.mrb[224].mxu0 %v4761_v24  ;;  %5314 = vmatmul.mubr.bf16.gmra.mrb[224].mxu1 %v4763_v61  ;;  %v4673_v32 = vmax.f32 %v6250_v42, 0.0  ;;  %v4675_v5 = vmax.f32 %v6314_v45, 0.0 }
 0x44e   : > { %v6253_v16 = vadd.f32 %v4152_v15, %v8255_v52  ;;  %v6317_v21 = vadd.f32 %v4538_v26, %v8258_v35  ;;  %v4674_v17 = vmax.f32 %v6251_v23, 0.0  ;;  %v4676_v8 = vmax.f32 %v6315_v27, 0.0 }
 0x44f   : > { %v4677_v10 = vmax.f32 %v6252_v12, 0.0  ;;  %v4679_v39 = vmax.f32 %v6316_v14, 0.0 }
 0x450   : > { %v4678_v47 = vmax.f32 %v6253_v16, 0.0  ;;  %v4680_v18 = vmax.f32 %v6317_v21, 0.0 }
 0x451   : > { %v4765_v36 = vpack.c.bf16 %v4677_v10, %v4673_v32  ;;  %v4767_v50 = vpack.c.bf16 %v4679_v39, %v4675_v5 }
 0x452   : > { %v4766_v37 = vpack.c.bf16 %v4678_v47, %v4674_v17  ;;  %v4768_v43 = vpack.c.bf16 %v4680_v18, %v4676_v8  ;;  %v4156_v60 = vpop.f32.mrb[168].mxu0  ;;  %v4542_v55 = vpop.f32.mrb[168].mxu1 }
 0x453   : > { %v6254_v0 = vadd.f32 %v4156_v60, %v8249_v44  ;;  %v6318_v13 = vadd.f32 %v4542_v55, %v8252_v6  ;;  %v4158_v51 = vpop.f32.mrb[169].mxu0  ;;  %v4544_v7 = vpop.f32.mrb[169].mxu1 }
 0x454   : > { %v6255_v48 = vadd.f32 %v4158_v51, %v8255_v52  ;;  %v6319_v31 = vadd.f32 %v4544_v7, %v8258_v35  ;;  %v4160_v59 = vpop.f32.mrb[170].mxu0  ;;  %v4546_v63 = vpop.f32.mrb[170].mxu1  ;;  %5160 = vmatprep.mubr.bf16.mxu0 %v4766_v37  ;;  %5321 = vmatprep.mubr.bf16.mxu1 %v4768_v43 }
 0x455   : > { %v6256_v38 = vadd.f32 %v4160_v59, %v8249_v44  ;;  %v6320_v33 = vadd.f32 %v4546_v63, %v8252_v6  ;;  %v4162_v29 = vpop.f32.mrb[171].mxu0  ;;  %v4548_v40 = vpop.f32.mrb[171].mxu1  ;;  %5161 = vmatmul.mubr.bf16.gmra.mrb[228].mxu0 %v4765_v36  ;;  %5322 = vmatmul.mubr.bf16.gmra.mrb[228].mxu1 %v4767_v50  ;;  %v4681_v1 = vmax.f32 %v6254_v0, 0.0  ;;  %v4683_v3 = vmax.f32 %v6318_v13, 0.0 }
 0x456   : > { %v6257_v9 = vadd.f32 %v4162_v29, %v8255_v52  ;;  %v6321_v62 = vadd.f32 %v4548_v40, %v8258_v35  ;;  %v4682_v49 = vmax.f32 %v6255_v48, 0.0  ;;  %v4684_v41 = vmax.f32 %v6319_v31, 0.0 }
 0x457   : > { %v4685_v22 = vmax.f32 %v6256_v38, 0.0  ;;  %v4687_v19 = vmax.f32 %v6320_v33, 0.0 }
 0x458   : > { %v4686_v2 = vmax.f32 %v6257_v9, 0.0  ;;  %v4688_v53 = vmax.f32 %v6321_v62, 0.0 }
 0x459   : > { %v4769_v20 = vpack.c.bf16 %v4685_v22, %v4681_v1  ;;  %v4771_v57 = vpack.c.bf16 %v4687_v19, %v4683_v3 }
 0x45a   : > { %v4770_v54 = vpack.c.bf16 %v4686_v2, %v4682_v49  ;;  %v4772_v46 = vpack.c.bf16 %v4688_v53, %v4684_v41  ;;  %v4166_v24 = vpop.f32.mrb[172].mxu0  ;;  %v4552_v61 = vpop.f32.mrb[172].mxu1 }
 0x45b   : > { %v6258_v56 = vadd.f32 %v4166_v24, %v8249_v44  ;;  %v6322_v30 = vadd.f32 %v4552_v61, %v8252_v6  ;;  %v4168_v28 = vpop.f32.mrb[173].mxu0  ;;  %v4554_v11 = vpop.f32.mrb[173].mxu1 }
 0x45c   : > { %v6259_v42 = vadd.f32 %v4168_v28, %v8255_v52  ;;  %v6323_v45 = vadd.f32 %v4554_v11, %v8258_v35  ;;  %v4170_v34 = vpop.f32.mrb[174].mxu0  ;;  %v4556_v4 = vpop.f32.mrb[174].mxu1  ;;  %5168 = vmatprep.mubr.bf16.mxu0 %v4770_v54  ;;  %5329 = vmatprep.mubr.bf16.mxu1 %v4772_v46 }
 0x45d   : > { %v6260_v23 = vadd.f32 %v4170_v34, %v8249_v44  ;;  %v6324_v27 = vadd.f32 %v4556_v4, %v8252_v6  ;;  %v4172_v25 = vpop.f32.mrb[175].mxu0  ;;  %v4558_v58 = vpop.f32.mrb[175].mxu1  ;;  %5169 = vmatmul.mubr.bf16.gmra.mrb[232].mxu0 %v4769_v20  ;;  %5330 = vmatmul.mubr.bf16.gmra.mrb[232].mxu1 %v4771_v57  ;;  %v4689_v15 = vmax.f32 %v6258_v56, 0.0  ;;  %v4691_v26 = vmax.f32 %v6322_v30, 0.0 }
 0x45e   : > { %v6261_v12 = vadd.f32 %v4172_v25, %v8255_v52  ;;  %v6325_v14 = vadd.f32 %v4558_v58, %v8258_v35  ;;  %v4690_v32 = vmax.f32 %v6259_v42, 0.0  ;;  %v4692_v5 = vmax.f32 %v6323_v45, 0.0 }
 0x45f   : > { %v4693_v16 = vmax.f32 %v6260_v23, 0.0  ;;  %v4695_v21 = vmax.f32 %v6324_v27, 0.0 }
 0x460   : > { %v4694_v10 = vmax.f32 %v6261_v12, 0.0  ;;  %v4696_v39 = vmax.f32 %v6325_v14, 0.0 }
 0x461   : > { %v4773_v17 = vpack.c.bf16 %v4693_v16, %v4689_v15  ;;  %v4775_v8 = vpack.c.bf16 %v4695_v21, %v4691_v26 }
 0x462   : > { %v4774_v47 = vpack.c.bf16 %v4694_v10, %v4690_v32  ;;  %v4776_v18 = vpack.c.bf16 %v4696_v39, %v4692_v5  ;;  %v4176_v36 = vpop.f32.mrb[176].mxu0  ;;  %v4562_v50 = vpop.f32.mrb[176].mxu1 }
 0x463   : > { %v6262_v37 = vadd.f32 %v4176_v36, %v8249_v44  ;;  %v6326_v43 = vadd.f32 %v4562_v50, %v8252_v6  ;;  %v4178_v60 = vpop.f32.mrb[177].mxu0  ;;  %v4564_v55 = vpop.f32.mrb[177].mxu1 }
 0x464   : > { %v6263_v0 = vadd.f32 %v4178_v60, %v8255_v52  ;;  %v6327_v13 = vadd.f32 %v4564_v55, %v8258_v35  ;;  %v4180_v51 = vpop.f32.mrb[178].mxu0  ;;  %v4566_v7 = vpop.f32.mrb[178].mxu1  ;;  %5176 = vmatprep.mubr.bf16.mxu0 %v4774_v47  ;;  %5337 = vmatprep.mubr.bf16.mxu1 %v4776_v18 }
 0x465   : > { %v6264_v48 = vadd.f32 %v4180_v51, %v8249_v44  ;;  %v6328_v31 = vadd.f32 %v4566_v7, %v8252_v6  ;;  %v4182_v59 = vpop.f32.mrb[179].mxu0  ;;  %v4568_v63 = vpop.f32.mrb[179].mxu1  ;;  %5177 = vmatmul.mubr.bf16.gmra.mrb[236].mxu0 %v4773_v17  ;;  %5338 = vmatmul.mubr.bf16.gmra.mrb[236].mxu1 %v4775_v8  ;;  %v4697_v29 = vmax.f32 %v6262_v37, 0.0  ;;  %v4699_v40 = vmax.f32 %v6326_v43, 0.0 }
 0x466   : > { %v6265_v38 = vadd.f32 %v4182_v59, %v8255_v52  ;;  %v6329_v33 = vadd.f32 %v4568_v63, %v8258_v35  ;;  %v4698_v1 = vmax.f32 %v6263_v0, 0.0  ;;  %v4700_v3 = vmax.f32 %v6327_v13, 0.0 }
 0x467   : > { %v4701_v9 = vmax.f32 %v6264_v48, 0.0  ;;  %v4703_v62 = vmax.f32 %v6328_v31, 0.0 }
 0x468   : > { %v4702_v22 = vmax.f32 %v6265_v38, 0.0  ;;  %v4704_v19 = vmax.f32 %v6329_v33, 0.0 }
 0x469   : > { %v4777_v49 = vpack.c.bf16 %v4701_v9, %v4697_v29  ;;  %v4779_v41 = vpack.c.bf16 %v4703_v62, %v4699_v40 }
 0x46a   : > { %v4778_v2 = vpack.c.bf16 %v4702_v22, %v4698_v1  ;;  %v4780_v53 = vpack.c.bf16 %v4704_v19, %v4700_v3  ;;  %v4186_v20 = vpop.f32.mrb[180].mxu0  ;;  %v4572_v57 = vpop.f32.mrb[180].mxu1 }
 0x46b   : > { %v6266_v54 = vadd.f32 %v4186_v20, %v8249_v44  ;;  %v6330_v46 = vadd.f32 %v4572_v57, %v8252_v6  ;;  %v4188_v24 = vpop.f32.mrb[181].mxu0  ;;  %v4574_v61 = vpop.f32.mrb[181].mxu1 }
 0x46c   : > { %v6267_v56 = vadd.f32 %v4188_v24, %v8255_v52  ;;  %v6331_v30 = vadd.f32 %v4574_v61, %v8258_v35  ;;  %v4190_v28 = vpop.f32.mrb[182].mxu0  ;;  %v4576_v11 = vpop.f32.mrb[182].mxu1  ;;  %5184 = vmatprep.mubr.bf16.mxu0 %v4778_v2  ;;  %5345 = vmatprep.mubr.bf16.mxu1 %v4780_v53 }
 0x46d   : > { %v6268_v42 = vadd.f32 %v4190_v28, %v8249_v44  ;;  %v6332_v45 = vadd.f32 %v4576_v11, %v8252_v6  ;;  %v4192_v34 = vpop.f32.mrb[183].mxu0  ;;  %v4578_v4 = vpop.f32.mrb[183].mxu1  ;;  %5185 = vmatmul.mubr.bf16.gmra.mrb[240].mxu0 %v4777_v49  ;;  %5346 = vmatmul.mubr.bf16.gmra.mrb[240].mxu1 %v4779_v41  ;;  %v4705_v25 = vmax.f32 %v6266_v54, 0.0  ;;  %v4707_v58 = vmax.f32 %v6330_v46, 0.0 }
 0x46e   : > { %v6269_v23 = vadd.f32 %v4192_v34, %v8255_v52  ;;  %v6333_v27 = vadd.f32 %v4578_v4, %v8258_v35  ;;  %v4706_v15 = vmax.f32 %v6267_v56, 0.0  ;;  %v4708_v26 = vmax.f32 %v6331_v30, 0.0 }
 0x46f   : > { %v4709_v12 = vmax.f32 %v6268_v42, 0.0  ;;  %v4711_v14 = vmax.f32 %v6332_v45, 0.0 }
 0x470   : > { %v4710_v16 = vmax.f32 %v6269_v23, 0.0  ;;  %v4712_v21 = vmax.f32 %v6333_v27, 0.0 }
 0x471   : > { %v4781_v32 = vpack.c.bf16 %v4709_v12, %v4705_v25  ;;  %v4783_v5 = vpack.c.bf16 %v4711_v14, %v4707_v58 }
 0x472   : > { %v4782_v10 = vpack.c.bf16 %v4710_v16, %v4706_v15  ;;  %v4784_v39 = vpack.c.bf16 %v4712_v21, %v4708_v26  ;;  %v4196_v17 = vpop.f32.mrb[184].mxu0  ;;  %v4582_v8 = vpop.f32.mrb[184].mxu1  ;;  %v8392_v16 = vld [vmem:[%s8522_s8] ss:$0 sm:$0xff] }
 0x473   : > { %v6270_v47 = vadd.f32 %v4196_v17, %v8249_v44  ;;  %v6334_v18 = vadd.f32 %v4582_v8, %v8252_v6  ;;  %v4198_v36 = vpop.f32.mrb[185].mxu0  ;;  %v4584_v50 = vpop.f32.mrb[185].mxu1 }
 0x474   : > { %v6271_v37 = vadd.f32 %v4198_v36, %v8255_v52  ;;  %v6335_v43 = vadd.f32 %v4584_v50, %v8258_v35  ;;  %v4200_v60 = vpop.f32.mrb[186].mxu0  ;;  %v4586_v55 = vpop.f32.mrb[186].mxu1  ;;  %5192 = vmatprep.mubr.bf16.mxu0 %v4782_v10  ;;  %5353 = vmatprep.mubr.bf16.mxu1 %v4784_v39 }
 0x475   : > { %v6272_v0 = vadd.f32 %v4200_v60, %v8249_v44  ;;  %v6336_v13 = vadd.f32 %v4586_v55, %v8252_v6  ;;  %v4202_v51 = vpop.f32.mrb[187].mxu0  ;;  %v4588_v7 = vpop.f32.mrb[187].mxu1  ;;  %5193 = vmatmul.mubr.bf16.gmra.mrb[244].mxu0 %v4781_v32  ;;  %5354 = vmatmul.mubr.bf16.gmra.mrb[244].mxu1 %v4783_v5  ;;  %v4713_v59 = vmax.f32 %v6270_v47, 0.0  ;;  %v4715_v63 = vmax.f32 %v6334_v18, 0.0 }
 0x476   : > { %v6273_v48 = vadd.f32 %v4202_v51, %v8255_v52  ;;  %v6337_v31 = vadd.f32 %v4588_v7, %v8258_v35  ;;  %v4714_v29 = vmax.f32 %v6271_v37, 0.0  ;;  %v4716_v40 = vmax.f32 %v6335_v43, 0.0 }
 0x477   : > { %v4717_v38 = vmax.f32 %v6272_v0, 0.0  ;;  %v4719_v33 = vmax.f32 %v6336_v13, 0.0 }
 0x478   : > { %v4718_v9 = vmax.f32 %v6273_v48, 0.0  ;;  %v4720_v62 = vmax.f32 %v6337_v31, 0.0 }
 0x479   : > { %v4785_v1 = vpack.c.bf16 %v4717_v38, %v4713_v59  ;;  %v4787_v3 = vpack.c.bf16 %v4719_v33, %v4715_v63 }
 0x47a   : > { %v4786_v22 = vpack.c.bf16 %v4718_v9, %v4714_v29  ;;  %v4788_v19 = vpack.c.bf16 %v4720_v62, %v4716_v40  ;;  %v4206_v49 = vpop.f32.mrb[188].mxu0  ;;  %v4592_v41 = vpop.f32.mrb[188].mxu1 }
 0x47b   : > { %v6274_v2 = vadd.f32 %v4206_v49, %v8249_v44  ;;  %v6338_v53 = vadd.f32 %v4592_v41, %v8252_v6  ;;  %v4208_v20 = vpop.f32.mrb[189].mxu0  ;;  %v4594_v57 = vpop.f32.mrb[189].mxu1 }
 0x47c   : > { %v6275_v54 = vadd.f32 %v4208_v20, %v8255_v52  ;;  %v6339_v46 = vadd.f32 %v4594_v57, %v8258_v35  ;;  %v4210_v24 = vpop.f32.mrb[190].mxu0  ;;  %v4596_v61 = vpop.f32.mrb[190].mxu1  ;;  %5200 = vmatprep.mubr.bf16.mxu0 %v4786_v22  ;;  %5361 = vmatprep.mubr.bf16.mxu1 %v4788_v19 }
 0x47d   : > { %v6276_v56 = vadd.f32 %v4210_v24, %v8249_v44  ;;  %v6340_v30 = vadd.f32 %v4596_v61, %v8252_v6  ;;  %v4212_v28 = vpop.f32.mrb[191].mxu0  ;;  %v4598_v11 = vpop.f32.mrb[191].mxu1  ;;  %5201 = vmatmul.mubr.bf16.gmra.mrb[248].mxu0 %v4785_v1  ;;  %5362 = vmatmul.mubr.bf16.gmra.mrb[248].mxu1 %v4787_v3  ;;  %v4721_v34 = vmax.f32 %v6274_v2, 0.0  ;;  %v4723_v4 = vmax.f32 %v6338_v53, 0.0 }
 0x47e   : > { %v6277_v42 = vadd.f32 %v4212_v28, %v8255_v52  ;;  %v6341_v45 = vadd.f32 %v4598_v11, %v8258_v35  ;;  %v4722_v25 = vmax.f32 %v6275_v54, 0.0  ;;  %v4724_v58 = vmax.f32 %v6339_v46, 0.0 }
 0x47f   : > { %v4725_v23 = vmax.f32 %v6276_v56, 0.0  ;;  %v4727_v27 = vmax.f32 %v6340_v30, 0.0 }
 0x480   : > { %v4726_v12 = vmax.f32 %v6277_v42, 0.0  ;;  %v4728_v14 = vmax.f32 %v6341_v45, 0.0 }
 0x481   : > { %v4789_v44 = vpack.c.bf16 %v4725_v23, %v4721_v34  ;;  %v4791_v6 = vpack.c.bf16 %v4727_v27, %v4723_v4 }
 0x482   : > { %v4790_v15 = vpack.c.bf16 %v4726_v12, %v4722_v25  ;;  %v4792_v26 = vpack.c.bf16 %v4728_v14, %v4724_v58 }
 0x484   : > { %5208 = vmatprep.mubr.bf16.mxu0 %v4790_v15  ;;  %5369 = vmatprep.mubr.bf16.mxu1 %v4792_v26 }
 0x485   : > { %5209 = vmatmul.mubr.bf16.gmra.mrb[252].mxu0 %v4789_v44  ;;  %5370 = vmatmul.mubr.bf16.gmra.mrb[252].mxu1 %v4791_v6 }
 0x4e0   : > { %v5878_v52 = vpop.f32.mrb[192].mxu0  ;;  %v5990_v35 = vpop.f32.mrb[192].mxu1 }
 0x4e1   : > { %v5879_v21 = vpop.f32.mrb[193].mxu0  ;;  %v5991_v32 = vpop.f32.mrb[193].mxu1 }
 0x4e2   : > { %v5880_v5 = vadd.f32 %v5879_v21, %v5878_v52  ;;  %v5992_v10 = vadd.f32 %v5991_v32, %v5990_v35  ;;  %v5881_v39 = vpop.f32.mrb[194].mxu0  ;;  %v5993_v17 = vpop.f32.mrb[194].mxu1 }
 0x4e3   : > { %v5882_v8 = vpop.f32.mrb[195].mxu0  ;;  %v5994_v47 = vpop.f32.mrb[195].mxu1 }
 0x4e4   : > { %v5091_v18 = vadd.f32 %v5880_v5, %v8392_v16  ;;  %v5883_v36 = vadd.f32 %v5882_v8, %v5881_v39  ;;  %v5995_v50 = vadd.f32 %v5994_v47, %v5993_v17 }
 0x4e6   : > { %v5252_v37 = vadd.f32 %v5992_v10, %v5091_v18  ;;  %v5094_v43 = vadd.f32 %v5883_v36, %v8392_v16 }
 0x4e8   : > { %5378 = vst [vmem:[%s8398_s23] sm:$0xff] %v5252_v37  ;;  %v5255_v60 = vadd.f32 %v5995_v50, %v5094_v43  ;;  %v5884_v55 = vpop.f32.mrb[196].mxu0  ;;  %v5996_v0 = vpop.f32.mrb[196].mxu1 }
 0x4e9   : > { %v5885_v13 = vpop.f32.mrb[197].mxu0  ;;  %v5997_v51 = vpop.f32.mrb[197].mxu1 }
 0x4ea   : > { %5379 = vst [vmem:[%s8398_s23 + $0x8] sm:$0xff] %v5255_v60  ;;  %v5886_v7 = vadd.f32 %v5885_v13, %v5884_v55  ;;  %v5998_v48 = vadd.f32 %v5997_v51, %v5996_v0  ;;  %v5887_v31 = vpop.f32.mrb[198].mxu0  ;;  %v5999_v59 = vpop.f32.mrb[198].mxu1 }
 0x4eb   : > { %v5888_v63 = vpop.f32.mrb[199].mxu0  ;;  %v6000_v38 = vpop.f32.mrb[199].mxu1 }
 0x4ec   : > { %v5099_v33 = vadd.f32 %v5886_v7, %v8392_v16  ;;  %v5889_v29 = vadd.f32 %v5888_v63, %v5887_v31  ;;  %v6001_v40 = vadd.f32 %v6000_v38, %v5999_v59 }
 0x4ee   : > { %v5260_v9 = vadd.f32 %v5998_v48, %v5099_v33  ;;  %v5102_v62 = vadd.f32 %v5889_v29, %v8392_v16 }
 0x4f0   : > { %5380 = vst [vmem:[%s8398_s23 + $0x10] sm:$0xff] %v5260_v9  ;;  %v5263_v1 = vadd.f32 %v6001_v40, %v5102_v62  ;;  %v5890_v3 = vpop.f32.mrb[200].mxu0  ;;  %v6002_v22 = vpop.f32.mrb[200].mxu1 }
 0x4f1   : > { %v5891_v19 = vpop.f32.mrb[201].mxu0  ;;  %v6003_v49 = vpop.f32.mrb[201].mxu1 }
 0x4f2   : > { %5381 = vst [vmem:[%s8398_s23 + $0x18] sm:$0xff] %v5263_v1  ;;  %v5892_v41 = vadd.f32 %v5891_v19, %v5890_v3  ;;  %v6004_v2 = vadd.f32 %v6003_v49, %v6002_v22  ;;  %v5893_v53 = vpop.f32.mrb[202].mxu0  ;;  %v6005_v20 = vpop.f32.mrb[202].mxu1 }
 0x4f3   : > { %v5894_v57 = vpop.f32.mrb[203].mxu0  ;;  %v6006_v54 = vpop.f32.mrb[203].mxu1 }
 0x4f4   : > { %v5107_v46 = vadd.f32 %v5892_v41, %v8392_v16  ;;  %v5895_v24 = vadd.f32 %v5894_v57, %v5893_v53  ;;  %v6007_v61 = vadd.f32 %v6006_v54, %v6005_v20 }
 0x4f6   : > { %v5268_v56 = vadd.f32 %v6004_v2, %v5107_v46  ;;  %v5110_v30 = vadd.f32 %v5895_v24, %v8392_v16 }
 0x4f8   : > { %5382 = vst [vmem:[%s8398_s23 + $0x20] sm:$0xff] %v5268_v56  ;;  %v5271_v28 = vadd.f32 %v6007_v61, %v5110_v30  ;;  %v5896_v11 = vpop.f32.mrb[204].mxu0  ;;  %v6008_v42 = vpop.f32.mrb[204].mxu1 }
 0x4f9   : > { %v5897_v45 = vpop.f32.mrb[205].mxu0  ;;  %v6009_v34 = vpop.f32.mrb[205].mxu1 }
 0x4fa   : > { %5383 = vst [vmem:[%s8398_s23 + $0x28] sm:$0xff] %v5271_v28  ;;  %v5898_v4 = vadd.f32 %v5897_v45, %v5896_v11  ;;  %v6010_v23 = vadd.f32 %v6009_v34, %v6008_v42  ;;  %v5899_v27 = vpop.f32.mrb[206].mxu0  ;;  %v6011_v25 = vpop.f32.mrb[206].mxu1 }
 0x4fb   : > { %v5900_v58 = vpop.f32.mrb[207].mxu0  ;;  %v6012_v12 = vpop.f32.mrb[207].mxu1 }
 0x4fc   : > { %v5115_v14 = vadd.f32 %v5898_v4, %v8392_v16  ;;  %v5901_v44 = vadd.f32 %v5900_v58, %v5899_v27  ;;  %v6013_v6 = vadd.f32 %v6012_v12, %v6011_v25 }
 0x4fe   : > { %v5276_v15 = vadd.f32 %v6010_v23, %v5115_v14  ;;  %v5118_v26 = vadd.f32 %v5901_v44, %v8392_v16 }
 0x500   : > { %5384 = vst [vmem:[%s8398_s23 + $0x30] sm:$0xff] %v5276_v15  ;;  %v5279_v52 = vadd.f32 %v6013_v6, %v5118_v26  ;;  %v5902_v35 = vpop.f32.mrb[208].mxu0  ;;  %v6014_v21 = vpop.f32.mrb[208].mxu1 }
 0x501   : > { %v5903_v32 = vpop.f32.mrb[209].mxu0  ;;  %v6015_v5 = vpop.f32.mrb[209].mxu1 }
 0x502   : > { %5385 = vst [vmem:[%s8398_s23 + $0x38] sm:$0xff] %v5279_v52  ;;  %v5904_v10 = vadd.f32 %v5903_v32, %v5902_v35  ;;  %v6016_v39 = vadd.f32 %v6015_v5, %v6014_v21  ;;  %v5905_v17 = vpop.f32.mrb[210].mxu0  ;;  %v6017_v8 = vpop.f32.mrb[210].mxu1 }
 0x503   : > { %v5906_v47 = vpop.f32.mrb[211].mxu0  ;;  %v6018_v18 = vpop.f32.mrb[211].mxu1 }
 0x504   : > { %v5123_v36 = vadd.f32 %v5904_v10, %v8392_v16  ;;  %v5907_v50 = vadd.f32 %v5906_v47, %v5905_v17  ;;  %v6019_v37 = vadd.f32 %v6018_v18, %v6017_v8 }
 0x506   : > { %v5284_v43 = vadd.f32 %v6016_v39, %v5123_v36  ;;  %v5126_v60 = vadd.f32 %v5907_v50, %v8392_v16 }
 0x508   : > { %5386 = vst [vmem:[%s8398_s23 + $0x40] sm:$0xff] %v5284_v43  ;;  %v5287_v55 = vadd.f32 %v6019_v37, %v5126_v60  ;;  %v5908_v0 = vpop.f32.mrb[212].mxu0  ;;  %v6020_v13 = vpop.f32.mrb[212].mxu1 }
 0x509   : > { %v5909_v51 = vpop.f32.mrb[213].mxu0  ;;  %v6021_v7 = vpop.f32.mrb[213].mxu1 }
 0x50a   : > { %5387 = vst [vmem:[%s8398_s23 + $0x48] sm:$0xff] %v5287_v55  ;;  %v5910_v48 = vadd.f32 %v5909_v51, %v5908_v0  ;;  %v6022_v31 = vadd.f32 %v6021_v7, %v6020_v13  ;;  %v5911_v59 = vpop.f32.mrb[214].mxu0  ;;  %v6023_v63 = vpop.f32.mrb[214].mxu1 }
 0x50b   : > { %v5912_v38 = vpop.f32.mrb[215].mxu0  ;;  %v6024_v33 = vpop.f32.mrb[215].mxu1 }
 0x50c   : > { %v5131_v29 = vadd.f32 %v5910_v48, %v8392_v16  ;;  %v5913_v40 = vadd.f32 %v5912_v38, %v5911_v59  ;;  %v6025_v9 = vadd.f32 %v6024_v33, %v6023_v63 }
 0x50e   : > { %v5292_v62 = vadd.f32 %v6022_v31, %v5131_v29  ;;  %v5134_v1 = vadd.f32 %v5913_v40, %v8392_v16 }
 0x510   : > { %5388 = vst [vmem:[%s8398_s23 + $0x50] sm:$0xff] %v5292_v62  ;;  %v5295_v3 = vadd.f32 %v6025_v9, %v5134_v1  ;;  %v5914_v22 = vpop.f32.mrb[216].mxu0  ;;  %v6026_v19 = vpop.f32.mrb[216].mxu1 }
 0x511   : > { %v5915_v49 = vpop.f32.mrb[217].mxu0  ;;  %v6027_v41 = vpop.f32.mrb[217].mxu1 }
 0x512   : > { %5389 = vst [vmem:[%s8398_s23 + $0x58] sm:$0xff] %v5295_v3  ;;  %v5916_v2 = vadd.f32 %v5915_v49, %v5914_v22  ;;  %v6028_v53 = vadd.f32 %v6027_v41, %v6026_v19  ;;  %v5917_v20 = vpop.f32.mrb[218].mxu0  ;;  %v6029_v57 = vpop.f32.mrb[218].mxu1 }
 0x513   : > { %v5918_v54 = vpop.f32.mrb[219].mxu0  ;;  %v6030_v46 = vpop.f32.mrb[219].mxu1 }
 0x514   : > { %v5139_v24 = vadd.f32 %v5916_v2, %v8392_v16  ;;  %v5919_v61 = vadd.f32 %v5918_v54, %v5917_v20  ;;  %v6031_v56 = vadd.f32 %v6030_v46, %v6029_v57 }
 0x516   : > { %v5300_v30 = vadd.f32 %v6028_v53, %v5139_v24  ;;  %v5142_v28 = vadd.f32 %v5919_v61, %v8392_v16 }
 0x518   : > { %5390 = vst [vmem:[%s8398_s23 + $0x60] sm:$0xff] %v5300_v30  ;;  %v5303_v11 = vadd.f32 %v6031_v56, %v5142_v28  ;;  %v5920_v42 = vpop.f32.mrb[220].mxu0  ;;  %v6032_v45 = vpop.f32.mrb[220].mxu1 }
 0x519   : > { %v5921_v34 = vpop.f32.mrb[221].mxu0  ;;  %v6033_v4 = vpop.f32.mrb[221].mxu1 }
 0x51a   : > { %5391 = vst [vmem:[%s8398_s23 + $0x68] sm:$0xff] %v5303_v11  ;;  %v5922_v23 = vadd.f32 %v5921_v34, %v5920_v42  ;;  %v6034_v27 = vadd.f32 %v6033_v4, %v6032_v45  ;;  %v5923_v25 = vpop.f32.mrb[222].mxu0  ;;  %v6035_v58 = vpop.f32.mrb[222].mxu1 }
 0x51b   : > { %v5924_v12 = vpop.f32.mrb[223].mxu0  ;;  %v6036_v14 = vpop.f32.mrb[223].mxu1 }
 0x51c   : > { %v5147_v44 = vadd.f32 %v5922_v23, %v8392_v16  ;;  %v5925_v6 = vadd.f32 %v5924_v12, %v5923_v25  ;;  %v6037_v15 = vadd.f32 %v6036_v14, %v6035_v58 }
 0x51e   : > { %v5308_v26 = vadd.f32 %v6034_v27, %v5147_v44  ;;  %v5150_v52 = vadd.f32 %v5925_v6, %v8392_v16 }
 0x520   : > { %5392 = vst [vmem:[%s8398_s23 + $0x70] sm:$0xff] %v5308_v26  ;;  %v5311_v35 = vadd.f32 %v6037_v15, %v5150_v52  ;;  %v5926_v21 = vpop.f32.mrb[224].mxu0  ;;  %v6038_v32 = vpop.f32.mrb[224].mxu1 }
 0x521   : > { %v5927_v5 = vpop.f32.mrb[225].mxu0  ;;  %v6039_v10 = vpop.f32.mrb[225].mxu1 }
 0x522   : > { %5393 = vst [vmem:[%s8398_s23 + $0x78] sm:$0xff] %v5311_v35  ;;  %v5928_v39 = vadd.f32 %v5927_v5, %v5926_v21  ;;  %v6040_v17 = vadd.f32 %v6039_v10, %v6038_v32  ;;  %v5929_v8 = vpop.f32.mrb[226].mxu0  ;;  %v6041_v47 = vpop.f32.mrb[226].mxu1 }
 0x523   : > { %v5930_v18 = vpop.f32.mrb[227].mxu0  ;;  %v6042_v36 = vpop.f32.mrb[227].mxu1 }
 0x524   : > { %v5155_v50 = vadd.f32 %v5928_v39, %v8392_v16  ;;  %v5931_v37 = vadd.f32 %v5930_v18, %v5929_v8  ;;  %v6043_v43 = vadd.f32 %v6042_v36, %v6041_v47 }
 0x526   : > { %v5316_v60 = vadd.f32 %v6040_v17, %v5155_v50  ;;  %v5158_v55 = vadd.f32 %v5931_v37, %v8392_v16 }
 0x528   : > { %5394 = vst [vmem:[%s8398_s23 + $0x80] sm:$0xff] %v5316_v60  ;;  %v5319_v0 = vadd.f32 %v6043_v43, %v5158_v55  ;;  %v5932_v13 = vpop.f32.mrb[228].mxu0  ;;  %v6044_v51 = vpop.f32.mrb[228].mxu1 }
 0x529   : > { %v5933_v7 = vpop.f32.mrb[229].mxu0  ;;  %v6045_v48 = vpop.f32.mrb[229].mxu1 }
 0x52a   : > { %5395 = vst [vmem:[%s8398_s23 + $0x88] sm:$0xff] %v5319_v0  ;;  %v5934_v31 = vadd.f32 %v5933_v7, %v5932_v13  ;;  %v6046_v59 = vadd.f32 %v6045_v48, %v6044_v51  ;;  %v5935_v63 = vpop.f32.mrb[230].mxu0  ;;  %v6047_v38 = vpop.f32.mrb[230].mxu1 }
 0x52b   : > { %v5936_v33 = vpop.f32.mrb[231].mxu0  ;;  %v6048_v29 = vpop.f32.mrb[231].mxu1 }
 0x52c   : > { %v5163_v40 = vadd.f32 %v5934_v31, %v8392_v16  ;;  %v5937_v9 = vadd.f32 %v5936_v33, %v5935_v63  ;;  %v6049_v62 = vadd.f32 %v6048_v29, %v6047_v38 }
 0x52e   : > { %v5324_v1 = vadd.f32 %v6046_v59, %v5163_v40  ;;  %v5166_v3 = vadd.f32 %v5937_v9, %v8392_v16 }
 0x530   : > { %5396 = vst [vmem:[%s8398_s23 + $0x90] sm:$0xff] %v5324_v1  ;;  %v5327_v22 = vadd.f32 %v6049_v62, %v5166_v3  ;;  %v5938_v19 = vpop.f32.mrb[232].mxu0  ;;  %v6050_v49 = vpop.f32.mrb[232].mxu1 }
 0x531   : > { %v5939_v41 = vpop.f32.mrb[233].mxu0  ;;  %v6051_v2 = vpop.f32.mrb[233].mxu1 }
 0x532   : > { %5397 = vst [vmem:[%s8398_s23 + $0x98] sm:$0xff] %v5327_v22  ;;  %v5940_v53 = vadd.f32 %v5939_v41, %v5938_v19  ;;  %v6052_v20 = vadd.f32 %v6051_v2, %v6050_v49  ;;  %v5941_v57 = vpop.f32.mrb[234].mxu0  ;;  %v6053_v54 = vpop.f32.mrb[234].mxu1 }
 0x533   : > { %v5942_v46 = vpop.f32.mrb[235].mxu0  ;;  %v6054_v24 = vpop.f32.mrb[235].mxu1 }
 0x534   : > { %v5171_v61 = vadd.f32 %v5940_v53, %v8392_v16  ;;  %v5943_v56 = vadd.f32 %v5942_v46, %v5941_v57  ;;  %v6055_v30 = vadd.f32 %v6054_v24, %v6053_v54 }
 0x536   : > { %v5332_v28 = vadd.f32 %v6052_v20, %v5171_v61  ;;  %v5174_v11 = vadd.f32 %v5943_v56, %v8392_v16 }
 0x538   : > { %5398 = vst [vmem:[%s8398_s23 + $0xa0] sm:$0xff] %v5332_v28  ;;  %v5335_v42 = vadd.f32 %v6055_v30, %v5174_v11  ;;  %v5944_v45 = vpop.f32.mrb[236].mxu0  ;;  %v6056_v34 = vpop.f32.mrb[236].mxu1 }
 0x539   : > { %v5945_v4 = vpop.f32.mrb[237].mxu0  ;;  %v6057_v23 = vpop.f32.mrb[237].mxu1 }
 0x53a   : > { %5399 = vst [vmem:[%s8398_s23 + $0xa8] sm:$0xff] %v5335_v42  ;;  %v5946_v27 = vadd.f32 %v5945_v4, %v5944_v45  ;;  %v6058_v25 = vadd.f32 %v6057_v23, %v6056_v34  ;;  %v5947_v58 = vpop.f32.mrb[238].mxu0  ;;  %v6059_v12 = vpop.f32.mrb[238].mxu1 }
 0x53b   : > { %v5948_v14 = vpop.f32.mrb[239].mxu0  ;;  %v6060_v44 = vpop.f32.mrb[239].mxu1 }
 0x53c   : > { %v5179_v6 = vadd.f32 %v5946_v27, %v8392_v16  ;;  %v5949_v15 = vadd.f32 %v5948_v14, %v5947_v58  ;;  %v6061_v26 = vadd.f32 %v6060_v44, %v6059_v12 }
 0x53e   : > { %v5340_v52 = vadd.f32 %v6058_v25, %v5179_v6  ;;  %v5182_v35 = vadd.f32 %v5949_v15, %v8392_v16 }
 0x540   : > { %5400 = vst [vmem:[%s8398_s23 + $0xb0] sm:$0xff] %v5340_v52  ;;  %v5343_v21 = vadd.f32 %v6061_v26, %v5182_v35  ;;  %v5950_v32 = vpop.f32.mrb[240].mxu0  ;;  %v6062_v5 = vpop.f32.mrb[240].mxu1 }
 0x541   : > { %v5951_v10 = vpop.f32.mrb[241].mxu0  ;;  %v6063_v39 = vpop.f32.mrb[241].mxu1 }
 0x542   : > { %5401 = vst [vmem:[%s8398_s23 + $0xb8] sm:$0xff] %v5343_v21  ;;  %v5952_v17 = vadd.f32 %v5951_v10, %v5950_v32  ;;  %v6064_v8 = vadd.f32 %v6063_v39, %v6062_v5  ;;  %v5953_v47 = vpop.f32.mrb[242].mxu0  ;;  %v6065_v18 = vpop.f32.mrb[242].mxu1 }
 0x543   : > { %v5954_v36 = vpop.f32.mrb[243].mxu0  ;;  %v6066_v50 = vpop.f32.mrb[243].mxu1 }
 0x544   : > { %v5187_v37 = vadd.f32 %v5952_v17, %v8392_v16  ;;  %v5955_v43 = vadd.f32 %v5954_v36, %v5953_v47  ;;  %v6067_v60 = vadd.f32 %v6066_v50, %v6065_v18 }
 0x546   : > { %v5348_v55 = vadd.f32 %v6064_v8, %v5187_v37  ;;  %v5190_v0 = vadd.f32 %v5955_v43, %v8392_v16 }
 0x548   : > { %5402 = vst [vmem:[%s8398_s23 + $0xc0] sm:$0xff] %v5348_v55  ;;  %v5351_v13 = vadd.f32 %v6067_v60, %v5190_v0  ;;  %v5956_v51 = vpop.f32.mrb[244].mxu0  ;;  %v6068_v7 = vpop.f32.mrb[244].mxu1 }
 0x549   : > { %v5957_v48 = vpop.f32.mrb[245].mxu0  ;;  %v6069_v31 = vpop.f32.mrb[245].mxu1 }
 0x54a   : > { %5403 = vst [vmem:[%s8398_s23 + $0xc8] sm:$0xff] %v5351_v13  ;;  %v5958_v59 = vadd.f32 %v5957_v48, %v5956_v51  ;;  %v6070_v63 = vadd.f32 %v6069_v31, %v6068_v7  ;;  %v5959_v38 = vpop.f32.mrb[246].mxu0  ;;  %v6071_v33 = vpop.f32.mrb[246].mxu1 }
 0x54b   : > { %v5960_v29 = vpop.f32.mrb[247].mxu0  ;;  %v6072_v40 = vpop.f32.mrb[247].mxu1 }
 0x54c   : > { %v5195_v9 = vadd.f32 %v5958_v59, %v8392_v16  ;;  %v5961_v62 = vadd.f32 %v5960_v29, %v5959_v38  ;;  %v6073_v1 = vadd.f32 %v6072_v40, %v6071_v33 }
 0x54e   : > { %v5356_v3 = vadd.f32 %v6070_v63, %v5195_v9  ;;  %v5198_v22 = vadd.f32 %v5961_v62, %v8392_v16 }
 0x550   : > { %5404 = vst [vmem:[%s8398_s23 + $0xd0] sm:$0xff] %v5356_v3  ;;  %v5359_v19 = vadd.f32 %v6073_v1, %v5198_v22  ;;  %v5962_v49 = vpop.f32.mrb[248].mxu0  ;;  %v6074_v41 = vpop.f32.mrb[248].mxu1 }
 0x551   : > { %v5963_v2 = vpop.f32.mrb[249].mxu0  ;;  %v6075_v53 = vpop.f32.mrb[249].mxu1 }
 0x552   : > { %5405 = vst [vmem:[%s8398_s23 + $0xd8] sm:$0xff] %v5359_v19  ;;  %v5964_v20 = vadd.f32 %v5963_v2, %v5962_v49  ;;  %v6076_v57 = vadd.f32 %v6075_v53, %v6074_v41  ;;  %v5965_v54 = vpop.f32.mrb[250].mxu0  ;;  %v6077_v46 = vpop.f32.mrb[250].mxu1 }
 0x553   : > { %v5966_v24 = vpop.f32.mrb[251].mxu0  ;;  %v6078_v61 = vpop.f32.mrb[251].mxu1 }
 0x554   : > { %v5203_v56 = vadd.f32 %v5964_v20, %v8392_v16  ;;  %v5967_v30 = vadd.f32 %v5966_v24, %v5965_v54  ;;  %v6079_v28 = vadd.f32 %v6078_v61, %v6077_v46 }
 0x556   : > { %v5364_v11 = vadd.f32 %v6076_v57, %v5203_v56  ;;  %v5206_v42 = vadd.f32 %v5967_v30, %v8392_v16 }
 0x558   : > { %5406 = vst [vmem:[%s8398_s23 + $0xe0] sm:$0xff] %v5364_v11  ;;  %v5367_v45 = vadd.f32 %v6079_v28, %v5206_v42  ;;  %v5968_v34 = vpop.f32.mrb[252].mxu0  ;;  %v6080_v4 = vpop.f32.mrb[252].mxu1 }
 0x559   : > { %v5969_v23 = vpop.f32.mrb[253].mxu0  ;;  %v6081_v27 = vpop.f32.mrb[253].mxu1 }
 0x55a   : > { %5407 = vst [vmem:[%s8398_s23 + $0xe8] sm:$0xff] %v5367_v45  ;;  %v5970_v25 = vadd.f32 %v5969_v23, %v5968_v34  ;;  %v6082_v58 = vadd.f32 %v6081_v27, %v6080_v4  ;;  %v5971_v12 = vpop.f32.mrb[254].mxu0  ;;  %v6083_v14 = vpop.f32.mrb[254].mxu1 }
 0x55b   : > { %v5972_v44 = vpop.f32.mrb[255].mxu0  ;;  %v6084_v6 = vpop.f32.mrb[255].mxu1 }
 0x55c   : > { %v5211_v15 = vadd.f32 %v5970_v25, %v8392_v16  ;;  %v5973_v26 = vadd.f32 %v5972_v44, %v5971_v12  ;;  %v6085_v52 = vadd.f32 %v6084_v6, %v6083_v14 }
 0x55e   : > { %v5372_v35 = vadd.f32 %v6082_v58, %v5211_v15  ;;  %v5214_v21 = vadd.f32 %v5973_v26, %v8392_v16 }
 0x560   : > { %5408 = vst [vmem:[%s8398_s23 + $0xf0] sm:$0xff] %v5372_v35  ;;  %v5375_v32 = vadd.f32 %v6085_v52, %v5214_v21 }
 0x562   : > { %5409 = vst [vmem:[%s8398_s23 + $0xf8] sm:$0xff] %v5375_v32 }
 0x563   : > { %7212 = shalt.err (!%p7209_p11)
}
 0x564   : > { %s7213_s18 = scalar_lea.hbm %s8465_s21, 4096  ;;  %s7217_s17 = scalar_lea.hbm %s8523_s9, 8192 }
 0x565   : > { %p7214_p13 = scmp.ne.s32.totalorder %s8465_s21, %s7213_s18  ;;  %p7218_p6 = scmp.lt.u32.totalorder %s8465_s21, %s8523_s9 }
 0x566   : > { %p7219_p9 = scmp.lt.u32.totalorder %s7217_s17, %s7213_s18  ;;  %p7221_p10 = scmp.lt.u32.totalorder %s7213_s18, %s8465_s21 }
 0x567   : > { %p7215_p5 = pnand %p7214_p13, %p8542_p1 }
 0x568   : > { %p7220_p12 = por %p7219_p9, %p7218_p6 }
 0x569   : > { %p7216_p0 = pneg %p7215_p5 }
 0x56a   : > { %p7222_p2 = por %p7221_p10, %p7220_p12 }
 0x56c   : > { %p7223_p3 = pnand %p7222_p2, %p7216_p0 }
 0x56e   : > { %7226 = shalt.err (!%p7223_p3)
}
 0x56f   : > { %s7277_s25 = smov 128   ;;  %s7278_s27 = smov 8  }
 0x570   : > { %6606 = dma.vmem_to_hbm [thread:$0]  (%p8542_p1), %s8467_s11, 4096, %s8465_s21, %s8473_s24, %s7277_s25, %s7277_s25, %s7278_s27  }
 0x571 PF: > { %p6623_p4 = scmp.ge.s32.totalorder %s7269_s12, 2  ;;  %s5439_s15 = sand.u32 1, %s7257_s30  }
 0x572   : > { %p8543_p7 = scmp.ne.s32.totalorder %s8534_s20, 0  ;;  %s5440_s13 = scalar_lea.sflag [#allocation4], %s5439_s15 }
 0x574   : > { %p6616_p8 = pnand %p6623_p4, %p8543_p7 }
 0x576   : > { %7252 = dma.done.wait (!%p6616_p8), %s5440_s13, 4096  }
 0x577   : > { %7254 = vsyncadd (!%p6616_p8), %s5440_s13, 4294963200  ;;  %s8544_s12 = sld [smem:[#allocation12_spill]]  ;;  %s8545_s26 = sld [smem:[#allocation11_spill]] }
 0x578   : > { %s8546_s11 = sld [smem:[#allocation13_spill]]  ;;  %s8547_s30 = smov %s7261_s10 }
 0x57d   : > { %p21_p11 = scmp.ge.s32.totalorder %s8544_s12, 4   ;;  %s8548_s10 = smov %s8545_s26 }
 0x57f   :  { %23 = sbr.rel (!%p21_p11) target bundleno = 5 (0x5), region = 100 }
 0x586   :  { %5445 = vsyncpa [#allocation3], 1 }
 0x587   :  { %5447 = vsyncpa [#allocation3 + $0x1], 1 }
 0x588   :  { %5448 = vsyncpa [#allocation6], 1 }
 0x589   :  { %5449 = vsyncpa [#allocation4], 1 }
 0x58a   :  { %5451 = vsyncpa [#allocation4 + $0x1], 1 }

</bundles_post_ra>
